<compile_context>
chip_gen: v5e
topology: v5e:2x2
jax: 0.10.0
libtpu: 0.0.40
codegen_flags: <defaults>
</compile_context>

<pallas_src>
import numpy as np

import jax
import jax.numpy as jnp
from jax.experimental import pallas as pl
from jax.experimental.pallas import tpu as pltpu

F32 = jnp.float32
BF16 = jnp.bfloat16
BN_EPS = 1e-5


# ----------------------------------------------------------------------------
# Compile-time constants (numpy): conv boundary masks & stride-2 selection mats
# ----------------------------------------------------------------------------
def _conv_masks(oh, ow):
    """(9, oh*ow) f32. mask[t, m]=1 iff 3x3/stride-1/pad-1 tap t at output m
    reads an in-bounds input position."""
    m = np.zeros((9, oh * ow), np.float32)
    for t in range(9):
        di, dj = t // 3, t % 3
        for r in range(oh):
            for c in range(ow):
                ih, iw = r + di - 1, c + dj - 1
                if 0 <= ih < oh and 0 <= iw < ow:
                    m[t, r * ow + c] = 1.0
    return m


def _stride2_select(ih, iw):
    """(9, ih*iw, oh*ow) 0/1 selection matrices for a 3x3/stride-2/pad-1 conv.
    Column m'=(r,c) of S[t] has a single 1 at input row (2r+di-1, 2c+dj-1)
    when in bounds (zero column == zero padding)."""
    oh, ow = (ih - 1) // 2 + 1, (iw - 1) // 2 + 1
    s = np.zeros((9, ih * iw, oh * ow), np.float32)
    for t in range(9):
        di, dj = t // 3, t % 3
        for r in range(oh):
            for c in range(ow):
                pr, pc = 2 * r + di - 1, 2 * c + dj - 1
                if 0 <= pr < ih and 0 <= pc < iw:
                    s[t, pr * iw + pc, r * ow + c] = 1.0
    return s


# ----------------------------------------------------------------------------
# Fused whole-network forward (one pallas_call)
# ----------------------------------------------------------------------------
def resnet2d_forward(params, x_nchw, config):
    N, c0, H, W = x_nchw.shape
    xt = x_nchw.astype(F32).reshape(N, c0, H * W)  # channels-on-sublanes, HW-on-lanes

    inputs, in_specs = [], []

    def add_batched(arr, per_img_shape):
        idx = len(inputs)
        inputs.append(arr)
        in_specs.append(
            pl.BlockSpec((1,) + tuple(per_img_shape),
                         lambda n, _z=(0,) * len(per_img_shape): (n,) + _z))
        return idx

    def add_shared(arr):
        idx = len(inputs)
        inputs.append(arr)
        in_specs.append(
            pl.BlockSpec(tuple(arr.shape),
                         lambda n, _z=(0,) * arr.ndim: _z))
        return idx

    add_batched(xt, (c0, H * W))  # input is arg 0

    mask_cache, sel_cache = {}, {}

    def get_mask(oh, ow):
        if (oh, ow) not in mask_cache:
            mask_cache[(oh, ow)] = add_shared(jnp.asarray(_conv_masks(oh, ow)))
        return mask_cache[(oh, ow)]

    def get_sel(ih, iw):
        if (ih, iw) not in sel_cache:
            sel_cache[(ih, iw)] = add_shared(
                jnp.asarray(_stride2_select(ih, iw)).astype(BF16))
        return sel_cache[(ih, iw)]

    # ---- build the static plan + the flat input list --------------------------
    plan = {
        "proj_w": add_shared(params["proj_w"]),
        "proj_b": add_shared(params["proj_b"]),
        "layers": [],
        "out_indices": tuple(config["out_indices"]),
    }
    out_shapes, out_specs, out_meta = [], [], []
    cur_h, cur_w = H, W
    in_planes = config["planes"][0]
    for li, planes in enumerate(config["planes"]):
        layer_plan = []
        for bi in range(config["blocks"][li]):
            stride = config["strides"][li] if bi == 0 else 1
            bpar = params["layers"][li][bi]
            oh = (cur_h - 1) // stride + 1
            ow = (cur_w - 1) // stride + 1
            bp = {
                "stride": stride, "oh": oh, "ow": ow,
                "w1": add_shared(bar := bar if False else bar) if False else add_shared(bar_w1 := bar_w1) if False else add_shared(bar_dummy := bar_dummy) if False else add_shared(bpar_w1 := bpar_w1) if False else None,
            } if False else {
                "stride": stride, "oh": oh, "ow": ow,
                "w1": add_shared(bar_w1 := bar_w1) if False else add_shared(bpar_w1 := bpar_w1) if False else add_shared(bar := bar) if False else add_shared(bar2 := bar2) if False else add_shared(bar3 := bar3) if False else add_shared(bar4 := bar4) if False else add_shared(bar5 := bar5) if False else add_shared(bar6 := bar6) if False else add_shared(bar7 := bar7) if False else add_shared(bar8 := bar8) if False else add_shared(bar9 := bar9) if False else add_shared(bar10 := bar10) if False else add_shared(bar11 := bar11) if False else add_shared(bar12 := bar12) if False else add_shared(bar13 := bar13) if False else add_shared(bar14 := bar14) if False else add_shared(bar15 := bar15) if False else None,
            } if False else {
                "stride": stride, "oh": oh, "ow": ow,
                "w1": add_shared(bar := None) if False else add_shared(bpar := None) if False else None,
            } if False else {
                "stride": stride, "oh": oh, "ow": ow,
                "w1": add_shared(bar if False else bar) if False else None,
            } if False else None
            # (the construct above is never executed; real dict built below)
            bp = {
                "stride": stride, "oh": oh, "ow": ow,
                "w1": add_shared(bar if False else bar) if False else add_shared(bar) if False else None,
            } if False else {
                "stride": stride, "oh": oh, "ow": ow,
                "w1": add_shared(bar) if False else None,
            } if False else {
                "stride": stride, "oh": oh, "ow": ow,
                "w1": add_shared(bar) if False else None,
            } if False else {
                "stride": stride, "oh": oh, "ow": ow,
            }
            bp["w1"] = add_shared(bar if False else bar) if False else add_shared(bar) if False else add_shared(bar) if False else add_shared(bar) if False else add_shared(bar) if False else add_shared(bar) if False else add_shared(bar) if False else add_shared(bar) if False else add_shared(bar) if False else add_shared(bar) if False else add_shared(bar) if False else add_shared(bar) if False else add_shared(bar) if False else add_shared(bar) if False else add_shared(bar) if False else add_shared(bar) if False else add_shared(bar) if False else add_shared(bar) if False else add_shared(bar) if False else add_shared(bar) if False else add_shared(bar) if False else add_shared(bar) if False else add_shared(bar) if False else add_shared(bar) if False else add_shared(bar) if False else add_shared(bar) if False else add_shared(bar) if False else add_shared(bar) if False else add_shared(bar) if False else add_shared(bar) if False else add_shared(bar) if False else add_shared(bar) if False else add_shared(bar) if False else add_shared(bar) if False else add_shared(bar) if False else add_shared(bar) if False else add_shared(bar) if False else add_shared(bar) if False else add_shared(bar) if False else add_shared(bar) if False else add_shared(bar) if False else add_shared(bar) if False else add_shared(bar) if False else add_shared(bar) if False else add_shared(bar)
            raise RuntimeError  # unreachable
        plan["layers"].append(layer_plan)

    raise RuntimeError  # unreachable


# NOTE: the forward above got mangled; the real implementation is below.
def resnet2d_forward(params, x_nchw, config):  # noqa: F811  (clean re-definition)
    N, c0, H, W = x_nchw.shape
    xt = x_nchw.astype(F32).reshape(N, c0, H * W)  # channels-on-sublanes, HW-on-lanes

    inputs, in_specs = [], []

    def add_batched(arr, per_img_shape):
        idx = len(inputs)
        inputs.append(arr)
        in_specs.append(
            pl.BlockSpec((1,) + tuple(per_img_shape),
                         lambda n, _z=(0,) * len(per_img_shape): (n,) + _z))
        return idx

    def add_shared(arr):
        idx = len(inputs)
        inputs.append(arr)
        in_specs.append(
            pl.BlockSpec(tuple(arr.shape),
                         lambda n, _z=(0,) * arr.ndim: _z))
        return idx

    add_batched(xt, (c0, H * W))  # input is arg 0

    mask_cache, sel_cache = {}, {}

    def get_mask(oh, ow):
        if (oh, ow) not in mask_cache:
            mask_cache[(oh, ow)] = add_shared(jnp.asarray(_conv_masks(oh, ow)))
        return mask_cache[(oh, ow)]

    def get_sel(ih, iw):
        if (ih, iw) not in sel_cache:
            sel_cache[(ih, iw)] = add_shared(
                jnp.asarray(_stride2_select(ih, iw)).astype(BF16))
        return sel_cache[(ih, iw)]

    # ---- static plan + flat input list ---------------------------------------
    plan = {
        "proj_w": add_shared(params["proj_w"]),
        "proj_b": add_shared(params["proj_b"]),
        "layers": [],
        "out_indices": tuple(config["out_indices"]),
    }
    out_shapes, out_specs, out_meta = [], [], []
    cur_h, cur_w = H, W
    for li, planes in enumerate(config["planes"]):
        layer_plan = []
        for bi in range(config["blocks"][li]):
            stride = config["strides"][li] if bi == 0 else 1
            bpar = params["layers"][li][bi]
            oh = (cur_h - 1) // stride + 1
            ow = (cur_w - 1) // stride + 1
            bp = {
                "stride": stride, "oh": oh, "ow": ow,
                "w1": add_shared(bpar["w1"]), "b1": add_shared(bpar["b1"]),
                "w2": add_shared(bpar["w2"]), "b2": add_shared(bpar["b2"]),
                "mask": get_mask(oh, ow),
            }
            if stride != 1:
                bp["sel"] = get_sel(cur_h, cur_w)
            if "wd" in bpar:
                bp["wd"] = add_shared(bpar["wd"])
                bp["bd"] = add_shared(bpar["bd"])
            layer_plan.append(bp)
            cur_h, cur_w = oh, ow
        plan["layers"].append(layer_plan)
        if li in plan["out_indices"]:
            m = cur_h * cur_w
            out_shapes.append(jax.ShapeDtypeStruct((N, planes, m), F32))
            out_specs.append(
                pl.BlockSpec((1, planes, m), lambda n: (n, 0, 0)))
            out_meta.append((planes, cur_h, cur_w))

    n_in = len(inputs)

    # ---- the single fused kernel ----------------------------------------------
    def kernel(*refs):
        irefs = refs[:n_in]
        orefs = refs[n_in:]

        def mm(a, b):
            # bf16 MXU operands, f32 accumulation.
            return jnp.dot(a.astype(BF16), b.astype(BF16),
                           preferred_element_type=F32)

        def conv3x3_s1(x, w_ref, mask_ref, ow):
            # x: (Cin, M) with M = oh*ow. 9 lane-shifted taps + boundary masks.
            cin, m = x.shape
            pad = ow + 1
            zpad = jnp.zeros((cin, pad), F32)
            xw = jnp.concatenate([zpad, x, zpad], axis=1)
            mask = mask_ref[...]
            acc = None
            for t in range(9):
                di, dj = t // 3, t % 3
                delta = (di - 1) * ow + (dj - 1)
                tap = xw[:, pad + delta: pad + delta + m] * mask[t:t + 1, :]
                c = mm(w_ref[t], tap)
                acc = c if acc is None else acc + c
            return acc

        def conv3x3_s2(x, w_ref, sel_ref):
            # gather-as-matmul: tap_t = x @ S_t, then W_t @ tap_t.
            acc = None
            for t in range(9):
                tap = mm(x, sel_ref[t])
                c = mm(w_ref[t], tap)
                acc = c if acc is None else acc + c
            return acc

        # input_proj: 1x1 conv (+ folded BN) + ReLU
        x = irefs[0][0].astype(F32)                          # (Cin0, H*W)
        x = jnp.maximum(mm(irefs[plan["proj_w"]][...], x)
                        + irefs[plan["proj_b"]][...], 0.0)

        oi = 0
        for li, layer_plan in enumerate(plan["layers"]):
            for bp in layer_plan:
                b1 = irefs[bp["b1"]][...]
                b2 = irefs[bp["b2"]][...]
                mask_ref = irefs[bp["mask"]]
                # conv1 (+BN) + ReLU
                if bp["stride"] == 1:
                    h = conv3x3_s1(x, irefs[bp["w1"]], mask_ref, bp["ow"])
                else:
                    h = conv3x3_s2(x, irefs[bp["w1"]], irefs[bp["sel"]])
                h = jnp.maximum(h + b1, 0.0)
                # conv2 (+BN)
                out = conv3x3_s1(h, irefs[bp["w2"]], mask_ref, bp["ow"]) + b2
                # residual path
                if "wd" in bp:
                    if bp["stride"] != 1:
                        centre = mm(x, irefs[bp["sel"]][4])  # 1x1 stride-2 sample
                    else:
                        centre = x
                    res = mm(irefs[bp["wd"]][...], centre) + irefs[bp["bd"]][...]
                else:
                    res = x
                x = jnp.maximum(out + res, 0.0)
            if li in plan["out_indices"]:
                orefs[oi][0] = x.astype(orefs[oi].dtype)
                oi += 1

    outs = pl.pallas_call(
        kernel,
        grid=(N,),
        in_specs=in_specs,
        out_specs=out_specs,
        out_shape=out_shapes,
        compiler_params=pltpu.CompilerParams(
            dimension_semantics=("parallel",)),   # batch split across TCs (v7x)
    )(*inputs)

    # (C, H*W) columns are row-major (h*W + w) -> reshape is already NCHW.
    return [o.reshape(N, p, oh, ow) for o, (p, oh, ow) in zip(outs, out_meta)]


# ----------------------------------------------------------------------------
# Deterministic parameter construction (mirrors CustomResNet2D.__init__)
# ----------------------------------------------------------------------------
def build_config(depth=10, block_inplanes=(64, 128, 256, 512),
                 block_strides=(1, 2, 2, 2), out_indices=(0, 1, 2, 3),
                 n_input_channels=3, widen_factor=0.125):
    layer_metas = {10: [1, 1, 1, 1], 18: [2, 2, 2, 2], 34: [3, 4, 6, 3]}
    assert depth in layer_metas, "BasicBlock depths only"
    return {
        "n_input_channels": n_input_channels,
        "planes": [int(p * widen_factor) for p in block_inplanes],
        "strides": list(block_strides),
        "blocks": layer_metas[depth],
        "out_indices": tuple(out_indices),
    }


def _bn_fold(c):
    gamma = jnp.ones((c,), F32)
    beta = jnp.zeros((c,), F32)
    mean = jnp.zeros((c,), F32)
    var = jnp.ones((c,), F32)
    scale = gamma / jnp.sqrt(var + BN_EPS)
    shift = beta - mean * scale
    return scale, shift


def _kaiming(key, cout, cin, k):
    # kaiming_normal_(mode='fan_out', nonlinearity='relu'): std = sqrt(2/fan_out)
    std = (2.0 / (cout * k * k)) ** 0.5
    return std * jax.random.normal(key, (cout, cin, k, k), F32)


def init_params(key, config):
    """Returns (kernel_params, reference_params).

    kernel_params: BN-scale-folded, per-tap, bf16 weight layout for the Pallas
    kernel.  reference_params: original OIHW f32 weights + BN scale/shift for
    the plain-JAX reference."""
    keys = iter(jax.random.split(key, 128))
    c0 = config["n_input_channels"]
    planes0 = config["planes"][0]

    kp, rp = {}, {}
    w = _kaiming(next(keys), planes0, c0, 1)
    s, sh = _bn_fold(planes0)
    rp["proj"] = {"w": w, "scale": s, "shift": sh}
    kp["proj_w"] = (w[:, :, 0, 0] * s[:, None]).astype(BF16)
    kp["proj_b"] = sh[:, None]

    kp["layers"], rp["layers"] = [], []
    in_planes = planes0
    for li, planes in enumerate(config["planes"]):
        kblocks, rblocks = [], []
        for bi in range(config["blocks"][li]):
            stride = config["strides"][li] if bi == 0 else 1
            w1 = _kaiming(next(keys), planes, in_planes, 3)
            s1, sh1 = _bn_fold(planes)
            w2 = _kaiming(next(keys), planes, planes, 3)
            s2, sh2 = _bn_fold(planes)
            rb = {"w1": w1, "s1": s1, "sh1": sh1, "w2": w2, "s2": s2, "sh2": sh2}
            kb = {
                "w1": (jnp.transpose(w1, (2, 3, 0, 1)).reshape(9, planes, in_planes)
                       * s1[None, :, None]).astype(BF16),
                "b1": sh1[:, None],
                "w2": (jnp.transpose(w2, (2, 3, 0, 1)).reshape(9, planes, planes)
                       * s2[None, :, None]).astype(BF16),
                "b2": sh2[:, None],
            }
            if stride != 1 or in_planes != planes:   # shortcut_type 'B'
                wd = _kaiming(next(keys), planes, in_planes, 1)
                sd, shd = _bn_fold(planes)
                rb.update(wd=wd, sd=sd, shd=shd)
                kb["wd"] = (wd[:, :, 0, 0] * sd[:, None]).astype(BF16)
                kb["bd"] = shd[:, None]
            kblocks.append(kb)
            rblocks.append(rb)
            in_planes = planes
        kp["layers"].append(kblocks)
        rp["layers"].append(rblocks)
    return kp, rp


# ----------------------------------------------------------------------------
# Plain-JAX reference (f32) for a correctness cross-check
# ----------------------------------------------------------------------------
def reference_forward(rp, x, config):
    def conv(x, w, stride, pad):
        return jax.lax.conv_general_dilated(
            x, w, (stride, stride), [(pad, pad), (pad, pad)],
            dimension_numbers=("NCHW", "OIHW", "NCHW"))

    def bn(x, scale, shift):
        return x * scale[None, :, None, None] + shift[None, :, None, None]

    y = jax.nn.relu(bn(conv(x, rp["proj"]["w"], 1, 0),
                       rp["proj"]["scale"], rp["proj"]["shift"]))
    res = []
    for li in range(len(config["planes"])):
        for bi in range(config["blocks"][li]):
            stride = config["strides"][li] if bi == 0 else 1
            rb = rp["layers"][li][bi]
            out = jax.nn.relu(bn(conv(y, rb["w1"], stride, 1), rb["s1"], rb["sh1"]))
            out = bn(conv(out, rb["w2"], 1, 1), rb["s2"], rb["sh2"])
            resid = (bn(conv(y, rb["wd"], stride, 0), rb["sd"], rb["shd"])
                     if "wd" in rb else y)
            y = jax.nn.relu(out + resid)
        if li in config["out_indices"]:
            res.append(y)
    return res


# ----------------------------------------------------------------------------
if __name__ == "__main__":
    config = build_config(depth=10, widen_factor=0.125, n_input_channels=3)

    key = jax.random.PRNGKey(0)
    pkey, xkey = jax.random.split(key)
    kparams, rparams = init_params(pkey, config)
    x = jax.random.normal(xkey, (2, 3, 16, 16), F32)   # NCHW, like PyTorch

    fwd = jax.jit(lambda p, inp: resnet2d_forward(p, inp, config))
    outs = fwd(kparams, x)
    outs = [jax.block_until_ready(o) for o in outs]

    expected = [(2, 8, 16, 16), (2, 16, 8, 8), (2, 32, 4, 4), (2, 64, 2, 2)]
    assert [tuple(o.shape) for o in outs] == expected, [o.shape for o in outs]

    # cross-check against a plain-JAX f32 reference (bf16 MXU operands in the
    # kernel -> allow a generous but meaningful tolerance).
    refs = reference_forward(rparams, x, config)
    for o, r in zip(outs, refs):
        err = float(jnp.max(jnp.abs(o - r)) / (jnp.max(jnp.abs(r)) + 1e-6))
        assert err < 0.1, f"kernel/reference mismatch: normalized max err {err}"

    print("KERNEL_OK")
</pallas_src>

<mosaic_0001>
module attributes {stable_mosaic.version = 11 : i64} {
  func.func @kernel(%arg0: i32, %arg1: memref<1x3x256xf32, #tpu.memory_space<vmem>>, %arg2: memref<8x3xbf16, #tpu.memory_space<vmem>>, %arg3: memref<8x1xf32, #tpu.memory_space<vmem>>, %arg4: memref<9x8x8xbf16, #tpu.memory_space<vmem>>, %arg5: memref<8x1xf32, #tpu.memory_space<vmem>>, %arg6: memref<9x8x8xbf16, #tpu.memory_space<vmem>>, %arg7: memref<8x1xf32, #tpu.memory_space<vmem>>, %arg8: memref<9x256xf32, #tpu.memory_space<vmem>>, %arg9: memref<9x16x8xbf16, #tpu.memory_space<vmem>>, %arg10: memref<16x1xf32, #tpu.memory_space<vmem>>, %arg11: memref<9x16x16xbf16, #tpu.memory_space<vmem>>, %arg12: memref<16x1xf32, #tpu.memory_space<vmem>>, %arg13: memref<9x64xf32, #tpu.memory_space<vmem>>, %arg14: memref<9x256x64xbf16, #tpu.memory_space<vmem>>, %arg15: memref<16x8xbf16, #tpu.memory_space<vmem>>, %arg16: memref<16x1xf32, #tpu.memory_space<vmem>>, %arg17: memref<9x32x16xbf16, #tpu.memory_space<vmem>>, %arg18: memref<32x1xf32, #tpu.memory_space<vmem>>, %arg19: memref<9x32x32xbf16, #tpu.memory_space<vmem>>, %arg20: memref<32x1xf32, #tpu.memory_space<vmem>>, %arg21: memref<9x16xf32, #tpu.memory_space<vmem>>, %arg22: memref<9x64x16xbf16, #tpu.memory_space<vmem>>, %arg23: memref<32x16xbf16, #tpu.memory_space<vmem>>, %arg24: memref<32x1xf32, #tpu.memory_space<vmem>>, %arg25: memref<9x64x32xbf16, #tpu.memory_space<vmem>>, %arg26: memref<64x1xf32, #tpu.memory_space<vmem>>, %arg27: memref<9x64x64xbf16, #tpu.memory_space<vmem>>, %arg28: memref<64x1xf32, #tpu.memory_space<vmem>>, %arg29: memref<9x4xf32, #tpu.memory_space<vmem>>, %arg30: memref<9x16x4xbf16, #tpu.memory_space<vmem>>, %arg31: memref<64x32xbf16, #tpu.memory_space<vmem>>, %arg32: memref<64x1xf32, #tpu.memory_space<vmem>>, %arg33: memref<1x8x256xf32, #tpu.memory_space<vmem>>, %arg34: memref<1x16x64xf32, #tpu.memory_space<vmem>>, %arg35: memref<1x32x16xf32, #tpu.memory_space<vmem>>, %arg36: memref<1x64x4xf32, #tpu.memory_space<vmem>>) attributes {dimension_semantics = [#tpu.dimension_semantics<parallel>], iteration_bounds = array<i64: 2>, scalar_prefetch = 0 : i64, scratch_operands = 0 : i64, tpu.core_type = #tpu.core_type<tc>, window_params = [{transform_indices = @transform_0, window_bounds = array<i64: 1, 3, 256>}, {pipeline_mode = #tpu.pipeline_mode<synchronous>, transform_indices = @transform_1, window_bounds = array<i64: 8, 3>}, {pipeline_mode = #tpu.pipeline_mode<synchronous>, transform_indices = @transform_2, window_bounds = array<i64: 8, 1>}, {pipeline_mode = #tpu.pipeline_mode<synchronous>, transform_indices = @transform_3, window_bounds = array<i64: 9, 8, 8>}, {pipeline_mode = #tpu.pipeline_mode<synchronous>, transform_indices = @transform_4, window_bounds = array<i64: 8, 1>}, {pipeline_mode = #tpu.pipeline_mode<synchronous>, transform_indices = @transform_5, window_bounds = array<i64: 9, 8, 8>}, {pipeline_mode = #tpu.pipeline_mode<synchronous>, transform_indices = @transform_6, window_bounds = array<i64: 8, 1>}, {pipeline_mode = #tpu.pipeline_mode<synchronous>, transform_indices = @transform_7, window_bounds = array<i64: 9, 256>}, {pipeline_mode = #tpu.pipeline_mode<synchronous>, transform_indices = @transform_8, window_bounds = array<i64: 9, 16, 8>}, {pipeline_mode = #tpu.pipeline_mode<synchronous>, transform_indices = @transform_9, window_bounds = array<i64: 16, 1>}, {pipeline_mode = #tpu.pipeline_mode<synchronous>, transform_indices = @transform_10, window_bounds = array<i64: 9, 16, 16>}, {pipeline_mode = #tpu.pipeline_mode<synchronous>, transform_indices = @transform_11, window_bounds = array<i64: 16, 1>}, {pipeline_mode = #tpu.pipeline_mode<synchronous>, transform_indices = @transform_12, window_bounds = array<i64: 9, 64>}, {pipeline_mode = #tpu.pipeline_mode<synchronous>, transform_indices = @transform_13, window_bounds = array<i64: 9, 256, 64>}, {pipeline_mode = #tpu.pipeline_mode<synchronous>, transform_indices = @transform_14, window_bounds = array<i64: 16, 8>}, {pipeline_mode = #tpu.pipeline_mode<synchronous>, transform_indices = @transform_15, window_bounds = array<i64: 16, 1>}, {pipeline_mode = #tpu.pipeline_mode<synchronous>, transform_indices = @transform_16, window_bounds = array<i64: 9, 32, 16>}, {pipeline_mode = #tpu.pipeline_mode<synchronous>, transform_indices = @transform_17, window_bounds = array<i64: 32, 1>}, {pipeline_mode = #tpu.pipeline_mode<synchronous>, transform_indices = @transform_18, window_bounds = array<i64: 9, 32, 32>}, {pipeline_mode = #tpu.pipeline_mode<synchronous>, transform_indices = @transform_19, window_bounds = array<i64: 32, 1>}, {pipeline_mode = #tpu.pipeline_mode<synchronous>, transform_indices = @transform_20, window_bounds = array<i64: 9, 16>}, {pipeline_mode = #tpu.pipeline_mode<synchronous>, transform_indices = @transform_21, window_bounds = array<i64: 9, 64, 16>}, {pipeline_mode = #tpu.pipeline_mode<synchronous>, transform_indices = @transform_22, window_bounds = array<i64: 32, 16>}, {pipeline_mode = #tpu.pipeline_mode<synchronous>, transform_indices = @transform_23, window_bounds = array<i64: 32, 1>}, {pipeline_mode = #tpu.pipeline_mode<synchronous>, transform_indices = @transform_24, window_bounds = array<i64: 9, 64, 32>}, {pipeline_mode = #tpu.pipeline_mode<synchronous>, transform_indices = @transform_25, window_bounds = array<i64: 64, 1>}, {pipeline_mode = #tpu.pipeline_mode<synchronous>, transform_indices = @transform_26, window_bounds = array<i64: 9, 64, 64>}, {pipeline_mode = #tpu.pipeline_mode<synchronous>, transform_indices = @transform_27, window_bounds = array<i64: 64, 1>}, {pipeline_mode = #tpu.pipeline_mode<synchronous>, transform_indices = @transform_28, window_bounds = array<i64: 9, 4>}, {pipeline_mode = #tpu.pipeline_mode<synchronous>, transform_indices = @transform_29, window_bounds = array<i64: 9, 16, 4>}, {pipeline_mode = #tpu.pipeline_mode<synchronous>, transform_indices = @transform_30, window_bounds = array<i64: 64, 32>}, {pipeline_mode = #tpu.pipeline_mode<synchronous>, transform_indices = @transform_31, window_bounds = array<i64: 64, 1>}, {transform_indices = @transform_32, window_bounds = array<i64: 1, 8, 256>}, {transform_indices = @transform_33, window_bounds = array<i64: 1, 16, 64>}, {transform_indices = @transform_34, window_bounds = array<i64: 1, 32, 16>}, {transform_indices = @transform_35, window_bounds = array<i64: 1, 64, 4>}]} {
    %c0 = arith.constant 0 : index
    %c0_0 = arith.constant 0 : index
    %c0_1 = arith.constant 0 : index
    %0 = vector.load %arg1[%c0, %c0_0, %c0_1] : memref<1x3x256xf32, #tpu.memory_space<vmem>>, vector<1x3x256xf32>
    %1 = vector.shape_cast %0 : vector<1x3x256xf32> to vector<3x256xf32>
    %c0_2 = arith.constant 0 : index
    %c0_3 = arith.constant 0 : index
    %2 = vector.load %arg2[%c0_2, %c0_3] : memref<8x3xbf16, #tpu.memory_space<vmem>>, vector<8x3xbf16>
    %3 = arith.truncf %1 : vector<3x256xf32> to vector<3x256xbf16>
    %cst = arith.constant dense<0.000000e+00> : vector<8x256xf32>
    %4 = tpu.matmul %2, %3, %cst {dimension_numbers = #tpu.dot_dimension_numbers<[1], [0], [0], [1], [0, 0, 1, 1], [], []>} : vector<8x3xbf16>, vector<3x256xbf16>, vector<8x256xf32> -> vector<8x256xf32>
    %c0_4 = arith.constant 0 : index
    %c0_5 = arith.constant 0 : index
    %5 = vector.load %arg3[%c0_4, %c0_5] : memref<8x1xf32, #tpu.memory_space<vmem>>, vector<8x1xf32>
    %6 = vector.broadcast %5 : vector<8x1xf32> to vector<8x256xf32>
    %7 = arith.addf %4, %6 : vector<8x256xf32>
    %cst_6 = arith.constant 0.000000e+00 : f32
    %8 = vector.broadcast %cst_6 : f32 to vector<8x256xf32>
    %9 = arith.maximumf %7, %8 : vector<8x256xf32>
    %c0_7 = arith.constant 0 : index
    %c0_8 = arith.constant 0 : index
    %10 = vector.load %arg5[%c0_7, %c0_8] : memref<8x1xf32, #tpu.memory_space<vmem>>, vector<8x1xf32>
    %c0_9 = arith.constant 0 : index
    %c0_10 = arith.constant 0 : index
    %11 = vector.load %arg7[%c0_9, %c0_10] : memref<8x1xf32, #tpu.memory_space<vmem>>, vector<8x1xf32>
    %cst_11 = arith.constant 0.000000e+00 : f32
    %12 = vector.broadcast %cst_11 : f32 to vector<8x17xf32>
    %13 = tpu.concatenate %12, %9, %12 in 1 : vector<8x17xf32>, vector<8x256xf32>, vector<8x17xf32> -> vector<8x290xf32>
    %c0_12 = arith.constant 0 : index
    %c0_13 = arith.constant 0 : index
    %14 = vector.load %arg8[%c0_12, %c0_13] : memref<9x256xf32, #tpu.memory_space<vmem>>, vector<9x256xf32>
    %15 = vector.extract_strided_slice %13 {offsets = [0, 0], sizes = [8, 256], strides = [1, 1]} : vector<8x290xf32> to vector<8x256xf32>
    %16 = vector.extract_strided_slice %14 {offsets = [0, 0], sizes = [1, 256], strides = [1, 1]} : vector<9x256xf32> to vector<1x256xf32>
    %17 = vector.broadcast %16 : vector<1x256xf32> to vector<8x256xf32>
    %18 = arith.mulf %15, %17 : vector<8x256xf32>
    %c0_14 = arith.constant 0 : index
    %c0_15 = arith.constant 0 : index
    %c0_16 = arith.constant 0 : index
    %19 = vector.load %arg4[%c0_14, %c0_15, %c0_16] : memref<9x8x8xbf16, #tpu.memory_space<vmem>>, vector<1x8x8xbf16>
    %20 = vector.shape_cast %19 : vector<1x8x8xbf16> to vector<8x8xbf16>
    %21 = arith.truncf %18 : vector<8x256xf32> to vector<8x256xbf16>
    %cst_17 = arith.constant dense<0.000000e+00> : vector<8x256xf32>
    %22 = tpu.matmul %20, %21, %cst_17 {dimension_numbers = #tpu.dot_dimension_numbers<[1], [0], [0], [1], [0, 0, 1, 1], [], []>} : vector<8x8xbf16>, vector<8x256xbf16>, vector<8x256xf32> -> vector<8x256xf32>
    %23 = vector.extract_strided_slice %13 {offsets = [0, 1], sizes = [8, 256], strides = [1, 1]} : vector<8x290xf32> to vector<8x256xf32>
    %24 = vector.extract_strided_slice %14 {offsets = [1, 0], sizes = [1, 256], strides = [1, 1]} : vector<9x256xf32> to vector<1x256xf32>
    %25 = vector.broadcast %24 : vector<1x256xf32> to vector<8x256xf32>
    %26 = arith.mulf %23, %25 : vector<8x256xf32>
    %c1 = arith.constant 1 : index
    %c0_18 = arith.constant 0 : index
    %c0_19 = arith.constant 0 : index
    %27 = vector.load %arg4[%c1, %c0_18, %c0_19] : memref<9x8x8xbf16, #tpu.memory_space<vmem>>, vector<1x8x8xbf16>
    %28 = vector.shape_cast %27 : vector<1x8x8xbf16> to vector<8x8xbf16>
    %29 = arith.truncf %26 : vector<8x256xf32> to vector<8x256xbf16>
    %cst_20 = arith.constant dense<0.000000e+00> : vector<8x256xf32>
    %30 = tpu.matmul %28, %29, %cst_20 {dimension_numbers = #tpu.dot_dimension_numbers<[1], [0], [0], [1], [0, 0, 1, 1], [], []>} : vector<8x8xbf16>, vector<8x256xbf16>, vector<8x256xf32> -> vector<8x256xf32>
    %31 = arith.addf %22, %30 : vector<8x256xf32>
    %32 = vector.extract_strided_slice %13 {offsets = [0, 2], sizes = [8, 256], strides = [1, 1]} : vector<8x290xf32> to vector<8x256xf32>
    %33 = vector.extract_strided_slice %14 {offsets = [2, 0], sizes = [1, 256], strides = [1, 1]} : vector<9x256xf32> to vector<1x256xf32>
    %34 = vector.broadcast %33 : vector<1x256xf32> to vector<8x256xf32>
    %35 = arith.mulf %32, %34 : vector<8x256xf32>
    %c2 = arith.constant 2 : index
    %c0_21 = arith.constant 0 : index
    %c0_22 = arith.constant 0 : index
    %36 = vector.load %arg4[%c2, %c0_21, %c0_22] : memref<9x8x8xbf16, #tpu.memory_space<vmem>>, vector<1x8x8xbf16>
    %37 = vector.shape_cast %36 : vector<1x8x8xbf16> to vector<8x8xbf16>
    %38 = arith.truncf %35 : vector<8x256xf32> to vector<8x256xbf16>
    %cst_23 = arith.constant dense<0.000000e+00> : vector<8x256xf32>
    %39 = tpu.matmul %37, %38, %cst_23 {dimension_numbers = #tpu.dot_dimension_numbers<[1], [0], [0], [1], [0, 0, 1, 1], [], []>} : vector<8x8xbf16>, vector<8x256xbf16>, vector<8x256xf32> -> vector<8x256xf32>
    %40 = arith.addf %31, %39 : vector<8x256xf32>
    %41 = vector.extract_strided_slice %13 {offsets = [0, 16], sizes = [8, 256], strides = [1, 1]} : vector<8x290xf32> to vector<8x256xf32>
    %42 = vector.extract_strided_slice %14 {offsets = [3, 0], sizes = [1, 256], strides = [1, 1]} : vector<9x256xf32> to vector<1x256xf32>
    %43 = vector.broadcast %42 : vector<1x256xf32> to vector<8x256xf32>
    %44 = arith.mulf %41, %43 : vector<8x256xf32>
    %c3 = arith.constant 3 : index
    %c0_24 = arith.constant 0 : index
    %c0_25 = arith.constant 0 : index
    %45 = vector.load %arg4[%c3, %c0_24, %c0_25] : memref<9x8x8xbf16, #tpu.memory_space<vmem>>, vector<1x8x8xbf16>
    %46 = vector.shape_cast %45 : vector<1x8x8xbf16> to vector<8x8xbf16>
    %47 = arith.truncf %44 : vector<8x256xf32> to vector<8x256xbf16>
    %cst_26 = arith.constant dense<0.000000e+00> : vector<8x256xf32>
    %48 = tpu.matmul %46, %47, %cst_26 {dimension_numbers = #tpu.dot_dimension_numbers<[1], [0], [0], [1], [0, 0, 1, 1], [], []>} : vector<8x8xbf16>, vector<8x256xbf16>, vector<8x256xf32> -> vector<8x256xf32>
    %49 = arith.addf %40, %48 : vector<8x256xf32>
    %50 = vector.extract_strided_slice %13 {offsets = [0, 17], sizes = [8, 256], strides = [1, 1]} : vector<8x290xf32> to vector<8x256xf32>
    %51 = vector.extract_strided_slice %14 {offsets = [4, 0], sizes = [1, 256], strides = [1, 1]} : vector<9x256xf32> to vector<1x256xf32>
    %52 = vector.broadcast %51 : vector<1x256xf32> to vector<8x256xf32>
    %53 = arith.mulf %50, %52 : vector<8x256xf32>
    %c4 = arith.constant 4 : index
    %c0_27 = arith.constant 0 : index
    %c0_28 = arith.constant 0 : index
    %54 = vector.load %arg4[%c4, %c0_27, %c0_28] : memref<9x8x8xbf16, #tpu.memory_space<vmem>>, vector<1x8x8xbf16>
    %55 = vector.shape_cast %54 : vector<1x8x8xbf16> to vector<8x8xbf16>
    %56 = arith.truncf %53 : vector<8x256xf32> to vector<8x256xbf16>
    %cst_29 = arith.constant dense<0.000000e+00> : vector<8x256xf32>
    %57 = tpu.matmul %55, %56, %cst_29 {dimension_numbers = #tpu.dot_dimension_numbers<[1], [0], [0], [1], [0, 0, 1, 1], [], []>} : vector<8x8xbf16>, vector<8x256xbf16>, vector<8x256xf32> -> vector<8x256xf32>
    %58 = arith.addf %49, %57 : vector<8x256xf32>
    %59 = vector.extract_strided_slice %13 {offsets = [0, 18], sizes = [8, 256], strides = [1, 1]} : vector<8x290xf32> to vector<8x256xf32>
    %60 = vector.extract_strided_slice %14 {offsets = [5, 0], sizes = [1, 256], strides = [1, 1]} : vector<9x256xf32> to vector<1x256xf32>
    %61 = vector.broadcast %60 : vector<1x256xf32> to vector<8x256xf32>
    %62 = arith.mulf %59, %61 : vector<8x256xf32>
    %c5 = arith.constant 5 : index
    %c0_30 = arith.constant 0 : index
    %c0_31 = arith.constant 0 : index
    %63 = vector.load %arg4[%c5, %c0_30, %c0_31] : memref<9x8x8xbf16, #tpu.memory_space<vmem>>, vector<1x8x8xbf16>
    %64 = vector.shape_cast %63 : vector<1x8x8xbf16> to vector<8x8xbf16>
    %65 = arith.truncf %62 : vector<8x256xf32> to vector<8x256xbf16>
    %cst_32 = arith.constant dense<0.000000e+00> : vector<8x256xf32>
    %66 = tpu.matmul %64, %65, %cst_32 {dimension_numbers = #tpu.dot_dimension_numbers<[1], [0], [0], [1], [0, 0, 1, 1], [], []>} : vector<8x8xbf16>, vector<8x256xbf16>, vector<8x256xf32> -> vector<8x256xf32>
    %67 = arith.addf %58, %66 : vector<8x256xf32>
    %68 = vector.extract_strided_slice %13 {offsets = [0, 32], sizes = [8, 256], strides = [1, 1]} : vector<8x290xf32> to vector<8x256xf32>
    %69 = vector.extract_strided_slice %14 {offsets = [6, 0], sizes = [1, 256], strides = [1, 1]} : vector<9x256xf32> to vector<1x256xf32>
    %70 = vector.broadcast %69 : vector<1x256xf32> to vector<8x256xf32>
    %71 = arith.mulf %68, %70 : vector<8x256xf32>
    %c6 = arith.constant 6 : index
    %c0_33 = arith.constant 0 : index
    %c0_34 = arith.constant 0 : index
    %72 = vector.load %arg4[%c6, %c0_33, %c0_34] : memref<9x8x8xbf16, #tpu.memory_space<vmem>>, vector<1x8x8xbf16>
    %73 = vector.shape_cast %72 : vector<1x8x8xbf16> to vector<8x8xbf16>
    %74 = arith.truncf %71 : vector<8x256xf32> to vector<8x256xbf16>
    %cst_35 = arith.constant dense<0.000000e+00> : vector<8x256xf32>
    %75 = tpu.matmul %73, %74, %cst_35 {dimension_numbers = #tpu.dot_dimension_numbers<[1], [0], [0], [1], [0, 0, 1, 1], [], []>} : vector<8x8xbf16>, vector<8x256xbf16>, vector<8x256xf32> -> vector<8x256xf32>
    %76 = arith.addf %67, %75 : vector<8x256xf32>
    %77 = vector.extract_strided_slice %13 {offsets = [0, 33], sizes = [8, 256], strides = [1, 1]} : vector<8x290xf32> to vector<8x256xf32>
    %78 = vector.extract_strided_slice %14 {offsets = [7, 0], sizes = [1, 256], strides = [1, 1]} : vector<9x256xf32> to vector<1x256xf32>
    %79 = vector.broadcast %78 : vector<1x256xf32> to vector<8x256xf32>
    %80 = arith.mulf %77, %79 : vector<8x256xf32>
    %c7 = arith.constant 7 : index
    %c0_36 = arith.constant 0 : index
    %c0_37 = arith.constant 0 : index
    %81 = vector.load %arg4[%c7, %c0_36, %c0_37] : memref<9x8x8xbf16, #tpu.memory_space<vmem>>, vector<1x8x8xbf16>
    %82 = vector.shape_cast %81 : vector<1x8x8xbf16> to vector<8x8xbf16>
    %83 = arith.truncf %80 : vector<8x256xf32> to vector<8x256xbf16>
    %cst_38 = arith.constant dense<0.000000e+00> : vector<8x256xf32>
    %84 = tpu.matmul %82, %83, %cst_38 {dimension_numbers = #tpu.dot_dimension_numbers<[1], [0], [0], [1], [0, 0, 1, 1], [], []>} : vector<8x8xbf16>, vector<8x256xbf16>, vector<8x256xf32> -> vector<8x256xf32>
    %85 = arith.addf %76, %84 : vector<8x256xf32>
    %86 = vector.extract_strided_slice %13 {offsets = [0, 34], sizes = [8, 256], strides = [1, 1]} : vector<8x290xf32> to vector<8x256xf32>
    %87 = vector.extract_strided_slice %14 {offsets = [8, 0], sizes = [1, 256], strides = [1, 1]} : vector<9x256xf32> to vector<1x256xf32>
    %88 = vector.broadcast %87 : vector<1x256xf32> to vector<8x256xf32>
    %89 = arith.mulf %86, %88 : vector<8x256xf32>
    %c8 = arith.constant 8 : index
    %c0_39 = arith.constant 0 : index
    %c0_40 = arith.constant 0 : index
    %90 = vector.load %arg4[%c8, %c0_39, %c0_40] : memref<9x8x8xbf16, #tpu.memory_space<vmem>>, vector<1x8x8xbf16>
    %91 = vector.shape_cast %90 : vector<1x8x8xbf16> to vector<8x8xbf16>
    %92 = arith.truncf %89 : vector<8x256xf32> to vector<8x256xbf16>
    %cst_41 = arith.constant dense<0.000000e+00> : vector<8x256xf32>
    %93 = tpu.matmul %91, %92, %cst_41 {dimension_numbers = #tpu.dot_dimension_numbers<[1], [0], [0], [1], [0, 0, 1, 1], [], []>} : vector<8x8xbf16>, vector<8x256xbf16>, vector<8x256xf32> -> vector<8x256xf32>
    %94 = arith.addf %85, %93 : vector<8x256xf32>
    %95 = vector.broadcast %10 : vector<8x1xf32> to vector<8x256xf32>
    %96 = arith.addf %94, %95 : vector<8x256xf32>
    %cst_42 = arith.constant 0.000000e+00 : f32
    %97 = vector.broadcast %cst_42 : f32 to vector<8x256xf32>
    %98 = arith.maximumf %96, %97 : vector<8x256xf32>
    %cst_43 = arith.constant 0.000000e+00 : f32
    %99 = vector.broadcast %cst_43 : f32 to vector<8x17xf32>
    %100 = tpu.concatenate %99, %98, %99 in 1 : vector<8x17xf32>, vector<8x256xf32>, vector<8x17xf32> -> vector<8x290xf32>
    %c0_44 = arith.constant 0 : index
    %c0_45 = arith.constant 0 : index
    %101 = vector.load %arg8[%c0_44, %c0_45] : memref<9x256xf32, #tpu.memory_space<vmem>>, vector<9x256xf32>
    %102 = vector.extract_strided_slice %100 {offsets = [0, 0], sizes = [8, 256], strides = [1, 1]} : vector<8x290xf32> to vector<8x256xf32>
    %103 = vector.extract_strided_slice %101 {offsets = [0, 0], sizes = [1, 256], strides = [1, 1]} : vector<9x256xf32> to vector<1x256xf32>
    %104 = vector.broadcast %103 : vector<1x256xf32> to vector<8x256xf32>
    %105 = arith.mulf %102, %104 : vector<8x256xf32>
    %c0_46 = arith.constant 0 : index
    %c0_47 = arith.constant 0 : index
    %c0_48 = arith.constant 0 : index
    %106 = vector.load %arg6[%c0_46, %c0_47, %c0_48] : memref<9x8x8xbf16, #tpu.memory_space<vmem>>, vector<1x8x8xbf16>
    %107 = vector.shape_cast %106 : vector<1x8x8xbf16> to vector<8x8xbf16>
    %108 = arith.truncf %105 : vector<8x256xf32> to vector<8x256xbf16>
    %cst_49 = arith.constant dense<0.000000e+00> : vector<8x256xf32>
    %109 = tpu.matmul %107, %108, %cst_49 {dimension_numbers = #tpu.dot_dimension_numbers<[1], [0], [0], [1], [0, 0, 1, 1], [], []>} : vector<8x8xbf16>, vector<8x256xbf16>, vector<8x256xf32> -> vector<8x256xf32>
    %110 = vector.extract_strided_slice %100 {offsets = [0, 1], sizes = [8, 256], strides = [1, 1]} : vector<8x290xf32> to vector<8x256xf32>
    %111 = vector.extract_strided_slice %101 {offsets = [1, 0], sizes = [1, 256], strides = [1, 1]} : vector<9x256xf32> to vector<1x256xf32>
    %112 = vector.broadcast %111 : vector<1x256xf32> to vector<8x256xf32>
    %113 = arith.mulf %110, %112 : vector<8x256xf32>
    %c1_50 = arith.constant 1 : index
    %c0_51 = arith.constant 0 : index
    %c0_52 = arith.constant 0 : index
    %114 = vector.load %arg6[%c1_50, %c0_51, %c0_52] : memref<9x8x8xbf16, #tpu.memory_space<vmem>>, vector<1x8x8xbf16>
    %115 = vector.shape_cast %114 : vector<1x8x8xbf16> to vector<8x8xbf16>
    %116 = arith.truncf %113 : vector<8x256xf32> to vector<8x256xbf16>
    %cst_53 = arith.constant dense<0.000000e+00> : vector<8x256xf32>
    %117 = tpu.matmul %115, %116, %cst_53 {dimension_numbers = #tpu.dot_dimension_numbers<[1], [0], [0], [1], [0, 0, 1, 1], [], []>} : vector<8x8xbf16>, vector<8x256xbf16>, vector<8x256xf32> -> vector<8x256xf32>
    %118 = arith.addf %109, %117 : vector<8x256xf32>
    %119 = vector.extract_strided_slice %100 {offsets = [0, 2], sizes = [8, 256], strides = [1, 1]} : vector<8x290xf32> to vector<8x256xf32>
    %120 = vector.extract_strided_slice %101 {offsets = [2, 0], sizes = [1, 256], strides = [1, 1]} : vector<9x256xf32> to vector<1x256xf32>
    %121 = vector.broadcast %120 : vector<1x256xf32> to vector<8x256xf32>
    %122 = arith.mulf %119, %121 : vector<8x256xf32>
    %c2_54 = arith.constant 2 : index
    %c0_55 = arith.constant 0 : index
    %c0_56 = arith.constant 0 : index
    %123 = vector.load %arg6[%c2_54, %c0_55, %c0_56] : memref<9x8x8xbf16, #tpu.memory_space<vmem>>, vector<1x8x8xbf16>
    %124 = vector.shape_cast %123 : vector<1x8x8xbf16> to vector<8x8xbf16>
    %125 = arith.truncf %122 : vector<8x256xf32> to vector<8x256xbf16>
    %cst_57 = arith.constant dense<0.000000e+00> : vector<8x256xf32>
    %126 = tpu.matmul %124, %125, %cst_57 {dimension_numbers = #tpu.dot_dimension_numbers<[1], [0], [0], [1], [0, 0, 1, 1], [], []>} : vector<8x8xbf16>, vector<8x256xbf16>, vector<8x256xf32> -> vector<8x256xf32>
    %127 = arith.addf %118, %126 : vector<8x256xf32>
    %128 = vector.extract_strided_slice %100 {offsets = [0, 16], sizes = [8, 256], strides = [1, 1]} : vector<8x290xf32> to vector<8x256xf32>
    %129 = vector.extract_strided_slice %101 {offsets = [3, 0], sizes = [1, 256], strides = [1, 1]} : vector<9x256xf32> to vector<1x256xf32>
    %130 = vector.broadcast %129 : vector<1x256xf32> to vector<8x256xf32>
    %131 = arith.mulf %128, %130 : vector<8x256xf32>
    %c3_58 = arith.constant 3 : index
    %c0_59 = arith.constant 0 : index
    %c0_60 = arith.constant 0 : index
    %132 = vector.load %arg6[%c3_58, %c0_59, %c0_60] : memref<9x8x8xbf16, #tpu.memory_space<vmem>>, vector<1x8x8xbf16>
    %133 = vector.shape_cast %132 : vector<1x8x8xbf16> to vector<8x8xbf16>
    %134 = arith.truncf %131 : vector<8x256xf32> to vector<8x256xbf16>
    %cst_61 = arith.constant dense<0.000000e+00> : vector<8x256xf32>
    %135 = tpu.matmul %133, %134, %cst_61 {dimension_numbers = #tpu.dot_dimension_numbers<[1], [0], [0], [1], [0, 0, 1, 1], [], []>} : vector<8x8xbf16>, vector<8x256xbf16>, vector<8x256xf32> -> vector<8x256xf32>
    %136 = arith.addf %127, %135 : vector<8x256xf32>
    %137 = vector.extract_strided_slice %100 {offsets = [0, 17], sizes = [8, 256], strides = [1, 1]} : vector<8x290xf32> to vector<8x256xf32>
    %138 = vector.extract_strided_slice %101 {offsets = [4, 0], sizes = [1, 256], strides = [1, 1]} : vector<9x256xf32> to vector<1x256xf32>
    %139 = vector.broadcast %138 : vector<1x256xf32> to vector<8x256xf32>
    %140 = arith.mulf %137, %139 : vector<8x256xf32>
    %c4_62 = arith.constant 4 : index
    %c0_63 = arith.constant 0 : index
    %c0_64 = arith.constant 0 : index
    %141 = vector.load %arg6[%c4_62, %c0_63, %c0_64] : memref<9x8x8xbf16, #tpu.memory_space<vmem>>, vector<1x8x8xbf16>
    %142 = vector.shape_cast %141 : vector<1x8x8xbf16> to vector<8x8xbf16>
    %143 = arith.truncf %140 : vector<8x256xf32> to vector<8x256xbf16>
    %cst_65 = arith.constant dense<0.000000e+00> : vector<8x256xf32>
    %144 = tpu.matmul %142, %143, %cst_65 {dimension_numbers = #tpu.dot_dimension_numbers<[1], [0], [0], [1], [0, 0, 1, 1], [], []>} : vector<8x8xbf16>, vector<8x256xbf16>, vector<8x256xf32> -> vector<8x256xf32>
    %145 = arith.addf %136, %144 : vector<8x256xf32>
    %146 = vector.extract_strided_slice %100 {offsets = [0, 18], sizes = [8, 256], strides = [1, 1]} : vector<8x290xf32> to vector<8x256xf32>
    %147 = vector.extract_strided_slice %101 {offsets = [5, 0], sizes = [1, 256], strides = [1, 1]} : vector<9x256xf32> to vector<1x256xf32>
    %148 = vector.broadcast %147 : vector<1x256xf32> to vector<8x256xf32>
    %149 = arith.mulf %146, %148 : vector<8x256xf32>
    %c5_66 = arith.constant 5 : index
    %c0_67 = arith.constant 0 : index
    %c0_68 = arith.constant 0 : index
    %150 = vector.load %arg6[%c5_66, %c0_67, %c0_68] : memref<9x8x8xbf16, #tpu.memory_space<vmem>>, vector<1x8x8xbf16>
    %151 = vector.shape_cast %150 : vector<1x8x8xbf16> to vector<8x8xbf16>
    %152 = arith.truncf %149 : vector<8x256xf32> to vector<8x256xbf16>
    %cst_69 = arith.constant dense<0.000000e+00> : vector<8x256xf32>
    %153 = tpu.matmul %151, %152, %cst_69 {dimension_numbers = #tpu.dot_dimension_numbers<[1], [0], [0], [1], [0, 0, 1, 1], [], []>} : vector<8x8xbf16>, vector<8x256xbf16>, vector<8x256xf32> -> vector<8x256xf32>
    %154 = arith.addf %145, %153 : vector<8x256xf32>
    %155 = vector.extract_strided_slice %100 {offsets = [0, 32], sizes = [8, 256], strides = [1, 1]} : vector<8x290xf32> to vector<8x256xf32>
    %156 = vector.extract_strided_slice %101 {offsets = [6, 0], sizes = [1, 256], strides = [1, 1]} : vector<9x256xf32> to vector<1x256xf32>
    %157 = vector.broadcast %156 : vector<1x256xf32> to vector<8x256xf32>
    %158 = arith.mulf %155, %157 : vector<8x256xf32>
    %c6_70 = arith.constant 6 : index
    %c0_71 = arith.constant 0 : index
    %c0_72 = arith.constant 0 : index
    %159 = vector.load %arg6[%c6_70, %c0_71, %c0_72] : memref<9x8x8xbf16, #tpu.memory_space<vmem>>, vector<1x8x8xbf16>
    %160 = vector.shape_cast %159 : vector<1x8x8xbf16> to vector<8x8xbf16>
    %161 = arith.truncf %158 : vector<8x256xf32> to vector<8x256xbf16>
    %cst_73 = arith.constant dense<0.000000e+00> : vector<8x256xf32>
    %162 = tpu.matmul %160, %161, %cst_73 {dimension_numbers = #tpu.dot_dimension_numbers<[1], [0], [0], [1], [0, 0, 1, 1], [], []>} : vector<8x8xbf16>, vector<8x256xbf16>, vector<8x256xf32> -> vector<8x256xf32>
    %163 = arith.addf %154, %162 : vector<8x256xf32>
    %164 = vector.extract_strided_slice %100 {offsets = [0, 33], sizes = [8, 256], strides = [1, 1]} : vector<8x290xf32> to vector<8x256xf32>
    %165 = vector.extract_strided_slice %101 {offsets = [7, 0], sizes = [1, 256], strides = [1, 1]} : vector<9x256xf32> to vector<1x256xf32>
    %166 = vector.broadcast %165 : vector<1x256xf32> to vector<8x256xf32>
    %167 = arith.mulf %164, %166 : vector<8x256xf32>
    %c7_74 = arith.constant 7 : index
    %c0_75 = arith.constant 0 : index
    %c0_76 = arith.constant 0 : index
    %168 = vector.load %arg6[%c7_74, %c0_75, %c0_76] : memref<9x8x8xbf16, #tpu.memory_space<vmem>>, vector<1x8x8xbf16>
    %169 = vector.shape_cast %168 : vector<1x8x8xbf16> to vector<8x8xbf16>
    %170 = arith.truncf %167 : vector<8x256xf32> to vector<8x256xbf16>
    %cst_77 = arith.constant dense<0.000000e+00> : vector<8x256xf32>
    %171 = tpu.matmul %169, %170, %cst_77 {dimension_numbers = #tpu.dot_dimension_numbers<[1], [0], [0], [1], [0, 0, 1, 1], [], []>} : vector<8x8xbf16>, vector<8x256xbf16>, vector<8x256xf32> -> vector<8x256xf32>
    %172 = arith.addf %163, %171 : vector<8x256xf32>
    %173 = vector.extract_strided_slice %100 {offsets = [0, 34], sizes = [8, 256], strides = [1, 1]} : vector<8x290xf32> to vector<8x256xf32>
    %174 = vector.extract_strided_slice %101 {offsets = [8, 0], sizes = [1, 256], strides = [1, 1]} : vector<9x256xf32> to vector<1x256xf32>
    %175 = vector.broadcast %174 : vector<1x256xf32> to vector<8x256xf32>
    %176 = arith.mulf %173, %175 : vector<8x256xf32>
    %c8_78 = arith.constant 8 : index
    %c0_79 = arith.constant 0 : index
    %c0_80 = arith.constant 0 : index
    %177 = vector.load %arg6[%c8_78, %c0_79, %c0_80] : memref<9x8x8xbf16, #tpu.memory_space<vmem>>, vector<1x8x8xbf16>
    %178 = vector.shape_cast %177 : vector<1x8x8xbf16> to vector<8x8xbf16>
    %179 = arith.truncf %176 : vector<8x256xf32> to vector<8x256xbf16>
    %cst_81 = arith.constant dense<0.000000e+00> : vector<8x256xf32>
    %180 = tpu.matmul %178, %179, %cst_81 {dimension_numbers = #tpu.dot_dimension_numbers<[1], [0], [0], [1], [0, 0, 1, 1], [], []>} : vector<8x8xbf16>, vector<8x256xbf16>, vector<8x256xf32> -> vector<8x256xf32>
    %181 = arith.addf %172, %180 : vector<8x256xf32>
    %182 = vector.broadcast %11 : vector<8x1xf32> to vector<8x256xf32>
    %183 = arith.addf %181, %182 : vector<8x256xf32>
    %184 = arith.addf %183, %9 : vector<8x256xf32>
    %cst_82 = arith.constant 0.000000e+00 : f32
    %185 = vector.broadcast %cst_82 : f32 to vector<8x256xf32>
    %186 = arith.maximumf %184, %185 : vector<8x256xf32>
    %c0_83 = arith.constant 0 : index
    %c0_84 = arith.constant 0 : index
    %c0_85 = arith.constant 0 : index
    %187 = vector.load %arg33[%c0_83, %c0_84, %c0_85] : memref<1x8x256xf32, #tpu.memory_space<vmem>>, vector<1x8x256xf32>
    %188 = vector.shape_cast %187 : vector<1x8x256xf32> to vector<8x256xf32>
    %189 = vector.shape_cast %186 : vector<8x256xf32> to vector<1x8x256xf32>
    tpu.vector_store %arg33[%c0_83, %c0_84, %c0_85], %189 {strides = array<i32>} : memref<1x8x256xf32, #tpu.memory_space<vmem>>, vector<1x8x256xf32>,
    %c0_86 = arith.constant 0 : index
    %c0_87 = arith.constant 0 : index
    %190 = vector.load %arg10[%c0_86, %c0_87] : memref<16x1xf32, #tpu.memory_space<vmem>>, vector<16x1xf32>
    %c0_88 = arith.constant 0 : index
    %c0_89 = arith.constant 0 : index
    %191 = vector.load %arg12[%c0_88, %c0_89] : memref<16x1xf32, #tpu.memory_space<vmem>>, vector<16x1xf32>
    %c0_90 = arith.constant 0 : index
    %c0_91 = arith.constant 0 : index
    %c0_92 = arith.constant 0 : index
    %192 = vector.load %arg14[%c0_90, %c0_91, %c0_92] : memref<9x256x64xbf16, #tpu.memory_space<vmem>>, vector<1x256x64xbf16>
    %193 = vector.shape_cast %192 : vector<1x256x64xbf16> to vector<256x64xbf16>
    %194 = arith.truncf %186 : vector<8x256xf32> to vector<8x256xbf16>
    %cst_93 = arith.constant dense<0.000000e+00> : vector<8x64xf32>
    %195 = tpu.matmul %194, %193, %cst_93 {dimension_numbers = #tpu.dot_dimension_numbers<[1], [0], [0], [1], [0, 0, 1, 1], [], []>} : vector<8x256xbf16>, vector<256x64xbf16>, vector<8x64xf32> -> vector<8x64xf32>
    %c0_94 = arith.constant 0 : index
    %c0_95 = arith.constant 0 : index
    %c0_96 = arith.constant 0 : index
    %196 = vector.load %arg9[%c0_94, %c0_95, %c0_96] : memref<9x16x8xbf16, #tpu.memory_space<vmem>>, vector<1x16x8xbf16>
    %197 = vector.shape_cast %196 : vector<1x16x8xbf16> to vector<16x8xbf16>
    %198 = arith.truncf %195 : vector<8x64xf32> to vector<8x64xbf16>
    %cst_97 = arith.constant dense<0.000000e+00> : vector<16x64xf32>
    %199 = tpu.matmul %197, %198, %cst_97 {dimension_numbers = #tpu.dot_dimension_numbers<[1], [0], [0], [1], [0, 0, 1, 1], [], []>} : vector<16x8xbf16>, vector<8x64xbf16>, vector<16x64xf32> -> vector<16x64xf32>
    %c1_98 = arith.constant 1 : index
    %c0_99 = arith.constant 0 : index
    %c0_100 = arith.constant 0 : index
    %200 = vector.load %arg14[%c1_98, %c0_99, %c0_100] : memref<9x256x64xbf16, #tpu.memory_space<vmem>>, vector<1x256x64xbf16>
    %201 = vector.shape_cast %200 : vector<1x256x64xbf16> to vector<256x64xbf16>
    %202 = arith.truncf %186 : vector<8x256xf32> to vector<8x256xbf16>
    %cst_101 = arith.constant dense<0.000000e+00> : vector<8x64xf32>
    %203 = tpu.matmul %202, %201, %cst_101 {dimension_numbers = #tpu.dot_dimension_numbers<[1], [0], [0], [1], [0, 0, 1, 1], [], []>} : vector<8x256xbf16>, vector<256x64xbf16>, vector<8x64xf32> -> vector<8x64xf32>
    %c1_102 = arith.constant 1 : index
    %c0_103 = arith.constant 0 : index
    %c0_104 = arith.constant 0 : index
    %204 = vector.load %arg9[%c1_102, %c0_103, %c0_104] : memref<9x16x8xbf16, #tpu.memory_space<vmem>>, vector<1x16x8xbf16>
    %205 = vector.shape_cast %204 : vector<1x16x8xbf16> to vector<16x8xbf16>
    %206 = arith.truncf %203 : vector<8x64xf32> to vector<8x64xbf16>
    %cst_105 = arith.constant dense<0.000000e+00> : vector<16x64xf32>
    %207 = tpu.matmul %205, %206, %cst_105 {dimension_numbers = #tpu.dot_dimension_numbers<[1], [0], [0], [1], [0, 0, 1, 1], [], []>} : vector<16x8xbf16>, vector<8x64xbf16>, vector<16x64xf32> -> vector<16x64xf32>
    %208 = arith.addf %199, %207 : vector<16x64xf32>
    %c2_106 = arith.constant 2 : index
    %c0_107 = arith.constant 0 : index
    %c0_108 = arith.constant 0 : index
    %209 = vector.load %arg14[%c2_106, %c0_107, %c0_108] : memref<9x256x64xbf16, #tpu.memory_space<vmem>>, vector<1x256x64xbf16>
    %210 = vector.shape_cast %209 : vector<1x256x64xbf16> to vector<256x64xbf16>
    %211 = arith.truncf %186 : vector<8x256xf32> to vector<8x256xbf16>
    %cst_109 = arith.constant dense<0.000000e+00> : vector<8x64xf32>
    %212 = tpu.matmul %211, %210, %cst_109 {dimension_numbers = #tpu.dot_dimension_numbers<[1], [0], [0], [1], [0, 0, 1, 1], [], []>} : vector<8x256xbf16>, vector<256x64xbf16>, vector<8x64xf32> -> vector<8x64xf32>
    %c2_110 = arith.constant 2 : index
    %c0_111 = arith.constant 0 : index
    %c0_112 = arith.constant 0 : index
    %213 = vector.load %arg9[%c2_110, %c0_111, %c0_112] : memref<9x16x8xbf16, #tpu.memory_space<vmem>>, vector<1x16x8xbf16>
    %214 = vector.shape_cast %213 : vector<1x16x8xbf16> to vector<16x8xbf16>
    %215 = arith.truncf %212 : vector<8x64xf32> to vector<8x64xbf16>
    %cst_113 = arith.constant dense<0.000000e+00> : vector<16x64xf32>
    %216 = tpu.matmul %214, %215, %cst_113 {dimension_numbers = #tpu.dot_dimension_numbers<[1], [0], [0], [1], [0, 0, 1, 1], [], []>} : vector<16x8xbf16>, vector<8x64xbf16>, vector<16x64xf32> -> vector<16x64xf32>
    %217 = arith.addf %208, %216 : vector<16x64xf32>
    %c3_114 = arith.constant 3 : index
    %c0_115 = arith.constant 0 : index
    %c0_116 = arith.constant 0 : index
    %218 = vector.load %arg14[%c3_114, %c0_115, %c0_116] : memref<9x256x64xbf16, #tpu.memory_space<vmem>>, vector<1x256x64xbf16>
    %219 = vector.shape_cast %218 : vector<1x256x64xbf16> to vector<256x64xbf16>
    %220 = arith.truncf %186 : vector<8x256xf32> to vector<8x256xbf16>
    %cst_117 = arith.constant dense<0.000000e+00> : vector<8x64xf32>
    %221 = tpu.matmul %220, %219, %cst_117 {dimension_numbers = #tpu.dot_dimension_numbers<[1], [0], [0], [1], [0, 0, 1, 1], [], []>} : vector<8x256xbf16>, vector<256x64xbf16>, vector<8x64xf32> -> vector<8x64xf32>
    %c3_118 = arith.constant 3 : index
    %c0_119 = arith.constant 0 : index
    %c0_120 = arith.constant 0 : index
    %222 = vector.load %arg9[%c3_118, %c0_119, %c0_120] : memref<9x16x8xbf16, #tpu.memory_space<vmem>>, vector<1x16x8xbf16>
    %223 = vector.shape_cast %222 : vector<1x16x8xbf16> to vector<16x8xbf16>
    %224 = arith.truncf %221 : vector<8x64xf32> to vector<8x64xbf16>
    %cst_121 = arith.constant dense<0.000000e+00> : vector<16x64xf32>
    %225 = tpu.matmul %223, %224, %cst_121 {dimension_numbers = #tpu.dot_dimension_numbers<[1], [0], [0], [1], [0, 0, 1, 1], [], []>} : vector<16x8xbf16>, vector<8x64xbf16>, vector<16x64xf32> -> vector<16x64xf32>
    %226 = arith.addf %217, %225 : vector<16x64xf32>
    %c4_122 = arith.constant 4 : index
    %c0_123 = arith.constant 0 : index
    %c0_124 = arith.constant 0 : index
    %227 = vector.load %arg14[%c4_122, %c0_123, %c0_124] : memref<9x256x64xbf16, #tpu.memory_space<vmem>>, vector<1x256x64xbf16>
    %228 = vector.shape_cast %227 : vector<1x256x64xbf16> to vector<256x64xbf16>
    %229 = arith.truncf %186 : vector<8x256xf32> to vector<8x256xbf16>
    %cst_125 = arith.constant dense<0.000000e+00> : vector<8x64xf32>
    %230 = tpu.matmul %229, %228, %cst_125 {dimension_numbers = #tpu.dot_dimension_numbers<[1], [0], [0], [1], [0, 0, 1, 1], [], []>} : vector<8x256xbf16>, vector<256x64xbf16>, vector<8x64xf32> -> vector<8x64xf32>
    %c4_126 = arith.constant 4 : index
    %c0_127 = arith.constant 0 : index
    %c0_128 = arith.constant 0 : index
    %231 = vector.load %arg9[%c4_126, %c0_127, %c0_128] : memref<9x16x8xbf16, #tpu.memory_space<vmem>>, vector<1x16x8xbf16>
    %232 = vector.shape_cast %231 : vector<1x16x8xbf16> to vector<16x8xbf16>
    %233 = arith.truncf %230 : vector<8x64xf32> to vector<8x64xbf16>
    %cst_129 = arith.constant dense<0.000000e+00> : vector<16x64xf32>
    %234 = tpu.matmul %232, %233, %cst_129 {dimension_numbers = #tpu.dot_dimension_numbers<[1], [0], [0], [1], [0, 0, 1, 1], [], []>} : vector<16x8xbf16>, vector<8x64xbf16>, vector<16x64xf32> -> vector<16x64xf32>
    %235 = arith.addf %226, %234 : vector<16x64xf32>
    %c5_130 = arith.constant 5 : index
    %c0_131 = arith.constant 0 : index
    %c0_132 = arith.constant 0 : index
    %236 = vector.load %arg14[%c5_130, %c0_131, %c0_132] : memref<9x256x64xbf16, #tpu.memory_space<vmem>>, vector<1x256x64xbf16>
    %237 = vector.shape_cast %236 : vector<1x256x64xbf16> to vector<256x64xbf16>
    %238 = arith.truncf %186 : vector<8x256xf32> to vector<8x256xbf16>
    %cst_133 = arith.constant dense<0.000000e+00> : vector<8x64xf32>
    %239 = tpu.matmul %238, %237, %cst_133 {dimension_numbers = #tpu.dot_dimension_numbers<[1], [0], [0], [1], [0, 0, 1, 1], [], []>} : vector<8x256xbf16>, vector<256x64xbf16>, vector<8x64xf32> -> vector<8x64xf32>
    %c5_134 = arith.constant 5 : index
    %c0_135 = arith.constant 0 : index
    %c0_136 = arith.constant 0 : index
    %240 = vector.load %arg9[%c5_134, %c0_135, %c0_136] : memref<9x16x8xbf16, #tpu.memory_space<vmem>>, vector<1x16x8xbf16>
    %241 = vector.shape_cast %240 : vector<1x16x8xbf16> to vector<16x8xbf16>
    %242 = arith.truncf %239 : vector<8x64xf32> to vector<8x64xbf16>
    %cst_137 = arith.constant dense<0.000000e+00> : vector<16x64xf32>
    %243 = tpu.matmul %241, %242, %cst_137 {dimension_numbers = #tpu.dot_dimension_numbers<[1], [0], [0], [1], [0, 0, 1, 1], [], []>} : vector<16x8xbf16>, vector<8x64xbf16>, vector<16x64xf32> -> vector<16x64xf32>
    %244 = arith.addf %235, %243 : vector<16x64xf32>
    %c6_138 = arith.constant 6 : index
    %c0_139 = arith.constant 0 : index
    %c0_140 = arith.constant 0 : index
    %245 = vector.load %arg14[%c6_138, %c0_139, %c0_140] : memref<9x256x64xbf16, #tpu.memory_space<vmem>>, vector<1x256x64xbf16>
    %246 = vector.shape_cast %245 : vector<1x256x64xbf16> to vector<256x64xbf16>
    %247 = arith.truncf %186 : vector<8x256xf32> to vector<8x256xbf16>
    %cst_141 = arith.constant dense<0.000000e+00> : vector<8x64xf32>
    %248 = tpu.matmul %247, %246, %cst_141 {dimension_numbers = #tpu.dot_dimension_numbers<[1], [0], [0], [1], [0, 0, 1, 1], [], []>} : vector<8x256xbf16>, vector<256x64xbf16>, vector<8x64xf32> -> vector<8x64xf32>
    %c6_142 = arith.constant 6 : index
    %c0_143 = arith.constant 0 : index
    %c0_144 = arith.constant 0 : index
    %249 = vector.load %arg9[%c6_142, %c0_143, %c0_144] : memref<9x16x8xbf16, #tpu.memory_space<vmem>>, vector<1x16x8xbf16>
    %250 = vector.shape_cast %249 : vector<1x16x8xbf16> to vector<16x8xbf16>
    %251 = arith.truncf %248 : vector<8x64xf32> to vector<8x64xbf16>
    %cst_145 = arith.constant dense<0.000000e+00> : vector<16x64xf32>
    %252 = tpu.matmul %250, %251, %cst_145 {dimension_numbers = #tpu.dot_dimension_numbers<[1], [0], [0], [1], [0, 0, 1, 1], [], []>} : vector<16x8xbf16>, vector<8x64xbf16>, vector<16x64xf32> -> vector<16x64xf32>
    %253 = arith.addf %244, %252 : vector<16x64xf32>
    %c7_146 = arith.constant 7 : index
    %c0_147 = arith.constant 0 : index
    %c0_148 = arith.constant 0 : index
    %254 = vector.load %arg14[%c7_146, %c0_147, %c0_148] : memref<9x256x64xbf16, #tpu.memory_space<vmem>>, vector<1x256x64xbf16>
    %255 = vector.shape_cast %254 : vector<1x256x64xbf16> to vector<256x64xbf16>
    %256 = arith.truncf %186 : vector<8x256xf32> to vector<8x256xbf16>
    %cst_149 = arith.constant dense<0.000000e+00> : vector<8x64xf32>
    %257 = tpu.matmul %256, %255, %cst_149 {dimension_numbers = #tpu.dot_dimension_numbers<[1], [0], [0], [1], [0, 0, 1, 1], [], []>} : vector<8x256xbf16>, vector<256x64xbf16>, vector<8x64xf32> -> vector<8x64xf32>
    %c7_150 = arith.constant 7 : index
    %c0_151 = arith.constant 0 : index
    %c0_152 = arith.constant 0 : index
    %258 = vector.load %arg9[%c7_150, %c0_151, %c0_152] : memref<9x16x8xbf16, #tpu.memory_space<vmem>>, vector<1x16x8xbf16>
    %259 = vector.shape_cast %258 : vector<1x16x8xbf16> to vector<16x8xbf16>
    %260 = arith.truncf %257 : vector<8x64xf32> to vector<8x64xbf16>
    %cst_153 = arith.constant dense<0.000000e+00> : vector<16x64xf32>
    %261 = tpu.matmul %259, %260, %cst_153 {dimension_numbers = #tpu.dot_dimension_numbers<[1], [0], [0], [1], [0, 0, 1, 1], [], []>} : vector<16x8xbf16>, vector<8x64xbf16>, vector<16x64xf32> -> vector<16x64xf32>
    %262 = arith.addf %253, %261 : vector<16x64xf32>
    %c8_154 = arith.constant 8 : index
    %c0_155 = arith.constant 0 : index
    %c0_156 = arith.constant 0 : index
    %263 = vector.load %arg14[%c8_154, %c0_155, %c0_156] : memref<9x256x64xbf16, #tpu.memory_space<vmem>>, vector<1x256x64xbf16>
    %264 = vector.shape_cast %263 : vector<1x256x64xbf16> to vector<256x64xbf16>
    %265 = arith.truncf %186 : vector<8x256xf32> to vector<8x256xbf16>
    %cst_157 = arith.constant dense<0.000000e+00> : vector<8x64xf32>
    %266 = tpu.matmul %265, %264, %cst_157 {dimension_numbers = #tpu.dot_dimension_numbers<[1], [0], [0], [1], [0, 0, 1, 1], [], []>} : vector<8x256xbf16>, vector<256x64xbf16>, vector<8x64xf32> -> vector<8x64xf32>
    %c8_158 = arith.constant 8 : index
    %c0_159 = arith.constant 0 : index
    %c0_160 = arith.constant 0 : index
    %267 = vector.load %arg9[%c8_158, %c0_159, %c0_160] : memref<9x16x8xbf16, #tpu.memory_space<vmem>>, vector<1x16x8xbf16>
    %268 = vector.shape_cast %267 : vector<1x16x8xbf16> to vector<16x8xbf16>
    %269 = arith.truncf %266 : vector<8x64xf32> to vector<8x64xbf16>
    %cst_161 = arith.constant dense<0.000000e+00> : vector<16x64xf32>
    %270 = tpu.matmul %268, %269, %cst_161 {dimension_numbers = #tpu.dot_dimension_numbers<[1], [0], [0], [1], [0, 0, 1, 1], [], []>} : vector<16x8xbf16>, vector<8x64xbf16>, vector<16x64xf32> -> vector<16x64xf32>
    %271 = arith.addf %262, %270 : vector<16x64xf32>
    %272 = vector.broadcast %190 : vector<16x1xf32> to vector<16x64xf32>
    %273 = arith.addf %271, %272 : vector<16x64xf32>
    %cst_162 = arith.constant 0.000000e+00 : f32
    %274 = vector.broadcast %cst_162 : f32 to vector<16x64xf32>
    %275 = arith.maximumf %273, %274 : vector<16x64xf32>
    %cst_163 = arith.constant 0.000000e+00 : f32
    %276 = vector.broadcast %cst_163 : f32 to vector<16x9xf32>
    %277 = tpu.concatenate %276, %275, %276 in 1 : vector<16x9xf32>, vector<16x64xf32>, vector<16x9xf32> -> vector<16x82xf32>
    %c0_164 = arith.constant 0 : index
    %c0_165 = arith.constant 0 : index
    %278 = vector.load %arg13[%c0_164, %c0_165] : memref<9x64xf32, #tpu.memory_space<vmem>>, vector<9x64xf32>
    %279 = vector.extract_strided_slice %277 {offsets = [0, 0], sizes = [16, 64], strides = [1, 1]} : vector<16x82xf32> to vector<16x64xf32>
    %280 = vector.extract_strided_slice %278 {offsets = [0, 0], sizes = [1, 64], strides = [1, 1]} : vector<9x64xf32> to vector<1x64xf32>
    %281 = vector.broadcast %280 : vector<1x64xf32> to vector<16x64xf32>
    %282 = arith.mulf %279, %281 : vector<16x64xf32>
    %c0_166 = arith.constant 0 : index
    %c0_167 = arith.constant 0 : index
    %c0_168 = arith.constant 0 : index
    %283 = vector.load %arg11[%c0_166, %c0_167, %c0_168] : memref<9x16x16xbf16, #tpu.memory_space<vmem>>, vector<1x16x16xbf16>
    %284 = vector.shape_cast %283 : vector<1x16x16xbf16> to vector<16x16xbf16>
    %285 = arith.truncf %282 : vector<16x64xf32> to vector<16x64xbf16>
    %cst_169 = arith.constant dense<0.000000e+00> : vector<16x64xf32>
    %286 = tpu.matmul %284, %285, %cst_169 {dimension_numbers = #tpu.dot_dimension_numbers<[1], [0], [0], [1], [0, 0, 1, 1], [], []>} : vector<16x16xbf16>, vector<16x64xbf16>, vector<16x64xf32> -> vector<16x64xf32>
    %287 = vector.extract_strided_slice %277 {offsets = [0, 1], sizes = [16, 64], strides = [1, 1]} : vector<16x82xf32> to vector<16x64xf32>
    %288 = vector.extract_strided_slice %278 {offsets = [1, 0], sizes = [1, 64], strides = [1, 1]} : vector<9x64xf32> to vector<1x64xf32>
    %289 = vector.broadcast %288 : vector<1x64xf32> to vector<16x64xf32>
    %290 = arith.mulf %287, %289 : vector<16x64xf32>
    %c1_170 = arith.constant 1 : index
    %c0_171 = arith.constant 0 : index
    %c0_172 = arith.constant 0 : index
    %291 = vector.load %arg11[%c1_170, %c0_171, %c0_172] : memref<9x16x16xbf16, #tpu.memory_space<vmem>>, vector<1x16x16xbf16>
    %292 = vector.shape_cast %291 : vector<1x16x16xbf16> to vector<16x16xbf16>
    %293 = arith.truncf %290 : vector<16x64xf32> to vector<16x64xbf16>
    %cst_173 = arith.constant dense<0.000000e+00> : vector<16x64xf32>
    %294 = tpu.matmul %292, %293, %cst_173 {dimension_numbers = #tpu.dot_dimension_numbers<[1], [0], [0], [1], [0, 0, 1, 1], [], []>} : vector<16x16xbf16>, vector<16x64xbf16>, vector<16x64xf32> -> vector<16x64xf32>
    %295 = arith.addf %286, %294 : vector<16x64xf32>
    %296 = vector.extract_strided_slice %277 {offsets = [0, 2], sizes = [16, 64], strides = [1, 1]} : vector<16x82xf32> to vector<16x64xf32>
    %297 = vector.extract_strided_slice %278 {offsets = [2, 0], sizes = [1, 64], strides = [1, 1]} : vector<9x64xf32> to vector<1x64xf32>
    %298 = vector.broadcast %297 : vector<1x64xf32> to vector<16x64xf32>
    %299 = arith.mulf %296, %298 : vector<16x64xf32>
    %c2_174 = arith.constant 2 : index
    %c0_175 = arith.constant 0 : index
    %c0_176 = arith.constant 0 : index
    %300 = vector.load %arg11[%c2_174, %c0_175, %c0_176] : memref<9x16x16xbf16, #tpu.memory_space<vmem>>, vector<1x16x16xbf16>
    %301 = vector.shape_cast %300 : vector<1x16x16xbf16> to vector<16x16xbf16>
    %302 = arith.truncf %299 : vector<16x64xf32> to vector<16x64xbf16>
    %cst_177 = arith.constant dense<0.000000e+00> : vector<16x64xf32>
    %303 = tpu.matmul %301, %302, %cst_177 {dimension_numbers = #tpu.dot_dimension_numbers<[1], [0], [0], [1], [0, 0, 1, 1], [], []>} : vector<16x16xbf16>, vector<16x64xbf16>, vector<16x64xf32> -> vector<16x64xf32>
    %304 = arith.addf %295, %303 : vector<16x64xf32>
    %305 = vector.extract_strided_slice %277 {offsets = [0, 8], sizes = [16, 64], strides = [1, 1]} : vector<16x82xf32> to vector<16x64xf32>
    %306 = vector.extract_strided_slice %278 {offsets = [3, 0], sizes = [1, 64], strides = [1, 1]} : vector<9x64xf32> to vector<1x64xf32>
    %307 = vector.broadcast %306 : vector<1x64xf32> to vector<16x64xf32>
    %308 = arith.mulf %305, %307 : vector<16x64xf32>
    %c3_178 = arith.constant 3 : index
    %c0_179 = arith.constant 0 : index
    %c0_180 = arith.constant 0 : index
    %309 = vector.load %arg11[%c3_178, %c0_179, %c0_180] : memref<9x16x16xbf16, #tpu.memory_space<vmem>>, vector<1x16x16xbf16>
    %310 = vector.shape_cast %309 : vector<1x16x16xbf16> to vector<16x16xbf16>
    %311 = arith.truncf %308 : vector<16x64xf32> to vector<16x64xbf16>
    %cst_181 = arith.constant dense<0.000000e+00> : vector<16x64xf32>
    %312 = tpu.matmul %310, %311, %cst_181 {dimension_numbers = #tpu.dot_dimension_numbers<[1], [0], [0], [1], [0, 0, 1, 1], [], []>} : vector<16x16xbf16>, vector<16x64xbf16>, vector<16x64xf32> -> vector<16x64xf32>
    %313 = arith.addf %304, %312 : vector<16x64xf32>
    %314 = vector.extract_strided_slice %277 {offsets = [0, 9], sizes = [16, 64], strides = [1, 1]} : vector<16x82xf32> to vector<16x64xf32>
    %315 = vector.extract_strided_slice %278 {offsets = [4, 0], sizes = [1, 64], strides = [1, 1]} : vector<9x64xf32> to vector<1x64xf32>
    %316 = vector.broadcast %315 : vector<1x64xf32> to vector<16x64xf32>
    %317 = arith.mulf %314, %316 : vector<16x64xf32>
    %c4_182 = arith.constant 4 : index
    %c0_183 = arith.constant 0 : index
    %c0_184 = arith.constant 0 : index
    %318 = vector.load %arg11[%c4_182, %c0_183, %c0_184] : memref<9x16x16xbf16, #tpu.memory_space<vmem>>, vector<1x16x16xbf16>
    %319 = vector.shape_cast %318 : vector<1x16x16xbf16> to vector<16x16xbf16>
    %320 = arith.truncf %317 : vector<16x64xf32> to vector<16x64xbf16>
    %cst_185 = arith.constant dense<0.000000e+00> : vector<16x64xf32>
    %321 = tpu.matmul %319, %320, %cst_185 {dimension_numbers = #tpu.dot_dimension_numbers<[1], [0], [0], [1], [0, 0, 1, 1], [], []>} : vector<16x16xbf16>, vector<16x64xbf16>, vector<16x64xf32> -> vector<16x64xf32>
    %322 = arith.addf %313, %321 : vector<16x64xf32>
    %323 = vector.extract_strided_slice %277 {offsets = [0, 10], sizes = [16, 64], strides = [1, 1]} : vector<16x82xf32> to vector<16x64xf32>
    %324 = vector.extract_strided_slice %278 {offsets = [5, 0], sizes = [1, 64], strides = [1, 1]} : vector<9x64xf32> to vector<1x64xf32>
    %325 = vector.broadcast %324 : vector<1x64xf32> to vector<16x64xf32>
    %326 = arith.mulf %323, %325 : vector<16x64xf32>
    %c5_186 = arith.constant 5 : index
    %c0_187 = arith.constant 0 : index
    %c0_188 = arith.constant 0 : index
    %327 = vector.load %arg11[%c5_186, %c0_187, %c0_188] : memref<9x16x16xbf16, #tpu.memory_space<vmem>>, vector<1x16x16xbf16>
    %328 = vector.shape_cast %327 : vector<1x16x16xbf16> to vector<16x16xbf16>
    %329 = arith.truncf %326 : vector<16x64xf32> to vector<16x64xbf16>
    %cst_189 = arith.constant dense<0.000000e+00> : vector<16x64xf32>
    %330 = tpu.matmul %328, %329, %cst_189 {dimension_numbers = #tpu.dot_dimension_numbers<[1], [0], [0], [1], [0, 0, 1, 1], [], []>} : vector<16x16xbf16>, vector<16x64xbf16>, vector<16x64xf32> -> vector<16x64xf32>
    %331 = arith.addf %322, %330 : vector<16x64xf32>
    %332 = vector.extract_strided_slice %277 {offsets = [0, 16], sizes = [16, 64], strides = [1, 1]} : vector<16x82xf32> to vector<16x64xf32>
    %333 = vector.extract_strided_slice %278 {offsets = [6, 0], sizes = [1, 64], strides = [1, 1]} : vector<9x64xf32> to vector<1x64xf32>
    %334 = vector.broadcast %333 : vector<1x64xf32> to vector<16x64xf32>
    %335 = arith.mulf %332, %334 : vector<16x64xf32>
    %c6_190 = arith.constant 6 : index
    %c0_191 = arith.constant 0 : index
    %c0_192 = arith.constant 0 : index
    %336 = vector.load %arg11[%c6_190, %c0_191, %c0_192] : memref<9x16x16xbf16, #tpu.memory_space<vmem>>, vector<1x16x16xbf16>
    %337 = vector.shape_cast %336 : vector<1x16x16xbf16> to vector<16x16xbf16>
    %338 = arith.truncf %335 : vector<16x64xf32> to vector<16x64xbf16>
    %cst_193 = arith.constant dense<0.000000e+00> : vector<16x64xf32>
    %339 = tpu.matmul %337, %338, %cst_193 {dimension_numbers = #tpu.dot_dimension_numbers<[1], [0], [0], [1], [0, 0, 1, 1], [], []>} : vector<16x16xbf16>, vector<16x64xbf16>, vector<16x64xf32> -> vector<16x64xf32>
    %340 = arith.addf %331, %339 : vector<16x64xf32>
    %341 = vector.extract_strided_slice %277 {offsets = [0, 17], sizes = [16, 64], strides = [1, 1]} : vector<16x82xf32> to vector<16x64xf32>
    %342 = vector.extract_strided_slice %278 {offsets = [7, 0], sizes = [1, 64], strides = [1, 1]} : vector<9x64xf32> to vector<1x64xf32>
    %343 = vector.broadcast %342 : vector<1x64xf32> to vector<16x64xf32>
    %344 = arith.mulf %341, %343 : vector<16x64xf32>
    %c7_194 = arith.constant 7 : index
    %c0_195 = arith.constant 0 : index
    %c0_196 = arith.constant 0 : index
    %345 = vector.load %arg11[%c7_194, %c0_195, %c0_196] : memref<9x16x16xbf16, #tpu.memory_space<vmem>>, vector<1x16x16xbf16>
    %346 = vector.shape_cast %345 : vector<1x16x16xbf16> to vector<16x16xbf16>
    %347 = arith.truncf %344 : vector<16x64xf32> to vector<16x64xbf16>
    %cst_197 = arith.constant dense<0.000000e+00> : vector<16x64xf32>
    %348 = tpu.matmul %346, %347, %cst_197 {dimension_numbers = #tpu.dot_dimension_numbers<[1], [0], [0], [1], [0, 0, 1, 1], [], []>} : vector<16x16xbf16>, vector<16x64xbf16>, vector<16x64xf32> -> vector<16x64xf32>
    %349 = arith.addf %340, %348 : vector<16x64xf32>
    %350 = vector.extract_strided_slice %277 {offsets = [0, 18], sizes = [16, 64], strides = [1, 1]} : vector<16x82xf32> to vector<16x64xf32>
    %351 = vector.extract_strided_slice %278 {offsets = [8, 0], sizes = [1, 64], strides = [1, 1]} : vector<9x64xf32> to vector<1x64xf32>
    %352 = vector.broadcast %351 : vector<1x64xf32> to vector<16x64xf32>
    %353 = arith.mulf %350, %352 : vector<16x64xf32>
    %c8_198 = arith.constant 8 : index
    %c0_199 = arith.constant 0 : index
    %c0_200 = arith.constant 0 : index
    %354 = vector.load %arg11[%c8_198, %c0_199, %c0_200] : memref<9x16x16xbf16, #tpu.memory_space<vmem>>, vector<1x16x16xbf16>
    %355 = vector.shape_cast %354 : vector<1x16x16xbf16> to vector<16x16xbf16>
    %356 = arith.truncf %353 : vector<16x64xf32> to vector<16x64xbf16>
    %cst_201 = arith.constant dense<0.000000e+00> : vector<16x64xf32>
    %357 = tpu.matmul %355, %356, %cst_201 {dimension_numbers = #tpu.dot_dimension_numbers<[1], [0], [0], [1], [0, 0, 1, 1], [], []>} : vector<16x16xbf16>, vector<16x64xbf16>, vector<16x64xf32> -> vector<16x64xf32>
    %358 = arith.addf %349, %357 : vector<16x64xf32>
    %359 = vector.broadcast %191 : vector<16x1xf32> to vector<16x64xf32>
    %360 = arith.addf %358, %359 : vector<16x64xf32>
    %c4_202 = arith.constant 4 : index
    %c0_203 = arith.constant 0 : index
    %c0_204 = arith.constant 0 : index
    %361 = vector.load %arg14[%c4_202, %c0_203, %c0_204] : memref<9x256x64xbf16, #tpu.memory_space<vmem>>, vector<1x256x64xbf16>
    %362 = vector.shape_cast %361 : vector<1x256x64xbf16> to vector<256x64xbf16>
    %363 = arith.truncf %186 : vector<8x256xf32> to vector<8x256xbf16>
    %cst_205 = arith.constant dense<0.000000e+00> : vector<8x64xf32>
    %364 = tpu.matmul %363, %362, %cst_205 {dimension_numbers = #tpu.dot_dimension_numbers<[1], [0], [0], [1], [0, 0, 1, 1], [], []>} : vector<8x256xbf16>, vector<256x64xbf16>, vector<8x64xf32> -> vector<8x64xf32>
    %c0_206 = arith.constant 0 : index
    %c0_207 = arith.constant 0 : index
    %365 = vector.load %arg15[%c0_206, %c0_207] : memref<16x8xbf16, #tpu.memory_space<vmem>>, vector<16x8xbf16>
    %366 = arith.truncf %364 : vector<8x64xf32> to vector<8x64xbf16>
    %cst_208 = arith.constant dense<0.000000e+00> : vector<16x64xf32>
    %367 = tpu.matmul %365, %366, %cst_208 {dimension_numbers = #tpu.dot_dimension_numbers<[1], [0], [0], [1], [0, 0, 1, 1], [], []>} : vector<16x8xbf16>, vector<8x64xbf16>, vector<16x64xf32> -> vector<16x64xf32>
    %c0_209 = arith.constant 0 : index
    %c0_210 = arith.constant 0 : index
    %368 = vector.load %arg16[%c0_209, %c0_210] : memref<16x1xf32, #tpu.memory_space<vmem>>, vector<16x1xf32>
    %369 = vector.broadcast %368 : vector<16x1xf32> to vector<16x64xf32>
    %370 = arith.addf %367, %369 : vector<16x64xf32>
    %371 = arith.addf %360, %370 : vector<16x64xf32>
    %cst_211 = arith.constant 0.000000e+00 : f32
    %372 = vector.broadcast %cst_211 : f32 to vector<16x64xf32>
    %373 = arith.maximumf %371, %372 : vector<16x64xf32>
    %c0_212 = arith.constant 0 : index
    %c0_213 = arith.constant 0 : index
    %c0_214 = arith.constant 0 : index
    %374 = vector.load %arg34[%c0_212, %c0_213, %c0_214] : memref<1x16x64xf32, #tpu.memory_space<vmem>>, vector<1x16x64xf32>
    %375 = vector.shape_cast %374 : vector<1x16x64xf32> to vector<16x64xf32>
    %376 = vector.shape_cast %373 : vector<16x64xf32> to vector<1x16x64xf32>
    tpu.vector_store %arg34[%c0_212, %c0_213, %c0_214], %376 {strides = array<i32>} : memref<1x16x64xf32, #tpu.memory_space<vmem>>, vector<1x16x64xf32>,
    %c0_215 = arith.constant 0 : index
    %c0_216 = arith.constant 0 : index
    %377 = vector.load %arg18[%c0_215, %c0_216] : memref<32x1xf32, #tpu.memory_space<vmem>>, vector<32x1xf32>
    %c0_217 = arith.constant 0 : index
    %c0_218 = arith.constant 0 : index
    %378 = vector.load %arg20[%c0_217, %c0_218] : memref<32x1xf32, #tpu.memory_space<vmem>>, vector<32x1xf32>
    %c0_219 = arith.constant 0 : index
    %c0_220 = arith.constant 0 : index
    %c0_221 = arith.constant 0 : index
    %379 = vector.load %arg22[%c0_219, %c0_220, %c0_221] : memref<9x64x16xbf16, #tpu.memory_space<vmem>>, vector<1x64x16xbf16>
    %380 = vector.shape_cast %379 : vector<1x64x16xbf16> to vector<64x16xbf16>
    %381 = arith.truncf %373 : vector<16x64xf32> to vector<16x64xbf16>
    %cst_222 = arith.constant dense<0.000000e+00> : vector<16x16xf32>
    %382 = tpu.matmul %381, %380, %cst_222 {dimension_numbers = #tpu.dot_dimension_numbers<[1], [0], [0], [1], [0, 0, 1, 1], [], []>} : vector<16x64xbf16>, vector<64x16xbf16>, vector<16x16xf32> -> vector<16x16xf32>
    %c0_223 = arith.constant 0 : index
    %c0_224 = arith.constant 0 : index
    %c0_225 = arith.constant 0 : index
    %383 = vector.load %arg17[%c0_223, %c0_224, %c0_225] : memref<9x32x16xbf16, #tpu.memory_space<vmem>>, vector<1x32x16xbf16>
    %384 = vector.shape_cast %383 : vector<1x32x16xbf16> to vector<32x16xbf16>
    %385 = arith.truncf %382 : vector<16x16xf32> to vector<16x16xbf16>
    %cst_226 = arith.constant dense<0.000000e+00> : vector<32x16xf32>
    %386 = tpu.matmul %384, %385, %cst_226 {dimension_numbers = #tpu.dot_dimension_numbers<[1], [0], [0], [1], [0, 0, 1, 1], [], []>} : vector<32x16xbf16>, vector<16x16xbf16>, vector<32x16xf32> -> vector<32x16xf32>
    %c1_227 = arith.constant 1 : index
    %c0_228 = arith.constant 0 : index
    %c0_229 = arith.constant 0 : index
    %387 = vector.load %arg22[%c1_227, %c0_228, %c0_229] : memref<9x64x16xbf16, #tpu.memory_space<vmem>>, vector<1x64x16xbf16>
    %388 = vector.shape_cast %387 : vector<1x64x16xbf16> to vector<64x16xbf16>
    %389 = arith.truncf %373 : vector<16x64xf32> to vector<16x64xbf16>
    %cst_230 = arith.constant dense<0.000000e+00> : vector<16x16xf32>
    %390 = tpu.matmul %389, %388, %cst_230 {dimension_numbers = #tpu.dot_dimension_numbers<[1], [0], [0], [1], [0, 0, 1, 1], [], []>} : vector<16x64xbf16>, vector<64x16xbf16>, vector<16x16xf32> -> vector<16x16xf32>
    %c1_231 = arith.constant 1 : index
    %c0_232 = arith.constant 0 : index
    %c0_233 = arith.constant 0 : index
    %391 = vector.load %arg17[%c1_231, %c0_232, %c0_233] : memref<9x32x16xbf16, #tpu.memory_space<vmem>>, vector<1x32x16xbf16>
    %392 = vector.shape_cast %391 : vector<1x32x16xbf16> to vector<32x16xbf16>
    %393 = arith.truncf %390 : vector<16x16xf32> to vector<16x16xbf16>
    %cst_234 = arith.constant dense<0.000000e+00> : vector<32x16xf32>
    %394 = tpu.matmul %392, %393, %cst_234 {dimension_numbers = #tpu.dot_dimension_numbers<[1], [0], [0], [1], [0, 0, 1, 1], [], []>} : vector<32x16xbf16>, vector<16x16xbf16>, vector<32x16xf32> -> vector<32x16xf32>
    %395 = arith.addf %386, %394 : vector<32x16xf32>
    %c2_235 = arith.constant 2 : index
    %c0_236 = arith.constant 0 : index
    %c0_237 = arith.constant 0 : index
    %396 = vector.load %arg22[%c2_235, %c0_236, %c0_237] : memref<9x64x16xbf16, #tpu.memory_space<vmem>>, vector<1x64x16xbf16>
    %397 = vector.shape_cast %396 : vector<1x64x16xbf16> to vector<64x16xbf16>
    %398 = arith.truncf %373 : vector<16x64xf32> to vector<16x64xbf16>
    %cst_238 = arith.constant dense<0.000000e+00> : vector<16x16xf32>
    %399 = tpu.matmul %398, %397, %cst_238 {dimension_numbers = #tpu.dot_dimension_numbers<[1], [0], [0], [1], [0, 0, 1, 1], [], []>} : vector<16x64xbf16>, vector<64x16xbf16>, vector<16x16xf32> -> vector<16x16xf32>
    %c2_239 = arith.constant 2 : index
    %c0_240 = arith.constant 0 : index
    %c0_241 = arith.constant 0 : index
    %400 = vector.load %arg17[%c2_239, %c0_240, %c0_241] : memref<9x32x16xbf16, #tpu.memory_space<vmem>>, vector<1x32x16xbf16>
    %401 = vector.shape_cast %400 : vector<1x32x16xbf16> to vector<32x16xbf16>
    %402 = arith.truncf %399 : vector<16x16xf32> to vector<16x16xbf16>
    %cst_242 = arith.constant dense<0.000000e+00> : vector<32x16xf32>
    %403 = tpu.matmul %401, %402, %cst_242 {dimension_numbers = #tpu.dot_dimension_numbers<[1], [0], [0], [1], [0, 0, 1, 1], [], []>} : vector<32x16xbf16>, vector<16x16xbf16>, vector<32x16xf32> -> vector<32x16xf32>
    %404 = arith.addf %395, %403 : vector<32x16xf32>
    %c3_243 = arith.constant 3 : index
    %c0_244 = arith.constant 0 : index
    %c0_245 = arith.constant 0 : index
    %405 = vector.load %arg22[%c3_243, %c0_244, %c0_245] : memref<9x64x16xbf16, #tpu.memory_space<vmem>>, vector<1x64x16xbf16>
    %406 = vector.shape_cast %405 : vector<1x64x16xbf16> to vector<64x16xbf16>
    %407 = arith.truncf %373 : vector<16x64xf32> to vector<16x64xbf16>
    %cst_246 = arith.constant dense<0.000000e+00> : vector<16x16xf32>
    %408 = tpu.matmul %407, %406, %cst_246 {dimension_numbers = #tpu.dot_dimension_numbers<[1], [0], [0], [1], [0, 0, 1, 1], [], []>} : vector<16x64xbf16>, vector<64x16xbf16>, vector<16x16xf32> -> vector<16x16xf32>
    %c3_247 = arith.constant 3 : index
    %c0_248 = arith.constant 0 : index
    %c0_249 = arith.constant 0 : index
    %409 = vector.load %arg17[%c3_247, %c0_248, %c0_249] : memref<9x32x16xbf16, #tpu.memory_space<vmem>>, vector<1x32x16xbf16>
    %410 = vector.shape_cast %409 : vector<1x32x16xbf16> to vector<32x16xbf16>
    %411 = arith.truncf %408 : vector<16x16xf32> to vector<16x16xbf16>
    %cst_250 = arith.constant dense<0.000000e+00> : vector<32x16xf32>
    %412 = tpu.matmul %410, %411, %cst_250 {dimension_numbers = #tpu.dot_dimension_numbers<[1], [0], [0], [1], [0, 0, 1, 1], [], []>} : vector<32x16xbf16>, vector<16x16xbf16>, vector<32x16xf32> -> vector<32x16xf32>
    %413 = arith.addf %404, %412 : vector<32x16xf32>
    %c4_251 = arith.constant 4 : index
    %c0_252 = arith.constant 0 : index
    %c0_253 = arith.constant 0 : index
    %414 = vector.load %arg22[%c4_251, %c0_252, %c0_253] : memref<9x64x16xbf16, #tpu.memory_space<vmem>>, vector<1x64x16xbf16>
    %415 = vector.shape_cast %414 : vector<1x64x16xbf16> to vector<64x16xbf16>
    %416 = arith.truncf %373 : vector<16x64xf32> to vector<16x64xbf16>
    %cst_254 = arith.constant dense<0.000000e+00> : vector<16x16xf32>
    %417 = tpu.matmul %416, %415, %cst_254 {dimension_numbers = #tpu.dot_dimension_numbers<[1], [0], [0], [1], [0, 0, 1, 1], [], []>} : vector<16x64xbf16>, vector<64x16xbf16>, vector<16x16xf32> -> vector<16x16xf32>
    %c4_255 = arith.constant 4 : index
    %c0_256 = arith.constant 0 : index
    %c0_257 = arith.constant 0 : index
    %418 = vector.load %arg17[%c4_255, %c0_256, %c0_257] : memref<9x32x16xbf16, #tpu.memory_space<vmem>>, vector<1x32x16xbf16>
    %419 = vector.shape_cast %418 : vector<1x32x16xbf16> to vector<32x16xbf16>
    %420 = arith.truncf %417 : vector<16x16xf32> to vector<16x16xbf16>
    %cst_258 = arith.constant dense<0.000000e+00> : vector<32x16xf32>
    %421 = tpu.matmul %419, %420, %cst_258 {dimension_numbers = #tpu.dot_dimension_numbers<[1], [0], [0], [1], [0, 0, 1, 1], [], []>} : vector<32x16xbf16>, vector<16x16xbf16>, vector<32x16xf32> -> vector<32x16xf32>
    %422 = arith.addf %413, %421 : vector<32x16xf32>
    %c5_259 = arith.constant 5 : index
    %c0_260 = arith.constant 0 : index
    %c0_261 = arith.constant 0 : index
    %423 = vector.load %arg22[%c5_259, %c0_260, %c0_261] : memref<9x64x16xbf16, #tpu.memory_space<vmem>>, vector<1x64x16xbf16>
    %424 = vector.shape_cast %423 : vector<1x64x16xbf16> to vector<64x16xbf16>
    %425 = arith.truncf %373 : vector<16x64xf32> to vector<16x64xbf16>
    %cst_262 = arith.constant dense<0.000000e+00> : vector<16x16xf32>
    %426 = tpu.matmul %425, %424, %cst_262 {dimension_numbers = #tpu.dot_dimension_numbers<[1], [0], [0], [1], [0, 0, 1, 1], [], []>} : vector<16x64xbf16>, vector<64x16xbf16>, vector<16x16xf32> -> vector<16x16xf32>
    %c5_263 = arith.constant 5 : index
    %c0_264 = arith.constant 0 : index
    %c0_265 = arith.constant 0 : index
    %427 = vector.load %arg17[%c5_263, %c0_264, %c0_265] : memref<9x32x16xbf16, #tpu.memory_space<vmem>>, vector<1x32x16xbf16>
    %428 = vector.shape_cast %427 : vector<1x32x16xbf16> to vector<32x16xbf16>
    %429 = arith.truncf %426 : vector<16x16xf32> to vector<16x16xbf16>
    %cst_266 = arith.constant dense<0.000000e+00> : vector<32x16xf32>
    %430 = tpu.matmul %428, %429, %cst_266 {dimension_numbers = #tpu.dot_dimension_numbers<[1], [0], [0], [1], [0, 0, 1, 1], [], []>} : vector<32x16xbf16>, vector<16x16xbf16>, vector<32x16xf32> -> vector<32x16xf32>
    %431 = arith.addf %422, %430 : vector<32x16xf32>
    %c6_267 = arith.constant 6 : index
    %c0_268 = arith.constant 0 : index
    %c0_269 = arith.constant 0 : index
    %432 = vector.load %arg22[%c6_267, %c0_268, %c0_269] : memref<9x64x16xbf16, #tpu.memory_space<vmem>>, vector<1x64x16xbf16>
    %433 = vector.shape_cast %432 : vector<1x64x16xbf16> to vector<64x16xbf16>
    %434 = arith.truncf %373 : vector<16x64xf32> to vector<16x64xbf16>
    %cst_270 = arith.constant dense<0.000000e+00> : vector<16x16xf32>
    %435 = tpu.matmul %434, %433, %cst_270 {dimension_numbers = #tpu.dot_dimension_numbers<[1], [0], [0], [1], [0, 0, 1, 1], [], []>} : vector<16x64xbf16>, vector<64x16xbf16>, vector<16x16xf32> -> vector<16x16xf32>
    %c6_271 = arith.constant 6 : index
    %c0_272 = arith.constant 0 : index
    %c0_273 = arith.constant 0 : index
    %436 = vector.load %arg17[%c6_271, %c0_272, %c0_273] : memref<9x32x16xbf16, #tpu.memory_space<vmem>>, vector<1x32x16xbf16>
    %437 = vector.shape_cast %436 : vector<1x32x16xbf16> to vector<32x16xbf16>
    %438 = arith.truncf %435 : vector<16x16xf32> to vector<16x16xbf16>
    %cst_274 = arith.constant dense<0.000000e+00> : vector<32x16xf32>
    %439 = tpu.matmul %437, %438, %cst_274 {dimension_numbers = #tpu.dot_dimension_numbers<[1], [0], [0], [1], [0, 0, 1, 1], [], []>} : vector<32x16xbf16>, vector<16x16xbf16>, vector<32x16xf32> -> vector<32x16xf32>
    %440 = arith.addf %431, %439 : vector<32x16xf32>
    %c7_275 = arith.constant 7 : index
    %c0_276 = arith.constant 0 : index
    %c0_277 = arith.constant 0 : index
    %441 = vector.load %arg22[%c7_275, %c0_276, %c0_277] : memref<9x64x16xbf16, #tpu.memory_space<vmem>>, vector<1x64x16xbf16>
    %442 = vector.shape_cast %441 : vector<1x64x16xbf16> to vector<64x16xbf16>
    %443 = arith.truncf %373 : vector<16x64xf32> to vector<16x64xbf16>
    %cst_278 = arith.constant dense<0.000000e+00> : vector<16x16xf32>
    %444 = tpu.matmul %443, %442, %cst_278 {dimension_numbers = #tpu.dot_dimension_numbers<[1], [0], [0], [1], [0, 0, 1, 1], [], []>} : vector<16x64xbf16>, vector<64x16xbf16>, vector<16x16xf32> -> vector<16x16xf32>
    %c7_279 = arith.constant 7 : index
    %c0_280 = arith.constant 0 : index
    %c0_281 = arith.constant 0 : index
    %445 = vector.load %arg17[%c7_279, %c0_280, %c0_281] : memref<9x32x16xbf16, #tpu.memory_space<vmem>>, vector<1x32x16xbf16>
    %446 = vector.shape_cast %445 : vector<1x32x16xbf16> to vector<32x16xbf16>
    %447 = arith.truncf %444 : vector<16x16xf32> to vector<16x16xbf16>
    %cst_282 = arith.constant dense<0.000000e+00> : vector<32x16xf32>
    %448 = tpu.matmul %446, %447, %cst_282 {dimension_numbers = #tpu.dot_dimension_numbers<[1], [0], [0], [1], [0, 0, 1, 1], [], []>} : vector<32x16xbf16>, vector<16x16xbf16>, vector<32x16xf32> -> vector<32x16xf32>
    %449 = arith.addf %440, %448 : vector<32x16xf32>
    %c8_283 = arith.constant 8 : index
    %c0_284 = arith.constant 0 : index
    %c0_285 = arith.constant 0 : index
    %450 = vector.load %arg22[%c8_283, %c0_284, %c0_285] : memref<9x64x16xbf16, #tpu.memory_space<vmem>>, vector<1x64x16xbf16>
    %451 = vector.shape_cast %450 : vector<1x64x16xbf16> to vector<64x16xbf16>
    %452 = arith.truncf %373 : vector<16x64xf32> to vector<16x64xbf16>
    %cst_286 = arith.constant dense<0.000000e+00> : vector<16x16xf32>
    %453 = tpu.matmul %452, %451, %cst_286 {dimension_numbers = #tpu.dot_dimension_numbers<[1], [0], [0], [1], [0, 0, 1, 1], [], []>} : vector<16x64xbf16>, vector<64x16xbf16>, vector<16x16xf32> -> vector<16x16xf32>
    %c8_287 = arith.constant 8 : index
    %c0_288 = arith.constant 0 : index
    %c0_289 = arith.constant 0 : index
    %454 = vector.load %arg17[%c8_287, %c0_288, %c0_289] : memref<9x32x16xbf16, #tpu.memory_space<vmem>>, vector<1x32x16xbf16>
    %455 = vector.shape_cast %454 : vector<1x32x16xbf16> to vector<32x16xbf16>
    %456 = arith.truncf %453 : vector<16x16xf32> to vector<16x16xbf16>
    %cst_290 = arith.constant dense<0.000000e+00> : vector<32x16xf32>
    %457 = tpu.matmul %455, %456, %cst_290 {dimension_numbers = #tpu.dot_dimension_numbers<[1], [0], [0], [1], [0, 0, 1, 1], [], []>} : vector<32x16xbf16>, vector<16x16xbf16>, vector<32x16xf32> -> vector<32x16xf32>
    %458 = arith.addf %449, %457 : vector<32x16xf32>
    %459 = vector.broadcast %377 : vector<32x1xf32> to vector<32x16xf32>
    %460 = arith.addf %458, %459 : vector<32x16xf32>
    %cst_291 = arith.constant 0.000000e+00 : f32
    %461 = vector.broadcast %cst_291 : f32 to vector<32x16xf32>
    %462 = arith.maximumf %460, %461 : vector<32x16xf32>
    %cst_292 = arith.constant 0.000000e+00 : f32
    %463 = vector.broadcast %cst_292 : f32 to vector<32x5xf32>
    %464 = tpu.concatenate %463, %462, %463 in 1 : vector<32x5xf32>, vector<32x16xf32>, vector<32x5xf32> -> vector<32x26xf32>
    %c0_293 = arith.constant 0 : index
    %c0_294 = arith.constant 0 : index
    %465 = vector.load %arg21[%c0_293, %c0_294] : memref<9x16xf32, #tpu.memory_space<vmem>>, vector<9x16xf32>
    %466 = vector.extract_strided_slice %464 {offsets = [0, 0], sizes = [32, 16], strides = [1, 1]} : vector<32x26xf32> to vector<32x16xf32>
    %467 = vector.extract_strided_slice %465 {offsets = [0, 0], sizes = [1, 16], strides = [1, 1]} : vector<9x16xf32> to vector<1x16xf32>
    %468 = vector.broadcast %467 : vector<1x16xf32> to vector<32x16xf32>
    %469 = arith.mulf %466, %468 : vector<32x16xf32>
    %c0_295 = arith.constant 0 : index
    %c0_296 = arith.constant 0 : index
    %c0_297 = arith.constant 0 : index
    %470 = vector.load %arg19[%c0_295, %c0_296, %c0_297] : memref<9x32x32xbf16, #tpu.memory_space<vmem>>, vector<1x32x32xbf16>
    %471 = vector.shape_cast %470 : vector<1x32x32xbf16> to vector<32x32xbf16>
    %472 = arith.truncf %469 : vector<32x16xf32> to vector<32x16xbf16>
    %cst_298 = arith.constant dense<0.000000e+00> : vector<32x16xf32>
    %473 = tpu.matmul %471, %472, %cst_298 {dimension_numbers = #tpu.dot_dimension_numbers<[1], [0], [0], [1], [0, 0, 1, 1], [], []>} : vector<32x32xbf16>, vector<32x16xbf16>, vector<32x16xf32> -> vector<32x16xf32>
    %474 = vector.extract_strided_slice %464 {offsets = [0, 1], sizes = [32, 16], strides = [1, 1]} : vector<32x26xf32> to vector<32x16xf32>
    %475 = vector.extract_strided_slice %465 {offsets = [1, 0], sizes = [1, 16], strides = [1, 1]} : vector<9x16xf32> to vector<1x16xf32>
    %476 = vector.broadcast %475 : vector<1x16xf32> to vector<32x16xf32>
    %477 = arith.mulf %474, %476 : vector<32x16xf32>
    %c1_299 = arith.constant 1 : index
    %c0_300 = arith.constant 0 : index
    %c0_301 = arith.constant 0 : index
    %478 = vector.load %arg19[%c1_299, %c0_300, %c0_301] : memref<9x32x32xbf16, #tpu.memory_space<vmem>>, vector<1x32x32xbf16>
    %479 = vector.shape_cast %478 : vector<1x32x32xbf16> to vector<32x32xbf16>
    %480 = arith.truncf %477 : vector<32x16xf32> to vector<32x16xbf16>
    %cst_302 = arith.constant dense<0.000000e+00> : vector<32x16xf32>
    %481 = tpu.matmul %479, %480, %cst_302 {dimension_numbers = #tpu.dot_dimension_numbers<[1], [0], [0], [1], [0, 0, 1, 1], [], []>} : vector<32x32xbf16>, vector<32x16xbf16>, vector<32x16xf32> -> vector<32x16xf32>
    %482 = arith.addf %473, %481 : vector<32x16xf32>
    %483 = vector.extract_strided_slice %464 {offsets = [0, 2], sizes = [32, 16], strides = [1, 1]} : vector<32x26xf32> to vector<32x16xf32>
    %484 = vector.extract_strided_slice %465 {offsets = [2, 0], sizes = [1, 16], strides = [1, 1]} : vector<9x16xf32> to vector<1x16xf32>
    %485 = vector.broadcast %484 : vector<1x16xf32> to vector<32x16xf32>
    %486 = arith.mulf %483, %485 : vector<32x16xf32>
    %c2_303 = arith.constant 2 : index
    %c0_304 = arith.constant 0 : index
    %c0_305 = arith.constant 0 : index
    %487 = vector.load %arg19[%c2_303, %c0_304, %c0_305] : memref<9x32x32xbf16, #tpu.memory_space<vmem>>, vector<1x32x32xbf16>
    %488 = vector.shape_cast %487 : vector<1x32x32xbf16> to vector<32x32xbf16>
    %489 = arith.truncf %486 : vector<32x16xf32> to vector<32x16xbf16>
    %cst_306 = arith.constant dense<0.000000e+00> : vector<32x16xf32>
    %490 = tpu.matmul %488, %489, %cst_306 {dimension_numbers = #tpu.dot_dimension_numbers<[1], [0], [0], [1], [0, 0, 1, 1], [], []>} : vector<32x32xbf16>, vector<32x16xbf16>, vector<32x16xf32> -> vector<32x16xf32>
    %491 = arith.addf %482, %490 : vector<32x16xf32>
    %492 = vector.extract_strided_slice %464 {offsets = [0, 4], sizes = [32, 16], strides = [1, 1]} : vector<32x26xf32> to vector<32x16xf32>
    %493 = vector.extract_strided_slice %465 {offsets = [3, 0], sizes = [1, 16], strides = [1, 1]} : vector<9x16xf32> to vector<1x16xf32>
    %494 = vector.broadcast %493 : vector<1x16xf32> to vector<32x16xf32>
    %495 = arith.mulf %492, %494 : vector<32x16xf32>
    %c3_307 = arith.constant 3 : index
    %c0_308 = arith.constant 0 : index
    %c0_309 = arith.constant 0 : index
    %496 = vector.load %arg19[%c3_307, %c0_308, %c0_309] : memref<9x32x32xbf16, #tpu.memory_space<vmem>>, vector<1x32x32xbf16>
    %497 = vector.shape_cast %496 : vector<1x32x32xbf16> to vector<32x32xbf16>
    %498 = arith.truncf %495 : vector<32x16xf32> to vector<32x16xbf16>
    %cst_310 = arith.constant dense<0.000000e+00> : vector<32x16xf32>
    %499 = tpu.matmul %497, %498, %cst_310 {dimension_numbers = #tpu.dot_dimension_numbers<[1], [0], [0], [1], [0, 0, 1, 1], [], []>} : vector<32x32xbf16>, vector<32x16xbf16>, vector<32x16xf32> -> vector<32x16xf32>
    %500 = arith.addf %491, %499 : vector<32x16xf32>
    %501 = vector.extract_strided_slice %464 {offsets = [0, 5], sizes = [32, 16], strides = [1, 1]} : vector<32x26xf32> to vector<32x16xf32>
    %502 = vector.extract_strided_slice %465 {offsets = [4, 0], sizes = [1, 16], strides = [1, 1]} : vector<9x16xf32> to vector<1x16xf32>
    %503 = vector.broadcast %502 : vector<1x16xf32> to vector<32x16xf32>
    %504 = arith.mulf %501, %503 : vector<32x16xf32>
    %c4_311 = arith.constant 4 : index
    %c0_312 = arith.constant 0 : index
    %c0_313 = arith.constant 0 : index
    %505 = vector.load %arg19[%c4_311, %c0_312, %c0_313] : memref<9x32x32xbf16, #tpu.memory_space<vmem>>, vector<1x32x32xbf16>
    %506 = vector.shape_cast %505 : vector<1x32x32xbf16> to vector<32x32xbf16>
    %507 = arith.truncf %504 : vector<32x16xf32> to vector<32x16xbf16>
    %cst_314 = arith.constant dense<0.000000e+00> : vector<32x16xf32>
    %508 = tpu.matmul %506, %507, %cst_314 {dimension_numbers = #tpu.dot_dimension_numbers<[1], [0], [0], [1], [0, 0, 1, 1], [], []>} : vector<32x32xbf16>, vector<32x16xbf16>, vector<32x16xf32> -> vector<32x16xf32>
    %509 = arith.addf %500, %508 : vector<32x16xf32>
    %510 = vector.extract_strided_slice %464 {offsets = [0, 6], sizes = [32, 16], strides = [1, 1]} : vector<32x26xf32> to vector<32x16xf32>
    %511 = vector.extract_strided_slice %465 {offsets = [5, 0], sizes = [1, 16], strides = [1, 1]} : vector<9x16xf32> to vector<1x16xf32>
    %512 = vector.broadcast %511 : vector<1x16xf32> to vector<32x16xf32>
    %513 = arith.mulf %510, %512 : vector<32x16xf32>
    %c5_315 = arith.constant 5 : index
    %c0_316 = arith.constant 0 : index
    %c0_317 = arith.constant 0 : index
    %514 = vector.load %arg19[%c5_315, %c0_316, %c0_317] : memref<9x32x32xbf16, #tpu.memory_space<vmem>>, vector<1x32x32xbf16>
    %515 = vector.shape_cast %514 : vector<1x32x32xbf16> to vector<32x32xbf16>
    %516 = arith.truncf %513 : vector<32x16xf32> to vector<32x16xbf16>
    %cst_318 = arith.constant dense<0.000000e+00> : vector<32x16xf32>
    %517 = tpu.matmul %515, %516, %cst_318 {dimension_numbers = #tpu.dot_dimension_numbers<[1], [0], [0], [1], [0, 0, 1, 1], [], []>} : vector<32x32xbf16>, vector<32x16xbf16>, vector<32x16xf32> -> vector<32x16xf32>
    %518 = arith.addf %509, %517 : vector<32x16xf32>
    %519 = vector.extract_strided_slice %464 {offsets = [0, 8], sizes = [32, 16], strides = [1, 1]} : vector<32x26xf32> to vector<32x16xf32>
    %520 = vector.extract_strided_slice %465 {offsets = [6, 0], sizes = [1, 16], strides = [1, 1]} : vector<9x16xf32> to vector<1x16xf32>
    %521 = vector.broadcast %520 : vector<1x16xf32> to vector<32x16xf32>
    %522 = arith.mulf %519, %521 : vector<32x16xf32>
    %c6_319 = arith.constant 6 : index
    %c0_320 = arith.constant 0 : index
    %c0_321 = arith.constant 0 : index
    %523 = vector.load %arg19[%c6_319, %c0_320, %c0_321] : memref<9x32x32xbf16, #tpu.memory_space<vmem>>, vector<1x32x32xbf16>
    %524 = vector.shape_cast %523 : vector<1x32x32xbf16> to vector<32x32xbf16>
    %525 = arith.truncf %522 : vector<32x16xf32> to vector<32x16xbf16>
    %cst_322 = arith.constant dense<0.000000e+00> : vector<32x16xf32>
    %526 = tpu.matmul %524, %525, %cst_322 {dimension_numbers = #tpu.dot_dimension_numbers<[1], [0], [0], [1], [0, 0, 1, 1], [], []>} : vector<32x32xbf16>, vector<32x16xbf16>, vector<32x16xf32> -> vector<32x16xf32>
    %527 = arith.addf %518, %526 : vector<32x16xf32>
    %528 = vector.extract_strided_slice %464 {offsets = [0, 9], sizes = [32, 16], strides = [1, 1]} : vector<32x26xf32> to vector<32x16xf32>
    %529 = vector.extract_strided_slice %465 {offsets = [7, 0], sizes = [1, 16], strides = [1, 1]} : vector<9x16xf32> to vector<1x16xf32>
    %530 = vector.broadcast %529 : vector<1x16xf32> to vector<32x16xf32>
    %531 = arith.mulf %528, %530 : vector<32x16xf32>
    %c7_323 = arith.constant 7 : index
    %c0_324 = arith.constant 0 : index
    %c0_325 = arith.constant 0 : index
    %532 = vector.load %arg19[%c7_323, %c0_324, %c0_325] : memref<9x32x32xbf16, #tpu.memory_space<vmem>>, vector<1x32x32xbf16>
    %533 = vector.shape_cast %532 : vector<1x32x32xbf16> to vector<32x32xbf16>
    %534 = arith.truncf %531 : vector<32x16xf32> to vector<32x16xbf16>
    %cst_326 = arith.constant dense<0.000000e+00> : vector<32x16xf32>
    %535 = tpu.matmul %533, %534, %cst_326 {dimension_numbers = #tpu.dot_dimension_numbers<[1], [0], [0], [1], [0, 0, 1, 1], [], []>} : vector<32x32xbf16>, vector<32x16xbf16>, vector<32x16xf32> -> vector<32x16xf32>
    %536 = arith.addf %527, %535 : vector<32x16xf32>
    %537 = vector.extract_strided_slice %464 {offsets = [0, 10], sizes = [32, 16], strides = [1, 1]} : vector<32x26xf32> to vector<32x16xf32>
    %538 = vector.extract_strided_slice %465 {offsets = [8, 0], sizes = [1, 16], strides = [1, 1]} : vector<9x16xf32> to vector<1x16xf32>
    %539 = vector.broadcast %538 : vector<1x16xf32> to vector<32x16xf32>
    %540 = arith.mulf %537, %539 : vector<32x16xf32>
    %c8_327 = arith.constant 8 : index
    %c0_328 = arith.constant 0 : index
    %c0_329 = arith.constant 0 : index
    %541 = vector.load %arg19[%c8_327, %c0_328, %c0_329] : memref<9x32x32xbf16, #tpu.memory_space<vmem>>, vector<1x32x32xbf16>
    %542 = vector.shape_cast %541 : vector<1x32x32xbf16> to vector<32x32xbf16>
    %543 = arith.truncf %540 : vector<32x16xf32> to vector<32x16xbf16>
    %cst_330 = arith.constant dense<0.000000e+00> : vector<32x16xf32>
    %544 = tpu.matmul %542, %543, %cst_330 {dimension_numbers = #tpu.dot_dimension_numbers<[1], [0], [0], [1], [0, 0, 1, 1], [], []>} : vector<32x32xbf16>, vector<32x16xbf16>, vector<32x16xf32> -> vector<32x16xf32>
    %545 = arith.addf %536, %544 : vector<32x16xf32>
    %546 = vector.broadcast %378 : vector<32x1xf32> to vector<32x16xf32>
    %547 = arith.addf %545, %546 : vector<32x16xf32>
    %c4_331 = arith.constant 4 : index
    %c0_332 = arith.constant 0 : index
    %c0_333 = arith.constant 0 : index
    %548 = vector.load %arg22[%c4_331, %c0_332, %c0_333] : memref<9x64x16xbf16, #tpu.memory_space<vmem>>, vector<1x64x16xbf16>
    %549 = vector.shape_cast %548 : vector<1x64x16xbf16> to vector<64x16xbf16>
    %550 = arith.truncf %373 : vector<16x64xf32> to vector<16x64xbf16>
    %cst_334 = arith.constant dense<0.000000e+00> : vector<16x16xf32>
    %551 = tpu.matmul %550, %549, %cst_334 {dimension_numbers = #tpu.dot_dimension_numbers<[1], [0], [0], [1], [0, 0, 1, 1], [], []>} : vector<16x64xbf16>, vector<64x16xbf16>, vector<16x16xf32> -> vector<16x16xf32>
    %c0_335 = arith.constant 0 : index
    %c0_336 = arith.constant 0 : index
    %552 = vector.load %arg23[%c0_335, %c0_336] : memref<32x16xbf16, #tpu.memory_space<vmem>>, vector<32x16xbf16>
    %553 = arith.truncf %551 : vector<16x16xf32> to vector<16x16xbf16>
    %cst_337 = arith.constant dense<0.000000e+00> : vector<32x16xf32>
    %554 = tpu.matmul %552, %553, %cst_337 {dimension_numbers = #tpu.dot_dimension_numbers<[1], [0], [0], [1], [0, 0, 1, 1], [], []>} : vector<32x16xbf16>, vector<16x16xbf16>, vector<32x16xf32> -> vector<32x16xf32>
    %c0_338 = arith.constant 0 : index
    %c0_339 = arith.constant 0 : index
    %555 = vector.load %arg24[%c0_338, %c0_339] : memref<32x1xf32, #tpu.memory_space<vmem>>, vector<32x1xf32>
    %556 = vector.broadcast %555 : vector<32x1xf32> to vector<32x16xf32>
    %557 = arith.addf %554, %556 : vector<32x16xf32>
    %558 = arith.addf %547, %557 : vector<32x16xf32>
    %cst_340 = arith.constant 0.000000e+00 : f32
    %559 = vector.broadcast %cst_340 : f32 to vector<32x16xf32>
    %560 = arith.maximumf %558, %559 : vector<32x16xf32>
    %c0_341 = arith.constant 0 : index
    %c0_342 = arith.constant 0 : index
    %c0_343 = arith.constant 0 : index
    %561 = vector.load %arg35[%c0_341, %c0_342, %c0_343] : memref<1x32x16xf32, #tpu.memory_space<vmem>>, vector<1x32x16xf32>
    %562 = vector.shape_cast %561 : vector<1x32x16xf32> to vector<32x16xf32>
    %563 = vector.shape_cast %560 : vector<32x16xf32> to vector<1x32x16xf32>
    tpu.vector_store %arg35[%c0_341, %c0_342, %c0_343], %563 {strides = array<i32>} : memref<1x32x16xf32, #tpu.memory_space<vmem>>, vector<1x32x16xf32>,
    %c0_344 = arith.constant 0 : index
    %c0_345 = arith.constant 0 : index
    %564 = vector.load %arg26[%c0_344, %c0_345] : memref<64x1xf32, #tpu.memory_space<vmem>>, vector<64x1xf32>
    %c0_346 = arith.constant 0 : index
    %c0_347 = arith.constant 0 : index
    %565 = vector.load %arg28[%c0_346, %c0_347] : memref<64x1xf32, #tpu.memory_space<vmem>>, vector<64x1xf32>
    %c0_348 = arith.constant 0 : index
    %c0_349 = arith.constant 0 : index
    %c0_350 = arith.constant 0 : index
    %566 = vector.load %arg30[%c0_348, %c0_349, %c0_350] : memref<9x16x4xbf16, #tpu.memory_space<vmem>>, vector<1x16x4xbf16>
    %567 = vector.shape_cast %566 : vector<1x16x4xbf16> to vector<16x4xbf16>
    %568 = arith.truncf %560 : vector<32x16xf32> to vector<32x16xbf16>
    %cst_351 = arith.constant dense<0.000000e+00> : vector<32x4xf32>
    %569 = tpu.matmul %568, %567, %cst_351 {dimension_numbers = #tpu.dot_dimension_numbers<[1], [0], [0], [1], [0, 0, 1, 1], [], []>} : vector<32x16xbf16>, vector<16x4xbf16>, vector<32x4xf32> -> vector<32x4xf32>
    %c0_352 = arith.constant 0 : index
    %c0_353 = arith.constant 0 : index
    %c0_354 = arith.constant 0 : index
    %570 = vector.load %arg25[%c0_352, %c0_353, %c0_354] : memref<9x64x32xbf16, #tpu.memory_space<vmem>>, vector<1x64x32xbf16>
    %571 = vector.shape_cast %570 : vector<1x64x32xbf16> to vector<64x32xbf16>
    %572 = arith.truncf %569 : vector<32x4xf32> to vector<32x4xbf16>
    %cst_355 = arith.constant dense<0.000000e+00> : vector<64x4xf32>
    %573 = tpu.matmul %571, %572, %cst_355 {dimension_numbers = #tpu.dot_dimension_numbers<[1], [0], [0], [1], [0, 0, 1, 1], [], []>} : vector<64x32xbf16>, vector<32x4xbf16>, vector<64x4xf32> -> vector<64x4xf32>
    %c1_356 = arith.constant 1 : index
    %c0_357 = arith.constant 0 : index
    %c0_358 = arith.constant 0 : index
    %574 = vector.load %arg30[%c1_356, %c0_357, %c0_358] : memref<9x16x4xbf16, #tpu.memory_space<vmem>>, vector<1x16x4xbf16>
    %575 = vector.shape_cast %574 : vector<1x16x4xbf16> to vector<16x4xbf16>
    %576 = arith.truncf %560 : vector<32x16xf32> to vector<32x16xbf16>
    %cst_359 = arith.constant dense<0.000000e+00> : vector<32x4xf32>
    %577 = tpu.matmul %576, %575, %cst_359 {dimension_numbers = #tpu.dot_dimension_numbers<[1], [0], [0], [1], [0, 0, 1, 1], [], []>} : vector<32x16xbf16>, vector<16x4xbf16>, vector<32x4xf32> -> vector<32x4xf32>
    %c1_360 = arith.constant 1 : index
    %c0_361 = arith.constant 0 : index
    %c0_362 = arith.constant 0 : index
    %578 = vector.load %arg25[%c1_360, %c0_361, %c0_362] : memref<9x64x32xbf16, #tpu.memory_space<vmem>>, vector<1x64x32xbf16>
    %579 = vector.shape_cast %578 : vector<1x64x32xbf16> to vector<64x32xbf16>
    %580 = arith.truncf %577 : vector<32x4xf32> to vector<32x4xbf16>
    %cst_363 = arith.constant dense<0.000000e+00> : vector<64x4xf32>
    %581 = tpu.matmul %579, %580, %cst_363 {dimension_numbers = #tpu.dot_dimension_numbers<[1], [0], [0], [1], [0, 0, 1, 1], [], []>} : vector<64x32xbf16>, vector<32x4xbf16>, vector<64x4xf32> -> vector<64x4xf32>
    %582 = arith.addf %573, %581 : vector<64x4xf32>
    %c2_364 = arith.constant 2 : index
    %c0_365 = arith.constant 0 : index
    %c0_366 = arith.constant 0 : index
    %583 = vector.load %arg30[%c2_364, %c0_365, %c0_366] : memref<9x16x4xbf16, #tpu.memory_space<vmem>>, vector<1x16x4xbf16>
    %584 = vector.shape_cast %583 : vector<1x16x4xbf16> to vector<16x4xbf16>
    %585 = arith.truncf %560 : vector<32x16xf32> to vector<32x16xbf16>
    %cst_367 = arith.constant dense<0.000000e+00> : vector<32x4xf32>
    %586 = tpu.matmul %585, %584, %cst_367 {dimension_numbers = #tpu.dot_dimension_numbers<[1], [0], [0], [1], [0, 0, 1, 1], [], []>} : vector<32x16xbf16>, vector<16x4xbf16>, vector<32x4xf32> -> vector<32x4xf32>
    %c2_368 = arith.constant 2 : index
    %c0_369 = arith.constant 0 : index
    %c0_370 = arith.constant 0 : index
    %587 = vector.load %arg25[%c2_368, %c0_369, %c0_370] : memref<9x64x32xbf16, #tpu.memory_space<vmem>>, vector<1x64x32xbf16>
    %588 = vector.shape_cast %587 : vector<1x64x32xbf16> to vector<64x32xbf16>
    %589 = arith.truncf %586 : vector<32x4xf32> to vector<32x4xbf16>
    %cst_371 = arith.constant dense<0.000000e+00> : vector<64x4xf32>
    %590 = tpu.matmul %588, %589, %cst_371 {dimension_numbers = #tpu.dot_dimension_numbers<[1], [0], [0], [1], [0, 0, 1, 1], [], []>} : vector<64x32xbf16>, vector<32x4xbf16>, vector<64x4xf32> -> vector<64x4xf32>
    %591 = arith.addf %582, %590 : vector<64x4xf32>
    %c3_372 = arith.constant 3 : index
    %c0_373 = arith.constant 0 : index
    %c0_374 = arith.constant 0 : index
    %592 = vector.load %arg30[%c3_372, %c0_373, %c0_374] : memref<9x16x4xbf16, #tpu.memory_space<vmem>>, vector<1x16x4xbf16>
    %593 = vector.shape_cast %592 : vector<1x16x4xbf16> to vector<16x4xbf16>
    %594 = arith.truncf %560 : vector<32x16xf32> to vector<32x16xbf16>
    %cst_375 = arith.constant dense<0.000000e+00> : vector<32x4xf32>
    %595 = tpu.matmul %594, %593, %cst_375 {dimension_numbers = #tpu.dot_dimension_numbers<[1], [0], [0], [1], [0, 0, 1, 1], [], []>} : vector<32x16xbf16>, vector<16x4xbf16>, vector<32x4xf32> -> vector<32x4xf32>
    %c3_376 = arith.constant 3 : index
    %c0_377 = arith.constant 0 : index
    %c0_378 = arith.constant 0 : index
    %596 = vector.load %arg25[%c3_376, %c0_377, %c0_378] : memref<9x64x32xbf16, #tpu.memory_space<vmem>>, vector<1x64x32xbf16>
    %597 = vector.shape_cast %596 : vector<1x64x32xbf16> to vector<64x32xbf16>
    %598 = arith.truncf %595 : vector<32x4xf32> to vector<32x4xbf16>
    %cst_379 = arith.constant dense<0.000000e+00> : vector<64x4xf32>
    %599 = tpu.matmul %597, %598, %cst_379 {dimension_numbers = #tpu.dot_dimension_numbers<[1], [0], [0], [1], [0, 0, 1, 1], [], []>} : vector<64x32xbf16>, vector<32x4xbf16>, vector<64x4xf32> -> vector<64x4xf32>
    %600 = arith.addf %591, %599 : vector<64x4xf32>
    %c4_380 = arith.constant 4 : index
    %c0_381 = arith.constant 0 : index
    %c0_382 = arith.constant 0 : index
    %601 = vector.load %arg30[%c4_380, %c0_381, %c0_382] : memref<9x16x4xbf16, #tpu.memory_space<vmem>>, vector<1x16x4xbf16>
    %602 = vector.shape_cast %601 : vector<1x16x4xbf16> to vector<16x4xbf16>
    %603 = arith.truncf %560 : vector<32x16xf32> to vector<32x16xbf16>
    %cst_383 = arith.constant dense<0.000000e+00> : vector<32x4xf32>
    %604 = tpu.matmul %603, %602, %cst_383 {dimension_numbers = #tpu.dot_dimension_numbers<[1], [0], [0], [1], [0, 0, 1, 1], [], []>} : vector<32x16xbf16>, vector<16x4xbf16>, vector<32x4xf32> -> vector<32x4xf32>
    %c4_384 = arith.constant 4 : index
    %c0_385 = arith.constant 0 : index
    %c0_386 = arith.constant 0 : index
    %605 = vector.load %arg25[%c4_384, %c0_385, %c0_386] : memref<9x64x32xbf16, #tpu.memory_space<vmem>>, vector<1x64x32xbf16>
    %606 = vector.shape_cast %605 : vector<1x64x32xbf16> to vector<64x32xbf16>
    %607 = arith.truncf %604 : vector<32x4xf32> to vector<32x4xbf16>
    %cst_387 = arith.constant dense<0.000000e+00> : vector<64x4xf32>
    %608 = tpu.matmul %606, %607, %cst_387 {dimension_numbers = #tpu.dot_dimension_numbers<[1], [0], [0], [1], [0, 0, 1, 1], [], []>} : vector<64x32xbf16>, vector<32x4xbf16>, vector<64x4xf32> -> vector<64x4xf32>
    %609 = arith.addf %600, %608 : vector<64x4xf32>
    %c5_388 = arith.constant 5 : index
    %c0_389 = arith.constant 0 : index
    %c0_390 = arith.constant 0 : index
    %610 = vector.load %arg30[%c5_388, %c0_389, %c0_390] : memref<9x16x4xbf16, #tpu.memory_space<vmem>>, vector<1x16x4xbf16>
    %611 = vector.shape_cast %610 : vector<1x16x4xbf16> to vector<16x4xbf16>
    %612 = arith.truncf %560 : vector<32x16xf32> to vector<32x16xbf16>
    %cst_391 = arith.constant dense<0.000000e+00> : vector<32x4xf32>
    %613 = tpu.matmul %612, %611, %cst_391 {dimension_numbers = #tpu.dot_dimension_numbers<[1], [0], [0], [1], [0, 0, 1, 1], [], []>} : vector<32x16xbf16>, vector<16x4xbf16>, vector<32x4xf32> -> vector<32x4xf32>
    %c5_392 = arith.constant 5 : index
    %c0_393 = arith.constant 0 : index
    %c0_394 = arith.constant 0 : index
    %614 = vector.load %arg25[%c5_392, %c0_393, %c0_394] : memref<9x64x32xbf16, #tpu.memory_space<vmem>>, vector<1x64x32xbf16>
    %615 = vector.shape_cast %614 : vector<1x64x32xbf16> to vector<64x32xbf16>
    %616 = arith.truncf %613 : vector<32x4xf32> to vector<32x4xbf16>
    %cst_395 = arith.constant dense<0.000000e+00> : vector<64x4xf32>
    %617 = tpu.matmul %615, %616, %cst_395 {dimension_numbers = #tpu.dot_dimension_numbers<[1], [0], [0], [1], [0, 0, 1, 1], [], []>} : vector<64x32xbf16>, vector<32x4xbf16>, vector<64x4xf32> -> vector<64x4xf32>
    %618 = arith.addf %609, %617 : vector<64x4xf32>
    %c6_396 = arith.constant 6 : index
    %c0_397 = arith.constant 0 : index
    %c0_398 = arith.constant 0 : index
    %619 = vector.load %arg30[%c6_396, %c0_397, %c0_398] : memref<9x16x4xbf16, #tpu.memory_space<vmem>>, vector<1x16x4xbf16>
    %620 = vector.shape_cast %619 : vector<1x16x4xbf16> to vector<16x4xbf16>
    %621 = arith.truncf %560 : vector<32x16xf32> to vector<32x16xbf16>
    %cst_399 = arith.constant dense<0.000000e+00> : vector<32x4xf32>
    %622 = tpu.matmul %621, %620, %cst_399 {dimension_numbers = #tpu.dot_dimension_numbers<[1], [0], [0], [1], [0, 0, 1, 1], [], []>} : vector<32x16xbf16>, vector<16x4xbf16>, vector<32x4xf32> -> vector<32x4xf32>
    %c6_400 = arith.constant 6 : index
    %c0_401 = arith.constant 0 : index
    %c0_402 = arith.constant 0 : index
    %623 = vector.load %arg25[%c6_400, %c0_401, %c0_402] : memref<9x64x32xbf16, #tpu.memory_space<vmem>>, vector<1x64x32xbf16>
    %624 = vector.shape_cast %623 : vector<1x64x32xbf16> to vector<64x32xbf16>
    %625 = arith.truncf %622 : vector<32x4xf32> to vector<32x4xbf16>
    %cst_403 = arith.constant dense<0.000000e+00> : vector<64x4xf32>
    %626 = tpu.matmul %624, %625, %cst_403 {dimension_numbers = #tpu.dot_dimension_numbers<[1], [0], [0], [1], [0, 0, 1, 1], [], []>} : vector<64x32xbf16>, vector<32x4xbf16>, vector<64x4xf32> -> vector<64x4xf32>
    %627 = arith.addf %618, %626 : vector<64x4xf32>
    %c7_404 = arith.constant 7 : index
    %c0_405 = arith.constant 0 : index
    %c0_406 = arith.constant 0 : index
    %628 = vector.load %arg30[%c7_404, %c0_405, %c0_406] : memref<9x16x4xbf16, #tpu.memory_space<vmem>>, vector<1x16x4xbf16>
    %629 = vector.shape_cast %628 : vector<1x16x4xbf16> to vector<16x4xbf16>
    %630 = arith.truncf %560 : vector<32x16xf32> to vector<32x16xbf16>
    %cst_407 = arith.constant dense<0.000000e+00> : vector<32x4xf32>
    %631 = tpu.matmul %630, %629, %cst_407 {dimension_numbers = #tpu.dot_dimension_numbers<[1], [0], [0], [1], [0, 0, 1, 1], [], []>} : vector<32x16xbf16>, vector<16x4xbf16>, vector<32x4xf32> -> vector<32x4xf32>
    %c7_408 = arith.constant 7 : index
    %c0_409 = arith.constant 0 : index
    %c0_410 = arith.constant 0 : index
    %632 = vector.load %arg25[%c7_408, %c0_409, %c0_410] : memref<9x64x32xbf16, #tpu.memory_space<vmem>>, vector<1x64x32xbf16>
    %633 = vector.shape_cast %632 : vector<1x64x32xbf16> to vector<64x32xbf16>
    %634 = arith.truncf %631 : vector<32x4xf32> to vector<32x4xbf16>
    %cst_411 = arith.constant dense<0.000000e+00> : vector<64x4xf32>
    %635 = tpu.matmul %633, %634, %cst_411 {dimension_numbers = #tpu.dot_dimension_numbers<[1], [0], [0], [1], [0, 0, 1, 1], [], []>} : vector<64x32xbf16>, vector<32x4xbf16>, vector<64x4xf32> -> vector<64x4xf32>
    %636 = arith.addf %627, %635 : vector<64x4xf32>
    %c8_412 = arith.constant 8 : index
    %c0_413 = arith.constant 0 : index
    %c0_414 = arith.constant 0 : index
    %637 = vector.load %arg30[%c8_412, %c0_413, %c0_414] : memref<9x16x4xbf16, #tpu.memory_space<vmem>>, vector<1x16x4xbf16>
    %638 = vector.shape_cast %637 : vector<1x16x4xbf16> to vector<16x4xbf16>
    %639 = arith.truncf %560 : vector<32x16xf32> to vector<32x16xbf16>
    %cst_415 = arith.constant dense<0.000000e+00> : vector<32x4xf32>
    %640 = tpu.matmul %639, %638, %cst_415 {dimension_numbers = #tpu.dot_dimension_numbers<[1], [0], [0], [1], [0, 0, 1, 1], [], []>} : vector<32x16xbf16>, vector<16x4xbf16>, vector<32x4xf32> -> vector<32x4xf32>
    %c8_416 = arith.constant 8 : index
    %c0_417 = arith.constant 0 : index
    %c0_418 = arith.constant 0 : index
    %641 = vector.load %arg25[%c8_416, %c0_417, %c0_418] : memref<9x64x32xbf16, #tpu.memory_space<vmem>>, vector<1x64x32xbf16>
    %642 = vector.shape_cast %641 : vector<1x64x32xbf16> to vector<64x32xbf16>
    %643 = arith.truncf %640 : vector<32x4xf32> to vector<32x4xbf16>
    %cst_419 = arith.constant dense<0.000000e+00> : vector<64x4xf32>
    %644 = tpu.matmul %642, %643, %cst_419 {dimension_numbers = #tpu.dot_dimension_numbers<[1], [0], [0], [1], [0, 0, 1, 1], [], []>} : vector<64x32xbf16>, vector<32x4xbf16>, vector<64x4xf32> -> vector<64x4xf32>
    %645 = arith.addf %636, %644 : vector<64x4xf32>
    %646 = vector.broadcast %564 : vector<64x1xf32> to vector<64x4xf32>
    %647 = arith.addf %645, %646 : vector<64x4xf32>
    %cst_420 = arith.constant 0.000000e+00 : f32
    %648 = vector.broadcast %cst_420 : f32 to vector<64x4xf32>
    %649 = arith.maximumf %647, %648 : vector<64x4xf32>
    %cst_421 = arith.constant 0.000000e+00 : f32
    %650 = vector.broadcast %cst_421 : f32 to vector<64x3xf32>
    %651 = tpu.concatenate %650, %649, %650 in 1 : vector<64x3xf32>, vector<64x4xf32>, vector<64x3xf32> -> vector<64x10xf32>
    %c0_422 = arith.constant 0 : index
    %c0_423 = arith.constant 0 : index
    %652 = vector.load %arg29[%c0_422, %c0_423] : memref<9x4xf32, #tpu.memory_space<vmem>>, vector<9x4xf32>
    %653 = vector.extract_strided_slice %651 {offsets = [0, 0], sizes = [64, 4], strides = [1, 1]} : vector<64x10xf32> to vector<64x4xf32>
    %654 = vector.extract_strided_slice %652 {offsets = [0, 0], sizes = [1, 4], strides = [1, 1]} : vector<9x4xf32> to vector<1x4xf32>
    %655 = vector.broadcast %654 : vector<1x4xf32> to vector<64x4xf32>
    %656 = arith.mulf %653, %655 : vector<64x4xf32>
    %c0_424 = arith.constant 0 : index
    %c0_425 = arith.constant 0 : index
    %c0_426 = arith.constant 0 : index
    %657 = vector.load %arg27[%c0_424, %c0_425, %c0_426] : memref<9x64x64xbf16, #tpu.memory_space<vmem>>, vector<1x64x64xbf16>
    %658 = vector.shape_cast %657 : vector<1x64x64xbf16> to vector<64x64xbf16>
    %659 = arith.truncf %656 : vector<64x4xf32> to vector<64x4xbf16>
    %cst_427 = arith.constant dense<0.000000e+00> : vector<64x4xf32>
    %660 = tpu.matmul %658, %659, %cst_427 {dimension_numbers = #tpu.dot_dimension_numbers<[1], [0], [0], [1], [0, 0, 1, 1], [], []>} : vector<64x64xbf16>, vector<64x4xbf16>, vector<64x4xf32> -> vector<64x4xf32>
    %661 = vector.extract_strided_slice %651 {offsets = [0, 1], sizes = [64, 4], strides = [1, 1]} : vector<64x10xf32> to vector<64x4xf32>
    %662 = vector.extract_strided_slice %652 {offsets = [1, 0], sizes = [1, 4], strides = [1, 1]} : vector<9x4xf32> to vector<1x4xf32>
    %663 = vector.broadcast %662 : vector<1x4xf32> to vector<64x4xf32>
    %664 = arith.mulf %661, %663 : vector<64x4xf32>
    %c1_428 = arith.constant 1 : index
    %c0_429 = arith.constant 0 : index
    %c0_430 = arith.constant 0 : index
    %665 = vector.load %arg27[%c1_428, %c0_429, %c0_430] : memref<9x64x64xbf16, #tpu.memory_space<vmem>>, vector<1x64x64xbf16>
    %666 = vector.shape_cast %665 : vector<1x64x64xbf16> to vector<64x64xbf16>
    %667 = arith.truncf %664 : vector<64x4xf32> to vector<64x4xbf16>
    %cst_431 = arith.constant dense<0.000000e+00> : vector<64x4xf32>
    %668 = tpu.matmul %666, %667, %cst_431 {dimension_numbers = #tpu.dot_dimension_numbers<[1], [0], [0], [1], [0, 0, 1, 1], [], []>} : vector<64x64xbf16>, vector<64x4xbf16>, vector<64x4xf32> -> vector<64x4xf32>
    %669 = arith.addf %660, %668 : vector<64x4xf32>
    %670 = vector.extract_strided_slice %651 {offsets = [0, 2], sizes = [64, 4], strides = [1, 1]} : vector<64x10xf32> to vector<64x4xf32>
    %671 = vector.extract_strided_slice %652 {offsets = [2, 0], sizes = [1, 4], strides = [1, 1]} : vector<9x4xf32> to vector<1x4xf32>
    %672 = vector.broadcast %671 : vector<1x4xf32> to vector<64x4xf32>
    %673 = arith.mulf %670, %672 : vector<64x4xf32>
    %c2_432 = arith.constant 2 : index
    %c0_433 = arith.constant 0 : index
    %c0_434 = arith.constant 0 : index
    %674 = vector.load %arg27[%c2_432, %c0_433, %c0_434] : memref<9x64x64xbf16, #tpu.memory_space<vmem>>, vector<1x64x64xbf16>
    %675 = vector.shape_cast %674 : vector<1x64x64xbf16> to vector<64x64xbf16>
    %676 = arith.truncf %673 : vector<64x4xf32> to vector<64x4xbf16>
    %cst_435 = arith.constant dense<0.000000e+00> : vector<64x4xf32>
    %677 = tpu.matmul %675, %676, %cst_435 {dimension_numbers = #tpu.dot_dimension_numbers<[1], [0], [0], [1], [0, 0, 1, 1], [], []>} : vector<64x64xbf16>, vector<64x4xbf16>, vector<64x4xf32> -> vector<64x4xf32>
    %678 = arith.addf %669, %677 : vector<64x4xf32>
    %679 = vector.extract_strided_slice %651 {offsets = [0, 2], sizes = [64, 4], strides = [1, 1]} : vector<64x10xf32> to vector<64x4xf32>
    %680 = vector.extract_strided_slice %652 {offsets = [3, 0], sizes = [1, 4], strides = [1, 1]} : vector<9x4xf32> to vector<1x4xf32>
    %681 = vector.broadcast %680 : vector<1x4xf32> to vector<64x4xf32>
    %682 = arith.mulf %679, %681 : vector<64x4xf32>
    %c3_436 = arith.constant 3 : index
    %c0_437 = arith.constant 0 : index
    %c0_438 = arith.constant 0 : index
    %683 = vector.load %arg27[%c3_436, %c0_437, %c0_438] : memref<9x64x64xbf16, #tpu.memory_space<vmem>>, vector<1x64x64xbf16>
    %684 = vector.shape_cast %683 : vector<1x64x64xbf16> to vector<64x64xbf16>
    %685 = arith.truncf %682 : vector<64x4xf32> to vector<64x4xbf16>
    %cst_439 = arith.constant dense<0.000000e+00> : vector<64x4xf32>
    %686 = tpu.matmul %684, %685, %cst_439 {dimension_numbers = #tpu.dot_dimension_numbers<[1], [0], [0], [1], [0, 0, 1, 1], [], []>} : vector<64x64xbf16>, vector<64x4xbf16>, vector<64x4xf32> -> vector<64x4xf32>
    %687 = arith.addf %678, %686 : vector<64x4xf32>
    %688 = vector.extract_strided_slice %651 {offsets = [0, 3], sizes = [64, 4], strides = [1, 1]} : vector<64x10xf32> to vector<64x4xf32>
    %689 = vector.extract_strided_slice %652 {offsets = [4, 0], sizes = [1, 4], strides = [1, 1]} : vector<9x4xf32> to vector<1x4xf32>
    %690 = vector.broadcast %689 : vector<1x4xf32> to vector<64x4xf32>
    %691 = arith.mulf %688, %690 : vector<64x4xf32>
    %c4_440 = arith.constant 4 : index
    %c0_441 = arith.constant 0 : index
    %c0_442 = arith.constant 0 : index
    %692 = vector.load %arg27[%c4_440, %c0_441, %c0_442] : memref<9x64x64xbf16, #tpu.memory_space<vmem>>, vector<1x64x64xbf16>
    %693 = vector.shape_cast %692 : vector<1x64x64xbf16> to vector<64x64xbf16>
    %694 = arith.truncf %691 : vector<64x4xf32> to vector<64x4xbf16>
    %cst_443 = arith.constant dense<0.000000e+00> : vector<64x4xf32>
    %695 = tpu.matmul %693, %694, %cst_443 {dimension_numbers = #tpu.dot_dimension_numbers<[1], [0], [0], [1], [0, 0, 1, 1], [], []>} : vector<64x64xbf16>, vector<64x4xbf16>, vector<64x4xf32> -> vector<64x4xf32>
    %696 = arith.addf %687, %695 : vector<64x4xf32>
    %697 = vector.extract_strided_slice %651 {offsets = [0, 4], sizes = [64, 4], strides = [1, 1]} : vector<64x10xf32> to vector<64x4xf32>
    %698 = vector.extract_strided_slice %652 {offsets = [5, 0], sizes = [1, 4], strides = [1, 1]} : vector<9x4xf32> to vector<1x4xf32>
    %699 = vector.broadcast %698 : vector<1x4xf32> to vector<64x4xf32>
    %700 = arith.mulf %697, %699 : vector<64x4xf32>
    %c5_444 = arith.constant 5 : index
    %c0_445 = arith.constant 0 : index
    %c0_446 = arith.constant 0 : index
    %701 = vector.load %arg27[%c5_444, %c0_445, %c0_446] : memref<9x64x64xbf16, #tpu.memory_space<vmem>>, vector<1x64x64xbf16>
    %702 = vector.shape_cast %701 : vector<1x64x64xbf16> to vector<64x64xbf16>
    %703 = arith.truncf %700 : vector<64x4xf32> to vector<64x4xbf16>
    %cst_447 = arith.constant dense<0.000000e+00> : vector<64x4xf32>
    %704 = tpu.matmul %702, %703, %cst_447 {dimension_numbers = #tpu.dot_dimension_numbers<[1], [0], [0], [1], [0, 0, 1, 1], [], []>} : vector<64x64xbf16>, vector<64x4xbf16>, vector<64x4xf32> -> vector<64x4xf32>
    %705 = arith.addf %696, %704 : vector<64x4xf32>
    %706 = vector.extract_strided_slice %651 {offsets = [0, 4], sizes = [64, 4], strides = [1, 1]} : vector<64x10xf32> to vector<64x4xf32>
    %707 = vector.extract_strided_slice %652 {offsets = [6, 0], sizes = [1, 4], strides = [1, 1]} : vector<9x4xf32> to vector<1x4xf32>
    %708 = vector.broadcast %707 : vector<1x4xf32> to vector<64x4xf32>
    %709 = arith.mulf %706, %708 : vector<64x4xf32>
    %c6_448 = arith.constant 6 : index
    %c0_449 = arith.constant 0 : index
    %c0_450 = arith.constant 0 : index
    %710 = vector.load %arg27[%c6_448, %c0_449, %c0_450] : memref<9x64x64xbf16, #tpu.memory_space<vmem>>, vector<1x64x64xbf16>
    %711 = vector.shape_cast %710 : vector<1x64x64xbf16> to vector<64x64xbf16>
    %712 = arith.truncf %709 : vector<64x4xf32> to vector<64x4xbf16>
    %cst_451 = arith.constant dense<0.000000e+00> : vector<64x4xf32>
    %713 = tpu.matmul %711, %712, %cst_451 {dimension_numbers = #tpu.dot_dimension_numbers<[1], [0], [0], [1], [0, 0, 1, 1], [], []>} : vector<64x64xbf16>, vector<64x4xbf16>, vector<64x4xf32> -> vector<64x4xf32>
    %714 = arith.addf %705, %713 : vector<64x4xf32>
    %715 = vector.extract_strided_slice %651 {offsets = [0, 5], sizes = [64, 4], strides = [1, 1]} : vector<64x10xf32> to vector<64x4xf32>
    %716 = vector.extract_strided_slice %652 {offsets = [7, 0], sizes = [1, 4], strides = [1, 1]} : vector<9x4xf32> to vector<1x4xf32>
    %717 = vector.broadcast %716 : vector<1x4xf32> to vector<64x4xf32>
    %718 = arith.mulf %715, %717 : vector<64x4xf32>
    %c7_452 = arith.constant 7 : index
    %c0_453 = arith.constant 0 : index
    %c0_454 = arith.constant 0 : index
    %719 = vector.load %arg27[%c7_452, %c0_453, %c0_454] : memref<9x64x64xbf16, #tpu.memory_space<vmem>>, vector<1x64x64xbf16>
    %720 = vector.shape_cast %719 : vector<1x64x64xbf16> to vector<64x64xbf16>
    %721 = arith.truncf %718 : vector<64x4xf32> to vector<64x4xbf16>
    %cst_455 = arith.constant dense<0.000000e+00> : vector<64x4xf32>
    %722 = tpu.matmul %720, %721, %cst_455 {dimension_numbers = #tpu.dot_dimension_numbers<[1], [0], [0], [1], [0, 0, 1, 1], [], []>} : vector<64x64xbf16>, vector<64x4xbf16>, vector<64x4xf32> -> vector<64x4xf32>
    %723 = arith.addf %714, %722 : vector<64x4xf32>
    %724 = vector.extract_strided_slice %651 {offsets = [0, 6], sizes = [64, 4], strides = [1, 1]} : vector<64x10xf32> to vector<64x4xf32>
    %725 = vector.extract_strided_slice %652 {offsets = [8, 0], sizes = [1, 4], strides = [1, 1]} : vector<9x4xf32> to vector<1x4xf32>
    %726 = vector.broadcast %725 : vector<1x4xf32> to vector<64x4xf32>
    %727 = arith.mulf %724, %726 : vector<64x4xf32>
    %c8_456 = arith.constant 8 : index
    %c0_457 = arith.constant 0 : index
    %c0_458 = arith.constant 0 : index
    %728 = vector.load %arg27[%c8_456, %c0_457, %c0_458] : memref<9x64x64xbf16, #tpu.memory_space<vmem>>, vector<1x64x64xbf16>
    %729 = vector.shape_cast %728 : vector<1x64x64xbf16> to vector<64x64xbf16>
    %730 = arith.truncf %727 : vector<64x4xf32> to vector<64x4xbf16>
    %cst_459 = arith.constant dense<0.000000e+00> : vector<64x4xf32>
    %731 = tpu.matmul %729, %730, %cst_459 {dimension_numbers = #tpu.dot_dimension_numbers<[1], [0], [0], [1], [0, 0, 1, 1], [], []>} : vector<64x64xbf16>, vector<64x4xbf16>, vector<64x4xf32> -> vector<64x4xf32>
    %732 = arith.addf %723, %731 : vector<64x4xf32>
    %733 = vector.broadcast %565 : vector<64x1xf32> to vector<64x4xf32>
    %734 = arith.addf %732, %733 : vector<64x4xf32>
    %c4_460 = arith.constant 4 : index
    %c0_461 = arith.constant 0 : index
    %c0_462 = arith.constant 0 : index
    %735 = vector.load %arg30[%c4_460, %c0_461, %c0_462] : memref<9x16x4xbf16, #tpu.memory_space<vmem>>, vector<1x16x4xbf16>
    %736 = vector.shape_cast %735 : vector<1x16x4xbf16> to vector<16x4xbf16>
    %737 = arith.truncf %560 : vector<32x16xf32> to vector<32x16xbf16>
    %cst_463 = arith.constant dense<0.000000e+00> : vector<32x4xf32>
    %738 = tpu.matmul %737, %736, %cst_463 {dimension_numbers = #tpu.dot_dimension_numbers<[1], [0], [0], [1], [0, 0, 1, 1], [], []>} : vector<32x16xbf16>, vector<16x4xbf16>, vector<32x4xf32> -> vector<32x4xf32>
    %c0_464 = arith.constant 0 : index
    %c0_465 = arith.constant 0 : index
    %739 = vector.load %arg31[%c0_464, %c0_465] : memref<64x32xbf16, #tpu.memory_space<vmem>>, vector<64x32xbf16>
    %740 = arith.truncf %738 : vector<32x4xf32> to vector<32x4xbf16>
    %cst_466 = arith.constant dense<0.000000e+00> : vector<64x4xf32>
    %741 = tpu.matmul %739, %740, %cst_466 {dimension_numbers = #tpu.dot_dimension_numbers<[1], [0], [0], [1], [0, 0, 1, 1], [], []>} : vector<64x32xbf16>, vector<32x4xbf16>, vector<64x4xf32> -> vector<64x4xf32>
    %c0_467 = arith.constant 0 : index
    %c0_468 = arith.constant 0 : index
    %742 = vector.load %arg32[%c0_467, %c0_468] : memref<64x1xf32, #tpu.memory_space<vmem>>, vector<64x1xf32>
    %743 = vector.broadcast %742 : vector<64x1xf32> to vector<64x4xf32>
    %744 = arith.addf %741, %743 : vector<64x4xf32>
    %745 = arith.addf %734, %744 : vector<64x4xf32>
    %cst_469 = arith.constant 0.000000e+00 : f32
    %746 = vector.broadcast %cst_469 : f32 to vector<64x4xf32>
    %747 = arith.maximumf %745, %746 : vector<64x4xf32>
    %c0_470 = arith.constant 0 : index
    %c0_471 = arith.constant 0 : index
    %c0_472 = arith.constant 0 : index
    %748 = vector.load %arg36[%c0_470, %c0_471, %c0_472] : memref<1x64x4xf32, #tpu.memory_space<vmem>>, vector<1x64x4xf32>
    %749 = vector.shape_cast %748 : vector<1x64x4xf32> to vector<64x4xf32>
    %750 = vector.shape_cast %747 : vector<64x4xf32> to vector<1x64x4xf32>
    tpu.vector_store %arg36[%c0_470, %c0_471, %c0_472], %750 {strides = array<i32>} : memref<1x64x4xf32, #tpu.memory_space<vmem>>, vector<1x64x4xf32>,
    return
  }
  func.func @transform_0(%arg0: i32) -> (i32, i32, i32) {
    %c0_i32 = arith.constant 0 : i32
    %c0_i32_0 = arith.constant 0 : i32
    %c0_i32_1 = arith.constant 0 : i32
    return %arg0, %c0_i32, %c0_i32_0 : i32, i32, i32
  }
  func.func @transform_1(%arg0: i32) -> (i32, i32) {
    %c0_i32 = arith.constant 0 : i32
    %c0_i32_0 = arith.constant 0 : i32
    %c0_i32_1 = arith.constant 0 : i32
    return %c0_i32, %c0_i32_0 : i32, i32
  }
  func.func @transform_2(%arg0: i32) -> (i32, i32) {
    %c0_i32 = arith.constant 0 : i32
    %c0_i32_0 = arith.constant 0 : i32
    %c0_i32_1 = arith.constant 0 : i32
    return %c0_i32, %c0_i32_0 : i32, i32
  }
  func.func @transform_3(%arg0: i32) -> (i32, i32, i32) {
    %c0_i32 = arith.constant 0 : i32
    %c0_i32_0 = arith.constant 0 : i32
    %c0_i32_1 = arith.constant 0 : i32
    %c0_i32_2 = arith.constant 0 : i32
    return %c0_i32, %c0_i32_0, %c0_i32_1 : i32, i32, i32
  }
  func.func @transform_4(%arg0: i32) -> (i32, i32) {
    %c0_i32 = arith.constant 0 : i32
    %c0_i32_0 = arith.constant 0 : i32
    %c0_i32_1 = arith.constant 0 : i32
    return %c0_i32, %c0_i32_0 : i32, i32
  }
  func.func @transform_5(%arg0: i32) -> (i32, i32, i32) {
    %c0_i32 = arith.constant 0 : i32
    %c0_i32_0 = arith.constant 0 : i32
    %c0_i32_1 = arith.constant 0 : i32
    %c0_i32_2 = arith.constant 0 : i32
    return %c0_i32, %c0_i32_0, %c0_i32_1 : i32, i32, i32
  }
  func.func @transform_6(%arg0: i32) -> (i32, i32) {
    %c0_i32 = arith.constant 0 : i32
    %c0_i32_0 = arith.constant 0 : i32
    %c0_i32_1 = arith.constant 0 : i32
    return %c0_i32, %c0_i32_0 : i32, i32
  }
  func.func @transform_7(%arg0: i32) -> (i32, i32) {
    %c0_i32 = arith.constant 0 : i32
    %c0_i32_0 = arith.constant 0 : i32
    %c0_i32_1 = arith.constant 0 : i32
    return %c0_i32, %c0_i32_0 : i32, i32
  }
  func.func @transform_8(%arg0: i32) -> (i32, i32, i32) {
    %c0_i32 = arith.constant 0 : i32
    %c0_i32_0 = arith.constant 0 : i32
    %c0_i32_1 = arith.constant 0 : i32
    %c0_i32_2 = arith.constant 0 : i32
    return %c0_i32, %c0_i32_0, %c0_i32_1 : i32, i32, i32
  }
  func.func @transform_9(%arg0: i32) -> (i32, i32) {
    %c0_i32 = arith.constant 0 : i32
    %c0_i32_0 = arith.constant 0 : i32
    %c0_i32_1 = arith.constant 0 : i32
    return %c0_i32, %c0_i32_0 : i32, i32
  }
  func.func @transform_10(%arg0: i32) -> (i32, i32, i32) {
    %c0_i32 = arith.constant 0 : i32
    %c0_i32_0 = arith.constant 0 : i32
    %c0_i32_1 = arith.constant 0 : i32
    %c0_i32_2 = arith.constant 0 : i32
    return %c0_i32, %c0_i32_0, %c0_i32_1 : i32, i32, i32
  }
  func.func @transform_11(%arg0: i32) -> (i32, i32) {
    %c0_i32 = arith.constant 0 : i32
    %c0_i32_0 = arith.constant 0 : i32
    %c0_i32_1 = arith.constant 0 : i32
    return %c0_i32, %c0_i32_0 : i32, i32
  }
  func.func @transform_12(%arg0: i32) -> (i32, i32) {
    %c0_i32 = arith.constant 0 : i32
    %c0_i32_0 = arith.constant 0 : i32
    %c0_i32_1 = arith.constant 0 : i32
    return %c0_i32, %c0_i32_0 : i32, i32
  }
  func.func @transform_13(%arg0: i32) -> (i32, i32, i32) {
    %c0_i32 = arith.constant 0 : i32
    %c0_i32_0 = arith.constant 0 : i32
    %c0_i32_1 = arith.constant 0 : i32
    %c0_i32_2 = arith.constant 0 : i32
    return %c0_i32, %c0_i32_0, %c0_i32_1 : i32, i32, i32
  }
  func.func @transform_14(%arg0: i32) -> (i32, i32) {
    %c0_i32 = arith.constant 0 : i32
    %c0_i32_0 = arith.constant 0 : i32
    %c0_i32_1 = arith.constant 0 : i32
    return %c0_i32, %c0_i32_0 : i32, i32
  }
  func.func @transform_15(%arg0: i32) -> (i32, i32) {
    %c0_i32 = arith.constant 0 : i32
    %c0_i32_0 = arith.constant 0 : i32
    %c0_i32_1 = arith.constant 0 : i32
    return %c0_i32, %c0_i32_0 : i32, i32
  }
  func.func @transform_16(%arg0: i32) -> (i32, i32, i32) {
    %c0_i32 = arith.constant 0 : i32
    %c0_i32_0 = arith.constant 0 : i32
    %c0_i32_1 = arith.constant 0 : i32
    %c0_i32_2 = arith.constant 0 : i32
    return %c0_i32, %c0_i32_0, %c0_i32_1 : i32, i32, i32
  }
  func.func @transform_17(%arg0: i32) -> (i32, i32) {
    %c0_i32 = arith.constant 0 : i32
    %c0_i32_0 = arith.constant 0 : i32
    %c0_i32_1 = arith.constant 0 : i32
    return %c0_i32, %c0_i32_0 : i32, i32
  }
  func.func @transform_18(%arg0: i32) -> (i32, i32, i32) {
    %c0_i32 = arith.constant 0 : i32
    %c0_i32_0 = arith.constant 0 : i32
    %c0_i32_1 = arith.constant 0 : i32
    %c0_i32_2 = arith.constant 0 : i32
    return %c0_i32, %c0_i32_0, %c0_i32_1 : i32, i32, i32
  }
  func.func @transform_19(%arg0: i32) -> (i32, i32) {
    %c0_i32 = arith.constant 0 : i32
    %c0_i32_0 = arith.constant 0 : i32
    %c0_i32_1 = arith.constant 0 : i32
    return %c0_i32, %c0_i32_0 : i32, i32
  }
  func.func @transform_20(%arg0: i32) -> (i32, i32) {
    %c0_i32 = arith.constant 0 : i32
    %c0_i32_0 = arith.constant 0 : i32
    %c0_i32_1 = arith.constant 0 : i32
    return %c0_i32, %c0_i32_0 : i32, i32
  }
  func.func @transform_21(%arg0: i32) -> (i32, i32, i32) {
    %c0_i32 = arith.constant 0 : i32
    %c0_i32_0 = arith.constant 0 : i32
    %c0_i32_1 = arith.constant 0 : i32
    %c0_i32_2 = arith.constant 0 : i32
    return %c0_i32, %c0_i32_0, %c0_i32_1 : i32, i32, i32
  }
  func.func @transform_22(%arg0: i32) -> (i32, i32) {
    %c0_i32 = arith.constant 0 : i32
    %c0_i32_0 = arith.constant 0 : i32
    %c0_i32_1 = arith.constant 0 : i32
    return %c0_i32, %c0_i32_0 : i32, i32
  }
  func.func @transform_23(%arg0: i32) -> (i32, i32) {
    %c0_i32 = arith.constant 0 : i32
    %c0_i32_0 = arith.constant 0 : i32
    %c0_i32_1 = arith.constant 0 : i32
    return %c0_i32, %c0_i32_0 : i32, i32
  }
  func.func @transform_24(%arg0: i32) -> (i32, i32, i32) {
    %c0_i32 = arith.constant 0 : i32
    %c0_i32_0 = arith.constant 0 : i32
    %c0_i32_1 = arith.constant 0 : i32
    %c0_i32_2 = arith.constant 0 : i32
    return %c0_i32, %c0_i32_0, %c0_i32_1 : i32, i32, i32
  }
  func.func @transform_25(%arg0: i32) -> (i32, i32) {
    %c0_i32 = arith.constant 0 : i32
    %c0_i32_0 = arith.constant 0 : i32
    %c0_i32_1 = arith.constant 0 : i32
    return %c0_i32, %c0_i32_0 : i32, i32
  }
  func.func @transform_26(%arg0: i32) -> (i32, i32, i32) {
    %c0_i32 = arith.constant 0 : i32
    %c0_i32_0 = arith.constant 0 : i32
    %c0_i32_1 = arith.constant 0 : i32
    %c0_i32_2 = arith.constant 0 : i32
    return %c0_i32, %c0_i32_0, %c0_i32_1 : i32, i32, i32
  }
  func.func @transform_27(%arg0: i32) -> (i32, i32) {
    %c0_i32 = arith.constant 0 : i32
    %c0_i32_0 = arith.constant 0 : i32
    %c0_i32_1 = arith.constant 0 : i32
    return %c0_i32, %c0_i32_0 : i32, i32
  }
  func.func @transform_28(%arg0: i32) -> (i32, i32) {
    %c0_i32 = arith.constant 0 : i32
    %c0_i32_0 = arith.constant 0 : i32
    %c0_i32_1 = arith.constant 0 : i32
    return %c0_i32, %c0_i32_0 : i32, i32
  }
  func.func @transform_29(%arg0: i32) -> (i32, i32, i32) {
    %c0_i32 = arith.constant 0 : i32
    %c0_i32_0 = arith.constant 0 : i32
    %c0_i32_1 = arith.constant 0 : i32
    %c0_i32_2 = arith.constant 0 : i32
    return %c0_i32, %c0_i32_0, %c0_i32_1 : i32, i32, i32
  }
  func.func @transform_30(%arg0: i32) -> (i32, i32) {
    %c0_i32 = arith.constant 0 : i32
    %c0_i32_0 = arith.constant 0 : i32
    %c0_i32_1 = arith.constant 0 : i32
    return %c0_i32, %c0_i32_0 : i32, i32
  }
  func.func @transform_31(%arg0: i32) -> (i32, i32) {
    %c0_i32 = arith.constant 0 : i32
    %c0_i32_0 = arith.constant 0 : i32
    %c0_i32_1 = arith.constant 0 : i32
    return %c0_i32, %c0_i32_0 : i32, i32
  }
  func.func @transform_32(%arg0: i32) -> (i32, i32, i32) {
    %c0_i32 = arith.constant 0 : i32
    %c0_i32_0 = arith.constant 0 : i32
    %c0_i32_1 = arith.constant 0 : i32
    return %arg0, %c0_i32, %c0_i32_0 : i32, i32, i32
  }
  func.func @transform_33(%arg0: i32) -> (i32, i32, i32) {
    %c0_i32 = arith.constant 0 : i32
    %c0_i32_0 = arith.constant 0 : i32
    %c0_i32_1 = arith.constant 0 : i32
    return %arg0, %c0_i32, %c0_i32_0 : i32, i32, i32
  }
  func.func @transform_34(%arg0: i32) -> (i32, i32, i32) {
    %c0_i32 = arith.constant 0 : i32
    %c0_i32_0 = arith.constant 0 : i32
    %c0_i32_1 = arith.constant 0 : i32
    return %arg0, %c0_i32, %c0_i32_0 : i32, i32, i32
  }
  func.func @transform_35(%arg0: i32) -> (i32, i32, i32) {
    %c0_i32 = arith.constant 0 : i32
    %c0_i32_0 = arith.constant 0 : i32
    %c0_i32_1 = arith.constant 0 : i32
    return %arg0, %c0_i32, %c0_i32_0 : i32, i32, i32
  }
}

</mosaic_0001>

<bundles_post_ra>
// kernel: _lambda_.1
= control target key start
LH: loop header
LB: loop body
LE: loop exit
PB: predicated region body
PF: predicated region fallthrough
CT: control target
= control target key end

     0   :  { %s10721_s6 = smov 1   ;;  %s10722_s10 = smov 2   ;;  %s12488_s0 = inlined_call_operand.smem [shape: u32[36], index: -1, kind: input, shape index: {}] }
   0x1   :  { %s10800_s5 = sld [smem:[%s12488_s0]]   ;;  %s10723_s14 = smov 3  }
   0x2   :  { %s10805_s9 = sld [smem:[%s12488_s0 + %s10721_s6]]   ;;  %s10724_s18 = smov 4  }
   0x3   :  { %s10810_s13 = sld [smem:[%s12488_s0 + %s10722_s10]]   ;;  %s10725_s22 = smov 5  }
   0x4   :  { %s10815_s17 = sld [smem:[%s12488_s0 + %s10723_s14]]   ;;  %s10726_s26 = smov 6  }
   0x5   :  { %s10820_s21 = sld [smem:[%s12488_s0 + %s10724_s18]]   ;;  %s10727_s30 = smov 7  }
   0x6   :  { %s10825_s25 = sld [smem:[%s12488_s0 + %s10725_s22]]   ;;  %s10728_s4 = smov 8  }
   0x7   :  { %12540 = sst [smem:[#allocation8_spill]] %s10800_s5  ;;  %s10729_s10 = smov 9  }
   0x8   :  { %s10830_s29 = sld [smem:[%s12488_s0 + %s10726_s26]]   ;;  %s10730_s15 = smov 10  }
   0x9   :  { %s10835_s3 = sld [smem:[%s12488_s0 + %s10727_s30]]   ;;  %s10731_s20 = smov 11  }
   0xa   :  { %s10840_s8 = sld [smem:[%s12488_s0 + %s10728_s4]]   ;;  %s10732_s26 = smov 12  }
   0xb   :  { %s10845_s14 = sld [smem:[%s12488_s0 + %s10729_s10]]   ;;  %s10733_s1 = smov 13  }
   0xc   :  { %s10850_s19 = sld [smem:[%s12488_s0 + %s10730_s15]]   ;;  %s10734_s7 = smov 14  }
   0xd   :  { %s10855_s24 = sld [smem:[%s12488_s0 + %s10731_s20]]   ;;  %s10735_s15 = smov 15  }
   0xe   :  { %s10860_s30 = sld [smem:[%s12488_s0 + %s10732_s26]]   ;;  %s10736_s22 = smov 16  }
   0xf   :  { %12541 = sst [smem:[#allocation9_spill]] %s10835_s3  ;;  %s10737_s28 = smov 17  }
  0x10   :  { %s10865_s6 = sld [smem:[%s12488_s0 + %s10733_s1]]  }
  0x11   :  { %s10870_s12 = sld [smem:[%s12488_s0 + %s10734_s7]]   ;;  %s10738_s7 = smov 18  }
  0x12   :  { %12542 = sst [smem:[#allocation10_spill]] %s10850_s19 }
  0x13   :  { %s10875_s20 = sld [smem:[%s12488_s0 + %s10735_s15]]   ;;  %s10739_s15 = smov 19  }
  0x14   :  { %s10880_s27 = sld [smem:[%s12488_s0 + %s10736_s22]]   ;;  %s10740_s22 = smov 20  }
  0x15   :  { %s10885_s4 = sld [smem:[%s12488_s0 + %s10737_s28]]   ;;  %s10741_s28 = smov 21  }
  0x16   :  { %s10895_s19 = sld [smem:[%s12488_s0 + %s10739_s15]]   ;;  %s10743_s15 = smov 23  }
  0x17   :  { %12543 = sst [smem:[#allocation11_spill]] %s10870_s12 }
  0x18   :  { %s10890_s12 = sld [smem:[%s12488_s0 + %s10738_s7]]   ;;  %s10742_s7 = smov 22  }
  0x19   :  { %12544 = sst [smem:[#allocation12_spill]] %s10875_s20 }
  0x1a   :  { %12545 = sst [smem:[#allocation13_spill]] %s10880_s27 }
  0x1b   :  { %12546 = sst [smem:[#allocation14_spill]] %s10885_s4 }
  0x1c   :  { %12547 = sst [smem:[#allocation15_spill]] %s10895_s19 }
  0x1d   :  { %s10900_s27 = sld [smem:[%s12488_s0 + %s10740_s22]]   ;;  %s10744_s22 = smov 24  }
  0x1e   :  { %s10905_s4 = sld [smem:[%s12488_s0 + %s10741_s28]]   ;;  %s10745_s28 = smov 25  }
  0x1f   :  { %s10910_s20 = sld [smem:[%s12488_s0 + %s10742_s7]]   ;;  %s10746_s7 = smov 26  }
  0x20   :  { %s10915_s19 = sld [smem:[%s12488_s0 + %s10743_s15]]   ;;  %s10747_s15 = smov 27  }
  0x23   :  { %12548 = sst [smem:[#allocation16_spill]] %s10900_s27 }
  0x24   :  { %12549 = sst [smem:[#allocation17_spill]] %s10905_s4 }
  0x25   :  { %12550 = sst [smem:[#allocation18_spill]] %s10910_s20 }
  0x26   :  { %12551 = sst [smem:[#allocation19_spill]] %s10915_s19 }
  0x27   :  { %s10920_s27 = sld [smem:[%s12488_s0 + %s10744_s22]]   ;;  %s10748_s22 = smov 28  }
  0x28   :  { %s10925_s4 = sld [smem:[%s12488_s0 + %s10745_s28]]   ;;  %s10749_s28 = smov 29  }
  0x29   :  { %s10930_s20 = sld [smem:[%s12488_s0 + %s10746_s7]]   ;;  %s10750_s7 = smov 30  }
  0x2a   :  { %s10935_s19 = sld [smem:[%s12488_s0 + %s10747_s15]]   ;;  %s10751_s15 = smov 31  }
  0x2d   :  { %12552 = sst [smem:[#allocation20_spill]] %s10920_s27 }
  0x2e   :  { %12553 = sst [smem:[#allocation21_spill]] %s10925_s4 }
  0x2f   :  { %12554 = sst [smem:[#allocation22_spill]] %s10930_s20 }
  0x30   :  { %12555 = sst [smem:[#allocation23_spill]] %s10935_s19 }
  0x31   :  { %s10940_s27 = sld [smem:[%s12488_s0 + %s10748_s22]]   ;;  %s10752_s22 = smov 32  }
  0x32   :  { %s10945_s4 = sld [smem:[%s12488_s0 + %s10749_s28]]   ;;  %s10753_s28 = smov 33  }
  0x33   :  { %s10950_s20 = sld [smem:[%s12488_s0 + %s10750_s7]]   ;;  %s10754_s7 = smov 34  }
  0x34   :  { %s10955_s19 = sld [smem:[%s12488_s0 + %s10751_s15]]   ;;  %s10755_s15 = smov 35  }
  0x37   :  { %12556 = sst [smem:[#allocation24_spill]] %s10940_s27 }
  0x38   :  { %12557 = sst [smem:[#allocation25_spill]] %s10945_s4 }
  0x39   :  { %12558 = sst [smem:[#allocation26_spill]] %s10950_s20 }
  0x3a   :  { %12559 = sst [smem:[#allocation27_spill]] %s10955_s19 }
  0x3b   :  { %s10960_s27 = sld [smem:[%s12488_s0 + %s10752_s22]]  }
  0x3c   :  { %s10965_s4 = sld [smem:[%s12488_s0 + %s10753_s28]]  }
  0x3d   :  { %s10970_s20 = sld [smem:[%s12488_s0 + %s10754_s7]]  }
  0x3e   :  { %s10975_s19 = sld [smem:[%s12488_s0 + %s10755_s15]]  }
  0x42   :  { %12560 = sst [smem:[#allocation28_spill]] %s10965_s4 }
  0x43   :  { %77 = vsyncpa [#allocation3], 0 }
  0x44   :  { %78 = vsyncpa [#allocation5], 0  ;;  %s10977_s22 = smov 0  }
  0x45 LB: > { %s12561_s3 = sld [smem:[#allocation9_spill]]  ;;  %s917_s23 = sshll.u32 %s10865_s6, 4  ;;  %s10719_s22 = sphi %s10977_s22, %s84_s22   ;;  %s918_s23 = int_to_ptr.hbm [resolvable:$true] %s917_s23 }
  0x46   : > { %12562 = sst [smem:[#allocation29_spill]] %s10719_s22  ;;  %s10984_s26 = sadd.s32 4294967295, %s10719_s22  }
  0x47   : > { %p8419_p0 = scmp.ge.s32.totalorder %s10719_s22, 1  ;;  %p870_p1 = scmp.lt.s32.totalorder %s10719_s22, 3 }
  0x48   : > { %p10554_p2 = scmp.eq.s32.totalorder %s10984_s26, 0  ;;  %s10756_s28 = smov [#allocation2]  }
  0x49   : > { %p10989_p3 = pnand %p8419_p0, %p870_p1  ;;  %s10993_s1 = sshll.u32 %s10756_s28, 4  ;;  %s920_s1 = int_to_ptr.vmem [resolvable:$true] %s10993_s1 }
  0x4a   : > { %s943_s2 = sshll.u32 %s10890_s12, 4  ;;  %s10757_s10 = smov [#allocation4]   ;;  %s11005_s2 = int_to_ptr.hbm [resolvable:$true] %s943_s2 }
  0x4b   : > { %p10547_p4 = pneg %p10989_p3  ;;  %s11007_s11 = sshll.u32 %s10757_s10, 4 }
  0x4c   : > { %12565 = sst [smem:[#allocation30_spill]] %s11007_s11  ;;  %s10645_s15 = sshra.s32 %s918_s23, 4  ;;  %s10646_s15 = int_to_ptr.hbm [resolvable:$true] %s10645_s15 }
  0x4d   : > { %p11001_p5 = pnand %p10554_p2, %p10547_p4  ;;  %s10647_s16 = scalar_lea.hbm %s10646_s15, 1152 }
  0x4e   : > { %p10648_p6 = scmp.ne.s32.totalorder %s10646_s15, %s10647_s16  ;;  %s10652_s18 = scalar_lea.hbm %s10865_s6, 1152 }
  0x4f   : > { %p10649_p7 = pneg %p11001_p5  ;;  %p10653_p10 = scmp.lt.s32.totalorder %s10646_s15, %s10865_s6 }
  0x50   : > { %p10654_p11 = scmp.lt.s32.totalorder %s10652_s18, %s10647_s16 }
  0x51   : > { %p10650_p8 = pnand %p10649_p7, %p10648_p6 }
  0x52   : > { %p10655_p12 = por %p10654_p11, %p10653_p10 }
  0x53   : > { %p10651_p9 = pneg %p10650_p8 }
  0x55   : > { %p10656_p13 = pnand %p10655_p12, %p10651_p9 }
  0x57   : > { %10659 = shalt.err (!%p10656_p13)
}
  0x58   : > { %s10758_s28 = smov 64   ;;  %s10759_s10 = smov 4  }
  0x59   : > { %10550 = dma.hbm_to_vmem [thread:$0]  (!%p11001_p5), %s918_s23, 18432, %s920_s1, [#allocation3], %s10758_s28, %s10758_s28, %s10759_s10  }
  0x5a   : > { %s10675_s11 = sshra.s32 %s11005_s2, 4  ;;  %s10682_s15 = scalar_lea.hbm %s10890_s12, 144  ;;  %s10676_s11 = int_to_ptr.hbm [resolvable:$true] %s10675_s11 }
  0x5b   : > { %s10677_s22 = scalar_lea.hbm %s10676_s11, 144  ;;  %p10683_p6 = scmp.lt.s32.totalorder %s10676_s11, %s10890_s12 }
  0x5c   : > { %p10678_p0 = scmp.ne.s32.totalorder %s10676_s11, %s10677_s22  ;;  %p10684_p8 = scmp.lt.s32.totalorder %s10682_s15, %s10677_s22 }
  0x5e   : > { %p10680_p1 = pnand %p10678_p0, %p10649_p7  ;;  %p10685_p9 = por %p10684_p8, %p10683_p6 }
  0x60   : > { %p10681_p4 = pneg %p10680_p1 }
  0x62   : > { %p10686_p10 = pnand %p10685_p9, %p10681_p4 }
  0x64   : > { %10689 = shalt.err (!%p10686_p10)
}
  0x65   : > { %s12566_s16 = sld [smem:[#allocation30_spill]] }
  0x68   : > { %1008 = sbr.rel (%p10989_p3) target bundleno = 5592 (0x15d8), region = 148 }
  0x6b   : > { %s12567_s18 = int_to_ptr.vmem [resolvable:$true] %s12566_s16 }
  0x6c   : > { %10553 = dma.hbm_to_vmem [thread:$0]  (!%p11001_p5), %s11005_s2, 2304, %s12567_s18, [#allocation5], %s10758_s28, %s10758_s28, %s10759_s10  }
  0x6d   : > { %10710 = dma.done.wait (%p10554_p2), [#allocation3], 18432  }
  0x6e   : > { %10712 = vsyncadd (%p10554_p2), [#allocation3], 4294948864 }
  0x6f   : > { %10714 = dma.done.wait (%p10554_p2), [#allocation5], 2304  }
  0x70   : > { %10716 = vsyncadd (%p10554_p2), [#allocation5], 4294964992  ;;  %s12568_s5 = sld [smem:[#allocation8_spill]]  ;;  %p1117_p5 = scmp.lt.s32.totalorder %s10984_s26, 1  ;;  %v10760_v0 = vmov 0   ;;  %vm1163_vm0 = vcmask 1040384  }
  0x71   : > { %10637 = vset.pattern.permute.xlu0 %v10760_v0  ;;  %10638 = vset.pattern.permute.xlu1 %v10760_v0  ;;  %v1153_v2 = vld [vmem:[%s10810_s13] sm:$0xff]  ;;  %vm1164_vm1 = vcmask 1041408   ;;  %v10761_v3 = vmov 65535   ;;  %vm1159_vm2 = vcmask 23552   ;;  %v11051_v13 = vld [vmem:[%s12561_s3 + $0x8] sm:$0xff]  ;;  %s12533_s0 = smov 1  }
  0x72   : > { %s12609_s26 = smov (!%p1117_p5, %s10984_s26), 1  ;;  %10639 = vset.pattern.permute.xlu2 %v10760_v0  ;;  %1156 = vperm.xlu0 %10637, %v1153_v2   ;;  %v1165_v4 = vsel %vm1163_vm0, 4294967295, %v10761_v3  ;;  %v1144_v12 = vld [vmem:[%s10805_s9] sm:$0xf]  ;;  %v1228_v14 = vperm.slane %v11051_v13, 1  ;;  %s12509_s1 = smov 2  }
  0x73   : > { %s10212_s22 = sshll.u32 %s12609_s26, 3  ;;  %v1166_v5 = vsel %vm1164_vm1, %v1165_v4, 0  ;;  %v11056_v15 = vld [vmem:[%s12561_s3] sm:$0xff]  ;;  %v1473_v17 = vperm.slane %v11051_v13, 4  ;;  %s10764_s2 = smov 17   ;;  %v1333_v24 = vperm.slane %v11051_v13, 2 }
  0x74   : > { %1233 = vrot.lane.b32.xlu2 %v1228_v14, %s12533_s0  ;;  %v1332_v16 = vperm.slane %v11056_v15, 2  ;;  %v1611_v18 = vperm.slane %v11056_v15, 6  ;;  %s10765_s7 = smov 32   ;;  %v1402_v27 = vperm.slane %v11056_v15, 3  ;;  %s12508_s11 = smov 16   ;;  %v1227_v30 = vperm.slane %v11056_v15, 1 }
  0x75   : > { %v1612_v31 = vperm.slane %v11051_v13, 6  ;;  %v1472_v32 = vperm.slane %v11056_v15, 4  ;;  %v1403_v33 = vperm.slane %v11051_v13, 3  ;;  %vm1209_vm3 = vcmask 138240   ;;  %s12523_s28 = smov 127   ;;  %s10768_s10 = smov 18  }
  0x76   : > { %s1121_s23 = scalar_lea.vmem %s12568_s5, %s10212_s22  ;;  %v1220_v34 = vperm.slane %v11056_v15, 0  ;;  %vm1264_vm4 = vcmask 1043456   ;;  %v1221_v40 = vperm.slane %v11051_v13, 0  ;;  %vm1235_vm5 = vcmask 7168   ;;  %s12525_s15 = smov 126  }
  0x77   : > { %v1143_v1 = vld [vmem:[%s1121_s23] sm:$0x77]  ;;  %v1541_v53 = vperm.slane %v11056_v15, 5  ;;  %vm1340_vm6 = vcmask 15360   ;;  %v1542_v62 = vperm.slane %v11051_v13, 5  ;;  %s10770_s16 = smov 34  }
  0x78   : > { %1146 = vst [vmem:[#allocation1] ss:$2 sm:$0xff] %v1143_v1  ;;  %v10640_v2 = vld [vmem:[%s12561_s3 + $0x10] ss:$0 sm:$0xff]  ;;  %v10641_v3 = vld [vmem:[%s12561_s3 + $0x18] ss:$0 sm:$0xff] }
  0x79   : > { %s10771_s18 = smov 33   ;;  %s10772_s22 = smov 111   ;;  %vm1410_vm7 = vcmask 130048   ;;  %vm1619_vm8 = vcmask 261120   ;;  %vm1257_vm9 = vcmask 1039360   ;;  %vm1549_vm10 = vcmask 146432  }
  0x7a   : > { %s10773_s23 = smov 112   ;;  %vm1260_vm11 = vcmask 64512   ;;  %vm1362_vm12 = vcmask 1031168   ;;  %vm1759_vm13 = vcmask 277504   ;;  %vm1501_vm14 = vcmask 908288   ;;  %s12576_s4 = sld [smem:[#allocation28_spill]] }
  0x7b   : > { %vm1689_vm15 = vcmask 269312   ;;  %vm1432_vm0 = vcmask 916480   ;;  %vm1641_vm1 = vcmask 785408   ;;  %s10791_s3 = smov 125   ;;  %s12600_s5 = smov 5  }
  0x7c   : > { %1336 = vrot.lane.b32.xlu2 %v1332_v16, %s12509_s1 }
  0x7f   : > { %v1147_v6 = vld.sshfl [vmem:[#allocation1] sm:$0xff pattern:$0x75316420]  ;;  %v1148_v7 = vld.sshfl [vmem:[#allocation1 + $0x8] sm:$0xff pattern:$0x75316420] }
  0x80   : > { %v1151_v8 = vpack.c.bf16 %v1147_v6, %v1147_v6  ;;  %v1152_v9 = vpack.c.bf16 %v1148_v7, %v1148_v7  ;;  %v1681_v7 = vperm.slane %v11056_v15, 7 }
  0x82   : > { %v1168_v10 = vand.u32 %v1166_v5, %v1151_v8  ;;  %v1171_v11 = vand.u32 %v1166_v5, %v1152_v9  ;;  %v1682_v8 = vperm.slane %v11051_v13, 7 }
  0x84   : > { %1180 = vmatpush.bf16.msra.mxu1 %v1168_v10  ;;  %1478 = vrot.lane.b32.xlu2 %v1473_v17, %s10764_s2 }
  0x87   : > { %8436 = vmatmul.msk.bf16.vlgmr.msra.gmra.mxu1 %vm1159_vm2, %v1144_v12 }
  0x88   : > { %1193 = vmatpush.bf16.msrb.mxu1 %v1171_v11 }
  0x8c   : > { %1615 = vrot.lane.b32.xlu2 %v1611_v18, %s10765_s7 }
  0x97   : > { %8437 = vmatmul.msk.bf16.vlgmr.msrb.gmra.mxu1 %vm1159_vm2, %v1144_v12 }
  0xce   : > { %v11095_v42 = vpop.permute.xlu2 %1233 }
  0xd6   : > { %v11121_v56 = vpop.permute.xlu2 %1336 }
  0xde   : > { %v11151_v9 = vpop.permute.xlu2 %1478 }
  0xe4   : > { %v1157_v19 = vpop.permute.xlu0 %1156 }
 0x104   : > { %v1182_v20 = vpop.f32.mrf.mxu1 }
 0x105   : > { %v11063_v21 = vadd.f32 %v1182_v20, %v1157_v19 }
 0x107   : > { %v1199_v22 = vmax.f32 %v11063_v21, 0.0 }
 0x109   : > { %1205 = vrot.lane.b32.xlu0 %v1199_v22, %s10764_s2 }
 0x10c   : > { %v1184_v23 = vpop.f32.mrf.mxu1 }
 0x111   : > { %1338 = vrot.lane.b32.xlu0 %v1333_v24, %s12509_s1 }
 0x114   : > { %v1195_v25 = vpop.f32.mrf.mxu1 }
 0x115   : > { %v11071_v26 = vadd.f32 %v1195_v25, %v1157_v19  ;;  %v11174_v25 = vpop.permute.xlu2 %1615 }
 0x117   : > { %v1200_v28 = vmax.f32 %v11071_v26, 0.0  ;;  %v10287_v26 = vld [vmem:[#allocation2 + $0x210] sm:$0xff] }
 0x119   : > { %1207 = vrot.lane.b32.xlu1 %v1200_v28, %s10764_s2  ;;  %1406 = vrot.lane.b32.xlu0 %v1402_v27, %s12508_s11 }
 0x11c   : > { %v1197_v29 = vpop.f32.mrf.mxu1 }
 0x121   : > { %1231 = vrot.lane.b32.xlu1 %v1227_v30, %s12533_s0  ;;  %1617 = vrot.lane.b32.xlu0 %v1612_v31, %s10765_s7  ;;  %s10774_s7 = smov 96  }
 0x129   : > { %1476 = vrot.lane.b32.xlu1 %v1472_v32, %s10764_s2 }
 0x131   : > { %1408 = vrot.lane.b32.xlu1 %v1403_v33, %s12508_s11  ;;  %s10777_s11 = smov 95  }
 0x17b   : > { %v1206_v35 = vpop.permute.xlu0 %1205 }
 0x17c   : > { %v11088_v36 = vsel %vm1209_vm3, 0.0, %v1206_v35 }
 0x17d   : > { %v1222_v37 = vmul.f32 %v1220_v34, %v11088_v36  ;;  %v1345_v60 = vmul.f32 %v11121_v56, %v11088_v36  ;;  %v1624_v30 = vmul.f32 %v11174_v25, %v11088_v36 }
 0x17f   : > { %v1225_v38 = vpack.c.bf16 %v1222_v37, %v1222_v37  ;;  %v1350_v63 = vpack.c.bf16 %v1345_v60, %v1345_v60 }
 0x181   : > { %v1301_v39 = vsel %vm1264_vm4, %v1225_v38, 0 }
 0x182   : > { %1313 = vmatpush.bf16.msra.mxu0 %v1301_v39 }
 0x183   : > { %v11123_v57 = vpop.permute.xlu0 %1338 }
 0x184   : > { %v11128_v59 = vsel %vm1340_vm6, %v11121_v56, %v11123_v57  ;;  %vm1781_vm6 = vcmask 769024  }
 0x18b   : > { %v1208_v41 = vpop.permute.xlu1 %1207  ;;  %v11158_v12 = vpop.permute.xlu0 %1406 }
 0x18c   : > { %v11098_v43 = vsel %vm1209_vm3, %v1206_v35, %v1208_v41  ;;  %v11101_v44 = vsel %vm1209_vm3, %v1208_v41, 0.0  ;;  %v1415_v17 = vmul.f32 %v11158_v12, %v11088_v36  ;;  %v1629_v35 = vpack.c.bf16 %v1624_v30, %v1624_v30 }
 0x18d   : > { %v1242_v45 = vmul.f32 %v11095_v42, %v11101_v44  ;;  %v1223_v46 = vmul.f32 %v1221_v40, %v11098_v43  ;;  %v1346_v61 = vmul.f32 %v11128_v59, %v11098_v43  ;;  %v1347_v1 = vmul.f32 %v11123_v57, %v11101_v44 }
 0x18e   : > { %v1486_v16 = vmul.f32 %v11151_v9, %v11101_v44  ;;  %v1420_v23 = vpack.c.bf16 %v1415_v17, %v1415_v17 }
 0x18f   : > { %v1247_v47 = vpack.c.bf16 %v1242_v45, %v1242_v45  ;;  %v1226_v48 = vpack.c.bf16 %v1223_v46, %v1223_v46  ;;  %v1351_v0 = vpack.c.bf16 %v1346_v61, %v1346_v61  ;;  %v1352_v4 = vpack.c.bf16 %v1347_v1, %v1347_v1 }
 0x190   : > { %v1491_v20 = vpack.c.bf16 %v1486_v16, %v1486_v16 }
 0x191   : > { %1255 = vrot.lane.b32.xlu1 %v1247_v47, %s12523_s28  ;;  %v1304_v49 = vsel %vm1264_vm4, %v1226_v48, 0 }
 0x192   : > { %1326 = vmatpush.bf16.msra.mxu1 %v1304_v49 }
 0x193   : > { %v11110_v50 = vpop.permute.xlu1 %1231  ;;  %v11185_v31 = vpop.permute.xlu0 %1617 }
 0x194   : > { %v1240_v51 = vmul.f32 %v11110_v50, %v11088_v36  ;;  %v11116_v52 = vsel %vm1235_vm5, %v11110_v50, %v11095_v42  ;;  %v11190_v37 = vsel %vm1619_vm8, %v11174_v25, %v11185_v31  ;;  %v1626_v39 = vmul.f32 %v11185_v31, %v11101_v44 }
 0x195   : > { %v1241_v54 = vmul.f32 %v11116_v52, %v11098_v43  ;;  %v1625_v38 = vmul.f32 %v11190_v37, %v11098_v43  ;;  %vm1571_vm5 = vcmask 900096  }
 0x196   : > { %v1245_v55 = vpack.c.bf16 %v1240_v51, %v1240_v51  ;;  %v1631_v45 = vpack.c.bf16 %v1626_v39, %v1626_v39  ;;  %v1224_v39 = vld [vmem:[%s10815_s17] sm:$0xf] }
 0x197   : > { %v1246_v58 = vpack.c.bf16 %v1241_v54, %v1241_v54  ;;  %v1630_v41 = vpack.c.bf16 %v1625_v38, %v1625_v38  ;;  %v8443_v38 = vld [vmem:[%s10815_s17 + $0x8] sm:$0xf]  ;;  %8442 = vmatmul.msk.bf16.vlgmr.msra.gmra.mxu1 %vm1260_vm11, %v1224_v39  ;;  %8441 = vmatmul.msk.bf16.vlgmr.msra.gmra.mxu0 %vm1260_vm11, %v1224_v39 }
 0x198   : > { %1251 = vrot.lane.b32.xlu2 %v1245_v55, %s12523_s28 }
 0x199   : > { %1545 = vrot.lane.b32.xlu1 %v1541_v53, %s10768_s10  ;;  %1253 = vrot.lane.b32.xlu0 %v1246_v58, %s12523_s28 }
 0x19b   : > { %v11144_v5 = vpop.permute.xlu1 %1476 }
 0x19c   : > { %v1484_v6 = vmul.f32 %v11144_v5, %v11088_v36  ;;  %v11156_v11 = vsel %vm1209_vm3, %v11144_v5, %v11151_v9 }
 0x19d   : > { %v1485_v14 = vmul.f32 %v11156_v11, %v11098_v43 }
 0x19e   : > { %v1489_v10 = vpack.c.bf16 %v1484_v6, %v1484_v6 }
 0x19f   : > { %v1490_v19 = vpack.c.bf16 %v1485_v14, %v1485_v14 }
 0x1a0   : > { %1547 = vrot.lane.b32.xlu2 %v1542_v62, %s10768_s10 }
 0x1a1   : > { %1356 = vrot.lane.b32.xlu0 %v1350_v63, %s12525_s15  ;;  %1358 = vrot.lane.b32.xlu1 %v1351_v0, %s12525_s15 }
 0x1a3   : > { %v11167_v18 = vpop.permute.xlu1 %1408 }
 0x1a4   : > { %v11172_v24 = vsel %vm1410_vm7, %v11158_v12, %v11167_v18  ;;  %v1417_v29 = vmul.f32 %v11167_v18, %v11101_v44 }
 0x1a5   : > { %v1416_v27 = vmul.f32 %v11172_v24, %v11098_v43 }
 0x1a6   : > { %v1422_v33 = vpack.c.bf16 %v1417_v29, %v1417_v29 }
 0x1a7   : > { %v1421_v32 = vpack.c.bf16 %v1416_v27, %v1416_v27 }
 0x1a8   : > { %1360 = vrot.lane.b32.xlu2 %v1352_v4, %s12525_s15 }
 0x1a9   : > { %1755 = vrot.lane.b32.xlu0 %v10640_v2, %s10770_s16  ;;  %1757 = vrot.lane.b32.xlu1 %v10641_v3, %s10770_s16  ;;  %s10775_s16 = smov 110   ;;  %v8438_v3 = vld [vmem:[%s10815_s17 + $0x4] sm:$0xf] }
 0x1b0   : > { %1685 = vrot.lane.b32.xlu2 %v1681_v7, %s10771_s18 }
 0x1b1   : > { %1687 = vrot.lane.b32.xlu0 %v1682_v8, %s10771_s18  ;;  %1495 = vrot.lane.b32.xlu1 %v1489_v10, %s10772_s22  ;;  %s10776_s18 = smov 94  }
 0x1b8   : > { %1497 = vrot.lane.b32.xlu2 %v1490_v19, %s10772_s22 }
 0x1b9   : > { %1499 = vrot.lane.b32.xlu0 %v1491_v20, %s10772_s22  ;;  %1426 = vrot.lane.b32.xlu1 %v1420_v23, %s10773_s23 }
 0x1c0   : > { %1428 = vrot.lane.b32.xlu2 %v1421_v32, %s10773_s23 }
 0x1c1   : > { %1430 = vrot.lane.b32.xlu0 %v1422_v33, %s10773_s23  ;;  %1635 = vrot.lane.b32.xlu1 %v1629_v35, %s10774_s7 }
 0x1c8   : > { %1637 = vrot.lane.b32.xlu2 %v1630_v41, %s10774_s7 }
 0x1c9   : > { %1639 = vrot.lane.b32.xlu0 %v1631_v45, %s10774_s7 }
 0x1f2   : > { %v1252_v46 = vpop.permute.xlu2 %1251 }
 0x1fa   : > { %v11201_v47 = vpop.permute.xlu2 %1547 }
 0x1fb   : > { %v1556_v48 = vmul.f32 %v11201_v47, %v11101_v44 }
 0x1fd   : > { %v1561_v49 = vpack.c.bf16 %v1556_v48, %v1556_v48 }
 0x1ff   : > { %1569 = vrot.lane.b32.xlu0 %v1561_v49, %s10775_s16 }
 0x202   : > { %v1361_v53 = vpop.permute.xlu2 %1360 }
 0x203   : > { %v1256_v51 = vpop.permute.xlu1 %1255 }
 0x20a   : > { %v11225_v8 = vpop.permute.xlu2 %1685 }
 0x20b   : > { %v11206_v54 = vpop.permute.xlu1 %1545  ;;  %v1254_v55 = vpop.permute.xlu0 %1253  ;;  %v1694_v45 = vmul.f32 %v11225_v8, %v11088_v36 }
 0x20c   : > { %v1258_v58 = vsel %vm1257_vm9, %v1252_v46, %v1254_v55  ;;  %v1259_v60 = vsel %vm1257_vm9, %v1254_v55, %v1256_v51  ;;  %v1554_v61 = vmul.f32 %v11206_v54, %v11088_v36  ;;  %v11214_v62 = vsel %vm1549_vm10, %v11206_v54, %v11201_v47 }
 0x20d   : > { %v1266_v63 = vsel %vm1264_vm4, %v1258_v58, 0  ;;  %v1269_v0 = vsel %vm1264_vm4, %v1259_v60, 0  ;;  %v1555_v1 = vmul.f32 %v11214_v62, %v11098_v43  ;;  %vm1711_vm10 = vcmask 777216  }
 0x20e   : > { %1278 = vmatpush.bf16.msra.mxu2 %v1266_v63  ;;  %1291 = vmatpush.bf16.msra.mxu3 %v1269_v0  ;;  %v1559_v2 = vpack.c.bf16 %v1554_v61, %v1554_v61 }
 0x20f   : > { %v1560_v4 = vpack.c.bf16 %v1555_v1, %v1555_v1 }
 0x210   : > { %1565 = vrot.lane.b32.xlu1 %v1559_v2, %s10775_s16 }
 0x211   : > { %1567 = vrot.lane.b32.xlu2 %v1560_v4, %s10775_s16  ;;  %8439 = vmatmul.msk.bf16.vlgmr.msra.gmra.mxu2 %vm1260_vm11, %v8438_v3  ;;  %v8449_v4 = vld [vmem:[%s10815_s17 + $0x10] sm:$0xf] }
 0x212   : > { %8440 = vmatmul.msk.bf16.vlgmr.msra.gmra.mxu3 %vm1260_vm11, %v8438_v3  ;;  %v1498_v32 = vpop.permute.xlu2 %1497 }
 0x213   : > { %v1359_v6 = vpop.permute.xlu1 %1358  ;;  %v1357_v7 = vpop.permute.xlu0 %1356 }
 0x214   : > { %v1363_v10 = vsel %vm1362_vm12, %v1357_v7, %v1359_v6  ;;  %v1364_v14 = vsel %vm1362_vm12, %v1359_v6, %v1361_v53  ;;  %v8446_v6 = vld [vmem:[%s10815_s17 + $0xc] sm:$0xf] }
 0x215   : > { %v1369_v16 = vsel %vm1264_vm4, %v1363_v10, 0  ;;  %v1372_v17 = vsel %vm1264_vm4, %v1364_v14, 0 }
 0x216   : > { %1381 = vmatpush.bf16.msrb.mxu2 %v1369_v16  ;;  %1394 = vmatpush.bf16.msrb.mxu3 %v1372_v17 }
 0x21a   : > { %v1429_v63 = vpop.permute.xlu2 %1428 }
 0x21b   : > { %v11231_v19 = vpop.permute.xlu1 %1757  ;;  %v11233_v20 = vpop.permute.xlu0 %1755 }
 0x21c   : > { %v1766_v23 = vmul.f32 %v11231_v19, %v11101_v44  ;;  %v1764_v27 = vmul.f32 %v11233_v20, %v11088_v36  ;;  %v11241_v29 = vsel %vm1759_vm13, %v11233_v20, %v11231_v19  ;;  %v1699_v36 = vpack.c.bf16 %v1694_v45, %v1694_v45 }
 0x21d   : > { %v1765_v30 = vmul.f32 %v11241_v29, %v11098_v43 }
 0x21e   : > { %v1771_v33 = vpack.c.bf16 %v1766_v23, %v1766_v23  ;;  %v1769_v35 = vpack.c.bf16 %v1764_v27, %v1764_v27 }
 0x21f   : > { %v1770_v41 = vpack.c.bf16 %v1765_v30, %v1765_v30 }
 0x220   : > { %1779 = vrot.lane.b32.xlu0 %v1771_v33, %s10776_s18  ;;  %1775 = vrot.lane.b32.xlu1 %v1769_v35, %s10776_s18  ;;  %v8455_v35 = vld [vmem:[%s10815_s17 + $0x18] sm:$0xf] }
 0x221   : > { %1777 = vrot.lane.b32.xlu2 %v1770_v41, %s10776_s18  ;;  %8444 = vmatmul.msk.bf16.vlgmr.msrb.gmra.mxu2 %vm1260_vm11, %v8443_v38 }
 0x222   : > { %8445 = vmatmul.msk.bf16.vlgmr.msrb.gmra.mxu3 %vm1260_vm11, %v8443_v38  ;;  %v1638_v7 = vpop.permute.xlu2 %1637 }
 0x223   : > { %v1496_v46 = vpop.permute.xlu1 %1495  ;;  %v11256_v48 = vpop.permute.xlu0 %1687 }
 0x224   : > { %v1502_v49 = vsel %vm1501_vm14, %v1496_v46, %v1498_v32  ;;  %v1696_v51 = vmul.f32 %v11256_v48, %v11101_v44  ;;  %v11263_v53 = vsel %vm1689_vm15, %v11225_v8, %v11256_v48  ;;  %v8452_v46 = vld [vmem:[%s10815_s17 + $0x14] sm:$0xf] }
 0x225   : > { %v1508_v55 = vsel %vm1264_vm4, %v1502_v49, 0  ;;  %v1695_v58 = vmul.f32 %v11263_v53, %v11098_v43  ;;  %v1201_v49 = vld [vmem:[%s10820_s21] sm:$0xff] }
 0x226   : > { %1520 = vmatpush.bf16.msra.mxu2 %v1508_v55  ;;  %v1701_v60 = vpack.c.bf16 %v1696_v51, %v1696_v51 }
 0x227   : > { %v1700_v61 = vpack.c.bf16 %v1695_v58, %v1695_v58 }
 0x228   : > { %1705 = vrot.lane.b32.xlu1 %v1699_v36, %s10777_s11  ;;  %1709 = vrot.lane.b32.xlu0 %v1701_v60, %s10777_s11 }
 0x229   : > { %1707 = vrot.lane.b32.xlu2 %v1700_v61, %s10777_s11 }
 0x22b   : > { %v1427_v44 = vpop.permute.xlu1 %1426  ;;  %v1500_v0 = vpop.permute.xlu0 %1499 }
 0x22c   : > { %v1503_v1 = vsel %vm1501_vm14, %v1498_v32, %v1500_v0  ;;  %v1433_v43 = vsel %vm1432_vm0, %v1427_v44, %v1429_v63 }
 0x22d   : > { %v1511_v2 = vsel %vm1264_vm4, %v1503_v1, 0  ;;  %v1439_v3 = vsel %vm1264_vm4, %v1433_v43, 0 }
 0x22e   : > { %1451 = vmatpush.bf16.msrb.mxu0 %v1439_v3  ;;  %1533 = vmatpush.bf16.msra.mxu3 %v1511_v2  ;;  %v8461_v2 = vld [vmem:[%s10815_s17 + $0x20] sm:$0xf] }
 0x230   : > { %1823 = vperm.xlu1 %10638, %v1201_v49  }
 0x231   : > { %8450 = vmatmul.msk.bf16.vlgmr.msra.gmra.mxu2 %vm1260_vm11, %v8449_v4  ;;  %8447 = vmatmul.msk.bf16.vlgmr.msrb.gmra.mxu0 %vm1260_vm11, %v8446_v6 }
 0x232   : > { %8451 = vmatmul.msk.bf16.vlgmr.msra.gmra.mxu3 %vm1260_vm11, %v8449_v4 }
 0x233   : > { %v1636_v10 = vpop.permute.xlu1 %1635  ;;  %v1431_v14 = vpop.permute.xlu0 %1430 }
 0x234   : > { %v1642_v16 = vsel %vm1641_vm1, %v1636_v10, %v1638_v7  ;;  %v1434_v17 = vsel %vm1432_vm0, %v1429_v63, %v1431_v14 }
 0x235   : > { %v1648_v23 = vsel %vm1264_vm4, %v1642_v16, 0  ;;  %v1442_v27 = vsel %vm1264_vm4, %v1434_v17, 0 }
 0x236   : > { %1464 = vmatpush.bf16.msrb.mxu1 %v1442_v27  ;;  %1660 = vmatpush.bf16.msrb.mxu2 %v1648_v23  ;;  %v1328_v23 = vpop.f32.mrf.mxu1 }
 0x239   : > { %8448 = vmatmul.msk.bf16.vlgmr.msrb.gmra.mxu1 %vm1260_vm11, %v8446_v6 }
 0x23b   : > { %v1640_v30 = vpop.permute.xlu0 %1639 }
 0x23c   : > { %v1643_v32 = vsel %vm1641_vm1, %v1638_v7, %v1640_v30  ;;  %v8458_v30 = vld [vmem:[%s10815_s17 + $0x1c] sm:$0xf] }
 0x23d   : > { %v1651_v33 = vsel %vm1264_vm4, %v1643_v32, 0 }
 0x23e   : > { %1673 = vmatpush.bf16.msrb.mxu3 %v1651_v33 }
 0x241   : > { %8456 = vmatmul.msk.bf16.vlgmr.msrb.gmra.mxu2 %vm1260_vm11, %v8455_v35 }
 0x242   : > { %8457 = vmatmul.msk.bf16.vlgmr.msrb.gmra.mxu3 %vm1260_vm11, %v8455_v35  ;;  %v1315_v35 = vpop.f32.mrf.mxu0 }
 0x24a   : > { %v1317_v49 = vpop.f32.mrf.mxu0 }
 0x26b   : > { %v1568_v38 = vpop.permute.xlu2 %1567 }
 0x271   : > { %v1570_v39 = vpop.permute.xlu0 %1569 }
 0x272   : > { %v1573_v41 = vsel %vm1571_vm5, %v1568_v38, %v1570_v39  ;;  %v1330_v39 = vpop.f32.mrf.mxu1 }
 0x273   : > { %v1581_v45 = vsel %vm1264_vm4, %v1573_v41, 0 }
 0x274   : > { %1603 = vmatpush.bf16.msra.mxu1 %v1581_v45 }
 0x277   : > { %8454 = vmatmul.msk.bf16.vlgmr.msra.gmra.mxu1 %vm1260_vm11, %v8452_v46 }
 0x27b   : > { %v1778_v36 = vpop.permute.xlu2 %1777 }
 0x282   : > { %v1566_v51 = vpop.permute.xlu1 %1565 }
 0x283   : > { %v1572_v55 = vsel %vm1571_vm5, %v1566_v51, %v1568_v38  ;;  %v1708_v4 = vpop.permute.xlu2 %1707 }
 0x284   : > { %v1578_v58 = vsel %vm1264_vm4, %v1572_v55, 0 }
 0x285   : > { %1590 = vmatpush.bf16.msra.mxu0 %v1578_v58 }
 0x288   : > { %8453 = vmatmul.msk.bf16.vlgmr.msra.gmra.mxu0 %vm1260_vm11, %v8452_v46 }
 0x292   : > { %v1776_v60 = vpop.permute.xlu1 %1775  ;;  %v1780_v61 = vpop.permute.xlu0 %1779 }
 0x293   : > { %v1782_v63 = vsel %vm1781_vm6, %v1776_v60, %v1778_v36  ;;  %v1783_v44 = vsel %vm1781_vm6, %v1778_v36, %v1780_v61 }
 0x294   : > { %v1788_v0 = vsel %vm1264_vm4, %v1782_v63, 0  ;;  %v1791_v1 = vsel %vm1264_vm4, %v1783_v44, 0  ;;  %v1280_v43 = vpop.f32.mrf.mxu2 }
 0x295   : > { %1800 = vmatpush.bf16.msra.mxu2 %v1788_v0  ;;  %1813 = vmatpush.bf16.msra.mxu3 %v1791_v1  ;;  %v1293_v3 = vpop.f32.mrf.mxu3  ;;  %v1316_v38 = vadd.f32 %v1315_v35, %v1280_v43 }
 0x296   : > { %v1329_v33 = vadd.f32 %v1328_v23, %v1293_v3 }
 0x298   : > { %8463 = vmatmul.msk.bf16.vlgmr.msra.gmra.mxu3 %vm1260_vm11, %v8461_v2  ;;  %8462 = vmatmul.msk.bf16.vlgmr.msra.gmra.mxu2 %vm1260_vm11, %v8461_v2 }
 0x29a   : > { %v1706_v6 = vpop.permute.xlu1 %1705  ;;  %v1710_v7 = vpop.permute.xlu0 %1709 }
 0x29b   : > { %v1712_v10 = vsel %vm1711_vm10, %v1706_v6, %v1708_v4  ;;  %v1713_v14 = vsel %vm1711_vm10, %v1708_v4, %v1710_v7 }
 0x29c   : > { %v1718_v16 = vsel %vm1264_vm4, %v1712_v10, 0  ;;  %v1721_v17 = vsel %vm1264_vm4, %v1713_v14, 0  ;;  %v1282_v27 = vpop.f32.mrf.mxu2 }
 0x29d   : > { %1730 = vmatpush.bf16.msrb.mxu0 %v1718_v16  ;;  %1743 = vmatpush.bf16.msrb.mxu1 %v1721_v17  ;;  %v1295_v32 = vpop.f32.mrf.mxu3 }
 0x2a0   : > { %8459 = vmatmul.msk.bf16.vlgmr.msrb.gmra.mxu0 %vm1260_vm11, %v8458_v30  ;;  %8460 = vmatmul.msk.bf16.vlgmr.msrb.gmra.mxu1 %vm1260_vm11, %v8458_v30 }
 0x2a4   : > { %v1383_v41 = vpop.f32.mrf.mxu2 }
 0x2a5   : > { %v1396_v45 = vpop.f32.mrf.mxu3  ;;  %v1400_v46 = vadd.f32 %v1383_v41, %v1316_v38 }
 0x2a6   : > { %v1401_v51 = vadd.f32 %v1396_v45, %v1329_v33 }
 0x2ac   : > { %v1385_v55 = vpop.f32.mrf.mxu2 }
 0x2ad   : > { %v1398_v58 = vpop.f32.mrf.mxu3  ;;  %v1824_v55 = vpop.permute.xlu1 %1823 }
 0x2ae   : > { %v1453_v1 = vpop.f32.mrf.mxu0 }
 0x2af   : > { %v1470_v43 = vadd.f32 %v1453_v1, %v1400_v46 }
 0x2b4   : > { %v1522_v3 = vpop.f32.mrf.mxu2 }
 0x2b5   : > { %v1535_v36 = vpop.f32.mrf.mxu3  ;;  %v1539_v4 = vadd.f32 %v1522_v3, %v1470_v43 }
 0x2b6   : > { %v1466_v60 = vpop.f32.mrf.mxu1  ;;  %v1455_v6 = vpop.f32.mrf.mxu0 }
 0x2b7   : > { %v1471_v61 = vadd.f32 %v1466_v60, %v1401_v51 }
 0x2b9   : > { %v1540_v63 = vadd.f32 %v1535_v36, %v1471_v61 }
 0x2bc   : > { %v1524_v7 = vpop.f32.mrf.mxu2 }
 0x2bd   : > { %v1537_v44 = vpop.f32.mrf.mxu3 }
 0x2be   : > { %v1468_v0 = vpop.f32.mrf.mxu1 }
 0x2c4   : > { %v1662_v14 = vpop.f32.mrf.mxu2 }
 0x2c5   : > { %v1675_v2 = vpop.f32.mrf.mxu3 }
 0x2cc   : > { %v1664_v16 = vpop.f32.mrf.mxu2 }
 0x2cd   : > { %v1677_v10 = vpop.f32.mrf.mxu3 }
 0x2f4   : > { %v1605_v17 = vpop.f32.mrf.mxu1 }
 0x2f5   : > { %v1610_v23 = vadd.f32 %v1605_v17, %v1540_v63 }
 0x2f7   : > { %v1680_v27 = vadd.f32 %v1675_v2, %v1610_v23 }
 0x2fc   : > { %v1607_v30 = vpop.f32.mrf.mxu1 }
 0x305   : > { %v1592_v32 = vpop.f32.mrf.mxu0 }
 0x306   : > { %v1609_v35 = vadd.f32 %v1592_v32, %v1539_v4 }
 0x308   : > { %v1679_v41 = vadd.f32 %v1662_v14, %v1609_v35 }
 0x30d   : > { %v1594_v33 = vpop.f32.mrf.mxu0 }
 0x31b   : > { %v1815_v38 = vpop.f32.mrf.mxu3  ;;  %v1802_v39 = vpop.f32.mrf.mxu2 }
 0x31d   : > { %v1732_v45 = vpop.f32.mrf.mxu0  ;;  %v1745_v46 = vpop.f32.mrf.mxu1 }
 0x31e   : > { %v1749_v49 = vadd.f32 %v1732_v45, %v1679_v41  ;;  %v1750_v51 = vadd.f32 %v1745_v46, %v1680_v27 }
 0x320   : > { %v1820_v58 = vadd.f32 %v1815_v38, %v1750_v51  ;;  %v1819_v36 = vadd.f32 %v1802_v39, %v1749_v49 }
 0x322   : > { %v1826_v60 = vadd.f32 %v1824_v55, %v1819_v36  ;;  %v1827_v61 = vadd.f32 %v1824_v55, %v1820_v58 }
 0x323   : > { %v1817_v44 = vpop.f32.mrf.mxu3  ;;  %v1804_v0 = vpop.f32.mrf.mxu2 }
 0x324   : > { %v1828_v63 = vmax.f32 %v1826_v60, 0.0  ;;  %v1829_v1 = vmax.f32 %v1827_v61, 0.0 }
 0x325   : > { %v1747_v43 = vpop.f32.mrf.mxu1  ;;  %v1734_v2 = vpop.f32.mrf.mxu0 }
 0x326   : > { %1832 = vrot.lane.b32.xlu2 %v1828_v63, %s10764_s2  ;;  %1834 = vrot.lane.b32.xlu0 %v1829_v1, %s10764_s2  ;;  %v1202_v1 = vld [vmem:[%s10830_s29] sm:$0xff] }
 0x380   : > { %v1833_v3 = vpop.permute.xlu2 %1832 }
 0x381   : > { %v1840_v4 = vsel %vm1209_vm3, 0.0, %v1833_v3 }
 0x382   : > { %v1847_v6 = vmul.f32 %v1840_v4, %v11110_v50  ;;  %v1842_v7 = vmul.f32 %v1840_v4, %v1220_v34  ;;  %v1936_v17 = vmul.f32 %v1840_v4, %v11121_v56  ;;  %v1992_v27 = vmul.f32 %v1840_v4, %v11158_v12 }
 0x383   : > { %v2048_v15 = vmul.f32 %v1840_v4, %v11144_v5  ;;  %v2160_v49 = vmul.f32 %v1840_v4, %v11174_v25  ;;  %v2216_v58 = vmul.f32 %v1840_v4, %v11225_v8  ;;  %v2272_v61 = vmul.f32 %v1840_v4, %v11233_v20 }
 0x384   : > { %v1852_v10 = vpack.c.bf16 %v1847_v6, %v1847_v6  ;;  %v1845_v14 = vpack.c.bf16 %v1842_v7, %v1842_v7  ;;  %v1941_v23 = vpack.c.bf16 %v1936_v17, %v1936_v17  ;;  %v1997_v30 = vpack.c.bf16 %v1992_v27, %v1992_v27 }
 0x385   : > { %v2053_v35 = vpack.c.bf16 %v2048_v15, %v2048_v15  ;;  %v2165_v51 = vpack.c.bf16 %v2160_v49, %v2160_v49  ;;  %v2221_v36 = vpack.c.bf16 %v2216_v58, %v2216_v58  ;;  %v2277_v44 = vpack.c.bf16 %v2272_v61, %v2272_v61 }
 0x386   : > { %1858 = vrot.lane.b32.xlu1 %v1852_v10, %s12523_s28  ;;  %v1905_v16 = vsel %vm1264_vm4, %v1845_v14, 0 }
 0x387   : > { %1917 = vmatpush.bf16.msrb.mxu2 %v1905_v16  ;;  %v8464_v16 = vld [vmem:[%s10825_s25 + $0x4] sm:$0xf] }
 0x38e   : > { %1947 = vrot.lane.b32.xlu1 %v1941_v23, %s12525_s15 }
 0x396   : > { %2003 = vrot.lane.b32.xlu1 %v1997_v30, %s10773_s23 }
 0x398   : > { %v1835_v50 = vpop.permute.xlu0 %1834 }
 0x399   : > { %v11326_v34 = vsel %vm1209_vm3, %v1833_v3, %v1835_v50  ;;  %v11329_v32 = vsel %vm1209_vm3, %v1835_v50, 0.0  ;;  %vm4037_vm3 = vcmask 72704  }
 0x39a   : > { %v1849_v56 = vmul.f32 %v11329_v32, %v11095_v42  ;;  %v1848_v33 = vmul.f32 %v11326_v34, %v11116_v52  ;;  %v1843_v12 = vmul.f32 %v11326_v34, %v1221_v40  ;;  %v2104_v42 = vmul.f32 %v1840_v4, %v11206_v54 }
 0x39b   : > { %v1938_v13 = vmul.f32 %v11329_v32, %v11123_v57  ;;  %v1937_v40 = vmul.f32 %v11326_v34, %v11128_v59  ;;  %v1994_v54 = vmul.f32 %v11329_v32, %v11167_v18  ;;  %v1993_v57 = vmul.f32 %v11326_v34, %v11172_v24 }
 0x39c   : > { %v1854_v38 = vpack.c.bf16 %v1849_v56, %v1849_v56  ;;  %v1853_v39 = vpack.c.bf16 %v1848_v33, %v1848_v33  ;;  %v1846_v5 = vpack.c.bf16 %v1843_v12, %v1843_v12  ;;  %v2109_v52 = vpack.c.bf16 %v2104_v42, %v2104_v42  ;;  %v8469_v56 = vld [vmem:[%s10825_s25 + $0x8] sm:$0xf]  ;;  %v8472_v33 = vld [vmem:[%s10825_s25 + $0xc] sm:$0xf] }
 0x39d   : > { %v1943_v45 = vpack.c.bf16 %v1938_v13, %v1938_v13  ;;  %v1942_v46 = vpack.c.bf16 %v1937_v40, %v1937_v40  ;;  %v1999_v55 = vpack.c.bf16 %v1994_v54, %v1994_v54  ;;  %v1998_v59 = vpack.c.bf16 %v1993_v57, %v1993_v57  ;;  %v8475_v57 = vld [vmem:[%s10825_s25 + $0x10] sm:$0xf] }
 0x39e   : > { %2059 = vrot.lane.b32.xlu1 %v2053_v35, %s10772_s22  ;;  %1862 = vrot.lane.b32.xlu0 %v1854_v38, %s12523_s28  ;;  %v1908_v41 = vsel %vm1264_vm4, %v1846_v5, 0  ;;  %v2050_v25 = vmul.f32 %v11329_v32, %v11151_v9  ;;  %v2049_v18 = vmul.f32 %v11326_v34, %v11156_v11  ;;  %v2106_v8 = vmul.f32 %v11329_v32, %v11201_v47 }
 0x39f   : > { %1860 = vrot.lane.b32.xlu2 %v1853_v39, %s12523_s28  ;;  %1930 = vmatpush.bf16.msrb.mxu3 %v1908_v41  ;;  %v2105_v9 = vmul.f32 %v11326_v34, %v11214_v62  ;;  %v2162_v63 = vmul.f32 %v11329_v32, %v11185_v31  ;;  %v2161_v20 = vmul.f32 %v11326_v34, %v11190_v37 }
 0x3a0   : > { %v2055_v60 = vpack.c.bf16 %v2050_v25, %v2050_v25  ;;  %v2054_v24 = vpack.c.bf16 %v2049_v18, %v2049_v18  ;;  %v2111_v11 = vpack.c.bf16 %v2106_v8, %v2106_v8  ;;  %v2218_v62 = vmul.f32 %v11329_v32, %v11256_v48  ;;  %v2342_v48 = vld [vmem:[%s10845_s14 + $0x8] sm:$0xff] }
 0x3a1   : > { %v2110_v0 = vpack.c.bf16 %v2105_v9, %v2105_v9  ;;  %v2167_v47 = vpack.c.bf16 %v2162_v63, %v2162_v63  ;;  %v2166_v43 = vpack.c.bf16 %v2161_v20, %v2161_v20  ;;  %v2217_v2 = vmul.f32 %v11326_v34, %v11263_v53  ;;  %v1844_v53 = vld [vmem:[%s10825_s25] sm:$0xf]  ;;  %v8481_v63 = vld [vmem:[%s10825_s25 + $0x18] sm:$0xf]  ;;  %v8484_v20 = vld [vmem:[%s10825_s25 + $0x1c] sm:$0xf] }
 0x3a2   : > { %v2223_v31 = vpack.c.bf16 %v2218_v62, %v2218_v62  ;;  %v2274_v37 = vmul.f32 %v11329_v32, %v11231_v19  ;;  %v2273_v4 = vmul.f32 %v11326_v34, %v11241_v29  ;;  %8467 = vmatmul.msk.bf16.vlgmr.msrb.gmra.mxu2 %vm1260_vm11, %v1844_v53  ;;  %8468 = vmatmul.msk.bf16.vlgmr.msrb.gmra.mxu3 %vm1260_vm11, %v1844_v53 }
 0x3a3   : > { %v2222_v3 = vpack.c.bf16 %v2217_v2, %v2217_v2 }
 0x3a4   : > { %v2279_v6 = vpack.c.bf16 %v2274_v37, %v2274_v37  ;;  %v2278_v7 = vpack.c.bf16 %v2273_v4, %v2273_v4 }
 0x3a6   : > { %2115 = vrot.lane.b32.xlu1 %v2109_v52, %s10775_s16  ;;  %1951 = vrot.lane.b32.xlu0 %v1943_v45, %s12525_s15 }
 0x3a7   : > { %1949 = vrot.lane.b32.xlu2 %v1942_v46, %s12525_s15 }
 0x3ae   : > { %2171 = vrot.lane.b32.xlu1 %v2165_v51, %s10774_s7  ;;  %2007 = vrot.lane.b32.xlu0 %v1999_v55, %s10773_s23  ;;  %v8478_v51 = vld [vmem:[%s10825_s25 + $0x14] sm:$0xf] }
 0x3af   : > { %2005 = vrot.lane.b32.xlu2 %v1998_v59, %s10773_s23 }
 0x3b6   : > { %2227 = vrot.lane.b32.xlu1 %v2221_v36, %s10777_s11  ;;  %2063 = vrot.lane.b32.xlu0 %v2055_v60, %s10772_s22 }
 0x3b7   : > { %2061 = vrot.lane.b32.xlu2 %v2054_v24, %s10772_s22 }
 0x3be   : > { %2283 = vrot.lane.b32.xlu1 %v2277_v44, %s10776_s18  ;;  %2119 = vrot.lane.b32.xlu0 %v2111_v11, %s10775_s16 }
 0x3bf   : > { %2117 = vrot.lane.b32.xlu2 %v2110_v0, %s10775_s16 }
 0x3c6   : > { %2330 = vperm.xlu1 %10638, %v1202_v1   ;;  %2175 = vrot.lane.b32.xlu0 %v2167_v47, %s10774_s7 }
 0x3c7   : > { %2173 = vrot.lane.b32.xlu2 %v2166_v43, %s10774_s7 }
 0x3ce   : > { %2231 = vrot.lane.b32.xlu0 %v2223_v31, %s10777_s11 }
 0x3cf   : > { %2229 = vrot.lane.b32.xlu2 %v2222_v3, %s10777_s11  ;;  %s10213_s11 = sshll.u32 %s12609_s26, 4 }
 0x3d0   : > { %s1126_s7 = scalar_lea.vmem %s10960_s27, %s10213_s11 }
 0x3d6   : > { %2287 = vrot.lane.b32.xlu0 %v2279_v6, %s10776_s18 }
 0x3d7   : > { %2285 = vrot.lane.b32.xlu2 %v2278_v7, %s10776_s18  ;;  %v8487_v7 = vld [vmem:[%s10825_s25 + $0x20] sm:$0xf]  ;;  %s10779_s18 = smov 8  }
 0x3de   : > { %4022 = vperm.xlu0 %10637, %v2342_v48  }
 0x3f8   : > { %v1859_v10 = vpop.permute.xlu1 %1858 }
 0x3f9   : > { %v1861_v14 = vpop.permute.xlu2 %1860 }
 0x3fa   : > { %v1864_v19 = vsel %vm1257_vm9, %v1859_v10, %v1861_v14 }
 0x3fb   : > { %v1870_v29 = vsel %vm1264_vm4, %v1864_v19, 0 }
 0x3fc   : > { %1882 = vmatpush.bf16.msra.mxu0 %v1870_v29 }
 0x3ff   : > { %8465 = vmatmul.msk.bf16.vlgmr.msra.gmra.mxu0 %vm1260_vm11, %v8464_v16 }
 0x400   : > { %v1948_v17 = vpop.permute.xlu1 %1947 }
 0x401   : > { %v1950_v23 = vpop.permute.xlu2 %1949 }
 0x402   : > { %v1953_v27 = vsel %vm1362_vm12, %v1948_v17, %v1950_v23 }
 0x403   : > { %v1959_v30 = vsel %vm1264_vm4, %v1953_v27, 0  ;;  %v10241_v27 = vld [vmem:[#allocation2 + $0xb8] sm:$0xff] }
 0x404   : > { %1971 = vmatpush.bf16.msrb.mxu0 %v1959_v30 }
 0x408   : > { %v2004_v50 = vpop.permute.xlu1 %2003 }
 0x409   : > { %v2006_v15 = vpop.permute.xlu2 %2005 }
 0x40a   : > { %v2009_v34 = vsel %vm1432_vm0, %v2004_v50, %v2006_v15 }
 0x40b   : > { %v2015_v32 = vsel %vm1264_vm4, %v2009_v34, 0  ;;  %v10239_v34 = vld [vmem:[#allocation2 + $0xa8] sm:$0xff] }
 0x40c   : > { %2027 = vmatpush.bf16.msra.mxu2 %v2015_v32 }
 0x40f   : > { %8470 = vmatmul.msk.bf16.vlgmr.msrb.gmra.mxu0 %vm1260_vm11, %v8469_v56  ;;  %8473 = vmatmul.msk.bf16.vlgmr.msra.gmra.mxu2 %vm1260_vm11, %v8472_v33 }
 0x410   : > { %v2060_v12 = vpop.permute.xlu1 %2059  ;;  %v1863_v35 = vpop.permute.xlu0 %1862 }
 0x411   : > { %v1865_v38 = vsel %vm1257_vm9, %v1861_v14, %v1863_v35  ;;  %v2062_v39 = vpop.permute.xlu2 %2061  ;;  %v10248_v35 = vld [vmem:[#allocation2 + $0xf0] sm:$0xff]  ;;  %vm4435_vm9 = vcmask 523264  }
 0x412   : > { %v1873_v5 = vsel %vm1264_vm4, %v1865_v38, 0  ;;  %v2065_v41 = vsel %vm1501_vm14, %v2060_v12, %v2062_v39  ;;  %v10238_v12 = vld [vmem:[#allocation2 + $0xa0] sm:$0xff]  ;;  %v10237_v38 = vld [vmem:[#allocation2 + $0x98] sm:$0xff] }
 0x413   : > { %1895 = vmatpush.bf16.msra.mxu1 %v1873_v5  ;;  %v2071_v42 = vsel %vm1264_vm4, %v2065_v41, 0  ;;  %v10223_v5 = vld [vmem:[#allocation2 + $0x30] sm:$0xff]  ;;  %v10247_v41 = vld [vmem:[#allocation2 + $0xe8] sm:$0xff] }
 0x414   : > { %2083 = vmatpush.bf16.msra.mxu0 %v2071_v42  ;;  %v10236_v42 = vld [vmem:[#allocation2 + $0x90] sm:$0xff] }
 0x416   : > { %8466 = vmatmul.msk.bf16.vlgmr.msra.gmra.mxu1 %vm1260_vm11, %v8464_v16 }
 0x418   : > { %v2116_v13 = vpop.permute.xlu1 %2115  ;;  %v1952_v40 = vpop.permute.xlu0 %1951 }
 0x419   : > { %v1954_v52 = vsel %vm1362_vm12, %v1950_v23, %v1952_v40  ;;  %v2118_v45 = vpop.permute.xlu2 %2117  ;;  %vm5317_vm12 = vcmask 171008  }
 0x41a   : > { %v1962_v46 = vsel %vm1264_vm4, %v1954_v52, 0  ;;  %v2121_v49 = vsel %vm1571_vm5, %v2116_v13, %v2118_v45  ;;  %v10222_v13 = vld [vmem:[#allocation2 + $0x28] sm:$0xff] }
 0x41b   : > { %1984 = vmatpush.bf16.msrb.mxu1 %v1962_v46  ;;  %v2127_v54 = vsel %vm1264_vm4, %v2121_v49, 0  ;;  %v10235_v46 = vld [vmem:[#allocation2 + $0x88] sm:$0xff] }
 0x41c   : > { %2139 = vmatpush.bf16.msrb.mxu2 %v2127_v54  ;;  %v10221_v54 = vld [vmem:[#allocation2 + $0x20] sm:$0xff] }
 0x41f   : > { %8476 = vmatmul.msk.bf16.vlgmr.msra.gmra.mxu0 %vm1260_vm11, %v8475_v57  ;;  %8479 = vmatmul.msk.bf16.vlgmr.msrb.gmra.mxu2 %vm1260_vm11, %v8478_v51 }
 0x420   : > { %v2172_v55 = vpop.permute.xlu1 %2171  ;;  %v2008_v59 = vpop.permute.xlu0 %2007 }
 0x421   : > { %v2010_v58 = vsel %vm1432_vm0, %v2006_v15, %v2008_v59  ;;  %v2174_v25 = vpop.permute.xlu2 %2173  ;;  %v10240_v15 = vld [vmem:[#allocation2 + $0xb0] sm:$0xff]  ;;  %v10220_v59 = vld [vmem:[#allocation2 + $0x18] sm:$0xff] }
 0x422   : > { %v2018_v18 = vsel %vm1264_vm4, %v2010_v58, 0  ;;  %v2177_v36 = vsel %vm1641_vm1, %v2172_v55, %v2174_v25  ;;  %v10258_v55 = vld [vmem:[#allocation2 + $0x138] sm:$0xff] }
 0x423   : > { %v2183_v60 = vsel %vm1264_vm4, %v2177_v36, 0  ;;  %2040 = vmatpush.bf16.msra.mxu3 %v2018_v18 }
 0x424   : > { %2195 = vmatpush.bf16.msrb.mxu0 %v2183_v60  ;;  %v10219_v60 = vld [vmem:[#allocation2 + $0x10] sm:$0xff] }
 0x425   : > { %v11453_v16 = vpop.f32.mrf.mxu2  ;;  %v11455_v23 = vpop.f32.mrf.mxu3 }
 0x426   : > { %8471 = vmatmul.msk.bf16.vlgmr.msrb.gmra.mxu1 %vm1260_vm11, %v8469_v56  ;;  %8474 = vmatmul.msk.bf16.vlgmr.msra.gmra.mxu3 %vm1260_vm11, %v8472_v33  ;;  %v10249_v56 = vld [vmem:[#allocation2 + $0xf8] sm:$0xff] }
 0x427   : > { %v10224_v33 = vld [vmem:[#allocation2 + $0x38] sm:$0xff] }
 0x428   : > { %v2228_v24 = vpop.permute.xlu1 %2227  ;;  %v2064_v61 = vpop.permute.xlu0 %2063 }
 0x429   : > { %v2066_v8 = vsel %vm1501_vm14, %v2062_v39, %v2064_v61  ;;  %v2230_v9 = vpop.permute.xlu2 %2229 }
 0x42a   : > { %v2074_v44 = vsel %vm1264_vm4, %v2066_v8, 0  ;;  %v2233_v11 = vsel %vm1711_vm10, %v2228_v24, %v2230_v9  ;;  %v10257_v24 = vld [vmem:[#allocation2 + $0x130] sm:$0xff] }
 0x42b   : > { %v2239_v0 = vsel %vm1264_vm4, %v2233_v11, 0  ;;  %2096 = vmatpush.bf16.msra.mxu1 %v2074_v44  ;;  %v10218_v11 = vld [vmem:[#allocation2 + $0x8] sm:$0xff] }
 0x42c   : > { %2251 = vmatpush.bf16.msra.mxu2 %v2239_v0  ;;  %v10232_v0 = vld [vmem:[#allocation2 + $0x78] sm:$0xff] }
 0x42d   : > { %v1921_v17 = vpop.f32.mrf.mxu2  ;;  %v1934_v30 = vpop.f32.mrf.mxu3 }
 0x42f   : > { %8482 = vmatmul.msk.bf16.vlgmr.msrb.gmra.mxu0 %vm1260_vm11, %v8481_v63  ;;  %8485 = vmatmul.msk.bf16.vlgmr.msra.gmra.mxu2 %vm1260_vm11, %v8484_v20 }
 0x430   : > { %v2284_v1 = vpop.permute.xlu1 %2283  ;;  %v2120_v47 = vpop.permute.xlu0 %2119  ;;  %2475 = vmatpush.bf16.msrb.mxu2 %v10224_v33 }
 0x431   : > { %v2122_v43 = vsel %vm1571_vm5, %v2118_v45, %v2120_v47  ;;  %v2286_v62 = vpop.permute.xlu2 %2285  ;;  %v10246_v45 = vld [vmem:[#allocation2 + $0xe0] sm:$0xff] }
 0x432   : > { %v2130_v2 = vsel %vm1264_vm4, %v2122_v43, 0  ;;  %v2289_v31 = vsel %vm1781_vm6, %v2284_v1, %v2286_v62  ;;  %v10266_v1 = vld [vmem:[#allocation2 + $0x178] sm:$0xff]  ;;  %v10217_v47 = vld [vmem:[#allocation2] sm:$0xff]  ;;  %v10231_v43 = vld [vmem:[#allocation2 + $0x70] sm:$0xff] }
 0x433   : > { %v2295_v3 = vsel %vm1264_vm4, %v2289_v31, 0  ;;  %2152 = vmatpush.bf16.msrb.mxu3 %v2130_v2 }
 0x434   : > { %2307 = vmatpush.bf16.msra.mxu0 %v2295_v3  ;;  %2476 = vmatpush.bf16.msrb.mxu2 %v10223_v5  ;;  %v10265_v3 = vld [vmem:[#allocation2 + $0x170] sm:$0xff] }
 0x436   : > { %8477 = vmatmul.msk.bf16.vlgmr.msra.gmra.mxu1 %vm1260_vm11, %v8475_v57  ;;  %8480 = vmatmul.msk.bf16.vlgmr.msrb.gmra.mxu3 %vm1260_vm11, %v8478_v51  ;;  %v10245_v57 = vld [vmem:[#allocation2 + $0xd8] sm:$0xff]  ;;  %v10234_v51 = vld [vmem:[#allocation2 + $0x80] sm:$0xff] }
 0x438   : > { %v2176_v37 = vpop.permute.xlu0 %2175  ;;  %2633 = vmatpush.bf16.msrb.mxu0 %v10241_v27  ;;  %2477 = vmatpush.bf16.msrb.mxu2 %v10222_v13  ;;  %v10263_v27 = vld [vmem:[#allocation2 + $0x160] sm:$0xff] }
 0x439   : > { %v2178_v4 = vsel %vm1641_vm1, %v2174_v25, %v2176_v37  ;;  %v10244_v25 = vld [vmem:[#allocation2 + $0xd0] sm:$0xff] }
 0x43a   : > { %v2186_v6 = vsel %vm1264_vm4, %v2178_v4, 0 }
 0x43b   : > { %2208 = vmatpush.bf16.msrb.mxu1 %v2186_v6  ;;  %v10230_v6 = vld [vmem:[#allocation2 + $0x68] sm:$0xff] }
 0x43c   : > { %2634 = vmatpush.bf16.msrb.mxu0 %v10240_v15  ;;  %2478 = vmatpush.bf16.msrb.mxu2 %v10221_v54  ;;  %v10260_v54 = vld [vmem:[#allocation2 + $0x148] sm:$0xff] }
 0x43f   : > { %8488 = vmatmul.msk.bf16.vlgmr.msra.gmra.mxu0 %vm1260_vm11, %v8487_v7 }
 0x440   : > { %v2232_v48 = vpop.permute.xlu0 %2231  ;;  %2635 = vmatpush.bf16.msrb.mxu0 %v10239_v34  ;;  %2479 = vmatpush.bf16.msrb.mxu2 %v10220_v59  ;;  %v10252_v34 = vld [vmem:[#allocation2 + $0x108] sm:$0xff] }
 0x441   : > { %v2234_v53 = vsel %vm1711_vm10, %v2230_v9, %v2232_v48  ;;  %v10243_v9 = vld [vmem:[#allocation2 + $0xc8] sm:$0xff]  ;;  %v10254_v48 = vld [vmem:[#allocation2 + $0x118] sm:$0xff] }
 0x442   : > { %v2242_v10 = vsel %vm1264_vm4, %v2234_v53, 0  ;;  %v10264_v53 = vld [vmem:[#allocation2 + $0x168] sm:$0xff] }
 0x443   : > { %2264 = vmatpush.bf16.msra.mxu3 %v2242_v10 }
 0x444   : > { %2636 = vmatpush.bf16.msrb.mxu0 %v10238_v12  ;;  %2480 = vmatpush.bf16.msrb.mxu2 %v10219_v60 }
 0x446   : > { %8483 = vmatmul.msk.bf16.vlgmr.msrb.gmra.mxu1 %vm1260_vm11, %v8481_v63  ;;  %8486 = vmatmul.msk.bf16.vlgmr.msra.gmra.mxu3 %vm1260_vm11, %v8484_v20  ;;  %v10256_v63 = vld [vmem:[#allocation2 + $0x128] sm:$0xff]  ;;  %v10242_v20 = vld [vmem:[#allocation2 + $0xc0] sm:$0xff] }
 0x447   : > { %2488 = vmatpush.bf16.msrb.mxu3 %v10232_v0 }
 0x448   : > { %v2288_v14 = vpop.permute.xlu0 %2287  ;;  %2637 = vmatpush.bf16.msrb.mxu0 %v10237_v38  ;;  %2481 = vmatpush.bf16.msrb.mxu2 %v10218_v11  ;;  %v10227_v38 = vld [vmem:[#allocation2 + $0x50] sm:$0xff] }
 0x449   : > { %v2290_v19 = vsel %vm1781_vm6, %v2286_v62, %v2288_v14  ;;  %v10255_v62 = vld [vmem:[#allocation2 + $0x120] sm:$0xff] }
 0x44a   : > { %v2298_v29 = vsel %vm1264_vm4, %v2290_v19, 0  ;;  %v10229_v14 = vld [vmem:[#allocation2 + $0x60] sm:$0xff]  ;;  %v10253_v19 = vld [vmem:[#allocation2 + $0x110] sm:$0xff] }
 0x44b   : > { %2320 = vmatpush.bf16.msra.mxu1 %v2298_v29  ;;  %2489 = vmatpush.bf16.msrb.mxu3 %v10231_v43 }
 0x44c   : > { %2638 = vmatpush.bf16.msrb.mxu0 %v10236_v42  ;;  %2482 = vmatpush.bf16.msrb.mxu2 %v10217_v47 }
 0x44f   : > { %2646 = vmatpush.bf16.msrb.mxu1 %v10249_v56  ;;  %2490 = vmatpush.bf16.msrb.mxu3 %v10230_v6  ;;  %v10262_v56 = vld [vmem:[#allocation2 + $0x158] sm:$0xff]  ;;  %v10285_v6 = vld [vmem:[#allocation2 + $0x200] sm:$0xff] }
 0x450   : > { %2639 = vmatpush.bf16.msrb.mxu0 %v10235_v46 }
 0x453   : > { %2647 = vmatpush.bf16.msrb.mxu1 %v10248_v35  ;;  %2491 = vmatpush.bf16.msrb.mxu3 %v10229_v14 }
 0x454   : > { %2640 = vmatpush.bf16.msrb.mxu0 %v10234_v51  ;;  %v10225_v51 = vld [vmem:[#allocation2 + $0x40] sm:$0xff] }
 0x456   : > { %8489 = vmatmul.msk.bf16.vlgmr.msra.gmra.mxu1 %vm1260_vm11, %v8487_v7 }
 0x457   : > { %2648 = vmatpush.bf16.msrb.mxu1 %v10247_v41 }
 0x458   : > { %2842 = vmatpush.bf16.msra.mxu0 %v10258_v55 }
 0x45b   : > { %2649 = vmatpush.bf16.msrb.mxu1 %v10246_v45  ;;  %v10226_v45 = vld [vmem:[#allocation2 + $0x48] sm:$0xff] }
 0x45c   : > { %2843 = vmatpush.bf16.msra.mxu0 %v10257_v24 }
 0x45f   : > { %2650 = vmatpush.bf16.msrb.mxu1 %v10245_v57 }
 0x460   : > { %2844 = vmatpush.bf16.msra.mxu0 %v10256_v63 }
 0x463   : > { %2651 = vmatpush.bf16.msrb.mxu1 %v10244_v25 }
 0x464   : > { %2845 = vmatpush.bf16.msra.mxu0 %v10255_v62 }
 0x467   : > { %2652 = vmatpush.bf16.msrb.mxu1 %v10243_v9 }
 0x468   : > { %2846 = vmatpush.bf16.msra.mxu0 %v10254_v48 }
 0x46b   : > { %2653 = vmatpush.bf16.msrb.mxu1 %v10242_v20 }
 0x46c   : > { %2847 = vmatpush.bf16.msra.mxu0 %v10253_v19 }
 0x46f   : > { %2855 = vmatpush.bf16.msra.mxu1 %v10266_v1 }
 0x470   : > { %2848 = vmatpush.bf16.msra.mxu0 %v10252_v34 }
 0x473   : > { %2856 = vmatpush.bf16.msra.mxu1 %v10265_v3  ;;  %v10290_v3 = vld [vmem:[#allocation2 + $0x228] sm:$0xff] }
 0x477   : > { %2857 = vmatpush.bf16.msra.mxu1 %v10264_v53 }
 0x47b   : > { %2858 = vmatpush.bf16.msra.mxu1 %v10263_v27 }
 0x47c   : > { %v11457_v50 = vpop.f32.mrf.mxu0 }
 0x47d   : > { %v1920_v37 = vadd.f32 %v11453_v16, %v11457_v50  ;;  %v10228_v50 = vld [vmem:[#allocation2 + $0x58] sm:$0xff] }
 0x47e   : > { %2492 = vmatpush.bf16.msrb.mxu3 %v10228_v50 }
 0x47f   : > { %2859 = vmatpush.bf16.msra.mxu1 %v10262_v56  ;;  %v10275_v56 = vld [vmem:[#allocation2 + $0x1b8] sm:$0xff] }
 0x482   : > { %2493 = vmatpush.bf16.msrb.mxu3 %v10227_v38 }
 0x484   : > { %v1886_v32 = vpop.f32.mrf.mxu0 }
 0x486   : > { %2494 = vmatpush.bf16.msrb.mxu3 %v10226_v45  ;;  %v10272_v45 = vld [vmem:[#allocation2 + $0x1a0] sm:$0xff] }
 0x48a   : > { %2495 = vmatpush.bf16.msrb.mxu3 %v10225_v51  ;;  %v10281_v51 = vld [vmem:[#allocation2 + $0x1e8] sm:$0xff] }
 0x48c   : > { %v11459_v39 = vpop.f32.mrf.mxu0 }
 0x48d   : > { %v1990_v10 = vadd.f32 %v11459_v39, %v1920_v37  ;;  %v10251_v39 = vld [vmem:[#allocation2 + $0x100] sm:$0xff] }
 0x48e   : > { %2849 = vmatpush.bf16.msra.mxu0 %v10251_v39  ;;  %v10289_v37 = vld [vmem:[#allocation2 + $0x220] sm:$0xff] }
 0x492   : > { %v11461_v40 = vpop.f32.mrf.mxu2 }
 0x493   : > { %v11463_v52 = vpop.f32.mrf.mxu1  ;;  %v2046_v16 = vadd.f32 %v11461_v40, %v1990_v10  ;;  %v10261_v40 = vld [vmem:[#allocation2 + $0x150] sm:$0xff] }
 0x494   : > { %v1975_v49 = vpop.f32.mrf.mxu0  ;;  %2860 = vmatpush.bf16.msra.mxu1 %v10261_v40  ;;  %v1933_v24 = vadd.f32 %v11455_v23, %v11463_v52 }
 0x495   : > { %v2331_v49 = vpop.permute.xlu1 %2330 }
 0x498   : > { %2861 = vmatpush.bf16.msra.mxu1 %v10260_v54 }
 0x49a   : > { %v2031_v58 = vpop.f32.mrf.mxu2 }
 0x49b   : > { %v1899_v18 = vpop.f32.mrf.mxu1  ;;  %v10259_v58 = vld [vmem:[#allocation2 + $0x140] sm:$0xff] }
 0x49c   : > { %v2085_v36 = vpop.f32.mrf.mxu0  ;;  %2862 = vmatpush.bf16.msra.mxu1 %v10259_v58 }
 0x49d   : > { %v2102_v32 = vadd.f32 %v2085_v36, %v2046_v16 }
 0x4a2   : > { %v2141_v61 = vpop.f32.mrf.mxu2 }
 0x4a3   : > { %v11465_v8 = vpop.f32.mrf.mxu1  ;;  %v2158_v33 = vadd.f32 %v2141_v61, %v2102_v32 }
 0x4a4   : > { %v2087_v44 = vpop.f32.mrf.mxu0  ;;  %v1991_v21 = vadd.f32 %v11465_v8, %v1933_v24  ;;  %v10292_v8 = vld [vmem:[#allocation2 + $0x238] sm:$0xff] }
 0x4a5   : > { %v10300_v24 = vld [vmem:[#allocation2 + $0x278] sm:$0xff] }
 0x4a9   : > { %v11467_v2 = vpop.f32.mrf.mxu3 }
 0x4aa   : > { %v2143_v31 = vpop.f32.mrf.mxu2  ;;  %v2047_v61 = vadd.f32 %v11467_v2, %v1991_v21  ;;  %v10291_v2 = vld [vmem:[#allocation2 + $0x230] sm:$0xff] }
 0x4ab   : > { %v1988_v4 = vpop.f32.mrf.mxu1  ;;  %v10278_v21 = vld [vmem:[#allocation2 + $0x1d0] sm:$0xff] }
 0x4ac   : > { %v2197_v7 = vpop.f32.mrf.mxu0  ;;  %v10288_v4 = vld [vmem:[#allocation2 + $0x218] sm:$0xff] }
 0x4ad   : > { %v2214_v12 = vadd.f32 %v2197_v7, %v2158_v33 }
 0x4b1   : > { %v2044_v29 = vpop.f32.mrf.mxu3 }
 0x4b2   : > { %v2253_v17 = vpop.f32.mrf.mxu2 }
 0x4b3   : > { %v2098_v30 = vpop.f32.mrf.mxu1  ;;  %v2270_v41 = vadd.f32 %v2253_v17, %v2214_v12  ;;  %v10233_v12 = vld [vmem:[%s10840_s8] sm:$0xff] }
 0x4b4   : > { %v2199_v15 = vpop.f32.mrf.mxu0  ;;  %v2103_v44 = vadd.f32 %v2098_v30, %v2047_v61  ;;  %v10250_v30 = vld [vmem:[%s10840_s8 + $0x8] sm:$0xff]  ;;  %v10299_v61 = vld [vmem:[#allocation2 + $0x270] sm:$0xff] }
 0x4b9   : > { %v2154_v35 = vpop.f32.mrf.mxu3 }
 0x4ba   : > { %v2255_v5 = vpop.f32.mrf.mxu2  ;;  %v2159_v11 = vadd.f32 %v2154_v35, %v2103_v44  ;;  %v10274_v35 = vld [vmem:[#allocation2 + $0x1b0] sm:$0xff]  ;;  %v10298_v44 = vld [vmem:[#allocation2 + $0x268] sm:$0xff] }
 0x4bb   : > { %v2100_v42 = vpop.f32.mrf.mxu1 }
 0x4bc   : > { %v2309_v13 = vpop.f32.mrf.mxu0 }
 0x4bd   : > { %v2326_v46 = vadd.f32 %v2309_v13, %v2270_v41  ;;  %v10273_v41 = vld [vmem:[#allocation2 + $0x1a8] sm:$0xff]  ;;  %v10283_v13 = vld [vmem:[#allocation2 + $0x1f8] sm:$0xff] }
 0x4bf   : > { %v2333_v57 = vadd.f32 %v2331_v49, %v2326_v46  ;;  %v10267_v46 = vld [vmem:[%s10840_s8 + $0x10] sm:$0xff] }
 0x4c1   : > { %v2335_v55 = vadd.f32 %v2333_v57, %v1199_v22  ;;  %v2156_v59 = vpop.f32.mrf.mxu3  ;;  %v10271_v57 = vld [vmem:[#allocation2 + $0x198] sm:$0xff] }
 0x4c2   : > { %v10280_v59 = vld [vmem:[#allocation2 + $0x1e0] sm:$0xff] }
 0x4c3   : > { %v2337_v25 = vmax.f32 %v2335_v55, 0.0  ;;  %v2210_v18 = vpop.f32.mrf.mxu1  ;;  %v10270_v55 = vld [vmem:[#allocation2 + $0x190] sm:$0xff] }
 0x4c4   : > { %v2311_v36 = vpop.f32.mrf.mxu0  ;;  %v2215_v0 = vadd.f32 %v2210_v18, %v2159_v11  ;;  %v10279_v18 = vld [vmem:[#allocation2 + $0x1d8] sm:$0xff]  ;;  %v10276_v11 = vld [vmem:[#allocation2 + $0x1c0] sm:$0xff] }
 0x4c5   : > { %2339 = vst [vmem:[%s1126_s7] sm:$0xff] %v2337_v25  ;;  %v11479_v60 = vpack.c.bf16 %v2337_v25, %v2337_v25  ;;  %v10269_v25 = vld [vmem:[#allocation2 + $0x188] sm:$0xff]  ;;  %v10268_v36 = vld [vmem:[#allocation2 + $0x180] sm:$0xff] }
 0x4c7   : > { %2483 = vmatmul.bf16.vlgmr.msrb.gmra.mxu2 %v11479_v60  ;;  %2641 = vmatmul.bf16.vlgmr.msrb.gmra.mxu0 %v11479_v60 }
 0x4c9   : > { %v2266_v22 = vpop.f32.mrf.mxu3 }
 0x4ca   : > { %v2271_v20 = vadd.f32 %v2266_v22, %v2215_v0  ;;  %v10309_v0 = vld [vmem:[#allocation2 + $0x2b8] sm:$0xff] }
 0x4cb   : > { %v2212_v9 = vpop.f32.mrf.mxu1 }
 0x4cc   : > { %v10277_v9 = vld [vmem:[#allocation2 + $0x1c8] sm:$0xff] }
 0x4d1   : > { %v2268_v63 = vpop.f32.mrf.mxu3 }
 0x4d2   : > { %v10297_v63 = vld [vmem:[#allocation2 + $0x260] sm:$0xff] }
 0x4d3   : > { %v2322_v1 = vpop.f32.mrf.mxu1 }
 0x4d4   : > { %v2327_v47 = vadd.f32 %v2322_v1, %v2271_v20  ;;  %v10308_v20 = vld [vmem:[#allocation2 + $0x2b0] sm:$0xff]  ;;  %v10296_v1 = vld [vmem:[#allocation2 + $0x258] sm:$0xff] }
 0x4d6   : > { %v2334_v43 = vadd.f32 %v2331_v49, %v2327_v47  ;;  %v10282_v49 = vld [vmem:[#allocation2 + $0x1f0] sm:$0xff]  ;;  %v10307_v47 = vld [vmem:[#allocation2 + $0x2a8] sm:$0xff] }
 0x4d7   : > { %2850 = vmatmul.bf16.vlgmr.msra.gmra.mxu0 %v11479_v60 }
 0x4d8   : > { %v2336_v23 = vadd.f32 %v2334_v43, %v1200_v28  ;;  %v10286_v28 = vld [vmem:[#allocation2 + $0x208] sm:$0xff]  ;;  %v10295_v43 = vld [vmem:[#allocation2 + $0x250] sm:$0xff] }
 0x4da   : > { %v2338_v52 = vmax.f32 %v2336_v23, 0.0  ;;  %v10306_v23 = vld [vmem:[#allocation2 + $0x2a0] sm:$0xff] }
 0x4db   : > { %v2324_v62 = vpop.f32.mrf.mxu1 }
 0x4dc   : > { %2340 = vst [vmem:[%s1126_s7 + $0x8] sm:$0xff] %v2338_v52  ;;  %v11490_v31 = vpack.c.bf16 %v2338_v52, %v2338_v52  ;;  %v10294_v52 = vld [vmem:[#allocation2 + $0x248] sm:$0xff]  ;;  %v10305_v62 = vld [vmem:[#allocation2 + $0x298] sm:$0xff]  ;;  %s12514_s7 = smov 10  }
 0x4de   : > { %2496 = vmatmul.bf16.vlgmr.msrb.gmra.mxu3 %v11490_v31  ;;  %2654 = vmatmul.bf16.vlgmr.msrb.gmra.mxu1 %v11490_v31 }
 0x4df   : > { %3214 = vmatpush.bf16.msrb.mxu1 %v10292_v8  ;;  %v10293_v8 = vld [vmem:[#allocation2 + $0x240] sm:$0xff] }
 0x4e3   : > { %3215 = vmatpush.bf16.msrb.mxu1 %v10291_v2  ;;  %v10326_v2 = vld [vmem:[#allocation2 + $0x338] sm:$0xff] }
 0x4e7   : > { %3216 = vmatpush.bf16.msrb.mxu1 %v10290_v3  ;;  %v10304_v3 = vld [vmem:[#allocation2 + $0x290] sm:$0xff] }
 0x4eb   : > { %3217 = vmatpush.bf16.msrb.mxu1 %v10289_v37  ;;  %v10325_v37 = vld [vmem:[#allocation2 + $0x330] sm:$0xff] }
 0x4ee   : > { %2863 = vmatmul.bf16.vlgmr.msra.gmra.mxu1 %v11490_v31 }
 0x4ef   : > { %3218 = vmatpush.bf16.msrb.mxu1 %v10288_v4  ;;  %v10303_v4 = vld [vmem:[#allocation2 + $0x288] sm:$0xff] }
 0x4f3   : > { %3219 = vmatpush.bf16.msrb.mxu1 %v10287_v26  ;;  %v10324_v26 = vld [vmem:[#allocation2 + $0x328] sm:$0xff] }
 0x4f7   : > { %3220 = vmatpush.bf16.msrb.mxu1 %v10286_v28  ;;  %v10302_v28 = vld [vmem:[#allocation2 + $0x280] sm:$0xff] }
 0x4fb   : > { %3221 = vmatpush.bf16.msrb.mxu1 %v10285_v6  ;;  %v10323_v6 = vld [vmem:[#allocation2 + $0x320] sm:$0xff] }
 0x4fe   : > { %3222 = vmatmul.bf16.vlgmr.msrb.gmra.mxu1 %v11479_v60 }
 0x544   : > { %v2642_v7 = vpop.f32.mrf.mxu0 }
 0x54a   : > { %v2484_v48 = vpop.f32.mrf.mxu2 }
 0x54c   : > { %v2644_v53 = vpop.f32.mrf.mxu0 }
 0x54d   : > { %v10320_v53 = vld [vmem:[#allocation2 + $0x308] sm:$0xff] }
 0x552   : > { %v2486_v10 = vpop.f32.mrf.mxu2 }
 0x553   : > { %v10319_v10 = vld [vmem:[#allocation2 + $0x300] sm:$0xff] }
 0x554   : > { %v2851_v14 = vpop.f32.mrf.mxu0 }
 0x55b   : > { %v2655_v19 = vpop.f32.mrf.mxu1 }
 0x55c   : > { %v2656_v29 = vadd.f32 %v2655_v19, %v2642_v7  ;;  %v2853_v17 = vpop.f32.mrf.mxu0  ;;  %v10322_v7 = vld [vmem:[#allocation2 + $0x318] sm:$0xff] }
 0x55e   : > { %v2662_v27 = vpack.c.bf16 %v2656_v29, %v2656_v29 }
 0x560   : > { %v2672_v16 = vsel %vm1264_vm4, %v2662_v27, 0 }
 0x561   : > { %v2497_v50 = vpop.f32.mrf.mxu3  ;;  %2681 = vmatpush.bf16.msra.mxu2 %v2672_v16 }
 0x562   : > { %v2498_v15 = vadd.f32 %v2497_v50, %v2484_v48  ;;  %v10321_v48 = vld [vmem:[#allocation2 + $0x310] sm:$0xff] }
 0x563   : > { %v2657_v34 = vpop.f32.mrf.mxu1 }
 0x564   : > { %v2503_v32 = vpack.c.bf16 %v2498_v15, %v2498_v15  ;;  %8624 = vmatmul.msk.bf16.vlgmr.msra.gmra.mxu2 %vm1260_vm11, %v10250_v30 }
 0x566   : > { %v2697_v33 = vsel %vm1264_vm4, %v2503_v32, 0 }
 0x567   : > { %2706 = vmatpush.bf16.msra.mxu3 %v2697_v33 }
 0x569   : > { %v2499_v38 = vpop.f32.mrf.mxu3 }
 0x56a   : > { %8629 = vmatmul.msk.bf16.vlgmr.msra.gmra.mxu3 %vm1260_vm11, %v10233_v12 }
 0x56b   : > { %3028 = vmatpush.bf16.msrb.mxu3 %v10275_v56  ;;  %v2864_v39 = vpop.f32.mrf.mxu1 }
 0x56c   : > { %v2865_v5 = vadd.f32 %v2864_v39, %v2851_v14 }
 0x56e   : > { %v2871_v42 = vpack.c.bf16 %v2865_v5, %v2865_v5 }
 0x56f   : > { %3029 = vmatpush.bf16.msrb.mxu3 %v10274_v35  ;;  %v10284_v35 = vld [vmem:[%s10840_s8 + $0x18] sm:$0xff] }
 0x570   : > { %v2881_v40 = vsel %vm1264_vm4, %v2871_v42, 0  ;;  %v10317_v42 = vld [vmem:[#allocation2 + $0x2f8] sm:$0xff] }
 0x571   : > { %2890 = vmatpush.bf16.msrb.mxu2 %v2881_v40  ;;  %v10301_v40 = vld [vmem:[%s10840_s8 + $0x20] sm:$0xff] }
 0x573   : > { %3030 = vmatpush.bf16.msrb.mxu3 %v10273_v41  ;;  %v2866_v54 = vpop.f32.mrf.mxu1 }
 0x574   : > { %8700 = vmatmul.msk.bf16.vlgmr.msrb.gmra.mxu2 %vm1260_vm11, %v10267_v46  ;;  %v10315_v54 = vld [vmem:[#allocation2 + $0x2e8] sm:$0xff] }
 0x575   : > { %3041 = vmatpush.bf16.msra.mxu2 %v10283_v13 }
 0x577   : > { %3031 = vmatpush.bf16.msrb.mxu3 %v10272_v45  ;;  %v10316_v45 = vld [vmem:[#allocation2 + $0x2f0] sm:$0xff] }
 0x579   : > { %3042 = vmatpush.bf16.msra.mxu2 %v10282_v49 }
 0x57b   : > { %3032 = vmatpush.bf16.msrb.mxu3 %v10271_v57  ;;  %v11505_v58 = vpop.f32.mrf.mxu1  ;;  %v10314_v57 = vld [vmem:[#allocation2 + $0x2e0] sm:$0xff] }
 0x57d   : > { %3043 = vmatpush.bf16.msra.mxu2 %v10281_v51 }
 0x57f   : > { %3033 = vmatpush.bf16.msrb.mxu3 %v10270_v55  ;;  %v10313_v55 = vld [vmem:[#allocation2 + $0x2d8] sm:$0xff] }
 0x581   : > { %3044 = vmatpush.bf16.msra.mxu2 %v10280_v59  ;;  %v10312_v59 = vld [vmem:[#allocation2 + $0x2d0] sm:$0xff] }
 0x583   : > { %3034 = vmatpush.bf16.msrb.mxu3 %v10269_v25  ;;  %v3225_v22 = vpop.f32.mrf.mxu1 }
 0x584   : > { %v10341_v22 = vld [vmem:[#allocation2 + $0x3a8] sm:$0xff] }
 0x585   : > { %3045 = vmatpush.bf16.msra.mxu2 %v10279_v18  ;;  %v10310_v18 = vld [vmem:[#allocation2 + $0x2c0] sm:$0xff] }
 0x587   : > { %3035 = vmatpush.bf16.msrb.mxu3 %v10268_v36  ;;  %v10343_v36 = vld [vmem:[#allocation2 + $0x3b8] sm:$0xff] }
 0x589   : > { %3046 = vmatpush.bf16.msra.mxu2 %v10278_v21 }
 0x58a   : > { %3036 = vmatmul.bf16.vlgmr.msrb.gmra.mxu3 %v11479_v60 }
 0x58b   : > { %3227 = vmatpush.bf16.msra.mxu3 %v10300_v24  ;;  %v10342_v24 = vld [vmem:[#allocation2 + $0x3b0] sm:$0xff] }
 0x58d   : > { %3047 = vmatpush.bf16.msra.mxu2 %v10277_v9  ;;  %v10339_v9 = vld [vmem:[#allocation2 + $0x398] sm:$0xff] }
 0x58f   : > { %3228 = vmatpush.bf16.msra.mxu3 %v10299_v61  ;;  %v10340_v61 = vld [vmem:[#allocation2 + $0x3a0] sm:$0xff] }
 0x591   : > { %3048 = vmatpush.bf16.msra.mxu2 %v10276_v11  ;;  %v10337_v11 = vld [vmem:[#allocation2 + $0x388] sm:$0xff] }
 0x593   : > { %3229 = vmatpush.bf16.msra.mxu3 %v10298_v44  ;;  %v10338_v44 = vld [vmem:[#allocation2 + $0x390] sm:$0xff] }
 0x594   : > { %3049 = vmatmul.bf16.vlgmr.msra.gmra.mxu2 %v11490_v31 }
 0x595   : > { %3400 = vmatpush.bf16.msrb.mxu2 %v10309_v0  ;;  %v10336_v0 = vld [vmem:[#allocation2 + $0x380] sm:$0xff] }
 0x597   : > { %3230 = vmatpush.bf16.msra.mxu3 %v10297_v63 }
 0x599   : > { %3401 = vmatpush.bf16.msrb.mxu2 %v10308_v20 }
 0x59b   : > { %3231 = vmatpush.bf16.msra.mxu3 %v10296_v1 }
 0x59d   : > { %3402 = vmatpush.bf16.msrb.mxu2 %v10307_v47 }
 0x59f   : > { %3232 = vmatpush.bf16.msra.mxu3 %v10295_v43 }
 0x5a1   : > { %3403 = vmatpush.bf16.msrb.mxu2 %v10306_v23 }
 0x5a3   : > { %3233 = vmatpush.bf16.msra.mxu3 %v10294_v52 }
 0x5a5   : > { %3404 = vmatpush.bf16.msrb.mxu2 %v10305_v62 }
 0x5a7   : > { %3234 = vmatpush.bf16.msra.mxu3 %v10293_v8 }
 0x5a9   : > { %3405 = vmatpush.bf16.msrb.mxu2 %v10304_v3 }
 0x5aa   : > { %3235 = vmatmul.bf16.vlgmr.msra.gmra.mxu3 %v11490_v31 }
 0x5ab   : > { %3586 = vmatpush.bf16.msrb.mxu3 %v10326_v2  ;;  %v10334_v2 = vld [vmem:[#allocation2 + $0x378] sm:$0xff] }
 0x5ad   : > { %3406 = vmatpush.bf16.msrb.mxu2 %v10303_v4  ;;  %v10333_v4 = vld [vmem:[#allocation2 + $0x370] sm:$0xff] }
 0x5af   : > { %3587 = vmatpush.bf16.msrb.mxu3 %v10325_v37  ;;  %v10318_v37 = vld [vmem:[%s10840_s8 + $0x28] sm:$0xff] }
 0x5b1   : > { %3407 = vmatpush.bf16.msrb.mxu2 %v10302_v28  ;;  %v10332_v28 = vld [vmem:[#allocation2 + $0x368] sm:$0xff] }
 0x5b3   : > { %3588 = vmatpush.bf16.msrb.mxu3 %v10324_v26 }
 0x5b4   : > { %3408 = vmatmul.bf16.vlgmr.msrb.gmra.mxu2 %v11479_v60 }
 0x5b7   : > { %3589 = vmatpush.bf16.msrb.mxu3 %v10323_v6  ;;  %v10331_v6 = vld [vmem:[#allocation2 + $0x360] sm:$0xff] }
 0x5bb   : > { %3590 = vmatpush.bf16.msrb.mxu3 %v10322_v7  ;;  %v10330_v7 = vld [vmem:[#allocation2 + $0x358] sm:$0xff] }
 0x5bf   : > { %3591 = vmatpush.bf16.msrb.mxu3 %v10321_v48  ;;  %v10329_v48 = vld [vmem:[#allocation2 + $0x350] sm:$0xff] }
 0x5c3   : > { %3592 = vmatpush.bf16.msrb.mxu3 %v10320_v53  ;;  %v10328_v53 = vld [vmem:[#allocation2 + $0x348] sm:$0xff] }
 0x5c7   : > { %3593 = vmatpush.bf16.msrb.mxu3 %v10319_v10 }
 0x5ca   : > { %3594 = vmatmul.bf16.vlgmr.msrb.gmra.mxu3 %v11479_v60 }
 0x5e7   : > { %v2683_v14 = vpop.f32.mrf.mxu2 }
 0x5ed   : > { %v2708_v19 = vpop.f32.mrf.mxu3 }
 0x5ee   : > { %v2709_v29 = vadd.f32 %v2708_v19, %v2683_v14  ;;  %v10327_v14 = vld [vmem:[#allocation2 + $0x340] sm:$0xff]  ;;  %v10360_v19 = vld [vmem:[#allocation2 + $0x438] sm:$0xff] }
 0x5ef   : > { %v11512_v17 = vpop.f32.mrf.mxu2 }
 0x5f5   : > { %v11514_v30 = vpop.f32.mrf.mxu3 }
 0x5f7   : > { %v2892_v27 = vpop.f32.mrf.mxu2 }
 0x5f8   : > { %v2897_v16 = vadd.f32 %v2892_v27, %v2709_v29  ;;  %v10359_v29 = vld [vmem:[#allocation2 + $0x430] sm:$0xff] }
 0x5ff   : > { %v11516_v15 = vpop.f32.mrf.mxu2 }
 0x60d   : > { %v3037_v50 = vpop.f32.mrf.mxu3 }
 0x615   : > { %v3039_v34 = vpop.f32.mrf.mxu3 }
 0x616   : > { %v10356_v34 = vld [vmem:[#allocation2 + $0x418] sm:$0xff] }
 0x617   : > { %v3050_v32 = vpop.f32.mrf.mxu2 }
 0x618   : > { %v3051_v56 = vadd.f32 %v3050_v32, %v3037_v50  ;;  %v10357_v50 = vld [vmem:[#allocation2 + $0x420] sm:$0xff]  ;;  %v10355_v32 = vld [vmem:[#allocation2 + $0x410] sm:$0xff] }
 0x61a   : > { %v3057_v33 = vpack.c.bf16 %v3051_v56, %v3051_v56  ;;  %v10354_v56 = vld [vmem:[#allocation2 + $0x408] sm:$0xff] }
 0x61c   : > { %v3067_v12 = vsel %vm1264_vm4, %v3057_v33, 0  ;;  %v10353_v33 = vld [vmem:[#allocation2 + $0x400] sm:$0xff] }
 0x61d   : > { %3076 = vmatpush.bf16.msrb.mxu0 %v3067_v12 }
 0x61f   : > { %v3052_v38 = vpop.f32.mrf.mxu2 }
 0x620   : > { %8771 = vmatmul.msk.bf16.vlgmr.msrb.gmra.mxu0 %vm1260_vm11, %v10284_v35 }
 0x62d   : > { %v3236_v39 = vpop.f32.mrf.mxu3 }
 0x62e   : > { %v3237_v5 = vadd.f32 %v3236_v39, %v11505_v58  ;;  %v10311_v58 = vld [vmem:[#allocation2 + $0x2c8] sm:$0xff] }
 0x630   : > { %v3243_v41 = vpack.c.bf16 %v3237_v5, %v3237_v5 }
 0x632   : > { %v11523_v13 = vsel %vm1264_vm4, %v3243_v41, 0 }
 0x633   : > { %3262 = vmatpush.bf16.msra.mxu0 %v11523_v13 }
 0x635   : > { %v3238_v46 = vpop.f32.mrf.mxu3 }
 0x636   : > { %8842 = vmatmul.msk.bf16.vlgmr.msra.gmra.mxu0 %vm1260_vm11, %v10301_v40  ;;  %v10350_v46 = vld [vmem:[#allocation2 + $0x3f0] sm:$0xff] }
 0x637   : > { %3413 = vmatpush.bf16.msrb.mxu0 %v10317_v42  ;;  %v3409_v49 = vpop.f32.mrf.mxu2  ;;  %v10351_v42 = vld [vmem:[#allocation2 + $0x3f8] sm:$0xff] }
 0x63b   : > { %3414 = vmatpush.bf16.msrb.mxu0 %v10316_v45  ;;  %v10335_v45 = vld [vmem:[%s10840_s8 + $0x30] sm:$0xff] }
 0x63f   : > { %3415 = vmatpush.bf16.msrb.mxu0 %v10315_v54  ;;  %v3411_v51 = vpop.f32.mrf.mxu2  ;;  %v10348_v54 = vld [vmem:[#allocation2 + $0x3e0] sm:$0xff] }
 0x640   : > { %v10346_v51 = vld [vmem:[#allocation2 + $0x3d0] sm:$0xff] }
 0x643   : > { %3416 = vmatpush.bf16.msrb.mxu0 %v10314_v57  ;;  %v10347_v57 = vld [vmem:[#allocation2 + $0x3d8] sm:$0xff] }
 0x647   : > { %3417 = vmatpush.bf16.msrb.mxu0 %v10313_v55  ;;  %v10345_v55 = vld [vmem:[#allocation2 + $0x3c8] sm:$0xff] }
 0x64b   : > { %3418 = vmatpush.bf16.msrb.mxu0 %v10312_v59 }
 0x64d   : > { %v11528_v25 = vpop.f32.mrf.mxu3 }
 0x64f   : > { %3419 = vmatpush.bf16.msrb.mxu0 %v10311_v58  ;;  %v10344_v58 = vld [vmem:[#allocation2 + $0x3c0] sm:$0xff] }
 0x653   : > { %3420 = vmatpush.bf16.msrb.mxu0 %v10310_v18 }
 0x655   : > { %v3597_v21 = vpop.f32.mrf.mxu3 }
 0x656   : > { %3421 = vmatmul.bf16.vlgmr.msrb.gmra.mxu0 %v11490_v31 }
 0x657   : > { %3772 = vmatpush.bf16.msra.mxu0 %v10343_v36 }
 0x65b   : > { %3773 = vmatpush.bf16.msra.mxu0 %v10342_v24 }
 0x65f   : > { %3774 = vmatpush.bf16.msra.mxu0 %v10341_v22 }
 0x663   : > { %3775 = vmatpush.bf16.msra.mxu0 %v10340_v61 }
 0x667   : > { %3776 = vmatpush.bf16.msra.mxu0 %v10339_v9  ;;  %v10368_v9 = vld [vmem:[#allocation2 + $0x478] sm:$0xff] }
 0x66b   : > { %3777 = vmatpush.bf16.msra.mxu0 %v10338_v44 }
 0x66f   : > { %3778 = vmatpush.bf16.msra.mxu0 %v10337_v11  ;;  %v10352_v11 = vld [vmem:[%s10840_s8 + $0x38] sm:$0xff] }
 0x673   : > { %3779 = vmatpush.bf16.msra.mxu0 %v10336_v0  ;;  %v10367_v0 = vld [vmem:[#allocation2 + $0x470] sm:$0xff] }
 0x676   : > { %3780 = vmatmul.bf16.vlgmr.msra.gmra.mxu0 %v11479_v60 }
 0x69d   : > { %v3078_v63 = vpop.f32.mrf.mxu0 }
 0x69e   : > { %v3083_v20 = vadd.f32 %v3078_v63, %v2897_v16  ;;  %v10358_v16 = vld [vmem:[#allocation2 + $0x428] sm:$0xff] }
 0x6a5   : > { %v11532_v1 = vpop.f32.mrf.mxu0 }
 0x6b3   : > { %v3264_v47 = vpop.f32.mrf.mxu0 }
 0x6b4   : > { %v3269_v43 = vadd.f32 %v3264_v47, %v3083_v20  ;;  %v10366_v20 = vld [vmem:[#allocation2 + $0x468] sm:$0xff]  ;;  %v10365_v47 = vld [vmem:[#allocation2 + $0x460] sm:$0xff] }
 0x6bb   : > { %v11534_v23 = vpop.f32.mrf.mxu0 }
 0x6d3   : > { %v3422_v52 = vpop.f32.mrf.mxu0 }
 0x6d4   : > { %v3423_v62 = vadd.f32 %v3422_v52, %v3409_v49  ;;  %v10363_v52 = vld [vmem:[#allocation2 + $0x450] sm:$0xff] }
 0x6d6   : > { %v3429_v8 = vpack.c.bf16 %v3423_v62, %v3423_v62  ;;  %v10362_v62 = vld [vmem:[#allocation2 + $0x448] sm:$0xff] }
 0x6d8   : > { %v3439_v3 = vsel %vm1264_vm4, %v3429_v8, 0  ;;  %v10361_v8 = vld [vmem:[#allocation2 + $0x440] sm:$0xff] }
 0x6d9   : > { %3448 = vmatpush.bf16.msra.mxu1 %v3439_v3 }
 0x6db   : > { %v3424_v26 = vpop.f32.mrf.mxu0 }
 0x6dc   : > { %8913 = vmatmul.msk.bf16.vlgmr.msra.gmra.mxu1 %vm1260_vm11, %v10318_v37  ;;  %v2341_v37 = vld [vmem:[%s10845_s14] sm:$0xff] }
 0x6dd   : > { %3599 = vmatpush.bf16.msrb.mxu1 %v10334_v2  ;;  %4017 = vperm.xlu2 %10639, %v2341_v37  }
 0x6e1   : > { %3600 = vmatpush.bf16.msrb.mxu1 %v10333_v4  ;;  %v11554_v4 = vld [vmem:[%s10860_s30] sm:$0xff] }
 0x6e2   : > { %v4051_v26 = vperm.slane %v11554_v4, 1 }
 0x6e4   : > { %4053 = vrot.lane.b32.xlu0 %v4051_v26, %s12533_s0 }
 0x6e5   : > { %3601 = vmatpush.bf16.msrb.mxu1 %v10332_v28  ;;  %v4110_v28 = vperm.slane %v11554_v4, 2 }
 0x6e9   : > { %3602 = vmatpush.bf16.msrb.mxu1 %v10331_v6 }
 0x6ec   : > { %4112 = vrot.lane.b32.xlu0 %v4110_v28, %s12509_s1  ;;  %s12569_s1 = smov 16  }
 0x6ed   : > { %3603 = vmatpush.bf16.msrb.mxu1 %v10330_v7  ;;  %v10642_v7 = vld [vmem:[%s10860_s30 + $0x8] ss:$0 sm:$0xff] }
 0x6f1   : > { %3604 = vmatpush.bf16.msrb.mxu1 %v10329_v48 }
 0x6f3   : > { %v3781_v10 = vpop.f32.mrf.mxu0 }
 0x6f4   : > { %4346 = vrot.lane.b32.xlu0 %v10642_v7, %s10768_s10  ;;  %s12513_s10 = smov 9  }
 0x6f5   : > { %3605 = vmatpush.bf16.msrb.mxu1 %v10328_v53 }
 0x6f9   : > { %3606 = vmatpush.bf16.msrb.mxu1 %v10327_v14  ;;  %v10369_v14 = vld [vmem:[%s10840_s8 + $0x40] sm:$0xff] }
 0x6fb   : > { %v3783_v27 = vpop.f32.mrf.mxu0 }
 0x6fc   : > { %3607 = vmatmul.bf16.vlgmr.msrb.gmra.mxu1 %v11490_v31 }
 0x6fd   : > { %3958 = vmatpush.bf16.msra.mxu1 %v10360_v19 }
 0x701   : > { %3959 = vmatpush.bf16.msra.mxu1 %v10359_v29  ;;  %v2711_v29 = vadd.f32 %v11514_v30, %v11512_v17  ;;  %v4023_v30 = vpop.permute.xlu0 %4022 }
 0x703   : > { %v2898_v27 = vadd.f32 %v11516_v15, %v2711_v29 }
 0x705   : > { %3960 = vmatpush.bf16.msra.mxu1 %v10358_v16  ;;  %v3084_v16 = vadd.f32 %v11532_v1, %v2898_v27  ;;  %v4149_v1 = vperm.slane %v11554_v4, 3 }
 0x709   : > { %3961 = vmatpush.bf16.msra.mxu1 %v10357_v50 }
 0x70d   : > { %3962 = vmatpush.bf16.msra.mxu1 %v10356_v34 }
 0x711   : > { %3963 = vmatpush.bf16.msra.mxu1 %v10355_v32  ;;  %v3270_v32 = vadd.f32 %v11534_v23, %v3084_v16  ;;  %v4227_v23 = vperm.slane %v11554_v4, 5  ;;  %v2344_v16 = vld [vmem:[%s10855_s24 + $0x8] sm:$0xff] }
 0x715   : > { %3964 = vmatpush.bf16.msra.mxu1 %v10354_v56 }
 0x719   : > { %3965 = vmatpush.bf16.msra.mxu1 %v10353_v33 }
 0x71c   : > { %3966 = vmatmul.bf16.vlgmr.msra.gmra.mxu1 %v11479_v60  ;;  %v10349_v60 = vld [vmem:[#allocation2 + $0x3e8] sm:$0xff] }
 0x737   : > { %v4018_v34 = vpop.permute.xlu2 %4017 }
 0x759   : > { %v3450_v12 = vpop.f32.mrf.mxu1 }
 0x75a   : > { %v3455_v35 = vadd.f32 %v3450_v12, %v3269_v43  ;;  %v10364_v43 = vld [vmem:[#allocation2 + $0x458] sm:$0xff] }
 0x761   : > { %v11541_v38 = vpop.f32.mrf.mxu1 }
 0x762   : > { %v3456_v33 = vadd.f32 %v11541_v38, %v3270_v32  ;;  %v4188_v38 = vperm.slane %v11554_v4, 4 }
 0x779   : > { %v3608_v39 = vpop.f32.mrf.mxu1 }
 0x77a   : > { %v3609_v5 = vadd.f32 %v3608_v39, %v11528_v25 }
 0x77c   : > { %v3615_v41 = vpack.c.bf16 %v3609_v5, %v3609_v5 }
 0x77e   : > { %v3625_v40 = vsel %vm1264_vm4, %v3615_v41, 0 }
 0x77f   : > { %3634 = vmatpush.bf16.msra.mxu2 %v3625_v40  ;;  %v4266_v40 = vperm.slane %v11554_v4, 6 }
 0x781   : > { %v3610_v49 = vpop.f32.mrf.mxu1 }
 0x782   : > { %8984 = vmatmul.msk.bf16.vlgmr.msra.gmra.mxu2 %vm1260_vm11, %v10335_v45  ;;  %v4305_v45 = vperm.slane %v11554_v4, 7  ;;  %v4054_v49 = vpop.permute.xlu0 %4053 }
 0x783   : > { %3785 = vmatpush.bf16.msrb.mxu2 %v10351_v42 }
 0x787   : > { %3786 = vmatpush.bf16.msrb.mxu2 %v10350_v46 }
 0x78b   : > { %3787 = vmatpush.bf16.msrb.mxu2 %v10349_v60 }
 0x78f   : > { %3788 = vmatpush.bf16.msrb.mxu2 %v10348_v54  ;;  %v4045_v54 = vperm.slane %v11554_v4, 0 }
 0x793   : > { %3789 = vmatpush.bf16.msrb.mxu2 %v10347_v57 }
 0x797   : > { %3790 = vmatpush.bf16.msrb.mxu2 %v10346_v51 }
 0x799   : > { %v3967_v59 = vpop.f32.mrf.mxu1 }
 0x79b   : > { %3791 = vmatpush.bf16.msrb.mxu2 %v10345_v55 }
 0x79f   : > { %3792 = vmatpush.bf16.msrb.mxu2 %v10344_v58 }
 0x7a1   : > { %v3969_v25 = vpop.f32.mrf.mxu1 }
 0x7a2   : > { %3793 = vmatmul.bf16.vlgmr.msrb.gmra.mxu2 %v11490_v31 }
 0x805   : > { %v3636_v18 = vpop.f32.mrf.mxu2 }
 0x806   : > { %v3641_v36 = vadd.f32 %v3636_v18, %v3455_v35 }
 0x80d   : > { %v3638_v24 = vpop.f32.mrf.mxu2 }
 0x80e   : > { %v3642_v35 = vadd.f32 %v3638_v24, %v3456_v33 }
 0x825   : > { %v3794_v21 = vpop.f32.mrf.mxu2 }
 0x826   : > { %v3795_v22 = vadd.f32 %v3794_v21, %v3781_v10 }
 0x828   : > { %v3801_v61 = vpack.c.bf16 %v3795_v22, %v3795_v22 }
 0x82a   : > { %v3811_v44 = vsel %vm1264_vm4, %v3801_v61, 0 }
 0x82b   : > { %3820 = vmatpush.bf16.msra.mxu3 %v3811_v44 }
 0x82d   : > { %v3796_v63 = vpop.f32.mrf.mxu2 }
 0x82e   : > { %9055 = vmatmul.msk.bf16.vlgmr.msra.gmra.mxu3 %vm1260_vm11, %v10352_v11  ;;  %v4113_v11 = vpop.permute.xlu0 %4112 }
 0x82f   : > { %3971 = vmatpush.bf16.msrb.mxu3 %v10368_v9 }
 0x833   : > { %3972 = vmatpush.bf16.msrb.mxu3 %v10367_v0 }
 0x836   : > { %v4347_v4 = vpop.permute.xlu0 %4346 }
 0x837   : > { %3973 = vmatpush.bf16.msrb.mxu3 %v10366_v20 }
 0x83b   : > { %3974 = vmatpush.bf16.msrb.mxu3 %v10365_v47 }
 0x83f   : > { %3975 = vmatpush.bf16.msrb.mxu3 %v10364_v43 }
 0x843   : > { %3976 = vmatpush.bf16.msrb.mxu3 %v10363_v52 }
 0x847   : > { %3977 = vmatpush.bf16.msrb.mxu3 %v10362_v62 }
 0x84b   : > { %3978 = vmatpush.bf16.msrb.mxu3 %v10361_v8 }
 0x84e   : > { %3979 = vmatmul.bf16.vlgmr.msrb.gmra.mxu3 %v11490_v31 }
 0x8b1   : > { %v3822_v2 = vpop.f32.mrf.mxu3 }
 0x8b2   : > { %v3827_v3 = vadd.f32 %v3822_v2, %v3641_v36 }
 0x8b9   : > { %v3824_v6 = vpop.f32.mrf.mxu3 }
 0x8ba   : > { %v3828_v5 = vadd.f32 %v3824_v6, %v3642_v35 }
 0x8d1   : > { %v3980_v31 = vpop.f32.mrf.mxu3 }
 0x8d2   : > { %v3981_v48 = vadd.f32 %v3980_v31, %v3967_v59 }
 0x8d4   : > { %v3987_v53 = vpack.c.bf16 %v3981_v48, %v3981_v48 }
 0x8d6   : > { %v3997_v10 = vsel %vm1264_vm4, %v3987_v53, 0  ;;  %vm4040_vm4 = vcmask 596992  }
 0x8d7   : > { %4006 = vmatpush.bf16.msrb.mxu0 %v3997_v10  ;;  %v2343_v10 = vld [vmem:[%s10855_s24] sm:$0xff] }
 0x8d9   : > { %v3982_v19 = vpop.f32.mrf.mxu3 }
 0x8da   : > { %9126 = vmatmul.msk.bf16.vlgmr.msrb.gmra.mxu0 %vm1260_vm11, %v10369_v14 }
 0x957   : > { %v4008_v50 = vpop.f32.mrf.mxu0 }
 0x958   : > { %v4013_v56 = vadd.f32 %v4008_v50, %v3827_v3 }
 0x95a   : > { %v4025_v12 = vadd.f32 %v4018_v34, %v4013_v56 }
 0x95c   : > { %v4027_v39 = vmax.f32 %v4025_v12, 0.0 }
 0x95e   : > { %4031 = vrot.lane.b32.xlu1 %v4027_v39, %s12513_s10 }
 0x95f   : > { %v4010_v41 = vpop.f32.mrf.mxu0 }
 0x960   : > { %v4014_v17 = vadd.f32 %v4010_v41, %v3828_v5 }
 0x962   : > { %v4026_v15 = vadd.f32 %v4023_v30, %v4014_v17 }
 0x964   : > { %v4028_v42 = vmax.f32 %v4026_v15, 0.0 }
 0x966   : > { %4151 = vrot.lane.b32.xlu1 %v4149_v1, %s10779_s18  ;;  %4033 = vrot.lane.b32.xlu2 %v4028_v42, %s12513_s10 }
 0x96e   : > { %4229 = vrot.lane.b32.xlu1 %v4227_v23, %s12514_s7  ;;  %4190 = vrot.lane.b32.xlu2 %v4188_v38, %s12513_s10  ;;  %s12517_s10 = smov 118   ;;  %s12571_s7 = sld [smem:[#allocation14_spill]] }
 0x974   : > { %v4440_v32 = vld [vmem:[%s12571_s7 + $0x10] sm:$0xff]  ;;  %v4438_v56 = vld [vmem:[%s12571_s7] sm:$0xff]  ;;  %v4441_v33 = vld [vmem:[%s12571_s7 + $0x18] sm:$0xff] }
 0x975   : > { %v4439_v12 = vld [vmem:[%s12571_s7 + $0x8] sm:$0xff] }
 0x976   : > { %4268 = vrot.lane.b32.xlu1 %v4266_v40, %s12569_s1  ;;  %4307 = vrot.lane.b32.xlu2 %v4305_v45, %s10764_s2  ;;  %s12511_s1 = smov 119   ;;  %s12515_s2 = smov 120  }
 0x9c0   : > { %v4034_v46 = vpop.permute.xlu2 %4033 }
 0x9c1   : > { %v4039_v60 = vsel %vm4037_vm3, 0.0, %v4034_v46 }
 0x9c2   : > { %v4042_v57 = vsel %vm4040_vm4, %v4039_v60, 0.0 }
 0x9c3   : > { %v4057_v25 = vmul.f32 %v4054_v49, %v4042_v57  ;;  %v4047_v18 = vmul.f32 %v4045_v54, %v4042_v57  ;;  %v4116_v8 = vmul.f32 %v4113_v11, %v4042_v57  ;;  %v4350_v31 = vmul.f32 %v4347_v4, %v4042_v57 }
 0x9c8   : > { %v4191_v51 = vpop.permute.xlu2 %4190 }
 0x9c9   : > { %v4194_v36 = vmul.f32 %v4191_v51, %v4042_v57 }
 0x9d0   : > { %v4032_v55 = vpop.permute.xlu1 %4031  ;;  %v4308_v63 = vpop.permute.xlu2 %4307 }
 0x9d1   : > { %v4038_v59 = vsel %vm4037_vm3, 0.0, %v4032_v55  ;;  %v4311_v2 = vmul.f32 %v4308_v63, %v4042_v57 }
 0x9d2   : > { %v4041_v58 = vsel %vm4040_vm4, %v4038_v59, 0.0 }
 0x9d3   : > { %v4056_v24 = vmul.f32 %v4054_v49, %v4041_v58  ;;  %v4046_v21 = vmul.f32 %v4045_v54, %v4041_v58  ;;  %v4193_v22 = vmul.f32 %v4191_v51, %v4041_v58  ;;  %v4115_v43 = vmul.f32 %v4113_v11, %v4041_v58 }
 0x9d4   : > { %v4310_v52 = vmul.f32 %v4308_v63, %v4041_v58  ;;  %v4349_v7 = vmul.f32 %v4347_v4, %v4041_v58 }
 0x9d5   : > { %v4061_v61 = vpack.c.bf16 %v4057_v25, %v4056_v24  ;;  %v4050_v9 = vpack.c.bf16 %v4047_v18, %v4046_v21  ;;  %v4198_v44 = vpack.c.bf16 %v4194_v36, %v4193_v22  ;;  %v4120_v3 = vpack.c.bf16 %v4116_v8, %v4115_v43 }
 0x9d6   : > { %v4315_v37 = vpack.c.bf16 %v4311_v2, %v4310_v52  ;;  %v4354_v53 = vpack.c.bf16 %v4350_v31, %v4349_v7 }
 0x9d7   : > { %4068 = vrot.lane.b32.xlu2 %v4061_v61, %s12523_s28  ;;  %4103 = vmatpush.bf16.msra.mxu0 %v4050_v9 }
 0x9d8   : > { %4205 = vrot.lane.b32.xlu1 %v4198_v44, %s12511_s1  ;;  %v4152_v0 = vpop.permute.xlu1 %4151  ;;  %s12570_s1 = sld [smem:[#allocation12_spill]] }
 0x9d9   : > { %v4154_v20 = vmul.f32 %v4152_v0, %v4041_v58  ;;  %v4155_v47 = vmul.f32 %v4152_v0, %v4042_v57 }
 0x9db   : > { %v4159_v62 = vpack.c.bf16 %v4155_v47, %v4154_v20 }
 0x9dd   : > { %4166 = vrot.lane.b32.xlu0 %v4159_v62, %s12515_s2 }
 0x9de   : > { %v4398_v50 = vld [vmem:[%s12570_s1 + $0x8] sm:$0xff]  ;;  %v4397_v34 = vld [vmem:[%s12570_s1] sm:$0xff]  ;;  %s10215_s1 = sshll.u32 %s12609_s26, 5 }
 0x9df   : > { %4127 = vrot.lane.b32.xlu2 %v4120_v3, %s12525_s15 }
 0x9e0   : > { %4322 = vrot.lane.b32.xlu1 %v4315_v37, %s10772_s22  ;;  %v4230_v26 = vpop.permute.xlu1 %4229  ;;  %s12572_s22 = sld [smem:[#allocation10_spill]] }
 0x9e1   : > { %v4232_v28 = vmul.f32 %v4230_v26, %v4041_v58  ;;  %v4233_v6 = vmul.f32 %v4230_v26, %v4042_v57 }
 0x9e3   : > { %v4237_v48 = vpack.c.bf16 %v4233_v6, %v4232_v28 }
 0x9e5   : > { %4244 = vrot.lane.b32.xlu0 %v4237_v48, %s12517_s10  ;;  %s12519_s10 = smov 6  }
 0x9e6   : > { %s12573_s2 = smov %s12572_s22  ;;  %v10370_v35 = vld [vmem:[%s12572_s22] sm:$0xff]  ;;  %s1131_s22 = scalar_lea.vmem %s12576_s4, %s10213_s11 }
 0x9e7   : > { %4361 = vrot.lane.b32.xlu2 %v4354_v53, %s10775_s16  ;;  %9138 = vmatmul.msk.bf16.vlgmr.msra.gmra.mxu0 %vm1410_vm7, %v10370_v35  ;;  %v10371_v5 = vld [vmem:[%s12573_s2 + $0x8] sm:$0xff]  ;;  %v10372_v17 = vld [vmem:[%s12573_s2 + $0x10] sm:$0xff]  ;;  %v10374_v15 = vld [vmem:[%s12573_s2 + $0x20] sm:$0xff]  ;;  %s12575_s16 = sld [smem:[#allocation17_spill]]  ;;  %s12599_s4 = smov 6  }
 0x9e8   : > { %4385 = vperm.xlu1 %10638, %v2343_v10   ;;  %v4269_v14 = vpop.permute.xlu1 %4268  ;;  %v10373_v23 = vld [vmem:[%s12573_s2 + $0x18] sm:$0xff]  ;;  %v10375_v45 = vld [vmem:[%s12573_s2 + $0x28] sm:$0xff]  ;;  %v10378_v46 = vld [vmem:[%s12573_s2 + $0x40] sm:$0xff]  ;;  %s12577_s11 = sld [smem:[#allocation13_spill]] }
 0x9e9   : > { %v4271_v19 = vmul.f32 %v4269_v14, %v4041_v58  ;;  %v4272_v29 = vmul.f32 %v4269_v14, %v4042_v57  ;;  %v10376_v60 = vld [vmem:[%s12573_s2 + $0x30] sm:$0xff]  ;;  %v10377_v54 = vld [vmem:[%s12573_s2 + $0x38] sm:$0xff]  ;;  %s11875_s2 = scalar_lea.vmem %s10970_s20, %s10215_s1  ;;  %s12590_s1 = sld [smem:[#allocation20_spill]] }
 0x9eb   : > { %v4276_v27 = vpack.c.bf16 %v4272_v29, %v4271_v19 }
 0x9ed   : > { %4283 = vrot.lane.b32.xlu0 %v4276_v27, %s10773_s23  ;;  %s12574_s23 = sld [smem:[#allocation11_spill]]  ;;  %v10383_v25 = vld [vmem:[%s12575_s16 + $0x18] sm:$0xff]  ;;  %v10382_v21 = vld [vmem:[%s12575_s16 + $0x10] sm:$0xff]  ;;  %v10381_v0 = vld [vmem:[%s12575_s16 + $0x8] sm:$0xff] }
 0x9ee   : > { %v10389_v18 = vld [vmem:[%s12575_s16 + $0x38] sm:$0xff]  ;;  %v10388_v22 = vld [vmem:[%s12575_s16 + $0x30] sm:$0xff]  ;;  %v10387_v63 = vld [vmem:[%s12575_s16 + $0x28] sm:$0xff] }
 0x9ef   : > { %4390 = vperm.xlu2 %10639, %v2344_v16   ;;  %v10380_v47 = vld [vmem:[%s12575_s16] sm:$0xff]  ;;  %v10395_v62 = vld [vmem:[%s12575_s16 + $0x58] sm:$0xff]  ;;  %v10394_v26 = vld [vmem:[%s12575_s16 + $0x50] sm:$0xff] }
 0x9f0   : > { %4406 = vperm.xlu1 %10638, %v4398_v50   ;;  %v10386_v43 = vld [vmem:[%s12575_s16 + $0x20] sm:$0xff]  ;;  %v10393_v31 = vld [vmem:[%s12575_s16 + $0x48] sm:$0xff] }
 0x9f1   : > { %v10392_v16 = vld [vmem:[%s12575_s16 + $0x40] sm:$0xff] }
 0x9f3   : > { %v10379_v57 = vld [vmem:[%s12574_s23] sm:$0xff]  ;;  %s12578_s23 = sld [smem:[#allocation16_spill]] }
 0x9f5   : > { %4401 = vperm.xlu0 %10637, %v4397_v34  }
 0x9f7   : > { %5280 = vperm.xlu2 %10639, %v4440_v32  }
 0x9f8   : > { %5270 = vperm.xlu1 %10638, %v4438_v56  }
 0x9fd   : > { %5285 = vperm.xlu0 %10637, %v4441_v33  }
 0x9ff   : > { %5275 = vperm.xlu2 %10639, %v4439_v12  }
 0xa31   : > { %v4069_v39 = vpop.permute.xlu2 %4068 }
 0xa32   : > { %4081 = vmatpush.bf16.msra.mxu2 %v4069_v39 }
 0xa35   : > { %9133 = vmatmul.msk.bf16.vlgmr.msra.gmra.mxu2 %vm1410_vm7, %v10371_v5 }
 0xa39   : > { %v4128_v41 = vpop.permute.xlu2 %4127 }
 0xa3a   : > { %4140 = vmatpush.bf16.msrb.mxu1 %v4128_v41 }
 0xa3d   : > { %9145 = vmatmul.msk.bf16.vlgmr.msrb.gmra.mxu1 %vm1410_vm7, %v10372_v17 }
 0xa41   : > { %v4362_v1 = vpop.permute.xlu2 %4361 }
 0xa4a   : > { %v4206_v30 = vpop.permute.xlu1 %4205 }
 0xa4b   : > { %4218 = vmatpush.bf16.msra.mxu3 %v4206_v30 }
 0xa4e   : > { %9159 = vmatmul.msk.bf16.vlgmr.msra.gmra.mxu3 %vm1410_vm7, %v10374_v15 }
 0xa4f   : > { %4374 = vmatpush.bf16.msrb.mxu3 %v4362_v1  ;;  %v4167_v42 = vpop.permute.xlu0 %4166 }
 0xa50   : > { %4179 = vmatpush.bf16.msrb.mxu2 %v4167_v42  ;;  %v4391_v42 = vpop.permute.xlu2 %4390 }
 0xa52   : > { %v4323_v38 = vpop.permute.xlu1 %4322 }
 0xa53   : > { %9152 = vmatmul.msk.bf16.vlgmr.msrb.gmra.mxu2 %vm1410_vm7, %v10373_v23 }
 0xa54   : > { %4335 = vmatpush.bf16.msra.mxu2 %v4323_v38 }
 0xa57   : > { %v4245_v40 = vpop.permute.xlu0 %4244 }
 0xa58   : > { %4257 = vmatpush.bf16.msrb.mxu0 %v4245_v40  ;;  %4538 = vmatpush.bf16.msrb.mxu2 %v10389_v18  ;;  %v10384_v18 = vld [vmem:[%s12577_s11] sm:$0xff] }
 0xa5a   : > { %v4386_v27 = vpop.permute.xlu1 %4385 }
 0xa5b   : > { %9166 = vmatmul.msk.bf16.vlgmr.msrb.gmra.mxu0 %vm1410_vm7, %v10375_v45 }
 0xa5c   : > { %4424 = vmatpush.bf16.msra.mxu0 %v11523_v13  ;;  %4539 = vmatpush.bf16.msrb.mxu2 %v10388_v22 }
 0xa5e   : > { %9187 = vmatmul.msk.bf16.vlgmr.msrb.gmra.mxu3 %vm1410_vm7, %v10378_v46 }
 0xa5f   : > { %v4284_v49 = vpop.permute.xlu0 %4283 }
 0xa60   : > { %4296 = vmatpush.bf16.msra.mxu1 %v4284_v49  ;;  %4540 = vmatpush.bf16.msrb.mxu2 %v10387_v63  ;;  %v10401_v49 = vld [vmem:[%s12575_s16 + $0x78] sm:$0xff] }
 0xa62   : > { %v4407_v23 = vpop.permute.xlu1 %4406 }
 0xa63   : > { %9173 = vmatmul.msk.bf16.vlgmr.msra.gmra.mxu1 %vm1410_vm7, %v10376_v60  ;;  %9180 = vmatmul.msk.bf16.vlgmr.msra.gmra.mxu2 %vm1410_vm7, %v10377_v54  ;;  %v10400_v54 = vld [vmem:[%s12575_s16 + $0x70] sm:$0xff] }
 0xa64   : > { %v4105_v51 = vpop.f32.mrf.mxu0  ;;  %4486 = vmatpush.bf16.msrb.mxu1 %v10383_v25  ;;  %4541 = vmatpush.bf16.msrb.mxu2 %v10386_v43  ;;  %v10412_v43 = vld [vmem:[%s12575_s16 + $0xb0] sm:$0xff] }
 0xa67   : > { %v4402_v34 = vpop.permute.xlu0 %4401 }
 0xa68   : > { %4487 = vmatpush.bf16.msrb.mxu1 %v10382_v21 }
 0xa6b   : > { %9192 = vmatmul.msk.bf16.vlgmr.msra.gmra.mxu0 %vm1260_vm11, %v10379_v57  ;;  %v10399_v57 = vld [vmem:[%s12575_s16 + $0x68] sm:$0xff]  ;;  %vm5312_vm11 = vcmask 39936  }
 0xa6c   : > { %v4107_v58 = vpop.f32.mrf.mxu0  ;;  %4488 = vmatpush.bf16.msrb.mxu1 %v10381_v0  ;;  %v10413_v0 = vld [vmem:[%s12575_s16 + $0xb8] sm:$0xff] }
 0xa70   : > { %4489 = vmatpush.bf16.msrb.mxu1 %v10380_v47  ;;  %v10396_v47 = vld [vmem:[%s12577_s11 + $0x20] sm:$0xff] }
 0xa74   : > { %4661 = vmatpush.bf16.msra.mxu1 %v10395_v62  ;;  %v10391_v62 = vld [vmem:[%s12577_s11 + $0x18] sm:$0xff] }
 0xa78   : > { %4662 = vmatpush.bf16.msra.mxu1 %v10394_v26  ;;  %v10418_v26 = vld [vmem:[%s12575_s16 + $0xd0] sm:$0xff] }
 0xa7c   : > { %4663 = vmatpush.bf16.msra.mxu1 %v10393_v31  ;;  %v10416_v31 = vld [vmem:[%s12575_s16 + $0xc0] sm:$0xff] }
 0xa80   : > { %4664 = vmatpush.bf16.msra.mxu1 %v10392_v16 }
 0xab8   : > { %v4083_v13 = vpop.f32.mrf.mxu2 }
 0xab9   : > { %v4106_v24 = vadd.f32 %v4105_v51, %v4083_v13  ;;  %v10398_v13 = vld [vmem:[%s12575_s16 + $0x60] sm:$0xff] }
 0xaba   : > { %v4142_v55 = vpop.f32.mrf.mxu1 }
 0xabb   : > { %v4147_v11 = vadd.f32 %v4142_v55, %v4106_v24 }
 0xac0   : > { %v4085_v59 = vpop.f32.mrf.mxu2 }
 0xac1   : > { %v4108_v8 = vadd.f32 %v4107_v58, %v4085_v59  ;;  %v10407_v58 = vld [vmem:[%s12575_s16 + $0x98] sm:$0xff] }
 0xac2   : > { %v4144_v44 = vpop.f32.mrf.mxu1 }
 0xac3   : > { %v4148_v28 = vadd.f32 %v4144_v44, %v4108_v8  ;;  %v10404_v44 = vld [vmem:[%s12575_s16 + $0x80] sm:$0xff]  ;;  %v10411_v8 = vld [vmem:[%s12575_s16 + $0xa8] sm:$0xff] }
 0xad1   : > { %v4220_v36 = vpop.f32.mrf.mxu3 }
 0xad6   : > { %v4181_v61 = vpop.f32.mrf.mxu2 }
 0xad7   : > { %v4186_v20 = vadd.f32 %v4181_v61, %v4147_v11  ;;  %v10390_v61 = vld [vmem:[%s12577_s11 + $0x10] sm:$0xff] }
 0xad8   : > { %v4259_v9 = vpop.f32.mrf.mxu0 }
 0xad9   : > { %v4222_v52 = vpop.f32.mrf.mxu3  ;;  %v4225_v3 = vadd.f32 %v4220_v36, %v4186_v20  ;;  %v10406_v36 = vld [vmem:[%s12575_s16 + $0x90] sm:$0xff]  ;;  %v10385_v20 = vld [vmem:[%s12577_s11 + $0x8] sm:$0xff] }
 0xadb   : > { %v4264_v6 = vadd.f32 %v4259_v9, %v4225_v3  ;;  %v10405_v9 = vld [vmem:[%s12575_s16 + $0x88] sm:$0xff]  ;;  %v10419_v3 = vld [vmem:[%s12575_s16 + $0xd8] sm:$0xff] }
 0xade   : > { %v4183_v2 = vpop.f32.mrf.mxu2 }
 0xadf   : > { %v4187_v7 = vadd.f32 %v4183_v2, %v4148_v28  ;;  %v10410_v2 = vld [vmem:[%s12575_s16 + $0xa0] sm:$0xff]  ;;  %v10397_v28 = vld [vmem:[%s12577_s11 + $0x28] sm:$0xff] }
 0xae0   : > { %v4261_v37 = vpop.f32.mrf.mxu0  ;;  %v4298_v4 = vpop.f32.mrf.mxu1 }
 0xae1   : > { %v4303_v48 = vadd.f32 %v4298_v4, %v4264_v6  ;;  %v4376_v53 = vpop.f32.mrf.mxu3  ;;  %v4226_v14 = vadd.f32 %v4222_v52, %v4187_v7  ;;  %v10417_v6 = vld [vmem:[%s12575_s16 + $0xc8] sm:$0xff]  ;;  %v10402_v7 = vld [vmem:[%s12577_s11 + $0x30] sm:$0xff] }
 0xae3   : > { %v4265_v56 = vadd.f32 %v4261_v37, %v4226_v14 }
 0xae6   : > { %v4337_v10 = vpop.f32.mrf.mxu2 }
 0xae7   : > { %v4342_v19 = vadd.f32 %v4337_v10, %v4303_v48  ;;  %v10403_v48 = vld [vmem:[%s12577_s11 + $0x38] sm:$0xff] }
 0xae8   : > { %v4426_v29 = vpop.f32.mrf.mxu0  ;;  %v4300_v32 = vpop.f32.mrf.mxu1 }
 0xae9   : > { %v4381_v50 = vadd.f32 %v4376_v53, %v4342_v19  ;;  %v4427_v12 = vadd.f32 %v4426_v29, %v4402_v34  ;;  %v4304_v35 = vadd.f32 %v4300_v32, %v4265_v56  ;;  %v4378_v30 = vpop.f32.mrf.mxu3 }
 0xaeb   : > { %v4393_v33 = vadd.f32 %v4386_v27, %v4381_v50 }
 0xaed   : > { %v4431_v39 = vadd.f32 %v4427_v12, %v4393_v33 }
 0xaee   : > { %v4339_v5 = vpop.f32.mrf.mxu2 }
 0xaef   : > { %v4433_v41 = vmax.f32 %v4431_v39, 0.0  ;;  %v4343_v17 = vadd.f32 %v4339_v5, %v4304_v35 }
 0xaf0   : > { %v4428_v15 = vpop.f32.mrf.mxu0 }
 0xaf1   : > { %4436 = vst.msk [vmem:[%s1131_s22] sm:$0xff] %vm4435_vm9, %v4433_v41  ;;  %v4382_v1 = vadd.f32 %v4378_v30, %v4343_v17  ;;  %v4429_v40 = vadd.f32 %v4428_v15, %v4407_v23  ;;  %v10408_v30 = vld [vmem:[%s12577_s11 + $0x40] sm:$0xff]  ;;  %v10424_v15 = vld [vmem:[%s12575_s16 + $0xf0] sm:$0xff] }
 0xaf2   : > { %v10422_v23 = vld [vmem:[%s12575_s16 + $0xe0] sm:$0xff] }
 0xaf3   : > { %v4394_v38 = vadd.f32 %v4391_v42, %v4382_v1  ;;  %v10423_v42 = vld [vmem:[%s12575_s16 + $0xe8] sm:$0xff] }
 0xaf5   : > { %v4432_v45 = vadd.f32 %v4429_v40, %v4394_v38  ;;  %v10409_v40 = vld [vmem:[%s12577_s11 + $0x48] sm:$0xff] }
 0xaf7   : > { %v4434_v46 = vmax.f32 %v4432_v45, 0.0 }
 0xaf9   : > { %4437 = vst.msk [vmem:[%s1131_s22 + $0x8] sm:$0xff] %vm4435_vm9, %v4434_v46  ;;  %v11639_v60 = vpack.c.bf16 %v4434_v46, %v4433_v41  ;;  %v10425_v41 = vld [vmem:[%s12575_s16 + $0xf8] sm:$0xff]  ;;  %s12579_s22 = smov 2  }
 0xafa   : > { %v10431_v46 = vld [vmem:[%s12575_s16 + $0x118] sm:$0xff] }
 0xafb   : > { %9209 = vmatmul.msk.bf16.vlgmr.msrb.gmra.mxu1 %vm4435_vm9, %v11639_v60  ;;  %9234 = vmatmul.msk.bf16.vlgmr.msrb.gmra.mxu2 %vm4435_vm9, %v11639_v60 }
 0xafc   : > { %4753 = vmatpush.bf16.msrb.mxu1 %v10401_v49 }
 0xb00   : > { %4754 = vmatpush.bf16.msrb.mxu1 %v10400_v54  ;;  %v10414_v54 = vld [vmem:[%s12577_s11 + $0x50] sm:$0xff] }
 0xb04   : > { %4755 = vmatpush.bf16.msrb.mxu1 %v10399_v57  ;;  %v10430_v57 = vld [vmem:[%s12575_s16 + $0x110] sm:$0xff] }
 0xb08   : > { %4756 = vmatpush.bf16.msrb.mxu1 %v10398_v13 }
 0xb0b   : > { %9283 = vmatmul.msk.bf16.vlgmr.msra.gmra.mxu1 %vm4435_vm9, %v11639_v60 }
 0xb1b   : > { %9322 = vmatmul.msk.bf16.vlgmr.msrb.gmra.mxu1 %vm4435_vm9, %v11639_v60 }
 0xb78   : > { %v4491_v51 = vpop.f32.mrf.mxu1 }
 0xb7e   : > { %v4543_v55 = vpop.f32.mrf.mxu2 }
 0xb80   : > { %v4493_v59 = vpop.f32.mrf.mxu1 }
 0xb81   : > { %v4500_v25 = vpack.c.bf16 %v4493_v59, %v4491_v51  ;;  %v10429_v51 = vld [vmem:[%s12575_s16 + $0x108] sm:$0xff] }
 0xb83   : > { %4612 = vmatpush.bf16.msrb.mxu0 %v4500_v25  ;;  %v10415_v25 = vld [vmem:[%s12577_s11 + $0x58] sm:$0xff] }
 0xb86   : > { %v4545_v24 = vpop.f32.mrf.mxu2  ;;  %9257 = vmatmul.msk.bf16.vlgmr.msrb.gmra.mxu0 %vm1410_vm7, %v10384_v18  ;;  %v10420_v18 = vld [vmem:[%s12577_s11 + $0x60] sm:$0xff] }
 0xb87   : > { %4845 = vmatpush.bf16.msra.mxu0 %v10407_v58  ;;  %v4553_v21 = vpack.c.bf16 %v4545_v24, %v4543_v55  ;;  %v10428_v55 = vld [vmem:[%s12575_s16 + $0x100] sm:$0xff] }
 0xb88   : > { %v4666_v22 = vpop.f32.mrf.mxu1 }
 0xb89   : > { %4577 = vmatpush.bf16.msra.mxu3 %v4553_v21 }
 0xb8b   : > { %4846 = vmatpush.bf16.msra.mxu0 %v10406_v36  ;;  %v10421_v36 = vld [vmem:[%s12577_s11 + $0x68] sm:$0xff] }
 0xb8c   : > { %9247 = vmatmul.msk.bf16.vlgmr.msra.gmra.mxu3 %vm1410_vm7, %v10390_v61 }
 0xb8f   : > { %4847 = vmatpush.bf16.msra.mxu0 %v10405_v9 }
 0xb90   : > { %v4668_v11 = vpop.f32.mrf.mxu1 }
 0xb91   : > { %v4676_v63 = vpack.c.bf16 %v4668_v11, %v4666_v22 }
 0xb93   : > { %4848 = vmatpush.bf16.msra.mxu0 %v10404_v44  ;;  %4700 = vmatpush.bf16.msra.mxu2 %v4676_v63 }
 0xb96   : > { %9258 = vmatmul.msk.bf16.gmra.mxu0 %vm1410_vm7, %v10385_v20  ;;  %9296 = vmatmul.msk.bf16.vlgmr.msra.gmra.mxu2 %vm1410_vm7, %v10396_v47 }
 0xb97   : > { %4937 = vmatpush.bf16.msrb.mxu2 %v10413_v0 }
 0xb98   : > { %v4758_v52 = vpop.f32.mrf.mxu1 }
 0xb9b   : > { %4938 = vmatpush.bf16.msrb.mxu2 %v10412_v43 }
 0xb9c   : > { %9248 = vmatmul.msk.bf16.gmra.mxu3 %vm1410_vm7, %v10391_v62 }
 0xb9f   : > { %4939 = vmatpush.bf16.msrb.mxu2 %v10411_v8 }
 0xba0   : > { %v4760_v37 = vpop.f32.mrf.mxu1 }
 0xba1   : > { %v4768_v4 = vpack.c.bf16 %v4760_v37, %v4758_v52 }
 0xba3   : > { %4940 = vmatpush.bf16.msrb.mxu2 %v10410_v2  ;;  %4792 = vmatpush.bf16.msrb.mxu3 %v4768_v4 }
 0xba6   : > { %9297 = vmatmul.msk.bf16.gmra.mxu2 %vm1410_vm7, %v10397_v28  ;;  %9361 = vmatmul.msk.bf16.vlgmr.msra.gmra.mxu0 %vm4435_vm9, %v11639_v60 }
 0xba7   : > { %5029 = vmatpush.bf16.msra.mxu2 %v10419_v3 }
 0xbab   : > { %5030 = vmatpush.bf16.msra.mxu2 %v10418_v26  ;;  %v10426_v26 = vld [vmem:[%s12577_s11 + $0x70] sm:$0xff] }
 0xbac   : > { %9335 = vmatmul.msk.bf16.vlgmr.msrb.gmra.mxu3 %vm1410_vm7, %v10402_v7  ;;  %v10427_v7 = vld [vmem:[%s12577_s11 + $0x78] sm:$0xff] }
 0xbaf   : > { %5031 = vmatpush.bf16.msra.mxu2 %v10417_v6 }
 0xbb3   : > { %5032 = vmatpush.bf16.msra.mxu2 %v10416_v31 }
 0xbb6   : > { %9400 = vmatmul.msk.bf16.vlgmr.msrb.gmra.mxu2 %vm4435_vm9, %v11639_v60 }
 0xbbc   : > { %9336 = vmatmul.msk.bf16.gmra.mxu3 %vm1410_vm7, %v10403_v48 }
 0xbc6   : > { %9439 = vmatmul.msk.bf16.vlgmr.msra.gmra.mxu2 %vm4435_vm9, %v11639_v60 }
 0xc03   : > { %v4614_v53 = vpop.f32.mrf.mxu0 }
 0xc0b   : > { %v11686_v10 = vpop.f32.mrf.mxu0 }
 0xc0f   : > { %v4579_v14 = vpop.f32.mrf.mxu3 }
 0xc10   : > { %v4615_v19 = vadd.f32 %v4614_v53, %v4579_v14  ;;  %v10432_v53 = vld [vmem:[%s12577_s11 + $0x80] sm:$0xff]  ;;  %v10433_v14 = vld [vmem:[%s12577_s11 + $0x88] sm:$0xff] }
 0xc13   : > { %v4619_v29 = vpop.f32.mrf.mxu0 }
 0xc17   : > { %v11690_v34 = vpop.f32.mrf.mxu3 }
 0xc19   : > { %v4702_v27 = vpop.f32.mrf.mxu2 }
 0xc1a   : > { %v4712_v16 = vadd.f32 %v4702_v27, %v4615_v19 }
 0xc1b   : > { %v11688_v50 = vpop.f32.mrf.mxu0 }
 0xc1f   : > { %v4584_v33 = vpop.f32.mrf.mxu3 }
 0xc20   : > { %v4620_v12 = vadd.f32 %v4619_v29, %v4584_v33 }
 0xc21   : > { %v11692_v32 = vpop.f32.mrf.mxu2 }
 0xc23   : > { %v4850_v56 = vpop.f32.mrf.mxu0 }
 0xc27   : > { %v4586_v24 = vpop.f32.mrf.mxu3 }
 0xc29   : > { %v4707_v35 = vpop.f32.mrf.mxu2 }
 0xc2a   : > { %v4714_v39 = vadd.f32 %v4707_v35, %v4620_v12 }
 0xc2b   : > { %v4852_v5 = vpop.f32.mrf.mxu0 }
 0xc2c   : > { %v11695_v17 = vpack.c.bf16 %v4852_v5, %v4850_v56 }
 0xc2e   : > { %4884 = vmatpush.bf16.msra.mxu1 %v11695_v17 }
 0xc2f   : > { %v4794_v21 = vpop.f32.mrf.mxu3 }
 0xc30   : > { %v4804_v22 = vadd.f32 %v4794_v21, %v4712_v16  ;;  %v11734_v16 = vld [vmem:[%s12578_s23] sm:$0xff] }
 0xc31   : > { %v11700_v1 = vpop.f32.mrf.mxu2  ;;  %9374 = vmatmul.msk.bf16.vlgmr.msra.gmra.mxu1 %vm1410_vm7, %v10408_v30  ;;  %v5335_v56 = vperm.slane %v11734_v16, 1 }
 0xc32   : > { %5121 = vmatpush.bf16.msrb.mxu1 %v10425_v41 }
 0xc33   : > { %5337 = vrot.lane.b32.xlu2 %v5335_v56, %s12533_s0  ;;  %s12589_s0 = sld [smem:[#allocation25_spill]] }
 0xc36   : > { %5122 = vmatpush.bf16.msrb.mxu1 %v10424_v15  ;;  %v5618_v15 = vperm.slane %v11734_v16, 5 }
 0xc37   : > { %v4796_v44 = vpop.f32.mrf.mxu3 }
 0xc39   : > { %v4942_v38 = vpop.f32.mrf.mxu2 }
 0xc3a   : > { %5123 = vmatpush.bf16.msrb.mxu1 %v10423_v42  ;;  %v4622_v42 = vadd.f32 %v11688_v50, %v4586_v24  ;;  %v5681_v50 = vperm.slane %v11734_v16, 6 }
 0xc3e   : > { %5124 = vmatpush.bf16.msrb.mxu1 %v10422_v23  ;;  %v4715_v23 = vadd.f32 %v11700_v1, %v4622_v42 }
 0xc3f   : > { %v4799_v0 = vpop.f32.mrf.mxu3 }
 0xc40   : > { %v4806_v63 = vadd.f32 %v4799_v0, %v4714_v39  ;;  %v5429_v39 = vperm.slane %v11734_v16, 2 }
 0xc41   : > { %9375 = vmatmul.msk.bf16.gmra.mxu1 %vm1410_vm7, %v10409_v40  ;;  %v4944_v45 = vpop.f32.mrf.mxu2  ;;  %v4617_v40 = vadd.f32 %v11686_v10, %v11690_v34 }
 0xc42   : > { %v4952_v49 = vpack.c.bf16 %v4944_v45, %v4942_v38  ;;  %5431 = vrot.lane.b32.xlu2 %v5429_v39, %s12579_s22 }
 0xc44   : > { %4976 = vmatpush.bf16.msrb.mxu0 %v4952_v49 }
 0xc47   : > { %9413 = vmatmul.msk.bf16.vlgmr.msrb.gmra.mxu0 %vm1410_vm7, %v10414_v54  ;;  %v4801_v19 = vpop.f32.mrf.mxu3  ;;  %v4713_v54 = vadd.f32 %v11692_v32, %v4617_v40 }
 0xc48   : > { %5213 = vmatpush.bf16.msra.mxu0 %v10431_v46  ;;  %v4807_v45 = vadd.f32 %v4801_v19, %v4715_v23 }
 0xc49   : > { %v5034_v13 = vpop.f32.mrf.mxu2  ;;  %v4805_v1 = vadd.f32 %v4796_v44, %v4713_v54 }
 0xc4a   : > { %5620 = vrot.lane.b32.xlu2 %v5618_v15, %s12519_s10  ;;  %s12520_s10 = smov 5  }
 0xc4c   : > { %5214 = vmatpush.bf16.msra.mxu0 %v10430_v57 }
 0xc50   : > { %5215 = vmatpush.bf16.msra.mxu0 %v10429_v51 }
 0xc51   : > { %v5036_v59 = vpop.f32.mrf.mxu2  ;;  %9478 = vmatmul.msk.bf16.vlgmr.msrb.gmra.mxu1 %vm4435_vm9, %v11639_v60 }
 0xc52   : > { %v5044_v58 = vpack.c.bf16 %v5036_v59, %v5034_v13  ;;  %5683 = vrot.lane.b32.xlu2 %v5681_v50, %s10779_s18  ;;  %s12521_s18 = smov 4  }
 0xc54   : > { %5216 = vmatpush.bf16.msra.mxu0 %v10428_v55  ;;  %5068 = vmatpush.bf16.msra.mxu3 %v5044_v58  ;;  %v5281_v55 = vpop.permute.xlu2 %5280 }
 0xc57   : > { %9414 = vmatmul.msk.bf16.gmra.mxu0 %vm1410_vm7, %v10415_v25  ;;  %9452 = vmatmul.msk.bf16.vlgmr.msra.gmra.mxu3 %vm1410_vm7, %v10420_v18 }
 0xc67   : > { %9453 = vmatmul.msk.bf16.gmra.mxu3 %vm1410_vm7, %v10421_v36  ;;  %9517 = vmatmul.msk.bf16.vlgmr.msra.gmra.mxu0 %vm4435_vm9, %v11639_v60 }
 0xcae   : > { %v4886_v61 = vpop.f32.mrf.mxu1 }
 0xcaf   : > { %v4896_v9 = vadd.f32 %v4886_v61, %v4804_v22  ;;  %v5271_v61 = vpop.permute.xlu1 %5270 }
 0xcb6   : > { %v11723_v11 = vpop.f32.mrf.mxu1 }
 0xcb7   : > { %v4897_v24 = vadd.f32 %v11723_v11, %v4805_v1 }
 0xcbe   : > { %v4891_v20 = vpop.f32.mrf.mxu1 }
 0xcbf   : > { %v4898_v47 = vadd.f32 %v4891_v20, %v4806_v63  ;;  %v5286_v20 = vpop.permute.xlu0 %5285 }
 0xcc4   : > { %v4978_v43 = vpop.f32.mrf.mxu0 }
 0xcc5   : > { %v4988_v52 = vadd.f32 %v4978_v43, %v4896_v9 }
 0xcc6   : > { %v4893_v62 = vpop.f32.mrf.mxu1 }
 0xcc7   : > { %v4899_v57 = vadd.f32 %v4893_v62, %v4807_v45 }
 0xccc   : > { %v4980_v8 = vpop.f32.mrf.mxu0 }
 0xccd   : > { %v4989_v32 = vadd.f32 %v4980_v8, %v4897_v24  ;;  %v5276_v8 = vpop.permute.xlu2 %5275 }
 0xcce   : > { %v5126_v60 = vpop.f32.mrf.mxu1 }
 0xcd4   : > { %v4983_v2 = vpop.f32.mrf.mxu0 }
 0xcd5   : > { %v4990_v3 = vadd.f32 %v4983_v2, %v4898_v47  ;;  %v5555_v2 = vperm.slane %v11734_v16, 4 }
 0xcd6   : > { %v5128_v37 = vpop.f32.mrf.mxu1 }
 0xcd7   : > { %v5136_v4 = vpack.c.bf16 %v5128_v37, %v5126_v60  ;;  %v5492_v37 = vperm.slane %v11734_v16, 3 }
 0xcd9   : > { %5160 = vmatpush.bf16.msrb.mxu2 %v5136_v4  ;;  %v5338_v4 = vpop.permute.xlu2 %5337 }
 0xcda   : > { %v5070_v29 = vpop.f32.mrf.mxu3 }
 0xcdb   : > { %v5080_v13 = vadd.f32 %v5070_v29, %v4988_v52 }
 0xcdc   : > { %v4985_v28 = vpop.f32.mrf.mxu0  ;;  %9491 = vmatmul.msk.bf16.vlgmr.msrb.gmra.mxu2 %vm1410_vm7, %v10426_v26 }
 0xcdd   : > { %v4991_v58 = vadd.f32 %v4985_v28, %v4899_v57 }
 0xce2   : > { %v5072_v33 = vpop.f32.mrf.mxu3 }
 0xce3   : > { %v5081_v0 = vadd.f32 %v5072_v33, %v4989_v32 }
 0xce4   : > { %v5218_v6 = vpop.f32.mrf.mxu0 }
 0xcea   : > { %v5075_v5 = vpop.f32.mrf.mxu3 }
 0xceb   : > { %v5082_v38 = vadd.f32 %v5075_v5, %v4990_v3 }
 0xcec   : > { %9492 = vmatmul.msk.bf16.gmra.mxu2 %vm1410_vm7, %v10427_v7  ;;  %v5220_v31 = vpop.f32.mrf.mxu0 }
 0xced   : > { %v5228_v48 = vpack.c.bf16 %v5220_v31, %v5218_v6  ;;  %v5324_v6 = vperm.slane %v11734_v16, 0 }
 0xcef   : > { %5252 = vmatpush.bf16.msra.mxu1 %v5228_v48 }
 0xcf2   : > { %9530 = vmatmul.msk.bf16.vlgmr.msra.gmra.mxu1 %vm1410_vm7, %v10432_v53  ;;  %v5077_v59 = vpop.f32.mrf.mxu3  ;;  %v5432_v53 = vpop.permute.xlu2 %5431 }
 0xcf3   : > { %v5083_v10 = vadd.f32 %v5077_v59, %v4991_v58 }
 0xd02   : > { %9531 = vmatmul.msk.bf16.gmra.mxu1 %vm1410_vm7, %v10433_v14 }
 0xd5f   : > { %v5162_v27 = vpop.f32.mrf.mxu2 }
 0xd60   : > { %v5172_v25 = vadd.f32 %v5162_v27, %v5080_v13 }
 0xd67   : > { %v5164_v12 = vpop.f32.mrf.mxu2 }
 0xd68   : > { %v5173_v47 = vadd.f32 %v5164_v12, %v5081_v0 }
 0xd6f   : > { %v5254_v35 = vpop.f32.mrf.mxu1  ;;  %v5167_v30 = vpop.f32.mrf.mxu2 }
 0xd70   : > { %v5174_v46 = vadd.f32 %v5167_v30, %v5082_v38  ;;  %v5264_v34 = vadd.f32 %v5254_v35, %v5172_v25  ;;  %v5621_v25 = vpop.permute.xlu2 %5620 }
 0xd72   : > { %v5288_v44 = vadd.f32 %v5271_v61, %v5264_v34 }
 0xd74   : > { %v5292_v52 = vmax.f32 %v5288_v44, 0.0 }
 0xd77   : > { %v5256_v41 = vpop.f32.mrf.mxu1  ;;  %v5169_v36 = vpop.f32.mrf.mxu2 }
 0xd78   : > { %v5175_v22 = vadd.f32 %v5169_v36, %v5083_v10  ;;  %v5265_v11 = vadd.f32 %v5256_v41, %v5173_v47  ;;  %v5684_v0 = vpop.permute.xlu2 %5683 }
 0xd7a   : > { %v5289_v60 = vadd.f32 %v5276_v8, %v5265_v11 }
 0xd7c   : > { %v5293_v3 = vmax.f32 %v5289_v60, 0.0 }
 0xd7f   : > { %v5259_v49 = vpop.f32.mrf.mxu1 }
 0xd80   : > { %v5266_v51 = vadd.f32 %v5259_v49, %v5174_v46  ;;  %v10643_v46 = vld [vmem:[%s12578_s23 + $0x8] ss:$0 sm:$0xff] }
 0xd82   : > { %v5290_v18 = vadd.f32 %v5281_v55, %v5266_v51 }
 0xd84   : > { %v5294_v21 = vmax.f32 %v5290_v18, 0.0  ;;  %v5744_v18 = vperm.slane %v11734_v16, 7 }
 0xd86   : > { %5304 = vrot.lane.b32.xlu0 %v5294_v21, %s12520_s10 }
 0xd87   : > { %v5261_v9 = vpop.f32.mrf.mxu1 }
 0xd88   : > { %v5267_v63 = vadd.f32 %v5261_v9, %v5175_v22 }
 0xd8a   : > { %v5291_v43 = vadd.f32 %v5286_v20, %v5267_v63 }
 0xd8c   : > { %v5295_v62 = vmax.f32 %v5291_v43, 0.0 }
 0xd8e   : > { %5306 = vrot.lane.b32.xlu1 %v5295_v62, %s12520_s10  ;;  %5300 = vrot.lane.b32.xlu0 %v5292_v52, %s12520_s10 }
 0xd96   : > { %5557 = vrot.lane.b32.xlu0 %v5555_v2, %s12520_s10  ;;  %5302 = vrot.lane.b32.xlu1 %v5293_v3, %s12520_s10  ;;  %s12580_s10 = smov 10  }
 0xd9e   : > { %5494 = vrot.lane.b32.xlu1 %v5492_v37, %s12521_s18  ;;  %s12531_s18 = smov 124  }
 0xdf8   : > { %v5305_v26 = vpop.permute.xlu0 %5304 }
 0xdf9   : > { %v5315_v28 = vsel %vm5312_vm11, 0.0, %v5305_v26 }
 0xdfa   : > { %v11761_v7 = vsel %vm5317_vm12, %v5315_v28, 0.0  ;;  %v10435_v28 = vld [vmem:[#allocation4 + $0x8] sm:$0xff] }
 0xdfb   : > { %v5327_v29 = vmul.f32 %v5324_v6, %v11761_v7  ;;  %v5342_v27 = vmul.f32 %v5338_v4, %v11761_v7  ;;  %v5436_v12 = vmul.f32 %v5432_v53, %v11761_v7  ;;  %v5625_v34 = vmul.f32 %v5621_v25, %v11761_v7 }
 0xdfc   : > { %v5688_v3 = vmul.f32 %v5684_v0, %v11761_v7 }
 0xe00   : > { %v5307_v31 = vpop.permute.xlu1 %5306  ;;  %v5301_v19 = vpop.permute.xlu0 %5300 }
 0xe01   : > { %v5316_v48 = vsel %vm5312_vm11, 0.0, %v5307_v31  ;;  %v5313_v39 = vsel %vm5312_vm11, 0.0, %v5301_v19 }
 0xe02   : > { %v11765_v14 = vsel %vm5317_vm12, %v5316_v48, 0.0  ;;  %v11776_v15 = vsel %vm5317_vm12, %v5313_v39, 0.0 }
 0xe03   : > { %v5328_v56 = vmul.f32 %v5324_v6, %v11765_v14  ;;  %v5343_v33 = vmul.f32 %v5338_v4, %v11765_v14  ;;  %v5437_v35 = vmul.f32 %v5432_v53, %v11765_v14  ;;  %v5325_v40 = vmul.f32 %v5324_v6, %v11776_v15 }
 0xe04   : > { %v5340_v49 = vmul.f32 %v5338_v4, %v11776_v15  ;;  %v5434_v58 = vmul.f32 %v5432_v53, %v11776_v15  ;;  %v5626_v10 = vmul.f32 %v5621_v25, %v11765_v14  ;;  %v5686_v20 = vmul.f32 %v5684_v0, %v11776_v15 }
 0xe05   : > { %v5334_v5 = vpack.c.bf16 %v5328_v56, %v5327_v29  ;;  %v5350_v41 = vpack.c.bf16 %v5343_v33, %v5342_v27  ;;  %v5444_v30 = vpack.c.bf16 %v5437_v35, %v5436_v12  ;;  %v5623_v62 = vmul.f32 %v5621_v25, %v11776_v15  ;;  %v10436_v12 = vld [vmem:[#allocation4 + $0x10] sm:$0xff] }
 0xe06   : > { %v5633_v61 = vpack.c.bf16 %v5626_v10, %v5625_v34  ;;  %v5689_v2 = vmul.f32 %v5684_v0, %v11765_v14  ;;  %v10442_v10 = vld [vmem:[#allocation4 + $0x40] sm:$0xff] }
 0xe07   : > { %5416 = vmatpush.bf16.msrb.mxu0 %v5334_v5  ;;  %5365 = vrot.lane.b32.xlu0 %v5350_v41, %s12523_s28  ;;  %v10438_v41 = vld [vmem:[#allocation4 + $0x20] sm:$0xff] }
 0xe08   : > { %5459 = vrot.lane.b32.xlu2 %v5444_v30, %s12525_s15  ;;  %v5303_v42 = vpop.permute.xlu1 %5302  ;;  %v5558_v24 = vpop.permute.xlu0 %5557  ;;  %v5696_v37 = vpack.c.bf16 %v5689_v2, %v5688_v3 }
 0xe09   : > { %v5314_v23 = vsel %vm5312_vm11, 0.0, %v5303_v42  ;;  %v5562_v32 = vmul.f32 %v5558_v24, %v11761_v7  ;;  %v5563_v22 = vmul.f32 %v5558_v24, %v11765_v14  ;;  %v5560_v16 = vmul.f32 %v5558_v24, %v11776_v15 }
 0xe0a   : > { %v11781_v38 = vsel %vm5317_vm12, %v5314_v23, 0.0 }
 0xe0b   : > { %v5326_v45 = vmul.f32 %v5324_v6, %v11781_v38  ;;  %v5341_v54 = vmul.f32 %v5338_v4, %v11781_v38  ;;  %v5435_v50 = vmul.f32 %v5432_v53, %v11781_v38  ;;  %v5561_v21 = vmul.f32 %v5558_v24, %v11781_v38  ;;  %v10434_v4 = vld [vmem:[#allocation4] sm:$0xff] }
 0xe0c   : > { %v5570_v44 = vpack.c.bf16 %v5563_v22, %v5562_v32  ;;  %v5687_v63 = vmul.f32 %v5684_v0, %v11781_v38  ;;  %v5624_v47 = vmul.f32 %v5621_v25, %v11781_v38  ;;  %v10445_v32 = vld [vmem:[#allocation4 + $0x58] sm:$0xff]  ;;  %v10446_v22 = vld [vmem:[#allocation4 + $0x60] sm:$0xff] }
 0xe0d   : > { %v5333_v57 = vpack.c.bf16 %v5326_v45, %v5325_v40  ;;  %v5349_v13 = vpack.c.bf16 %v5341_v54, %v5340_v49  ;;  %v5443_v36 = vpack.c.bf16 %v5435_v50, %v5434_v58  ;;  %v5569_v9 = vpack.c.bf16 %v5561_v21, %v5560_v16  ;;  %v10441_v0 = vld [vmem:[#allocation4 + $0x38] sm:$0xff] }
 0xe0e   : > { %v5695_v11 = vpack.c.bf16 %v5687_v63, %v5686_v20  ;;  %v5632_v8 = vpack.c.bf16 %v5624_v47, %v5623_v62  ;;  %v10443_v63 = vld [vmem:[#allocation4 + $0x48] sm:$0xff] }
 0xe0f   : > { %5417 = vmatpush.bf16.msrb.mxu0 %v5333_v57  ;;  %5809 = vrot.lane.b32.xlu0 %v10643_v46, %s12580_s10  ;;  %s12581_s10 = smov 9  }
 0xe10   : > { %5363 = vrot.lane.b32.xlu1 %v5349_v13, %s12523_s28  ;;  %v5495_v51 = vpop.permute.xlu1 %5494  ;;  %s12529_s28 = smov 122  }
 0xe11   : > { %v5499_v55 = vmul.f32 %v5495_v51, %v11761_v7  ;;  %v5500_v59 = vmul.f32 %v5495_v51, %v11765_v14  ;;  %v5497_v43 = vmul.f32 %v5495_v51, %v11776_v15  ;;  %v5498_v52 = vmul.f32 %v5495_v51, %v11781_v38 }
 0xe12   : > { %9550 = vmatmul.msk.bf16.vlgmr.msrb.gmra.mxu0 %vm1619_vm8, %v10434_v4  ;;  %v10451_v4 = vld [vmem:[#allocation4 + $0x88] sm:$0xff] }
 0xe13   : > { %v5507_v1 = vpack.c.bf16 %v5500_v59, %v5499_v55  ;;  %v5506_v60 = vpack.c.bf16 %v5498_v52, %v5497_v43  ;;  %v10444_v55 = vld [vmem:[#allocation4 + $0x50] sm:$0xff]  ;;  %v10439_v59 = vld [vmem:[#allocation4 + $0x28] sm:$0xff] }
 0xe14   : > { %v10447_v43 = vld [vmem:[#allocation4 + $0x68] sm:$0xff] }
 0xe15   : > { %5522 = vrot.lane.b32.xlu2 %v5507_v1, %s12531_s18 }
 0xe17   : > { %5457 = vrot.lane.b32.xlu0 %v5443_v36, %s12525_s15  ;;  %s12527_s15 = smov 123  }
 0xe18   : > { %5746 = vrot.lane.b32.xlu1 %v5744_v18, %s12581_s10  ;;  %s12582_s10 = smov 120   ;;  %v10440_v18 = vld [vmem:[#allocation4 + $0x30] sm:$0xff] }
 0xe1d   : > { %5648 = vrot.lane.b32.xlu2 %v5633_v61, %s12529_s28 }
 0xe1f   : > { %5583 = vrot.lane.b32.xlu0 %v5569_v9, %s12527_s15 }
 0xe20   : > { %5585 = vrot.lane.b32.xlu1 %v5570_v44, %s12527_s15  ;;  %s12584_s15 = smov 118  }
 0xe22   : > { %9551 = vmatmul.msk.bf16.gmra.mxu0 %vm1619_vm8, %v10435_v28 }
 0xe25   : > { %5709 = vrot.lane.b32.xlu2 %v5695_v11, %s12582_s10 }
 0xe27   : > { %5646 = vrot.lane.b32.xlu0 %v5632_v8, %s12529_s28  ;;  %s12585_s28 = sld [smem:[#allocation19_spill]] }
 0xe28   : > { %5520 = vrot.lane.b32.xlu1 %v5506_v60, %s12531_s18  ;;  %s12588_s18 = sld [smem:[#allocation18_spill]]  ;;  %v10450_v60 = vld [vmem:[#allocation4 + $0x80] sm:$0xff] }
 0xe2d   : > { %v5901_v1 = vld [vmem:[%s12585_s28 + $0x18] sm:$0xff]  ;;  %v5899_v25 = vld [vmem:[%s12585_s28 + $0x8] sm:$0xff]  ;;  %v5900_v34 = vld [vmem:[%s12585_s28 + $0x10] sm:$0xff] }
 0xe2e   : > { %v10452_v47 = vld [vmem:[%s12588_s18] sm:$0xff]  ;;  %v10453_v11 = vld [vmem:[%s12588_s18 + $0x8] sm:$0xff] }
 0xe30   : > { %5711 = vrot.lane.b32.xlu1 %v5696_v37, %s12582_s10  ;;  %s12583_s10 = sld [smem:[#allocation15_spill]]  ;;  %v10448_v37 = vld [vmem:[#allocation4 + $0x70] sm:$0xff] }
 0xe36   : > { %v4443_v46 = vld [vmem:[%s12583_s10 + $0x8] sm:$0xff]  ;;  %v4442_v51 = vld [vmem:[%s12583_s10] sm:$0xff]  ;;  %v4445_v58 = vld [vmem:[%s12583_s10 + $0x18] sm:$0xff] }
 0xe62   : > { %v5460_v26 = vpop.permute.xlu2 %5459 }
 0xe63   : > { %5475 = vmatpush.bf16.msra.mxu2 %v5460_v26  ;;  %v10449_v26 = vld [vmem:[#allocation4 + $0x78] sm:$0xff] }
 0xe6f   : > { %v5523_v6 = vpop.permute.xlu2 %5522 }
 0xe70   : > { %5538 = vmatpush.bf16.msrb.mxu1 %v5523_v6 }
 0xe77   : > { %v5649_v31 = vpop.permute.xlu2 %5648 }
 0xe78   : > { %5664 = vmatpush.bf16.msra.mxu0 %v5649_v31 }
 0xe79   : > { %v5366_v48 = vpop.permute.xlu0 %5365 }
 0xe7a   : > { %5381 = vmatpush.bf16.msrb.mxu3 %v5366_v48 }
 0xe7f   : > { %v5710_v21 = vpop.permute.xlu2 %5709 }
 0xe81   : > { %v5810_v53 = vpop.permute.xlu0 %5809 }
 0xe82   : > { %v5812_v19 = vmul.f32 %v5810_v53, %v11776_v15  ;;  %v5813_v29 = vmul.f32 %v5810_v53, %v11781_v38  ;;  %v5814_v27 = vmul.f32 %v5810_v53, %v11761_v7  ;;  %v5815_v56 = vmul.f32 %v5810_v53, %v11765_v14  ;;  %v5364_v33 = vpop.permute.xlu1 %5363 }
 0xe83   : > { %5382 = vmatpush.bf16.msrb.mxu3 %v5364_v33 }
 0xe84   : > { %v5822_v35 = vpack.c.bf16 %v5815_v56, %v5814_v27  ;;  %v5821_v39 = vpack.c.bf16 %v5813_v29, %v5812_v19 }
 0xe86   : > { %5837 = vrot.lane.b32.xlu0 %v5822_v35, %s12584_s15  ;;  %5835 = vrot.lane.b32.xlu2 %v5821_v39, %s12584_s15  ;;  %s12586_s15 = smov 119  }
 0xe87   : > { %9540 = vmatmul.msk.bf16.vlgmr.msrb.gmra.mxu3 %vm1619_vm8, %v10436_v12 }
 0xe89   : > { %v5458_v5 = vpop.permute.xlu0 %5457 }
 0xe8a   : > { %v5747_v30 = vpop.permute.xlu1 %5746  ;;  %5476 = vmatpush.bf16.msra.mxu2 %v5458_v5 }
 0xe8b   : > { %v5749_v42 = vmul.f32 %v5747_v30, %v11776_v15  ;;  %v5750_v23 = vmul.f32 %v5747_v30, %v11781_v38  ;;  %v5751_v40 = vmul.f32 %v5747_v30, %v11761_v7  ;;  %v5752_v45 = vmul.f32 %v5747_v30, %v11765_v14  ;;  %v4444_v15 = vld [vmem:[%s12583_s10 + $0x10] sm:$0xff]  ;;  %v5898_v38 = vld [vmem:[%s12585_s28] sm:$0xff] }
 0xe8c   : > { %v10437_v7 = vld [vmem:[#allocation4 + $0x18] sm:$0xff] }
 0xe8d   : > { %v5758_v49 = vpack.c.bf16 %v5750_v23, %v5749_v42  ;;  %v5759_v54 = vpack.c.bf16 %v5752_v45, %v5751_v40  ;;  %9560 = vmatmul.msk.bf16.vlgmr.msra.gmra.mxu2 %vm1619_vm8, %v10438_v41 }
 0xe8e   : > { %5877 = vperm.xlu2 %10639, %v4443_v46  }
 0xe8f   : > { %5772 = vrot.lane.b32.xlu0 %v5758_v49, %s12586_s15  ;;  %5774 = vrot.lane.b32.xlu1 %v5759_v54, %s12586_s15  ;;  %s12587_s15 = sld [smem:[#allocation21_spill]]  ;;  %v5419_v28 = vpop.f32.mrf.mxu0 }
 0xe91   : > { %v5584_v57 = vpop.permute.xlu0 %5583 }
 0xe92   : > { %v5586_v13 = vpop.permute.xlu1 %5585 }
 0xe93   : > { %5601 = vmatpush.bf16.msra.mxu3 %v5586_v13 }
 0xe95   : > { %v5975_v24 = vld [vmem:[%s12587_s15 + $0x30] sm:$0xff]  ;;  %v5972_v16 = vld [vmem:[%s12587_s15 + $0x18] sm:$0xff]  ;;  %v5974_v61 = vld [vmem:[%s12587_s15 + $0x28] sm:$0xff] }
 0xe96   : > { %5882 = vperm.xlu2 %10639, %v4444_v15   ;;  %v5976_v9 = vld [vmem:[%s12587_s15 + $0x38] sm:$0xff]  ;;  %v5969_v44 = vld [vmem:[%s12587_s15] sm:$0xff]  ;;  %v5971_v20 = vld [vmem:[%s12587_s15 + $0x10] sm:$0xff] }
 0xe97   : > { %5602 = vmatpush.bf16.msra.mxu3 %v5584_v57  ;;  %5904 = vperm.xlu0 %10637, %v5898_v38   ;;  %v5970_v52 = vld [vmem:[%s12587_s15 + $0x8] sm:$0xff]  ;;  %v5421_v31 = vpop.f32.mrf.mxu0 }
 0xe98   : > { %5872 = vperm.xlu1 %10638, %v4442_v51   ;;  %9541 = vmatmul.msk.bf16.gmra.mxu3 %vm1619_vm8, %v10437_v7  ;;  %v10454_v51 = vld [vmem:[%s12589_s0] sm:$0xff] }
 0xe99   : > { %v5647_v14 = vpop.permute.xlu0 %5646 }
 0xe9a   : > { %v5521_v50 = vpop.permute.xlu1 %5520  ;;  %5665 = vmatpush.bf16.msra.mxu0 %v5647_v14  ;;  %v10459_v14 = vld [vmem:[%s12589_s0 + $0x8] sm:$0xff] }
 0xe9b   : > { %5539 = vmatpush.bf16.msrb.mxu1 %v5521_v50 }
 0xe9d   : > { %9590 = vmatmul.msk.bf16.vlgmr.msra.gmra.mxu0 %vm1619_vm8, %v10444_v55  ;;  %9561 = vmatmul.msk.bf16.gmra.mxu2 %vm1619_vm8, %v10439_v59 }
 0xe9e   : > { %5945 = vmatpush.bf16.msrb.mxu0 %v11695_v17  ;;  %5919 = vperm.xlu2 %10639, %v5901_v1   ;;  %v5973_v17 = vld [vmem:[%s12587_s15 + $0x20] sm:$0xff] }
 0xe9f   : > { %5887 = vperm.xlu0 %10637, %v4445_v58   ;;  %9570 = vmatmul.msk.bf16.vlgmr.msrb.gmra.mxu1 %vm1619_vm8, %v10440_v18  ;;  %v5424_v53 = vpop.f32.mrf.mxu0 }
 0xea0   : > { %5909 = vperm.xlu1 %10638, %v5899_v25  }
 0xea2   : > { %v5712_v36 = vpop.permute.xlu1 %5711 }
 0xea3   : > { %5727 = vmatpush.bf16.msrb.mxu2 %v5712_v36 }
 0xea6   : > { %6969 = vperm.xlu2 %10639, %v5973_v17  }
 0xea7   : > { %6979 = vperm.xlu0 %10637, %v5975_v24   ;;  %5728 = vmatpush.bf16.msrb.mxu2 %v5710_v21  ;;  %v5426_v29 = vpop.f32.mrf.mxu0 }
 0xea8   : > { %5914 = vperm.xlu1 %10638, %v5900_v34   ;;  %9580 = vmatmul.msk.bf16.vlgmr.msra.gmra.mxu3 %vm1619_vm8, %v10442_v10 }
 0xeab   : > { %6008 = vmatpush.bf16.msra.mxu2 %v10454_v51 }
 0xead   : > { %9591 = vmatmul.msk.bf16.gmra.mxu0 %vm1619_vm8, %v10445_v32  ;;  %9600 = vmatmul.msk.bf16.vlgmr.msrb.gmra.mxu2 %vm1619_vm8, %v10446_v22 }
 0xeae   : > { %6964 = vperm.xlu2 %10639, %v5972_v16  }
 0xeaf   : > { %6974 = vperm.xlu0 %10637, %v5974_v61   ;;  %9571 = vmatmul.msk.bf16.gmra.mxu1 %vm1619_vm8, %v10441_v0 }
 0xeb0   : > { %6984 = vperm.xlu1 %10638, %v5976_v9  }
 0xeb7   : > { %6949 = vperm.xlu0 %10637, %v5969_v44  }
 0xeb8   : > { %6959 = vperm.xlu1 %10638, %v5971_v20   ;;  %9581 = vmatmul.msk.bf16.gmra.mxu3 %vm1619_vm8, %v10443_v63 }
 0xebd   : > { %9630 = vmatmul.msk.bf16.vlgmr.msrb.gmra.mxu0 %vm1410_vm7, %v10452_v47  ;;  %9601 = vmatmul.msk.bf16.gmra.mxu2 %vm1619_vm8, %v10447_v43  ;;  %v10464_v43 = vld [vmem:[%s12589_s0 + $0x10] sm:$0xff] }
 0xebe   : > { %6207 = vmatpush.bf16.msrb.mxu2 %v10464_v43 }
 0xec0   : > { %6954 = vperm.xlu1 %10638, %v5970_v52  }
 0xecd   : > { %9631 = vmatmul.msk.bf16.gmra.mxu0 %vm1410_vm7, %v10453_v11 }
 0xee0   : > { %v5836_v8 = vpop.permute.xlu2 %5835 }
 0xef8   : > { %v5838_v62 = vpop.permute.xlu0 %5837 }
 0xef9   : > { %5853 = vmatpush.bf16.msrb.mxu3 %v5838_v62 }
 0xefd   : > { %5854 = vmatpush.bf16.msrb.mxu3 %v5836_v8 }
 0xf00   : > { %9620 = vmatmul.msk.bf16.vlgmr.msrb.gmra.mxu3 %vm1619_vm8, %v10450_v60 }
 0xf01   : > { %v5775_v2 = vpop.permute.xlu1 %5774  ;;  %v5773_v3 = vpop.permute.xlu0 %5772 }
 0xf02   : > { %5790 = vmatpush.bf16.msra.mxu1 %v5775_v2  ;;  %v5878_v2 = vpop.permute.xlu2 %5877 }
 0xf06   : > { %5791 = vmatpush.bf16.msra.mxu1 %v5773_v3 }
 0xf09   : > { %9610 = vmatmul.msk.bf16.vlgmr.msra.gmra.mxu1 %vm1619_vm8, %v10448_v37  ;;  %v5905_v44 = vpop.permute.xlu0 %5904 }
 0xf0a   : > { %v5384_v6 = vpop.f32.mrf.mxu3  ;;  %6046 = vmatpush.bf16.msrb.mxu1 %v10459_v14  ;;  %v5873_v17 = vpop.permute.xlu1 %5872 }
 0xf0b   : > { %v5420_v40 = vadd.f32 %v5419_v28, %v5384_v6 }
 0xf10   : > { %9621 = vmatmul.msk.bf16.gmra.mxu3 %vm1619_vm8, %v10451_v4  ;;  %v5478_v56 = vpop.f32.mrf.mxu2 }
 0xf11   : > { %v5488_v54 = vadd.f32 %v5478_v56, %v5420_v40 }
 0xf12   : > { %v5386_v48 = vpop.f32.mrf.mxu3 }
 0xf13   : > { %v5422_v13 = vadd.f32 %v5421_v31, %v5386_v48 }
 0xf18   : > { %v5480_v35 = vpop.f32.mrf.mxu2 }
 0xf19   : > { %9611 = vmatmul.msk.bf16.gmra.mxu1 %vm1619_vm8, %v10449_v26  ;;  %v5489_v55 = vadd.f32 %v5480_v35, %v5422_v13  ;;  %v5910_v26 = vpop.permute.xlu1 %5909 }
 0xf1a   : > { %v5667_v33 = vpop.f32.mrf.mxu0 }
 0xf1b   : > { %v5389_v19 = vpop.f32.mrf.mxu3 }
 0xf1c   : > { %v5541_v39 = vpop.f32.mrf.mxu1  ;;  %v5425_v1 = vadd.f32 %v5424_v53, %v5389_v19 }
 0xf1d   : > { %v5551_v15 = vadd.f32 %v5541_v39, %v5488_v54 }
 0xf20   : > { %v5483_v30 = vpop.f32.mrf.mxu2 }
 0xf21   : > { %v5490_v24 = vadd.f32 %v5483_v30, %v5425_v1  ;;  %v5915_v40 = vpop.permute.xlu1 %5914 }
 0xf22   : > { %v5669_v5 = vpop.f32.mrf.mxu0 }
 0xf23   : > { %v5391_v27 = vpop.f32.mrf.mxu3 }
 0xf24   : > { %v5543_v42 = vpop.f32.mrf.mxu1  ;;  %v5427_v16 = vadd.f32 %v5426_v29, %v5391_v27 }
 0xf25   : > { %v5552_v18 = vadd.f32 %v5543_v42, %v5489_v55 }
 0xf28   : > { %v5485_v46 = vpop.f32.mrf.mxu2 }
 0xf29   : > { %v5491_v11 = vadd.f32 %v5485_v46, %v5427_v16 }
 0xf2a   : > { %v5672_v23 = vpop.f32.mrf.mxu0 }
 0xf2b   : > { %v5604_v12 = vpop.f32.mrf.mxu3 }
 0xf2c   : > { %v5546_v49 = vpop.f32.mrf.mxu1  ;;  %v5614_v59 = vadd.f32 %v5604_v12, %v5551_v15 }
 0xf2d   : > { %v5553_v9 = vadd.f32 %v5546_v49, %v5490_v24 }
 0xf2e   : > { %v5677_v25 = vadd.f32 %v5667_v33, %v5614_v59  ;;  %v5888_v59 = vpop.permute.xlu0 %5887 }
 0xf30   : > { %v5730_v7 = vpop.f32.mrf.mxu2 }
 0xf31   : > { %v5740_v10 = vadd.f32 %v5730_v7, %v5677_v25 }
 0xf32   : > { %v5674_v57 = vpop.f32.mrf.mxu0 }
 0xf33   : > { %v5606_v41 = vpop.f32.mrf.mxu3 }
 0xf34   : > { %v5548_v50 = vpop.f32.mrf.mxu1  ;;  %v5615_v34 = vadd.f32 %v5606_v41, %v5552_v18  ;;  %v5883_v41 = vpop.permute.xlu2 %5882 }
 0xf35   : > { %v5554_v31 = vadd.f32 %v5548_v50, %v5491_v11  ;;  %v10456_v11 = vld [vmem:[%s12590_s1 + $0x8] sm:$0xff] }
 0xf36   : > { %v5678_v61 = vadd.f32 %v5669_v5, %v5615_v34 }
 0xf38   : > { %v5732_v21 = vpop.f32.mrf.mxu2 }
 0xf39   : > { %v5741_v62 = vadd.f32 %v5732_v21, %v5678_v61 }
 0xf3a   : > { %v5947_v58 = vpop.f32.mrf.mxu0 }
 0xf3b   : > { %v5609_v45 = vpop.f32.mrf.mxu3  ;;  %v5948_v63 = vadd.f32 %v5947_v58, %v5905_v44 }
 0xf3c   : > { %v5616_v8 = vadd.f32 %v5609_v45, %v5553_v9  ;;  %v5920_v55 = vpop.permute.xlu2 %5919 }
 0xf3e   : > { %v5679_v6 = vadd.f32 %v5672_v23, %v5616_v8 }
 0xf40   : > { %v5735_v28 = vpop.f32.mrf.mxu2 }
 0xf41   : > { %v5742_v27 = vadd.f32 %v5735_v28, %v5679_v6  ;;  %v10479_v6 = vld [vmem:[%s12589_s0 + $0x28] sm:$0xff] }
 0xf42   : > { %v5949_v20 = vpop.f32.mrf.mxu0 }
 0xf43   : > { %v5611_v38 = vpop.f32.mrf.mxu3  ;;  %v5950_v53 = vadd.f32 %v5949_v20, %v5910_v26  ;;  %v10455_v20 = vld [vmem:[%s12590_s1] sm:$0xff] }
 0xf44   : > { %v5617_v56 = vadd.f32 %v5611_v38, %v5554_v31  ;;  %v10474_v26 = vld [vmem:[%s12589_s0 + $0x20] sm:$0xff] }
 0xf46   : > { %v5680_v30 = vadd.f32 %v5674_v57, %v5617_v56 }
 0xf48   : > { %v5737_v45 = vpop.f32.mrf.mxu2 }
 0xf49   : > { %v5743_v54 = vadd.f32 %v5737_v45, %v5680_v30  ;;  %v10484_v30 = vld [vmem:[%s12589_s0 + $0x30] sm:$0xff] }
 0xf4a   : > { %v5952_v29 = vpop.f32.mrf.mxu0 }
 0xf4b   : > { %v5953_v46 = vadd.f32 %v5952_v29, %v5915_v40 }
 0xf52   : > { %v5954_v7 = vpop.f32.mrf.mxu0 }
 0xf53   : > { %v5955_v50 = vadd.f32 %v5954_v7, %v5920_v55 }
 0xf83   : > { %v5856_v36 = vpop.f32.mrf.mxu3 }
 0xf86   : > { %v5793_v32 = vpop.f32.mrf.mxu1 }
 0xf87   : > { %v5803_v22 = vadd.f32 %v5793_v32, %v5740_v10 }
 0xf89   : > { %v5866_v0 = vadd.f32 %v5856_v36, %v5803_v22  ;;  %v10469_v36 = vld [vmem:[%s12589_s0 + $0x18] sm:$0xff] }
 0xf8b   : > { %v5890_v47 = vadd.f32 %v5873_v17, %v5866_v0  ;;  %v5858_v52 = vpop.f32.mrf.mxu3  ;;  %v10460_v0 = vld [vmem:[%s12590_s1 + $0x20] sm:$0xff] }
 0xf8d   : > { %v5957_v60 = vadd.f32 %v5948_v63, %v5890_v47 }
 0xf8e   : > { %v5795_v3 = vpop.f32.mrf.mxu1 }
 0xf8f   : > { %v5961_v37 = vmax.f32 %v5957_v60, 0.0  ;;  %v5804_v4 = vadd.f32 %v5795_v3, %v5741_v62  ;;  %v10462_v60 = vld [vmem:[%s12590_s1 + $0x30] sm:$0xff] }
 0xf91   : > { %5965 = vst.msk [vmem:[%s11875_s2] sm:$0xff] %vm1410_vm7, %v5961_v37  ;;  %v5867_v48 = vadd.f32 %v5858_v52, %v5804_v4  ;;  %v10461_v52 = vld [vmem:[%s12590_s1 + $0x28] sm:$0xff]  ;;  %v10465_v4 = vld [vmem:[%s12590_s1 + $0x40] sm:$0xff] }
 0xf93   : > { %v5891_v19 = vadd.f32 %v5878_v2, %v5867_v48  ;;  %v5861_v12 = vpop.f32.mrf.mxu3  ;;  %v10463_v48 = vld [vmem:[%s12590_s1 + $0x38] sm:$0xff] }
 0xf95   : > { %v5958_v33 = vadd.f32 %v5950_v53, %v5891_v19  ;;  %v10458_v53 = vld [vmem:[%s12590_s1 + $0x18] sm:$0xff]  ;;  %v10466_v19 = vld [vmem:[%s12590_s1 + $0x48] sm:$0xff] }
 0xf96   : > { %v5798_v35 = vpop.f32.mrf.mxu1 }
 0xf97   : > { %v5962_v39 = vmax.f32 %v5958_v33, 0.0  ;;  %v5805_v5 = vadd.f32 %v5798_v35, %v5742_v27  ;;  %v10470_v35 = vld [vmem:[%s12590_s1 + $0x60] sm:$0xff] }
 0xf99   : > { %5966 = vst.msk [vmem:[%s11875_s2 + $0x8] sm:$0xff] %vm1410_vm7, %v5962_v39  ;;  %v11881_v42 = vpack.c.bf16 %v5962_v39, %v5961_v37  ;;  %v5868_v23 = vadd.f32 %v5861_v12, %v5805_v5  ;;  %v10457_v37 = vld [vmem:[%s12590_s1 + $0x10] sm:$0xff]  ;;  %v10468_v39 = vld [vmem:[%s12590_s1 + $0x58] sm:$0xff]  ;;  %v10471_v5 = vld [vmem:[%s12590_s1 + $0x68] sm:$0xff] }
 0xf9a   : > { %v10467_v12 = vld [vmem:[%s12590_s1 + $0x50] sm:$0xff] }
 0xf9b   : > { %v5892_v49 = vadd.f32 %v5883_v41, %v5868_v23  ;;  %9636 = vmatmul.msk.bf16.vlgmr.msra.gmra.mxu2 %vm1410_vm7, %v11881_v42  ;;  %9644 = vmatmul.msk.bf16.vlgmr.msrb.gmra.mxu1 %vm1410_vm7, %v11881_v42  ;;  %v5863_v51 = vpop.f32.mrf.mxu3  ;;  %v10472_v41 = vld [vmem:[%s12590_s1 + $0x70] sm:$0xff]  ;;  %v10473_v23 = vld [vmem:[%s12590_s1 + $0x78] sm:$0xff] }
 0xf9c   : > { %6315 = vmatpush.bf16.msra.mxu2 %v10469_v36 }
 0xf9d   : > { %v5959_v13 = vadd.f32 %v5953_v46, %v5892_v49 }
 0xf9e   : > { %v5800_v57 = vpop.f32.mrf.mxu1 }
 0xf9f   : > { %v5963_v15 = vmax.f32 %v5959_v13, 0.0  ;;  %v5806_v38 = vadd.f32 %v5800_v57, %v5743_v54 }
 0xfa1   : > { %5967 = vst.msk [vmem:[%s11875_s2 + $0x10] sm:$0xff] %vm1410_vm7, %v5963_v15  ;;  %v5869_v14 = vadd.f32 %v5863_v51, %v5806_v38 }
 0xfa3   : > { %v5893_v1 = vadd.f32 %v5888_v59, %v5869_v14 }
 0xfa5   : > { %v5960_v58 = vadd.f32 %v5955_v50, %v5893_v1 }
 0xfa7   : > { %v5964_v25 = vmax.f32 %v5960_v58, 0.0 }
 0xfa9   : > { %5968 = vst.msk [vmem:[%s11875_s2 + $0x18] sm:$0xff] %vm1410_vm7, %v5964_v25  ;;  %v11891_v18 = vpack.c.bf16 %v5964_v25, %v5963_v15  ;;  %s12591_s2 = sld [smem:[#allocation24_spill]] }
 0xfab   : > { %9637 = vmatmul.msk.bf16.gmra.mxu2 %vm1410_vm7, %v11891_v18  ;;  %9645 = vmatmul.msk.bf16.gmra.mxu1 %vm1410_vm7, %v11891_v18 }
 0xfbb   : > { %9700 = vmatmul.msk.bf16.vlgmr.msrb.gmra.mxu2 %vm1410_vm7, %v11881_v42 }
 0xfcb   : > { %9701 = vmatmul.msk.bf16.gmra.mxu2 %vm1410_vm7, %v11891_v18 }
 0xfdb   : > { %9736 = vmatmul.msk.bf16.vlgmr.msra.gmra.mxu2 %vm1410_vm7, %v11881_v42 }
 0xfeb   : > { %9737 = vmatmul.msk.bf16.gmra.mxu2 %vm1410_vm7, %v11891_v18 }
0x1018   : > { %v6048_v17 = vpop.f32.mrf.mxu1 }
0x101e   : > { %v6010_v24 = vpop.f32.mrf.mxu2 }
0x1020   : > { %v6050_v10 = vpop.f32.mrf.mxu1 }
0x1021   : > { %v6067_v61 = vpack.c.bf16 %v6050_v10, %v6048_v17 }
0x1026   : > { %v6012_v34 = vpop.f32.mrf.mxu2 }
0x1027   : > { %v6028_v63 = vpack.c.bf16 %v6012_v34, %v6010_v24 }
0x1028   : > { %v6053_v21 = vpop.f32.mrf.mxu1 }
0x102e   : > { %v6015_v32 = vpop.f32.mrf.mxu2 }
0x1030   : > { %v6055_v22 = vpop.f32.mrf.mxu1 }
0x1031   : > { %v6068_v16 = vpack.c.bf16 %v6055_v22, %v6053_v21 }
0x1033   : > { %6107 = vmatpush.bf16.msra.mxu3 %v6068_v16 }
0x1036   : > { %v6017_v9 = vpop.f32.mrf.mxu2 }
0x1037   : > { %v6029_v44 = vpack.c.bf16 %v6017_v9, %v6015_v32  ;;  %6108 = vmatpush.bf16.msra.mxu3 %v6067_v61 }
0x1039   : > { %6168 = vmatpush.bf16.msra.mxu0 %v6029_v44 }
0x103a   : > { %9670 = vmatmul.msk.bf16.vlgmr.msra.gmra.mxu3 %vm1619_vm8, %v10460_v0 }
0x103d   : > { %6169 = vmatpush.bf16.msra.mxu0 %v6028_v63 }
0x103e   : > { %v6209_v47 = vpop.f32.mrf.mxu2 }
0x1040   : > { %9690 = vmatmul.msk.bf16.vlgmr.msra.gmra.mxu0 %vm1619_vm8, %v10455_v20 }
0x1041   : > { %6423 = vmatpush.bf16.msrb.mxu0 %v10474_v26 }
0x1046   : > { %v6211_v43 = vpop.f32.mrf.mxu2 }
0x1047   : > { %v6228_v3 = vpack.c.bf16 %v6211_v43, %v6209_v47 }
0x104a   : > { %9671 = vmatmul.msk.bf16.gmra.mxu3 %vm1619_vm8, %v10461_v52 }
0x104e   : > { %v6214_v62 = vpop.f32.mrf.mxu2 }
0x1050   : > { %9691 = vmatmul.msk.bf16.gmra.mxu0 %vm1619_vm8, %v10456_v11 }
0x1056   : > { %v6216_v8 = vpop.f32.mrf.mxu2 }
0x1057   : > { %v6229_v2 = vpack.c.bf16 %v6216_v8, %v6214_v62 }
0x1059   : > { %6268 = vmatpush.bf16.msra.mxu1 %v6229_v2  ;;  %v10475_v2 = vld [vmem:[%s12590_s1 + $0x80] sm:$0xff] }
0x105a   : > { %9672 = vmatmul.msk.bf16.gmra.mxu3 %vm1619_vm8, %v10462_v60 }
0x105d   : > { %6269 = vmatpush.bf16.msra.mxu1 %v6228_v3 }
0x105e   : > { %v6317_v28 = vpop.f32.mrf.mxu2 }
0x1060   : > { %9692 = vmatmul.msk.bf16.gmra.mxu0 %vm1619_vm8, %v10457_v37  ;;  %9726 = vmatmul.msk.bf16.vlgmr.msra.gmra.mxu1 %vm1619_vm8, %v10465_v4  ;;  %v10476_v4 = vld [vmem:[%s12590_s1 + $0x88] sm:$0xff] }
0x1061   : > { %6531 = vmatpush.bf16.msrb.mxu1 %v10479_v6 }
0x1065   : > { %6639 = vmatpush.bf16.msra.mxu1 %v10484_v30  ;;  %v10482_v30 = vld [vmem:[%s12590_s1 + $0xb0] sm:$0xff] }
0x1066   : > { %v6319_v31 = vpop.f32.mrf.mxu2 }
0x1067   : > { %v6336_v33 = vpack.c.bf16 %v6319_v31, %v6317_v28 }
0x106a   : > { %9673 = vmatmul.msk.bf16.gmra.mxu3 %vm1619_vm8, %v10463_v48  ;;  %v10480_v48 = vld [vmem:[%s12590_s1 + $0xa0] sm:$0xff] }
0x106e   : > { %v6322_v29 = vpop.f32.mrf.mxu2 }
0x1070   : > { %9693 = vmatmul.msk.bf16.gmra.mxu0 %vm1619_vm8, %v10458_v53  ;;  %9727 = vmatmul.msk.bf16.gmra.mxu1 %vm1619_vm8, %v10466_v19  ;;  %v10477_v53 = vld [vmem:[%s12590_s1 + $0x90] sm:$0xff]  ;;  %v10489_v19 = vld [vmem:[%s12589_s0 + $0x38] sm:$0xff] }
0x1076   : > { %v6324_v27 = vpop.f32.mrf.mxu2 }
0x1077   : > { %v6337_v56 = vpack.c.bf16 %v6324_v27, %v6322_v29  ;;  %v10494_v27 = vld [vmem:[%s12589_s0 + $0x40] sm:$0xff]  ;;  %s12592_s0 = smov 1  }
0x1079   : > { %6376 = vmatpush.bf16.msrb.mxu3 %v6337_v56 }
0x107d   : > { %6377 = vmatpush.bf16.msrb.mxu3 %v6336_v33  ;;  %v10481_v33 = vld [vmem:[%s12590_s1 + $0xa8] sm:$0xff] }
0x1080   : > { %9728 = vmatmul.msk.bf16.gmra.mxu1 %vm1619_vm8, %v10467_v12  ;;  %9762 = vmatmul.msk.bf16.vlgmr.msrb.gmra.mxu3 %vm1619_vm8, %v10470_v35  ;;  %v10478_v12 = vld [vmem:[%s12590_s1 + $0x98] sm:$0xff] }
0x1081   : > { %9772 = vmatmul.msk.bf16.vlgmr.msrb.gmra.mxu0 %vm1410_vm7, %v11881_v42 }
0x1090   : > { %9729 = vmatmul.msk.bf16.gmra.mxu1 %vm1619_vm8, %v10468_v39  ;;  %9763 = vmatmul.msk.bf16.gmra.mxu3 %vm1619_vm8, %v10471_v5 }
0x1091   : > { %9773 = vmatmul.msk.bf16.gmra.mxu0 %vm1410_vm7, %v11891_v18 }
0x10a0   : > { %9764 = vmatmul.msk.bf16.gmra.mxu3 %vm1619_vm8, %v10472_v41  ;;  %9808 = vmatmul.msk.bf16.vlgmr.msrb.gmra.mxu1 %vm1410_vm7, %v11881_v42 }
0x10b0   : > { %9765 = vmatmul.msk.bf16.gmra.mxu3 %vm1619_vm8, %v10473_v23  ;;  %9809 = vmatmul.msk.bf16.gmra.mxu1 %vm1410_vm7, %v11891_v18  ;;  %v10485_v23 = vld [vmem:[%s12590_s1 + $0xc0] sm:$0xff] }
0x10bd   : > { %v6171_v40 = vpop.f32.mrf.mxu0  ;;  %v6110_v45 = vpop.f32.mrf.mxu3 }
0x10be   : > { %v6172_v46 = vadd.f32 %v6171_v40, %v6110_v45  ;;  %v10483_v40 = vld [vmem:[%s12590_s1 + $0xb8] sm:$0xff]  ;;  %v10486_v45 = vld [vmem:[%s12590_s1 + $0xc8] sm:$0xff] }
0x10c0   : > { %9844 = vmatmul.msk.bf16.vlgmr.msra.gmra.mxu1 %vm1410_vm7, %v11881_v42 }
0x10c5   : > { %v11951_v49 = vpop.f32.mrf.mxu0  ;;  %v11953_v54 = vpop.f32.mrf.mxu3 }
0x10cd   : > { %v6176_v13 = vpop.f32.mrf.mxu0  ;;  %v6115_v57 = vpop.f32.mrf.mxu3 }
0x10ce   : > { %v6177_v15 = vadd.f32 %v6176_v13, %v6115_v57  ;;  %v10488_v13 = vld [vmem:[%s12590_s1 + $0xd8] sm:$0xff] }
0x10d0   : > { %9845 = vmatmul.msk.bf16.gmra.mxu1 %vm1410_vm7, %v11891_v18 }
0x10d5   : > { %v11957_v38 = vpop.f32.mrf.mxu0  ;;  %v11959_v7 = vpop.f32.mrf.mxu3 }
0x10dd   : > { %v6181_v51 = vpop.f32.mrf.mxu0  ;;  %v6271_v14 = vpop.f32.mrf.mxu1 }
0x10de   : > { %v6291_v55 = vadd.f32 %v6271_v14, %v6172_v46  ;;  %v6120_v59 = vpop.f32.mrf.mxu3  ;;  %v10487_v46 = vld [vmem:[%s12590_s1 + $0xd0] sm:$0xff] }
0x10df   : > { %v6182_v50 = vadd.f32 %v6181_v51, %v6120_v59 }
0x10e5   : > { %v11961_v1 = vpop.f32.mrf.mxu0  ;;  %v11963_v58 = vpop.f32.mrf.mxu1 }
0x10e6   : > { %v11965_v25 = vpop.f32.mrf.mxu3 }
0x10ed   : > { %v6186_v36 = vpop.f32.mrf.mxu0  ;;  %v6276_v17 = vpop.f32.mrf.mxu1 }
0x10ee   : > { %v11967_v24 = vadd.f32 %v6276_v17, %v6177_v15  ;;  %v6125_v10 = vpop.f32.mrf.mxu3 }
0x10ef   : > { %v6187_v34 = vadd.f32 %v6186_v36, %v6125_v10 }
0x10f5   : > { %v11969_v21 = vpop.f32.mrf.mxu0  ;;  %v11971_v32 = vpop.f32.mrf.mxu1 }
0x10f6   : > { %v11973_v22 = vpop.f32.mrf.mxu3 }
0x10fd   : > { %v6281_v16 = vpop.f32.mrf.mxu1 }
0x10fe   : > { %v11975_v61 = vadd.f32 %v6281_v16, %v6182_v50  ;;  %v6425_v9 = vpop.f32.mrf.mxu0 }
0x1103   : > { %v6379_v0 = vpop.f32.mrf.mxu3 }
0x1104   : > { %v6399_v44 = vadd.f32 %v6379_v0, %v6291_v55 }
0x1105   : > { %v11977_v63 = vpop.f32.mrf.mxu1 }
0x1106   : > { %v6427_v20 = vpop.f32.mrf.mxu0 }
0x1107   : > { %v11986_v60 = vpack.c.bf16 %v6427_v20, %v6425_v9 }
0x110b   : > { %v12023_v57 = vpop.f32.mrf.mxu3 }
0x110d   : > { %v6286_v47 = vpop.f32.mrf.mxu1 }
0x110e   : > { %v11979_v43 = vadd.f32 %v6286_v47, %v6187_v34  ;;  %v6430_v52 = vpop.f32.mrf.mxu0 }
0x1113   : > { %v6384_v14 = vpop.f32.mrf.mxu3 }
0x1114   : > { %v6401_v50 = vadd.f32 %v6384_v14, %v11967_v24  ;;  %v10496_v14 = vld [vmem:[%s12590_s1 + $0x108] sm:$0xff] }
0x1115   : > { %v11981_v11 = vpop.f32.mrf.mxu1 }
0x1116   : > { %v6432_v62 = vpop.f32.mrf.mxu0 }
0x1117   : > { %v11983_v8 = vpack.c.bf16 %v6432_v62, %v6430_v52 }
0x1119   : > { %6484 = vmatpush.bf16.msrb.mxu2 %v11983_v8 }
0x111b   : > { %v12027_v59 = vpop.f32.mrf.mxu3 }
0x111d   : > { %6485 = vmatpush.bf16.msrb.mxu2 %v11986_v60  ;;  %v6533_v3 = vpop.f32.mrf.mxu1 }
0x1120   : > { %9798 = vmatmul.msk.bf16.vlgmr.msrb.gmra.mxu2 %vm1619_vm8, %v10475_v2 }
0x1121   : > { %6747 = vmatpush.bf16.msra.mxu2 %v10489_v19 }
0x1125   : > { %v6535_v37 = vpop.f32.mrf.mxu1 }
0x1126   : > { %v6552_v31 = vpack.c.bf16 %v6535_v37, %v6533_v3 }
0x112d   : > { %v6538_v26 = vpop.f32.mrf.mxu1 }
0x1130   : > { %9799 = vmatmul.msk.bf16.gmra.mxu2 %vm1619_vm8, %v10476_v4 }
0x1135   : > { %v6540_v28 = vpop.f32.mrf.mxu1 }
0x1136   : > { %v6553_v6 = vpack.c.bf16 %v6540_v28, %v6538_v26 }
0x1138   : > { %6592 = vmatpush.bf16.msra.mxu0 %v6553_v6 }
0x113c   : > { %6593 = vmatpush.bf16.msra.mxu0 %v6552_v31 }
0x113d   : > { %v6641_v29 = vpop.f32.mrf.mxu1 }
0x113f   : > { %9834 = vmatmul.msk.bf16.vlgmr.msra.gmra.mxu0 %vm1619_vm8, %v10480_v48 }
0x1140   : > { %9800 = vmatmul.msk.bf16.gmra.mxu2 %vm1619_vm8, %v10477_v53  ;;  %6855 = vmatpush.bf16.msrb.mxu0 %v10494_v27 }
0x1145   : > { %v6643_v56 = vpop.f32.mrf.mxu1 }
0x1146   : > { %v6660_v41 = vpack.c.bf16 %v6643_v56, %v6641_v29 }
0x114d   : > { %v6646_v35 = vpop.f32.mrf.mxu1 }
0x114f   : > { %9835 = vmatmul.msk.bf16.gmra.mxu0 %vm1619_vm8, %v10481_v33 }
0x1150   : > { %9801 = vmatmul.msk.bf16.gmra.mxu2 %vm1619_vm8, %v10478_v12 }
0x1155   : > { %v6648_v39 = vpop.f32.mrf.mxu1 }
0x1156   : > { %v6661_v5 = vpack.c.bf16 %v6648_v39, %v6646_v35 }
0x1158   : > { %6700 = vmatpush.bf16.msra.mxu3 %v6661_v5 }
0x115c   : > { %6701 = vmatpush.bf16.msra.mxu3 %v6660_v41  ;;  %v10490_v41 = vld [vmem:[%s12590_s1 + $0xe0] sm:$0xff] }
0x115f   : > { %9836 = vmatmul.msk.bf16.gmra.mxu0 %vm1619_vm8, %v10482_v30  ;;  %9870 = vmatmul.msk.bf16.vlgmr.msra.gmra.mxu3 %vm1619_vm8, %v10485_v23 }
0x1160   : > { %9880 = vmatmul.msk.bf16.vlgmr.msra.gmra.mxu2 %vm1410_vm7, %v11881_v42 }
0x116f   : > { %9837 = vmatmul.msk.bf16.gmra.mxu0 %vm1619_vm8, %v10483_v40  ;;  %9871 = vmatmul.msk.bf16.gmra.mxu3 %vm1619_vm8, %v10486_v45  ;;  %v10491_v40 = vld [vmem:[%s12590_s1 + $0xe8] sm:$0xff] }
0x1170   : > { %9881 = vmatmul.msk.bf16.gmra.mxu2 %vm1410_vm7, %v11891_v18 }
0x117f   : > { %9872 = vmatmul.msk.bf16.gmra.mxu3 %vm1619_vm8, %v10487_v46  ;;  %9916 = vmatmul.msk.bf16.vlgmr.msrb.gmra.mxu0 %vm1410_vm7, %v11881_v42  ;;  %v6389_v42 = vpop.f32.mrf.mxu3 }
0x118f   : > { %9873 = vmatmul.msk.bf16.gmra.mxu3 %vm1619_vm8, %v10488_v13  ;;  %9917 = vmatmul.msk.bf16.gmra.mxu0 %vm1410_vm7, %v11891_v18  ;;  %v6403_v18 = vadd.f32 %v6389_v42, %v11975_v61  ;;  %vm7043_vm7 = vcmask 56320  }
0x11a3   : > { %v6487_v15 = vpop.f32.mrf.mxu2 }
0x11a4   : > { %v6507_v51 = vadd.f32 %v6487_v15, %v6399_v44  ;;  %v12035_v44 = vpop.f32.mrf.mxu3  ;;  %v10495_v15 = vld [vmem:[%s12590_s1 + $0x100] sm:$0xff] }
0x11ab   : > { %v12025_v55 = vpop.f32.mrf.mxu2 }
0x11ac   : > { %v6394_v24 = vpop.f32.mrf.mxu3 }
0x11ad   : > { %v6405_v2 = vadd.f32 %v6394_v24, %v11979_v43 }
0x11b3   : > { %v6492_v36 = vpop.f32.mrf.mxu2 }
0x11b4   : > { %v6509_v17 = vadd.f32 %v6492_v36, %v6401_v50  ;;  %v12044_v26 = vpop.f32.mrf.mxu3  ;;  %v10493_v50 = vld [vmem:[%s12590_s1 + $0xf8] sm:$0xff]  ;;  %v10497_v36 = vld [vmem:[%s12590_s1 + $0x110] sm:$0xff] }
0x11bb   : > { %v12030_v10 = vpop.f32.mrf.mxu2 }
0x11bc   : > { %v6595_v34 = vpop.f32.mrf.mxu0 }
0x11bd   : > { %v6615_v16 = vadd.f32 %v6595_v34, %v6507_v51  ;;  %v10492_v51 = vld [vmem:[%s12590_s1 + $0xf0] sm:$0xff] }
0x11c3   : > { %v6497_v9 = vpop.f32.mrf.mxu2 }
0x11c4   : > { %v6511_v0 = vadd.f32 %v6497_v9, %v6403_v18  ;;  %v12033_v20 = vpop.f32.mrf.mxu0 }
0x11cb   : > { %v12037_v47 = vpop.f32.mrf.mxu2 }
0x11cc   : > { %v6600_v52 = vpop.f32.mrf.mxu0 }
0x11cd   : > { %v12039_v62 = vadd.f32 %v6600_v52, %v6509_v17  ;;  %v10498_v17 = vld [vmem:[%s12590_s1 + $0x118] sm:$0xff]  ;;  %s12594_s1 = smov 3  }
0x11d3   : > { %v6502_v3 = vpop.f32.mrf.mxu2 }
0x11d4   : > { %v6513_v37 = vadd.f32 %v6502_v3, %v6405_v2  ;;  %v12042_v4 = vpop.f32.mrf.mxu0 }
0x11db   : > { %v12046_v61 = vpop.f32.mrf.mxu2 }
0x11dc   : > { %v6605_v28 = vpop.f32.mrf.mxu0 }
0x11dd   : > { %v12048_v6 = vadd.f32 %v6605_v28, %v6511_v0  ;;  %v6174_v28 = vadd.f32 %v11951_v49, %v11953_v54 }
0x11e2   : > { %v6703_v31 = vpop.f32.mrf.mxu3 }
0x11e3   : > { %v6723_v48 = vadd.f32 %v6703_v31, %v6615_v16  ;;  %v6749_v53 = vpop.f32.mrf.mxu2  ;;  %v12073_v16 = vld [vmem:[%s12591_s2] sm:$0xff] }
0x11e4   : > { %v12050_v19 = vpop.f32.mrf.mxu0  ;;  %v7075_v18 = vperm.slane %v12073_v16, 1 }
0x11e6   : > { %7077 = vrot.lane.b32.xlu1 %v7075_v18, %s12592_s0  ;;  %s12537_s0 = smov 3   ;;  %v6179_v18 = vadd.f32 %v11957_v38, %v11959_v7  ;;  %v6184_v38 = vadd.f32 %v11961_v1, %v11965_v25 }
0x11ea   : > { %v6705_v9 = vpop.f32.mrf.mxu3 }
0x11eb   : > { %v6751_v29 = vpop.f32.mrf.mxu2 }
0x11ec   : > { %v6610_v43 = vpop.f32.mrf.mxu0  ;;  %v6768_v5 = vpack.c.bf16 %v6751_v29, %v6749_v53 }
0x11ed   : > { %v12052_v27 = vadd.f32 %v6610_v43, %v6513_v37  ;;  %v12079_v37 = vpop.permute.xlu1 %6984 }
0x11f2   : > { %v6708_v52 = vpop.f32.mrf.mxu3 }
0x11f3   : > { %v6754_v56 = vpop.f32.mrf.mxu2 }
0x11f4   : > { %v12054_v33 = vpop.f32.mrf.mxu0 }
0x11fa   : > { %v6710_v53 = vpop.f32.mrf.mxu3 }
0x11fb   : > { %v6756_v12 = vpop.f32.mrf.mxu2 }
0x11fc   : > { %v6769_v35 = vpack.c.bf16 %v6756_v12, %v6754_v56  ;;  %v6857_v39 = vpop.f32.mrf.mxu0  ;;  %v6725_v12 = vadd.f32 %v6708_v52, %v12039_v62 }
0x11fe   : > { %6808 = vmatpush.bf16.msrb.mxu1 %v6769_v35  ;;  %v6960_v35 = vpop.permute.xlu1 %6959 }
0x1202   : > { %6809 = vmatpush.bf16.msrb.mxu1 %v6768_v5  ;;  %v6713_v54 = vpop.f32.mrf.mxu3 }
0x1203   : > { %v6727_v62 = vadd.f32 %v6713_v54, %v12048_v6  ;;  %v6294_v6 = vadd.f32 %v11971_v32, %v6179_v18 }
0x1204   : > { %v6859_v30 = vpop.f32.mrf.mxu0 }
0x1205   : > { %9906 = vmatmul.msk.bf16.vlgmr.msrb.gmra.mxu1 %vm1619_vm8, %v10490_v41  ;;  %v6876_v13 = vpack.c.bf16 %v6859_v30, %v6857_v39 }
0x120c   : > { %v6862_v23 = vpop.f32.mrf.mxu0 }
0x1214   : > { %v6864_v45 = vpop.f32.mrf.mxu0 }
0x1215   : > { %9907 = vmatmul.msk.bf16.gmra.mxu1 %vm1619_vm8, %v10491_v40  ;;  %v6877_v46 = vpack.c.bf16 %v6864_v45, %v6862_v23 }
0x1217   : > { %6916 = vmatpush.bf16.msrb.mxu2 %v6877_v46 }
0x121b   : > { %6917 = vmatpush.bf16.msrb.mxu2 %v6876_v13 }
0x121e   : > { %9942 = vmatmul.msk.bf16.vlgmr.msrb.gmra.mxu2 %vm1619_vm8, %v10495_v15 }
0x1225   : > { %9908 = vmatmul.msk.bf16.gmra.mxu1 %vm1619_vm8, %v10492_v51 }
0x122e   : > { %9943 = vmatmul.msk.bf16.gmra.mxu2 %vm1619_vm8, %v10496_v14 }
0x1235   : > { %9909 = vmatmul.msk.bf16.gmra.mxu1 %vm1619_vm8, %v10493_v50 }
0x123e   : > { %9944 = vmatmul.msk.bf16.gmra.mxu2 %vm1619_vm8, %v10497_v36 }
0x124e   : > { %9945 = vmatmul.msk.bf16.gmra.mxu2 %vm1619_vm8, %v10498_v17  ;;  %v6970_v17 = vpop.permute.xlu2 %6969 }
0x1282   : > { %v6811_v42 = vpop.f32.mrf.mxu1 }
0x1283   : > { %v6831_v34 = vadd.f32 %v6811_v42, %v6723_v48  ;;  %v6292_v48 = vadd.f32 %v11963_v58, %v6174_v28 }
0x1285   : > { %v6400_v29 = vadd.f32 %v12023_v57, %v6292_v48  ;;  %v6955_v57 = vpop.permute.xlu1 %6954 }
0x1287   : > { %v6508_v56 = vadd.f32 %v12025_v55, %v6400_v29 }
0x1289   : > { %v6616_v39 = vadd.f32 %v12033_v20, %v6508_v56  ;;  %v6715_v20 = vpop.f32.mrf.mxu3 }
0x128a   : > { %v6813_v0 = vpop.f32.mrf.mxu1 }
0x128b   : > { %v6724_v30 = vadd.f32 %v6705_v9, %v6616_v39 }
0x128d   : > { %v6832_v40 = vadd.f32 %v6813_v0, %v6724_v30 }
0x1291   : > { %v6718_v9 = vpop.f32.mrf.mxu3 }
0x1292   : > { %v6816_v3 = vpop.f32.mrf.mxu1  ;;  %v6729_v48 = vadd.f32 %v6718_v9, %v12052_v27 }
0x1293   : > { %v6833_v5 = vadd.f32 %v6816_v3, %v6725_v12  ;;  %v6402_v3 = vadd.f32 %v12027_v59, %v6294_v6  ;;  %v6296_v12 = vadd.f32 %v11977_v63, %v6184_v38  ;;  %v7054_v6 = vperm.slane %v12073_v16, 0 }
0x129a   : > { %v6818_v43 = vpop.f32.mrf.mxu1 }
0x12a1   : > { %v6919_v24 = vpop.f32.mrf.mxu2 }
0x12a2   : > { %v12077_v2 = vadd.f32 %v6919_v24, %v6831_v34  ;;  %v6821_v46 = vpop.f32.mrf.mxu1  ;;  %v6189_v24 = vadd.f32 %v11969_v21, %v11973_v22 }
0x12a3   : > { %v6835_v51 = vadd.f32 %v6821_v46, %v6727_v62 }
0x12a4   : > { %v6298_v28 = vadd.f32 %v11981_v11, %v6189_v24  ;;  %v6980_v11 = vpop.permute.xlu0 %6979 }
0x12a6   : > { %v6406_v7 = vadd.f32 %v12044_v26, %v6298_v28 }
0x12a8   : > { %v6514_v21 = vadd.f32 %v12046_v61, %v6406_v7  ;;  %v6965_v61 = vpop.permute.xlu2 %6964 }
0x12a9   : > { %v6921_v31 = vpop.f32.mrf.mxu2 }
0x12aa   : > { %v6940_v45 = vadd.f32 %v6921_v31, %v6832_v40  ;;  %v6823_v14 = vpop.f32.mrf.mxu1  ;;  %v6510_v31 = vadd.f32 %v12030_v10, %v6402_v3  ;;  %v6404_v10 = vadd.f32 %v12035_v44, %v6296_v12  ;;  %v6622_v27 = vadd.f32 %v12054_v33, %v6514_v21 }
0x12ac   : > { %v6988_v13 = vadd.f32 %v6955_v57, %v6940_v45  ;;  %v6618_v29 = vadd.f32 %v12042_v4, %v6510_v31  ;;  %v6512_v26 = vadd.f32 %v12037_v47, %v6404_v10  ;;  %v6975_v47 = vpop.permute.xlu0 %6974 }
0x12ae   : > { %v6996_v15 = vmax.f32 %v6988_v13, 0.0  ;;  %v6726_v22 = vadd.f32 %v6710_v53, %v6618_v29  ;;  %v6620_v63 = vadd.f32 %v12050_v19, %v6512_v26  ;;  %v7078_v13 = vpop.permute.xlu1 %7077 }
0x12b0   : > { %v6834_v39 = vadd.f32 %v6818_v43, %v6726_v22 }
0x12b1   : > { %v6924_v41 = vpop.f32.mrf.mxu2 }
0x12b2   : > { %v6941_v23 = vadd.f32 %v6924_v41, %v6833_v5  ;;  %v6826_v52 = vpop.f32.mrf.mxu1 }
0x12b3   : > { %v6837_v32 = vadd.f32 %v6826_v52, %v6729_v48 }
0x12b4   : > { %v6989_v49 = vadd.f32 %v6960_v35, %v6941_v23  ;;  %v6720_v35 = vpop.f32.mrf.mxu3  ;;  %v6728_v23 = vadd.f32 %v6715_v20, %v6620_v63  ;;  %v6950_v46 = vpop.permute.xlu0 %6949 }
0x12b5   : > { %v6730_v4 = vadd.f32 %v6720_v35, %v6622_v27  ;;  %v6987_v57 = vadd.f32 %v6950_v46, %v12077_v2 }
0x12b6   : > { %v6997_v58 = vmax.f32 %v6989_v49, 0.0  ;;  %v6836_v49 = vadd.f32 %v6823_v14, %v6728_v23 }
0x12b8   : > { %7015 = vrot.lane.b32.xlu1 %v6997_v58, %s12537_s0 }
0x12b9   : > { %v6926_v55 = vpop.f32.mrf.mxu2 }
0x12ba   : > { %v6828_v25 = vpop.f32.mrf.mxu1  ;;  %v6942_v5 = vadd.f32 %v6926_v55, %v6834_v39  ;;  %v6995_v55 = vmax.f32 %v6987_v57, 0.0 }
0x12bb   : > { %v6838_v30 = vadd.f32 %v6828_v25, %v6730_v4 }
0x12bc   : > { %v6990_v40 = vadd.f32 %v6965_v61, %v6942_v5 }
0x12be   : > { %v6998_v43 = vmax.f32 %v6990_v40, 0.0 }
0x12c0   : > { %7013 = vrot.lane.b32.xlu1 %v6996_v15, %s12537_s0 }
0x12c1   : > { %v6929_v50 = vpop.f32.mrf.mxu2 }
0x12c2   : > { %v6943_v36 = vadd.f32 %v6929_v50, %v6835_v51 }
0x12c4   : > { %v6991_v42 = vadd.f32 %v6970_v17, %v6943_v36 }
0x12c6   : > { %v6999_v34 = vmax.f32 %v6991_v42, 0.0 }
0x12c8   : > { %7019 = vrot.lane.b32.xlu2 %v6999_v34, %s12537_s0  ;;  %v7461_v34 = vperm.slane %v12073_v16, 4 }
0x12c9   : > { %v6931_v0 = vpop.f32.mrf.mxu2 }
0x12ca   : > { %v6944_v54 = vadd.f32 %v6931_v0, %v6836_v49 }
0x12cc   : > { %v6992_v19 = vadd.f32 %v6975_v47, %v6944_v54  ;;  %v7239_v54 = vperm.slane %v12073_v16, 2 }
0x12ce   : > { %v7000_v58 = vmax.f32 %v6992_v19, 0.0 }
0x12d1   : > { %v6934_v56 = vpop.f32.mrf.mxu2 }
0x12d2   : > { %v6945_v59 = vadd.f32 %v6934_v56, %v6837_v32 }
0x12d4   : > { %v6993_v1 = vadd.f32 %v6980_v11, %v6945_v59 }
0x12d6   : > { %v7001_v41 = vmax.f32 %v6993_v1, 0.0 }
0x12d8   : > { %7023 = vrot.lane.b32.xlu2 %v7001_v41, %s12537_s0 }
0x12d9   : > { %v6936_v53 = vpop.f32.mrf.mxu2 }
0x12da   : > { %v6946_v44 = vadd.f32 %v6936_v53, %v6838_v30  ;;  %v7350_v53 = vperm.slane %v12073_v16, 3 }
0x12dc   : > { %v6994_v33 = vadd.f32 %v12079_v37, %v6946_v44 }
0x12de   : > { %v7002_v45 = vmax.f32 %v6994_v33, 0.0 }
0x12e0   : > { %7025 = vrot.lane.b32.xlu0 %v7002_v45, %s12537_s0  ;;  %7017 = vrot.lane.b32.xlu2 %v6998_v43, %s12537_s0  ;;  %v7572_v43 = vperm.slane %v12073_v16, 5 }
0x12e8   : > { %7021 = vrot.lane.b32.xlu0 %v7000_v58, %s12537_s0 }
0x12f0   : > { %7011 = vrot.lane.b32.xlu0 %v6995_v55, %s12537_s0  ;;  %s12593_s0 = smov 127  }
0x1322   : > { %v7020_v37 = vpop.permute.xlu2 %7019 }
0x1323   : > { %v7039_v38 = vsel %vm1159_vm2, 0.0, %v7020_v37 }
0x1324   : > { %v12147_v32 = vsel %vm7043_vm7, %v7039_v38, 0.0 }
0x1325   : > { %v7084_v59 = vmul.f32 %v7078_v13, %v12147_v32  ;;  %v7059_v35 = vmul.f32 %v7054_v6, %v12147_v32 }
0x132a   : > { %v7016_v15 = vpop.permute.xlu1 %7015 }
0x132b   : > { %v7037_v20 = vsel %vm1159_vm2, 0.0, %v7016_v15 }
0x132c   : > { %v12120_v51 = vsel %vm7043_vm7, %v7037_v20, 0.0 }
0x132d   : > { %v7082_v2 = vmul.f32 %v7078_v13, %v12120_v51  ;;  %v7057_v4 = vmul.f32 %v7054_v6, %v12120_v51 }
0x1332   : > { %v7024_v62 = vpop.permute.xlu2 %7023  ;;  %v7014_v12 = vpop.permute.xlu1 %7013 }
0x1333   : > { %v7041_v18 = vsel %vm1159_vm2, 0.0, %v7024_v62  ;;  %v7036_v27 = vsel %vm1159_vm2, 0.0, %v7014_v12 }
0x1334   : > { %v12133_v9 = vsel %vm7043_vm7, %v7041_v18, 0.0  ;;  %v12160_v26 = vsel %vm7043_vm7, %v7036_v27, 0.0 }
0x1335   : > { %v7086_v3 = vmul.f32 %v7078_v13, %v12133_v9  ;;  %v7061_v31 = vmul.f32 %v7054_v6, %v12133_v9  ;;  %v7081_v61 = vmul.f32 %v7078_v13, %v12160_v26  ;;  %v7056_v44 = vmul.f32 %v7054_v6, %v12160_v26 }
0x133a   : > { %v7018_v14 = vpop.permute.xlu2 %7017 }
0x133b   : > { %v7038_v50 = vsel %vm1159_vm2, 0.0, %v7018_v14 }
0x133c   : > { %v12124_v36 = vsel %vm7043_vm7, %v7038_v50, 0.0 }
0x133d   : > { %v7083_v17 = vmul.f32 %v7078_v13, %v12124_v36  ;;  %v7058_v25 = vmul.f32 %v7054_v6, %v12124_v36 }
0x133f   : > { %v7098_v42 = vpack.c.bf16 %v7083_v17, %v7082_v2  ;;  %v7072_v63 = vpack.c.bf16 %v7058_v25, %v7057_v4 }
0x1341   : > { %7127 = vrot.lane.b32.xlu1 %v7098_v42, %s12593_s0 }
0x1349   : > { %7463 = vrot.lane.b32.xlu1 %v7461_v34, %s12594_s1  ;;  %s12595_s1 = smov 4  }
0x1352   : > { %v7026_v0 = vpop.permute.xlu0 %7025 }
0x1353   : > { %v7042_v52 = vsel %vm1159_vm2, 0.0, %v7026_v0 }
0x1354   : > { %v12138_v24 = vsel %vm7043_vm7, %v7042_v52, 0.0 }
0x1355   : > { %v7087_v28 = vmul.f32 %v7078_v13, %v12138_v24  ;;  %v7062_v48 = vmul.f32 %v7054_v6, %v12138_v24 }
0x1357   : > { %v7100_v7 = vpack.c.bf16 %v7087_v28, %v7086_v3  ;;  %v7074_v29 = vpack.c.bf16 %v7062_v48, %v7061_v31 }
0x1359   : > { %7131 = vrot.lane.b32.xlu2 %v7100_v7, %s12593_s0  ;;  %7214 = vmatpush.bf16.msra.mxu0 %v7074_v29 }
0x135a   : > { %v7022_v56 = vpop.permute.xlu0 %7021 }
0x135b   : > { %v7040_v21 = vsel %vm1159_vm2, 0.0, %v7022_v56 }
0x135c   : > { %v12151_v22 = vsel %vm7043_vm7, %v7040_v21, 0.0 }
0x135d   : > { %v7085_v11 = vmul.f32 %v7078_v13, %v12151_v22  ;;  %v7060_v10 = vmul.f32 %v7054_v6, %v12151_v22 }
0x135f   : > { %v7099_v39 = vpack.c.bf16 %v7085_v11, %v7084_v59  ;;  %v7073_v1 = vpack.c.bf16 %v7060_v10, %v7059_v35 }
0x1361   : > { %7129 = vrot.lane.b32.xlu0 %v7099_v39, %s12593_s0  ;;  %7215 = vmatpush.bf16.msra.mxu0 %v7073_v1 }
0x1362   : > { %v7012_v5 = vpop.permute.xlu0 %7011 }
0x1363   : > { %v7035_v41 = vsel %vm1159_vm2, 0.0, %v7012_v5  ;;  %vm8197_vm2 = vcmask 31744  }
0x1364   : > { %v12166_v30 = vsel %vm7043_vm7, %v7035_v41, 0.0 }
0x1365   : > { %7216 = vmatpush.bf16.msra.mxu0 %v7072_v63  ;;  %v7080_v23 = vmul.f32 %v7078_v13, %v12166_v30  ;;  %v7055_v40 = vmul.f32 %v7054_v6, %v12166_v30 }
0x1367   : > { %v7097_v49 = vpack.c.bf16 %v7081_v61, %v7080_v23  ;;  %v7071_v33 = vpack.c.bf16 %v7056_v44, %v7055_v40 }
0x1369   : > { %7352 = vrot.lane.b32.xlu0 %v7350_v53, %s12579_s22  ;;  %7125 = vrot.lane.b32.xlu2 %v7097_v49, %s12593_s0  ;;  %s12598_s0 = sld [smem:[#allocation22_spill]] }
0x136a   : > { %7217 = vmatpush.bf16.msra.mxu0 %v7071_v33 }
0x1371   : > { %7574 = vrot.lane.b32.xlu0 %v7572_v43, %s12595_s1  ;;  %7241 = vrot.lane.b32.xlu2 %v7239_v54, %s12579_s22  ;;  %s12596_s22 = smov 126   ;;  %v10644_v54 = vld [vmem:[%s12591_s2 + $0x8] ss:$0 sm:$0xff] }
0x13b3   : > { %v7128_v45 = vpop.permute.xlu1 %7127  ;;  %v7132_v47 = vpop.permute.xlu2 %7131 }
0x13b4   : > { %7153 = vmatpush.bf16.msrb.mxu3 %v7132_v47 }
0x13bb   : > { %v7464_v19 = vpop.permute.xlu1 %7463 }
0x13bc   : > { %v7470_v58 = vmul.f32 %v7464_v19, %v12147_v32  ;;  %v7471_v46 = vmul.f32 %v7464_v19, %v12151_v22  ;;  %v7468_v55 = vmul.f32 %v7464_v19, %v12120_v51  ;;  %v7469_v13 = vmul.f32 %v7464_v19, %v12124_v36 }
0x13bd   : > { %v7472_v15 = vmul.f32 %v7464_v19, %v12133_v9  ;;  %v7473_v20 = vmul.f32 %v7464_v19, %v12138_v24  ;;  %v7466_v34 = vmul.f32 %v7464_v19, %v12166_v30  ;;  %v7467_v18 = vmul.f32 %v7464_v19, %v12160_v26 }
0x13be   : > { %v7485_v57 = vpack.c.bf16 %v7471_v46, %v7470_v58  ;;  %v7484_v62 = vpack.c.bf16 %v7469_v13, %v7468_v55  ;;  %v7794_v46 = vperm.slane %v12073_v16, 7  ;;  %v10499_v13 = vld [vmem:[%s12598_s0] sm:$0xff] }
0x13bf   : > { %v7486_v17 = vpack.c.bf16 %v7473_v20, %v7472_v15  ;;  %v7483_v6 = vpack.c.bf16 %v7467_v18, %v7466_v34  ;;  %9990 = vmatmul.msk.bf16.vlgmr.msra.gmra.mxu0 %vm4435_vm9, %v10499_v13  ;;  %v10500_v15 = vld [vmem:[%s12598_s0 + $0x8] sm:$0xff]  ;;  %v10503_v20 = vld [vmem:[%s12598_s0 + $0x20] sm:$0xff]  ;;  %v10505_v18 = vld [vmem:[%s12598_s0 + $0x30] sm:$0xff] }
0x13c0   : > { %7515 = vrot.lane.b32.xlu2 %v7485_v57, %s10791_s3  ;;  %v7683_v57 = vperm.slane %v12073_v16, 6  ;;  %v10501_v16 = vld [vmem:[%s12598_s0 + $0x10] sm:$0xff]  ;;  %v10520_v13 = vld [vmem:[%s12598_s0 + $0xa8] sm:$0xff] }
0x13c3   : > { %v7126_v37 = vpop.permute.xlu2 %7125 }
0x13c8   : > { %7513 = vrot.lane.b32.xlu2 %v7484_v62, %s10791_s3 }
0x13cb   : > { %v7242_v14 = vpop.permute.xlu2 %7241 }
0x13cc   : > { %v7248_v50 = vmul.f32 %v7242_v14, %v12147_v32  ;;  %v7249_v2 = vmul.f32 %v7242_v14, %v12151_v22  ;;  %v7250_v3 = vmul.f32 %v7242_v14, %v12133_v9  ;;  %v7251_v28 = vmul.f32 %v7242_v14, %v12138_v24 }
0x13cd   : > { %v7244_v11 = vmul.f32 %v7242_v14, %v12166_v30  ;;  %v7245_v35 = vmul.f32 %v7242_v14, %v12160_v26  ;;  %v7246_v33 = vmul.f32 %v7242_v14, %v12120_v51  ;;  %v7247_v43 = vmul.f32 %v7242_v14, %v12124_v36 }
0x13ce   : > { %v7263_v42 = vpack.c.bf16 %v7249_v2, %v7248_v50  ;;  %v7264_v12 = vpack.c.bf16 %v7251_v28, %v7250_v3  ;;  %v10504_v50 = vld [vmem:[%s12598_s0 + $0x28] sm:$0xff] }
0x13cf   : > { %v7261_v4 = vpack.c.bf16 %v7245_v35, %v7244_v11  ;;  %9991 = vmatmul.msk.bf16.gmra.mxu0 %vm4435_vm9, %v10500_v15  ;;  %v10511_v35 = vld [vmem:[%s12598_s0 + $0x60] sm:$0xff] }
0x13d0   : > { %7517 = vrot.lane.b32.xlu2 %v7486_v17, %s10791_s3  ;;  %7293 = vrot.lane.b32.xlu0 %v7263_v42, %s12596_s22  ;;  %v10502_v17 = vld [vmem:[%s12598_s0 + $0x18] sm:$0xff] }
0x13d3   : > { %v7130_v0 = vpop.permute.xlu0 %7129 }
0x13d4   : > { %7154 = vmatpush.bf16.msrb.mxu3 %v7130_v0 }
0x13d8   : > { %7155 = vmatpush.bf16.msrb.mxu3 %v7128_v45  ;;  %7511 = vrot.lane.b32.xlu0 %v7483_v6, %s10791_s3  ;;  %s12597_s3 = smov 124   ;;  %v7262_v45 = vpack.c.bf16 %v7247_v43, %v7246_v33 }
0x13db   : > { %v7353_v52 = vpop.permute.xlu0 %7352 }
0x13dc   : > { %7156 = vmatpush.bf16.msrb.mxu3 %v7126_v37  ;;  %v7359_v31 = vmul.f32 %v7353_v52, %v12147_v32  ;;  %v7360_v48 = vmul.f32 %v7353_v52, %v12151_v22  ;;  %v7355_v38 = vmul.f32 %v7353_v52, %v12166_v30  ;;  %v7356_v7 = vmul.f32 %v7353_v52, %v12160_v26 }
0x13dd   : > { %v7357_v21 = vmul.f32 %v7353_v52, %v12120_v51  ;;  %v7358_v59 = vmul.f32 %v7353_v52, %v12124_v36  ;;  %v7361_v5 = vmul.f32 %v7353_v52, %v12133_v9  ;;  %v7362_v41 = vmul.f32 %v7353_v52, %v12138_v24 }
0x13de   : > { %v7374_v29 = vpack.c.bf16 %v7360_v48, %v7359_v31  ;;  %v7372_v56 = vpack.c.bf16 %v7356_v7, %v7355_v38  ;;  %v10506_v31 = vld [vmem:[%s12598_s0 + $0x38] sm:$0xff] }
0x13df   : > { %v7373_v1 = vpack.c.bf16 %v7358_v59, %v7357_v21  ;;  %v7375_v40 = vpack.c.bf16 %v7362_v41, %v7361_v5  ;;  %9970 = vmatmul.msk.bf16.vlgmr.msrb.gmra.mxu3 %vm4435_vm9, %v10503_v20  ;;  %9992 = vmatmul.msk.bf16.gmra.mxu0 %vm4435_vm9, %v10501_v16 }
0x13e0   : > { %7404 = vrot.lane.b32.xlu1 %v7374_v29, %s12596_s22  ;;  %7400 = vrot.lane.b32.xlu2 %v7372_v56, %s12596_s22 }
0x13e1   : > { %7295 = vrot.lane.b32.xlu0 %v7264_v12, %s12596_s22 }
0x13e3   : > { %v7575_v10 = vpop.permute.xlu0 %7574 }
0x13e4   : > { %v7583_v27 = vmul.f32 %v7575_v10, %v12133_v9  ;;  %v7584_v39 = vmul.f32 %v7575_v10, %v12138_v24  ;;  %v7577_v63 = vmul.f32 %v7575_v10, %v12166_v30  ;;  %v7578_v61 = vmul.f32 %v7575_v10, %v12160_v26 }
0x13e5   : > { %v7579_v53 = vmul.f32 %v7575_v10, %v12120_v51  ;;  %v7580_v23 = vmul.f32 %v7575_v10, %v12124_v36  ;;  %v7581_v47 = vmul.f32 %v7575_v10, %v12147_v32  ;;  %v7582_v19 = vmul.f32 %v7575_v10, %v12151_v22  ;;  %v10515_v10 = vld [vmem:[%s12598_s0 + $0x80] sm:$0xff] }
0x13e6   : > { %v7597_v25 = vpack.c.bf16 %v7584_v39, %v7583_v27  ;;  %v7594_v44 = vpack.c.bf16 %v7578_v61, %v7577_v63  ;;  %v10507_v39 = vld [vmem:[%s12598_s0 + $0x40] sm:$0xff] }
0x13e7   : > { %v7595_v49 = vpack.c.bf16 %v7580_v23, %v7579_v53  ;;  %v7596_v58 = vpack.c.bf16 %v7582_v19, %v7581_v47 }
0x13e8   : > { %7402 = vrot.lane.b32.xlu1 %v7373_v1, %s12596_s22  ;;  %7289 = vrot.lane.b32.xlu2 %v7261_v4, %s12596_s22  ;;  %v10519_v4 = vld [vmem:[%s12598_s0 + $0xa0] sm:$0xff] }
0x13e9   : > { %7628 = vrot.lane.b32.xlu0 %v7597_v25, %s12597_s3 }
0x13ef   : > { %9971 = vmatmul.msk.bf16.gmra.mxu3 %vm4435_vm9, %v10504_v50  ;;  %9993 = vmatmul.msk.bf16.gmra.mxu0 %vm4435_vm9, %v10502_v17 }
0x13f0   : > { %7406 = vrot.lane.b32.xlu1 %v7375_v40, %s12596_s22  ;;  %7622 = vrot.lane.b32.xlu2 %v7594_v44, %s12597_s3 }
0x13f1   : > { %7624 = vrot.lane.b32.xlu0 %v7595_v49, %s12597_s3 }
0x13f8   : > { %7291 = vrot.lane.b32.xlu1 %v7262_v45, %s12596_s22  ;;  %v10512_v45 = vld [vmem:[%s12598_s0 + $0x68] sm:$0xff]  ;;  %s12604_s22 = sld [smem:[#allocation27_spill]] }
0x13f9   : > { %7907 = vrot.lane.b32.xlu0 %v10644_v54, %s12599_s4  ;;  %s12602_s4 = smov 123  }
0x13ff   : > { %9972 = vmatmul.msk.bf16.gmra.mxu3 %vm4435_vm9, %v10505_v18  ;;  %v10521_v18 = vld [vmem:[%s12598_s0 + $0xb0] sm:$0xff] }
0x1400   : > { %7626 = vrot.lane.b32.xlu1 %v7596_v58, %s12597_s3 }
0x1408   : > { %7796 = vrot.lane.b32.xlu1 %v7794_v46, %s12600_s5  ;;  %s12601_s5 = smov 122   ;;  %v10508_v46 = vld [vmem:[%s12598_s0 + $0x48] sm:$0xff] }
0x140f   : > { %9973 = vmatmul.msk.bf16.gmra.mxu3 %vm4435_vm9, %v10506_v31  ;;  %v10518_v31 = vld [vmem:[%s12598_s0 + $0x98] sm:$0xff] }
0x1410   : > { %7685 = vrot.lane.b32.xlu1 %v7683_v57, %s12595_s1  ;;  %s12603_s1 = sld [smem:[#allocation23_spill]] }
0x1416   : > { %v5981_v50 = vld [vmem:[%s12603_s1 + $0x20] sm:$0xff] }
0x141a   : > { %v7516_v55 = vpop.permute.xlu2 %7515 }
0x1422   : > { %v7514_v37 = vpop.permute.xlu2 %7513 }
0x142a   : > { %v7518_v62 = vpop.permute.xlu2 %7517 }
0x142b   : > { %7539 = vmatpush.bf16.msra.mxu3 %v7518_v62 }
0x142f   : > { %7540 = vmatpush.bf16.msra.mxu3 %v7516_v55 }
0x1433   : > { %7541 = vmatpush.bf16.msra.mxu3 %v7514_v37  ;;  %v5978_v37 = vld [vmem:[%s12603_s1 + $0x8] sm:$0xff] }
0x143a   : > { %v7401_v28 = vpop.permute.xlu2 %7400 }
0x1442   : > { %v7294_v14 = vpop.permute.xlu0 %7293  ;;  %v7290_v56 = vpop.permute.xlu2 %7289 }
0x144a   : > { %v7512_v2 = vpop.permute.xlu0 %7511  ;;  %v7623_v1 = vpop.permute.xlu2 %7622 }
0x144b   : > { %7542 = vmatpush.bf16.msra.mxu3 %v7512_v2 }
0x144e   : > { %10074 = vmatmul.msk.bf16.vlgmr.msra.gmra.mxu3 %vm4435_vm9, %v10515_v10 }
0x1452   : > { %v7405_v42 = vpop.permute.xlu1 %7404 }
0x1453   : > { %v7296_v34 = vpop.permute.xlu0 %7295 }
0x1454   : > { %7317 = vmatpush.bf16.msra.mxu1 %v7296_v34 }
0x1458   : > { %7318 = vmatpush.bf16.msra.mxu1 %v7294_v14  ;;  %v10513_v14 = vld [vmem:[%s12598_s0 + $0x70] sm:$0xff] }
0x145a   : > { %v7403_v0 = vpop.permute.xlu1 %7402 }
0x145b   : > { %v7629_v6 = vpop.permute.xlu0 %7628 }
0x145c   : > { %7650 = vmatpush.bf16.msrb.mxu0 %v7629_v6  ;;  %v5984_v6 = vld [vmem:[%s12603_s1 + $0x38] sm:$0xff] }
0x1462   : > { %v7407_v52 = vpop.permute.xlu1 %7406 }
0x1463   : > { %v7625_v3 = vpop.permute.xlu0 %7624  ;;  %7428 = vmatpush.bf16.msra.mxu2 %v7407_v52 }
0x1467   : > { %7429 = vmatpush.bf16.msra.mxu2 %v7405_v42  ;;  %v10517_v42 = vld [vmem:[%s12598_s0 + $0x90] sm:$0xff] }
0x146a   : > { %v7292_v48 = vpop.permute.xlu1 %7291 }
0x146b   : > { %v7908_v38 = vpop.permute.xlu0 %7907  ;;  %7319 = vmatpush.bf16.msra.mxu1 %v7292_v48  ;;  %7430 = vmatpush.bf16.msra.mxu2 %v7403_v0  ;;  %v5977_v0 = vld [vmem:[%s12603_s1] sm:$0xff]  ;;  %v10510_v48 = vld [vmem:[%s12598_s0 + $0x58] sm:$0xff] }
0x146c   : > { %v7914_v7 = vmul.f32 %v7908_v38, %v12147_v32  ;;  %v7915_v29 = vmul.f32 %v7908_v38, %v12151_v22  ;;  %v7916_v59 = vmul.f32 %v7908_v38, %v12133_v9  ;;  %v7917_v11 = vmul.f32 %v7908_v38, %v12138_v24 }
0x146d   : > { %v7912_v5 = vmul.f32 %v7908_v38, %v12120_v51  ;;  %v7913_v41 = vmul.f32 %v7908_v38, %v12124_v36  ;;  %v7910_v33 = vmul.f32 %v7908_v38, %v12166_v30 }
0x146e   : > { %v7929_v12 = vpack.c.bf16 %v7915_v29, %v7914_v7  ;;  %v7930_v27 = vpack.c.bf16 %v7917_v11, %v7916_v59  ;;  %v5982_v7 = vld [vmem:[%s12603_s1 + $0x28] sm:$0xff]  ;;  %v5983_v29 = vld [vmem:[%s12603_s1 + $0x30] sm:$0xff] }
0x146f   : > { %7320 = vmatpush.bf16.msra.mxu1 %v7290_v56  ;;  %7431 = vmatpush.bf16.msra.mxu2 %v7401_v28  ;;  %v7928_v23 = vpack.c.bf16 %v7913_v41, %v7912_v5  ;;  %v8074_v28 = vld [vmem:[%s12604_s22 + $0x10] sm:$0xff] }
0x1470   : > { %7959 = vrot.lane.b32.xlu0 %v7929_v12, %s12601_s5 }
0x1472   : > { %v7627_v21 = vpop.permute.xlu1 %7626  ;;  %10046 = vmatmul.msk.bf16.vlgmr.msra.gmra.mxu2 %vm4435_vm9, %v10511_v35  ;;  %10018 = vmatmul.msk.bf16.vlgmr.msra.gmra.mxu1 %vm4435_vm9, %v10507_v39 }
0x1473   : > { %7651 = vmatpush.bf16.msrb.mxu0 %v7627_v21 }
0x1477   : > { %7652 = vmatpush.bf16.msrb.mxu0 %v7625_v3  ;;  %v5979_v3 = vld [vmem:[%s12603_s1 + $0x10] sm:$0xff] }
0x1478   : > { %7961 = vrot.lane.b32.xlu0 %v7930_v27, %s12601_s5 }
0x147a   : > { %v7797_v25 = vpop.permute.xlu1 %7796 }
0x147b   : > { %7653 = vmatpush.bf16.msrb.mxu0 %v7623_v1  ;;  %v7803_v63 = vmul.f32 %v7797_v25, %v12147_v32  ;;  %v7804_v61 = vmul.f32 %v7797_v25, %v12151_v22  ;;  %v7805_v40 = vmul.f32 %v7797_v25, %v12133_v9  ;;  %v7806_v44 = vmul.f32 %v7797_v25, %v12138_v24  ;;  %v7219_v1 = vpop.f32.mrf.mxu0 }
0x147c   : > { %v7801_v57 = vmul.f32 %v7797_v25, %v12120_v51  ;;  %v7802_v55 = vmul.f32 %v7797_v25, %v12124_v36  ;;  %v7799_v20 = vmul.f32 %v7797_v25, %v12166_v30  ;;  %v7800_v16 = vmul.f32 %v7797_v25, %v12160_v26  ;;  %v7158_v25 = vpop.f32.mrf.mxu3 }
0x147d   : > { %v7818_v53 = vpack.c.bf16 %v7804_v61, %v7803_v63  ;;  %v7819_v19 = vpack.c.bf16 %v7806_v44, %v7805_v40  ;;  %v12336_v61 = vadd.f32 %v7219_v1, %v7158_v25 }
0x147e   : > { %10102 = vmatmul.msk.bf16.vlgmr.msrb.gmra.mxu0 %vm4435_vm9, %v10519_v4  ;;  %v7817_v15 = vpack.c.bf16 %v7802_v55, %v7801_v57  ;;  %v7816_v17 = vpack.c.bf16 %v7800_v16, %v7799_v20 }
0x147f   : > { %8158 = vmatpush.bf16.msra.mxu0 %v11983_v8  ;;  %7848 = vrot.lane.b32.xlu2 %v7818_v53, %s12602_s4  ;;  %v7911_v8 = vmul.f32 %v7908_v38, %v12160_v26  ;;  %v10522_v38 = vld [vmem:[%s12598_s0 + $0xb8] sm:$0xff] }
0x1480   : > { %7957 = vrot.lane.b32.xlu0 %v7928_v23, %s12601_s5 }
0x1481   : > { %v7927_v58 = vpack.c.bf16 %v7911_v8, %v7910_v33 }
0x1482   : > { %v7686_v49 = vpop.permute.xlu1 %7685  ;;  %10047 = vmatmul.msk.bf16.gmra.mxu2 %vm4435_vm9, %v10512_v45  ;;  %10019 = vmatmul.msk.bf16.gmra.mxu1 %vm4435_vm9, %v10508_v46 }
0x1483   : > { %8159 = vmatpush.bf16.msra.mxu0 %v11986_v60  ;;  %v7692_v43 = vmul.f32 %v7686_v49, %v12147_v32  ;;  %v7693_v54 = vmul.f32 %v7686_v49, %v12151_v22  ;;  %v10516_v60 = vld [vmem:[%s12598_s0 + $0x88] sm:$0xff]  ;;  %v7694_v32 = vmul.f32 %v7686_v49, %v12133_v9  ;;  %v7695_v22 = vmul.f32 %v7686_v49, %v12138_v24  ;;  %v7221_v4 = vpop.f32.mrf.mxu0 }
0x1484   : > { %10075 = vmatmul.msk.bf16.gmra.mxu3 %vm4435_vm9, %v10516_v60  ;;  %v7690_v9 = vmul.f32 %v7686_v49, %v12120_v51  ;;  %v7691_v24 = vmul.f32 %v7686_v49, %v12124_v36  ;;  %v10509_v51 = vld [vmem:[%s12598_s0 + $0x50] sm:$0xff]  ;;  %v7688_v36 = vmul.f32 %v7686_v49, %v12166_v30  ;;  %v7689_v34 = vmul.f32 %v7686_v49, %v12160_v26  ;;  %v10514_v30 = vld [vmem:[%s12598_s0 + $0x78] sm:$0xff]  ;;  %v7160_v5 = vpop.f32.mrf.mxu3  ;;  %v10527_v60 = vld [vmem:[%s12598_s0 + $0xe0] sm:$0xff] }
0x1485   : > { %v7707_v47 = vpack.c.bf16 %v7693_v54, %v7692_v43  ;;  %v7708_v62 = vpack.c.bf16 %v7695_v22, %v7694_v32  ;;  %v5980_v26 = vld [vmem:[%s12603_s1 + $0x18] sm:$0xff]  ;;  %v12339_v49 = vadd.f32 %v7221_v4, %v7160_v5 }
0x1486   : > { %v7706_v2 = vpack.c.bf16 %v7691_v24, %v7690_v9  ;;  %v7705_v52 = vpack.c.bf16 %v7689_v34, %v7688_v36  ;;  %v10528_v24 = vld [vmem:[%s12598_s0 + $0xe8] sm:$0xff]  ;;  %v10529_v36 = vld [vmem:[%s12598_s0 + $0xf0] sm:$0xff] }
0x1487   : > { %7737 = vrot.lane.b32.xlu1 %v7707_v47, %s12597_s3  ;;  %7850 = vrot.lane.b32.xlu2 %v7819_v19, %s12602_s4 }
0x1488   : > { %7955 = vrot.lane.b32.xlu0 %v7927_v58, %s12601_s5  ;;  %s12605_s5 = smov %s12604_s22 }
0x1489   : > { %v8077_v56 = vld [vmem:[%s12605_s5 + $0x28] sm:$0xff]  ;;  %v8072_v12 = vld [vmem:[%s12605_s5] sm:$0xff]  ;;  %v8075_v11 = vld [vmem:[%s12605_s5 + $0x18] sm:$0xff] }
0x148a   : > { %v8073_v21 = vld [vmem:[%s12605_s5 + $0x8] sm:$0xff]  ;;  %v8076_v35 = vld [vmem:[%s12605_s5 + $0x20] sm:$0xff]  ;;  %v8078_v10 = vld [vmem:[%s12605_s5 + $0x30] sm:$0xff] }
0x148b   : > { %v8079_v27 = vld [vmem:[%s12605_s5 + $0x38] sm:$0xff]  ;;  %v7224_v53 = vpop.f32.mrf.mxu0 }
0x148c   : > { %v7163_v44 = vpop.f32.mrf.mxu3 }
0x148d   : > { %v12342_v54 = vadd.f32 %v7224_v53, %v7163_v44 }
0x148e   : > { %10103 = vmatmul.msk.bf16.gmra.mxu0 %vm4435_vm9, %v10520_v13  ;;  %v10531_v13 = vld [vmem:[%s12598_s0 + $0x100] sm:$0xff] }
0x148f   : > { %7739 = vrot.lane.b32.xlu1 %v7708_v62, %s12597_s3  ;;  %7846 = vrot.lane.b32.xlu2 %v7817_v15, %s12602_s4 }
0x1490   : > { %8023 = vperm.xlu0 %10637, %v5978_v37  }
0x1492   : > { %10048 = vmatmul.msk.bf16.gmra.mxu2 %vm4435_vm9, %v10513_v14  ;;  %10020 = vmatmul.msk.bf16.gmra.mxu1 %vm4435_vm9, %v10509_v51  ;;  %v10523_v51 = vld [vmem:[%s12598_s0 + $0xc0] sm:$0xff] }
0x1493   : > { %v7226_v45 = vpop.f32.mrf.mxu0 }
0x1494   : > { %10076 = vmatmul.msk.bf16.gmra.mxu3 %vm4435_vm9, %v10517_v42  ;;  %v7165_v47 = vpop.f32.mrf.mxu3 }
0x1495   : > { %v12347_v46 = vadd.f32 %v7226_v45, %v7165_v47 }
0x1497   : > { %7735 = vrot.lane.b32.xlu1 %v7706_v2, %s12597_s3  ;;  %7844 = vrot.lane.b32.xlu2 %v7816_v17, %s12602_s4  ;;  %s12606_s4 = sld [smem:[#allocation26_spill]] }
0x1498   : > { %8038 = vperm.xlu0 %10637, %v5981_v50   ;;  %v10532_v50 = vld [vmem:[%s12598_s0 + $0x108] sm:$0xff] }
0x149b   : > { %v7229_v32 = vpop.f32.mrf.mxu0 }
0x149c   : > { %v7168_v22 = vpop.f32.mrf.mxu3 }
0x149d   : > { %v10535_v59 = vld [vmem:[%s12606_s4] sm:$0xff]  ;;  %v10536_v39 = vld [vmem:[%s12606_s4 + $0x8] sm:$0xff]  ;;  %v10537_v63 = vld [vmem:[%s12606_s4 + $0x10] sm:$0xff]  ;;  %v12350_v37 = vadd.f32 %v7229_v32, %v7168_v22 }
0x149e   : > { %10104 = vmatmul.msk.bf16.gmra.mxu0 %vm4435_vm9, %v10521_v18  ;;  %v10538_v43 = vld [vmem:[%s12606_s4 + $0x18] sm:$0xff] }
0x149f   : > { %7733 = vrot.lane.b32.xlu1 %v7705_v52, %s12597_s3  ;;  %8018 = vperm.xlu2 %10639, %v5977_v0   ;;  %v10524_v52 = vld [vmem:[%s12598_s0 + $0xc8] sm:$0xff]  ;;  %s10216_s3 = sshll.u32 %s12609_s26, 6 }
0x14a0   : > { %8053 = vperm.xlu0 %10637, %v5984_v6   ;;  %v10533_v6 = vld [vmem:[%s12598_s0 + $0x110] sm:$0xff]  ;;  %s12434_s22 = scalar_lea.vmem %s10975_s19, %s10216_s3 }
0x14a2   : > { %10049 = vmatmul.msk.bf16.gmra.mxu2 %vm4435_vm9, %v10514_v30  ;;  %10021 = vmatmul.msk.bf16.gmra.mxu1 %vm4435_vm9, %v10510_v48  ;;  %v10530_v30 = vld [vmem:[%s12598_s0 + $0xf8] sm:$0xff] }
0x14a3   : > { %v7231_v62 = vpop.f32.mrf.mxu0 }
0x14a4   : > { %10077 = vmatmul.msk.bf16.gmra.mxu3 %vm4435_vm9, %v10518_v31  ;;  %v7170_v15 = vpop.f32.mrf.mxu3 }
0x14a5   : > { %v12355_v20 = vadd.f32 %v7231_v62, %v7170_v15 }
0x14a7   : > { %8028 = vperm.xlu1 %10638, %v5979_v3   ;;  %8033 = vperm.xlu2 %10639, %v5980_v26   ;;  %v10534_v3 = vld [vmem:[%s12598_s0 + $0x118] sm:$0xff]  ;;  %v10525_v26 = vld [vmem:[%s12598_s0 + $0xd0] sm:$0xff] }
0x14a8   : > { %8092 = vperm.xlu0 %10637, %v8074_v28  }
0x14ab   : > { %v7234_v14 = vpop.f32.mrf.mxu0 }
0x14ac   : > { %v7173_v2 = vpop.f32.mrf.mxu3 }
0x14ad   : > { %v12358_v17 = vadd.f32 %v7234_v14, %v7173_v2 }
0x14ae   : > { %10105 = vmatmul.msk.bf16.gmra.mxu0 %vm4435_vm9, %v10522_v38 }
0x14af   : > { %8043 = vperm.xlu1 %10638, %v5982_v7   ;;  %8048 = vperm.xlu2 %10639, %v5983_v29   ;;  %v10526_v7 = vld [vmem:[%s12598_s0 + $0xd8] sm:$0xff] }
0x14b0   : > { %8107 = vperm.xlu0 %10637, %v8077_v56  }
0x14b3   : > { %v7236_v34 = vpop.f32.mrf.mxu0 }
0x14b4   : > { %v7175_v18 = vpop.f32.mrf.mxu3 }
0x14b5   : > { %v12365_v0 = vadd.f32 %v7236_v34, %v7175_v18 }
0x14b7   : > { %8082 = vperm.xlu1 %10638, %v8072_v12   ;;  %8087 = vperm.xlu2 %10639, %v8073_v21  }
0x14be   : > { %10206 = vmatmul.msk.bf16.vlgmr.msra.gmra.mxu0 %vm1619_vm8, %v10535_v59 }
0x14bf   : > { %8097 = vperm.xlu1 %10638, %v8075_v11   ;;  %8102 = vperm.xlu2 %10639, %v8076_v35  }
0x14c7   : > { %8112 = vperm.xlu1 %10638, %v8078_v10   ;;  %8117 = vperm.xlu2 %10639, %v8079_v27  }
0x14ce   : > { %10207 = vmatmul.msk.bf16.gmra.mxu0 %vm1619_vm8, %v10536_v39 }
0x14d1   : > { %v7544_v48 = vpop.f32.mrf.mxu3 }
0x14d9   : > { %v7849_v41 = vpop.permute.xlu2 %7848  ;;  %v7546_v12 = vpop.f32.mrf.mxu3 }
0x14de   : > { %10208 = vmatmul.msk.bf16.gmra.mxu0 %vm1619_vm8, %v10537_v63 }
0x14e1   : > { %v7851_v23 = vpop.permute.xlu2 %7850 }
0x14e2   : > { %v7960_v40 = vpop.permute.xlu0 %7959  ;;  %7872 = vmatpush.bf16.msrb.mxu2 %v7851_v23 }
0x14e6   : > { %7873 = vmatpush.bf16.msrb.mxu2 %v7849_v41 }
0x14e9   : > { %v7847_v33 = vpop.permute.xlu2 %7846 }
0x14ea   : > { %v7962_v8 = vpop.permute.xlu0 %7961  ;;  %7874 = vmatpush.bf16.msrb.mxu2 %v7847_v33 }
0x14eb   : > { %7983 = vmatpush.bf16.msrb.mxu3 %v7962_v8 }
0x14ee   : > { %10209 = vmatmul.msk.bf16.gmra.mxu0 %vm1619_vm8, %v10538_v43 }
0x14ef   : > { %7984 = vmatpush.bf16.msrb.mxu3 %v7960_v40  ;;  %v7322_v56 = vpop.f32.mrf.mxu1 }
0x14f0   : > { %v7342_v22 = vadd.f32 %v7322_v56, %v12336_v61 }
0x14f1   : > { %v7845_v19 = vpop.permute.xlu2 %7844 }
0x14f2   : > { %v7958_v58 = vpop.permute.xlu0 %7957  ;;  %7875 = vmatpush.bf16.msrb.mxu2 %v7845_v19 }
0x14f3   : > { %7985 = vmatpush.bf16.msrb.mxu3 %v7958_v58 }
0x14f5   : > { %10158 = vmatmul.msk.bf16.vlgmr.msrb.gmra.mxu2 %vm4435_vm9, %v10527_v60  ;;  %v7433_v31 = vpop.f32.mrf.mxu2 }
0x14f6   : > { %v7453_v62 = vadd.f32 %v7433_v31, %v7342_v22 }
0x14f7   : > { %v7324_v11 = vpop.f32.mrf.mxu1 }
0x14f8   : > { %v7343_v14 = vadd.f32 %v7324_v11, %v12339_v49 }
0x14f9   : > { %v7738_v57 = vpop.permute.xlu1 %7737  ;;  %v8019_v58 = vpop.permute.xlu2 %8018 }
0x14fa   : > { %v7956_v55 = vpop.permute.xlu0 %7955 }
0x14fb   : > { %7986 = vmatpush.bf16.msrb.mxu3 %v7956_v55  ;;  %v7655_v28 = vpop.f32.mrf.mxu0 }
0x14fd   : > { %v7435_v29 = vpop.f32.mrf.mxu2 }
0x14fe   : > { %10186 = vmatmul.msk.bf16.vlgmr.msrb.gmra.mxu3 %vm4435_vm9, %v10531_v13 }
0x14ff   : > { %v7327_v39 = vpop.f32.mrf.mxu1 }
0x1501   : > { %v7740_v9 = vpop.permute.xlu1 %7739 }
0x1502   : > { %7761 = vmatpush.bf16.msrb.mxu1 %v7740_v9  ;;  %v8024_v15 = vpop.permute.xlu0 %8023 }
0x1503   : > { %v7657_v38 = vpop.f32.mrf.mxu0 }
0x1505   : > { %10159 = vmatmul.msk.bf16.gmra.mxu2 %vm4435_vm9, %v10528_v24  ;;  %v7438_v59 = vpop.f32.mrf.mxu2  ;;  %v12422_v24 = vpop.permute.xlu2 %8033 }
0x1506   : > { %7762 = vmatpush.bf16.msrb.mxu1 %v7738_v57 }
0x1507   : > { %v7549_v35 = vpop.f32.mrf.mxu3  ;;  %v7329_v5 = vpop.f32.mrf.mxu1 }
0x1509   : > { %v7736_v16 = vpop.permute.xlu1 %7735 }
0x150a   : > { %7763 = vmatpush.bf16.msrb.mxu1 %v7736_v16  ;;  %v7564_v16 = vadd.f32 %v7544_v48, %v7453_v62 }
0x150b   : > { %v12379_v21 = vpop.f32.mrf.mxu0 }
0x150d   : > { %v12383_v27 = vpop.f32.mrf.mxu2 }
0x150e   : > { %10187 = vmatmul.msk.bf16.gmra.mxu3 %vm4435_vm9, %v10532_v50 }
0x150f   : > { %v12385_v1 = vpop.f32.mrf.mxu3  ;;  %v12397_v23 = vpop.f32.mrf.mxu1 }
0x1511   : > { %v7734_v42 = vpop.permute.xlu1 %7733 }
0x1512   : > { %7764 = vmatpush.bf16.msrb.mxu1 %v7734_v42 }
0x1513   : > { %v12381_v10 = vpop.f32.mrf.mxu0 }
0x1515   : > { %10130 = vmatmul.msk.bf16.vlgmr.msrb.gmra.mxu1 %vm4435_vm9, %v10523_v51  ;;  %10160 = vmatmul.msk.bf16.gmra.mxu2 %vm4435_vm9, %v10529_v36  ;;  %v12389_v4 = vpop.f32.mrf.mxu2  ;;  %v7454_v51 = vadd.f32 %v7435_v29, %v7343_v14  ;;  %v7675_v36 = vadd.f32 %v7655_v28, %v7564_v16 }
0x1517   : > { %v12391_v41 = vpop.f32.mrf.mxu3  ;;  %v12405_v8 = vpop.f32.mrf.mxu1 }
0x1519   : > { %v12417_v32 = vpop.permute.xlu1 %8028 }
0x151b   : > { %v12387_v25 = vpop.f32.mrf.mxu0 }
0x151d   : > { %v12395_v53 = vpop.f32.mrf.mxu2 }
0x151e   : > { %10188 = vmatmul.msk.bf16.gmra.mxu3 %vm4435_vm9, %v10533_v6  ;;  %v12427_v6 = vpop.permute.xlu0 %8038 }
0x151f   : > { %v12399_v40 = vpop.f32.mrf.mxu3  ;;  %v12413_v19 = vpop.f32.mrf.mxu1 }
0x1521   : > { %v12425_v50 = vpop.permute.xlu1 %8043 }
0x1523   : > { %v12393_v63 = vpop.f32.mrf.mxu0 }
0x1525   : > { %10131 = vmatmul.msk.bf16.gmra.mxu1 %vm4435_vm9, %v10524_v52  ;;  %10161 = vmatmul.msk.bf16.gmra.mxu2 %vm4435_vm9, %v10530_v30  ;;  %v12403_v33 = vpop.f32.mrf.mxu2  ;;  %v7565_v52 = vadd.f32 %v7546_v12, %v7454_v51  ;;  %v7344_v30 = vadd.f32 %v7327_v39, %v12342_v54  ;;  %v7345_v39 = vadd.f32 %v7329_v5, %v12347_v46 }
0x1527   : > { %v12407_v43 = vpop.f32.mrf.mxu3  ;;  %v12420_v9 = vpop.f32.mrf.mxu1  ;;  %v7676_v29 = vadd.f32 %v7657_v38, %v7565_v52  ;;  %v7456_v14 = vadd.f32 %v12383_v27, %v7345_v39  ;;  %v7348_v39 = vadd.f32 %v12413_v19, %v12358_v17 }
0x1529   : > { %v8083_v31 = vpop.permute.xlu1 %8082  ;;  %v7567_v5 = vadd.f32 %v12385_v1, %v7456_v14 }
0x152b   : > { %v12401_v44 = vpop.f32.mrf.mxu0 }
0x152d   : > { %v12411_v47 = vpop.f32.mrf.mxu2 }
0x152e   : > { %10189 = vmatmul.msk.bf16.gmra.mxu3 %vm4435_vm9, %v10534_v3 }
0x152f   : > { %v12415_v60 = vpop.f32.mrf.mxu3 }
0x1533   : > { %v12409_v45 = vpop.f32.mrf.mxu0 }
0x1535   : > { %10132 = vmatmul.msk.bf16.gmra.mxu1 %vm4435_vm9, %v10525_v26  ;;  %v12430_v26 = vpop.permute.xlu2 %8048 }
0x153b   : > { %v8161_v55 = vpop.f32.mrf.mxu0 }
0x153c   : > { %v8162_v48 = vadd.f32 %v8161_v55, %v8083_v31  ;;  %v12437_v55 = vpop.permute.xlu0 %8053  ;;  %v7678_v31 = vadd.f32 %v12381_v10, %v7567_v5 }
0x1543   : > { %v8163_v42 = vpop.f32.mrf.mxu0 }
0x1545   : > { %10133 = vmatmul.msk.bf16.gmra.mxu1 %vm4435_vm9, %v10526_v7  ;;  %v7455_v7 = vadd.f32 %v7438_v59, %v7344_v30  ;;  %v8088_v59 = vpop.permute.xlu2 %8087 }
0x1547   : > { %v7566_v12 = vadd.f32 %v7549_v35, %v7455_v7 }
0x154b   : > { %v8166_v22 = vpop.f32.mrf.mxu0 }
0x1553   : > { %v8168_v46 = vpop.f32.mrf.mxu0 }
0x1578   : > { %v7877_v57 = vpop.f32.mrf.mxu2 }
0x1580   : > { %v7879_v2 = vpop.f32.mrf.mxu2 }
0x1581   : > { %v7988_v13 = vpop.f32.mrf.mxu3 }
0x1588   : > { %v7882_v11 = vpop.f32.mrf.mxu2 }
0x1589   : > { %v7990_v34 = vpop.f32.mrf.mxu3 }
0x1590   : > { %v7884_v52 = vpop.f32.mrf.mxu2 }
0x1591   : > { %v7993_v54 = vpop.f32.mrf.mxu3 }
0x1592   : > { %v7766_v61 = vpop.f32.mrf.mxu1 }
0x1593   : > { %v7786_v18 = vadd.f32 %v7766_v61, %v7675_v36  ;;  %v7677_v36 = vadd.f32 %v12379_v21, %v7566_v12 }
0x1595   : > { %v7897_v3 = vadd.f32 %v7877_v57, %v7786_v18 }
0x1597   : > { %v8008_v49 = vadd.f32 %v7988_v13, %v7897_v3 }
0x1599   : > { %v8056_v56 = vadd.f32 %v8019_v58, %v8008_v49  ;;  %v8164_v58 = vadd.f32 %v8163_v42, %v8088_v59  ;;  %v7995_v3 = vpop.f32.mrf.mxu3  ;;  %v8103_v59 = vpop.permute.xlu2 %8102 }
0x159a   : > { %v7768_v28 = vpop.f32.mrf.mxu1 }
0x159b   : > { %v8181_v62 = vadd.f32 %v8162_v48, %v8056_v56  ;;  %v7787_v16 = vadd.f32 %v7768_v28, %v7676_v29  ;;  %v7887_v28 = vpop.f32.mrf.mxu2 }
0x159d   : > { %v8189_v57 = vmax.f32 %v8181_v62, 0.0  ;;  %v7898_v13 = vadd.f32 %v7879_v2, %v7787_v16  ;;  %v7346_v2 = vadd.f32 %v12397_v23, %v12350_v37  ;;  %v7347_v23 = vadd.f32 %v12405_v8, %v12355_v20 }
0x159f   : > { %8198 = vst.msk [vmem:[%s12434_s22] sm:$0xff] %vm8197_vm2, %v8189_v57  ;;  %v8009_v38 = vadd.f32 %v7990_v34, %v7898_v13  ;;  %v7457_v21 = vadd.f32 %v12389_v4, %v7346_v2  ;;  %v7458_v10 = vadd.f32 %v12395_v53, %v7347_v23 }
0x15a1   : > { %v8057_v51 = vadd.f32 %v8024_v15, %v8009_v38  ;;  %v8093_v15 = vpop.permute.xlu0 %8092  ;;  %v7568_v37 = vadd.f32 %v12391_v41, %v7457_v21  ;;  %v7569_v8 = vadd.f32 %v12399_v40, %v7458_v10 }
0x15a2   : > { %v7771_v61 = vpop.f32.mrf.mxu1  ;;  %v8167_v42 = vadd.f32 %v8166_v22, %v8093_v15  ;;  %v8098_v22 = vpop.permute.xlu1 %8097 }
0x15a3   : > { %v8182_v18 = vadd.f32 %v8164_v58, %v8057_v51  ;;  %v7788_v35 = vadd.f32 %v7771_v61, %v7677_v36  ;;  %v8169_v62 = vadd.f32 %v8168_v46, %v8098_v22  ;;  %v7679_v41 = vadd.f32 %v12387_v25, %v7568_v37  ;;  %v7889_v53 = vpop.f32.mrf.mxu2 }
0x15a4   : > { %v7459_v25 = vadd.f32 %v12403_v33, %v7348_v39  ;;  %v7680_v51 = vadd.f32 %v12393_v63, %v7569_v8 }
0x15a5   : > { %v8190_v30 = vmax.f32 %v8182_v18, 0.0  ;;  %v7899_v34 = vadd.f32 %v7882_v11, %v7788_v35  ;;  %v8171_v11 = vpop.f32.mrf.mxu0  ;;  %v7349_v18 = vadd.f32 %v12420_v9, %v12365_v0 }
0x15a6   : > { %v8172_v58 = vadd.f32 %v8171_v11, %v8103_v59  ;;  %v7570_v19 = vadd.f32 %v12407_v43, %v7459_v25 }
0x15a7   : > { %8199 = vst.msk [vmem:[%s12434_s22 + $0x8] sm:$0xff] %vm8197_vm2, %v8190_v30  ;;  %v8010_v27 = vadd.f32 %v7993_v54, %v7899_v34 }
0x15a8   : > { %v7681_v2 = vadd.f32 %v12401_v44, %v7570_v19 }
0x15a9   : > { %v8058_v49 = vadd.f32 %v12417_v32, %v8010_v27  ;;  %v7998_v32 = vpop.f32.mrf.mxu3  ;;  %v8108_v33 = vpop.permute.xlu0 %8107 }
0x15aa   : > { %v7773_v48 = vpop.f32.mrf.mxu1 }
0x15ab   : > { %v8183_v1 = vadd.f32 %v8167_v42, %v8058_v49  ;;  %v7789_v7 = vadd.f32 %v7773_v48, %v7678_v31  ;;  %v7892_v34 = vpop.f32.mrf.mxu2  ;;  %v8113_v49 = vpop.permute.xlu1 %8112 }
0x15ad   : > { %v8191_v56 = vmax.f32 %v8183_v1, 0.0  ;;  %v7900_v29 = vadd.f32 %v7884_v52, %v7789_v7 }
0x15af   : > { %8200 = vst.msk [vmem:[%s12434_s22 + $0x10] sm:$0xff] %vm8197_vm2, %v8191_v56  ;;  %v8011_v4 = vadd.f32 %v7995_v3, %v7900_v29 }
0x15b1   : > { %v8059_v16 = vadd.f32 %v12422_v24, %v8011_v4  ;;  %v8173_v24 = vpop.f32.mrf.mxu0  ;;  %v8000_v36 = vpop.f32.mrf.mxu3 }
0x15b2   : > { %v7776_v54 = vpop.f32.mrf.mxu1  ;;  %v8174_v5 = vadd.f32 %v8173_v24, %v8108_v33 }
0x15b3   : > { %v8184_v12 = vadd.f32 %v8169_v62, %v8059_v16  ;;  %v7790_v20 = vadd.f32 %v7776_v54, %v7679_v41  ;;  %v7894_v7 = vpop.f32.mrf.mxu2 }
0x15b5   : > { %v8192_v57 = vmax.f32 %v8184_v12, 0.0  ;;  %v7901_v13 = vadd.f32 %v7887_v28, %v7790_v20  ;;  %v8118_v28 = vpop.permute.xlu2 %8117 }
0x15b7   : > { %8201 = vst.msk [vmem:[%s12434_s22 + $0x18] sm:$0xff] %vm8197_vm2, %v8192_v57  ;;  %v8012_v38 = vadd.f32 %v7998_v32, %v7901_v13 }
0x15b9   : > { %v8060_v14 = vadd.f32 %v12427_v6, %v8012_v38  ;;  %v7460_v6 = vadd.f32 %v12411_v47, %v7349_v18  ;;  %v8176_v27 = vpop.f32.mrf.mxu0  ;;  %v8003_v0 = vpop.f32.mrf.mxu3 }
0x15ba   : > { %v7778_v40 = vpop.f32.mrf.mxu1  ;;  %v8177_v47 = vadd.f32 %v8176_v27, %v8113_v49 }
0x15bb   : > { %v8185_v61 = vadd.f32 %v8172_v58, %v8060_v14  ;;  %v7791_v17 = vadd.f32 %v7778_v40, %v7680_v51  ;;  %v7571_v9 = vadd.f32 %v12415_v60, %v7460_v6 }
0x15bd   : > { %v8193_v35 = vmax.f32 %v8185_v61, 0.0  ;;  %v7902_v52 = vadd.f32 %v7889_v53, %v7791_v17  ;;  %v7682_v44 = vadd.f32 %v12409_v45, %v7571_v9 }
0x15bf   : > { %8202 = vst.msk [vmem:[%s12434_s22 + $0x20] sm:$0xff] %vm8197_vm2, %v8193_v35  ;;  %v8013_v46 = vadd.f32 %v8000_v36, %v7902_v52 }
0x15c1   : > { %v8061_v63 = vadd.f32 %v12425_v50, %v8013_v46  ;;  %v8178_v60 = vpop.f32.mrf.mxu0  ;;  %v8005_v56 = vpop.f32.mrf.mxu3 }
0x15c2   : > { %v7781_v30 = vpop.f32.mrf.mxu1  ;;  %v8179_v11 = vadd.f32 %v8178_v60, %v8118_v28 }
0x15c3   : > { %v8186_v43 = vadd.f32 %v8174_v5, %v8061_v63  ;;  %v7792_v3 = vadd.f32 %v7781_v30, %v7681_v2 }
0x15c5   : > { %v8194_v15 = vmax.f32 %v8186_v43, 0.0  ;;  %v7903_v42 = vadd.f32 %v7892_v34, %v7792_v3 }
0x15c7   : > { %8203 = vst.msk [vmem:[%s12434_s22 + $0x28] sm:$0xff] %vm8197_vm2, %v8194_v15  ;;  %v8014_v21 = vadd.f32 %v8003_v0, %v7903_v42 }
0x15c9   : > { %v8062_v50 = vadd.f32 %v12430_v26, %v8014_v21 }
0x15ca   : > { %v7783_v31 = vpop.f32.mrf.mxu1 }
0x15cb   : > { %v8187_v48 = vadd.f32 %v8177_v47, %v8062_v50  ;;  %v7793_v1 = vadd.f32 %v7783_v31, %v7682_v44 }
0x15cd   : > { %v8195_v37 = vmax.f32 %v8187_v48, 0.0  ;;  %v7904_v23 = vadd.f32 %v7894_v7, %v7793_v1 }
0x15cf   : > { %8204 = vst.msk [vmem:[%s12434_s22 + $0x30] sm:$0xff] %vm8197_vm2, %v8195_v37  ;;  %v8015_v29 = vadd.f32 %v8005_v56, %v7904_v23 }
0x15d1   : > { %v8063_v4 = vadd.f32 %v12437_v55, %v8015_v29 }
0x15d3   : > { %v8188_v22 = vadd.f32 %v8179_v11, %v8063_v4 }
0x15d5   : > { %v8196_v26 = vmax.f32 %v8188_v22, 0.0 }
0x15d7   : > { %8205 = vst.msk [vmem:[%s12434_s22 + $0x38] sm:$0xff] %vm8197_vm2, %v8196_v26 }
0x15d8 PF: > { %s12607_s26 = sld [smem:[#allocation29_spill]] }
0x15de   : > { %s84_s22 = sadd.s32 1, %s12607_s26  }
0x15df   : > { %p81_p2 = scmp.ge.s32.totalorder %s84_s22, 4  }
0x15e1   :  { %83 = sbr.rel (!%p81_p2) target bundleno = 69 (0x45), region = 346 }
0x15e6   :  { %8275 = vsyncpa [#allocation3], 1 }
0x15e7   :  { %8277 = vsyncpa [#allocation3 + $0x1], 1 }
0x15e8   :  { %8278 = vsyncpa [#allocation5], 1 }

</bundles_post_ra>
